<compile_context>
chip_gen: v7x
topology: tpu7x:2x2x1
jax: 0.10.0
libtpu: 0.0.40
codegen_flags: <defaults>
</compile_context>

<pallas_src>
import jax
import jax.numpy as jnp
from jax.experimental import pallas as pl
from jax.experimental.pallas import tpu as pltpu

# ---- static configuration ---------------------------------------------------
N      = 2               # batch
H      = 16              # height
W      = 16              # width
CIN    = 16              # input_c (after _make_divisible(16*1.0, 8))
RATIO  = 6
CEXP   = CIN * RATIO     # expanded_c = 96
COUT   = 16              # out_c
CSQ    = CIN // 4        # squeeze_c = 4
CSQP   = 8               # squeeze channels zero-padded to a sublane group (exact)
K      = 3               # depthwise kernel size
HW     = H * W           # pixels per image = 256
NHW    = N * HW          # lane extent inside the kernel = 512
BN_EPS = 1e-3

CH     = 16              # channel chunk size for the expanded (96-ch) stages
NCHUNK = CEXP // CH      # 6

assert W & (W - 1) == 0 and HW & (HW - 1) == 0, "bit-mask coords need powers of two"
assert CEXP % CH == 0 and CH % 8 == 0


def _silu(v):
    return v * jax.nn.sigmoid(v)


# ---- the Pallas kernel (single grid step, whole batch) -----------------------
def inverted_residual_kernel(x_ref, w_exp_ref, w_dw_ref, shifts_ref,
                             w_fc1_ref, w_fc2_ref, w_proj_ref,
                             out_ref, h2_ref, gates_ref):
    # Pixels live on the lane axis as n*HW + h*W + w; coordinate masks built once.
    lane = jax.lax.broadcasted_iota(jnp.int32, (1, NHW), 1)
    wpos = jnp.bitwise_and(lane, W - 1)        # w coordinate   (W is a power of 2)
    pix  = jnp.bitwise_and(lane, HW - 1)       # position within its image
    col_ok_l = wpos >= 1
    col_ok_r = wpos <= W - 2
    row_ok_u = pix >= W
    row_ok_d = pix < HW - W

    x = x_ref[...]                                            # (CIN, NHW)

    # ---- stage 1+2: expand 1x1 + SiLU + depthwise 3x3 + SiLU, channel-chunked
    def chunk_a(c, carry):
        r = pl.multiple_of(c * CH, CH)
        wexp_c = w_exp_ref[pl.ds(r, CH), :]                   # (CH, CIN)
        wdw_c  = w_dw_ref[pl.ds(r, CH), :]                    # (CH, K*K)
        b1_c   = shifts_ref[pl.ds(r, CH), 0:1]                # (CH, 1)
        b2_c   = shifts_ref[pl.ds(r, CH), 1:2]                # (CH, 1)

        h1c = _silu(jnp.dot(wexp_c, x, preferred_element_type=jnp.float32) + b1_c)

        # column taps: left / right neighbours, zeroed at the row edges
        left  = jnp.where(col_ok_l, pltpu.roll(h1c, shift=1,       axis=1), 0.0)
        right = jnp.where(col_ok_r, pltpu.roll(h1c, shift=NHW - 1, axis=1), 0.0)

        def row_filter(ky):                 # 1-D conv along W for kernel row ky
            return (left  * wdw_c[:, ky * K + 0:ky * K + 1]
                    + h1c * wdw_c[:, ky * K + 1:ky * K + 2]
                    + right * wdw_c[:, ky * K + 2:ky * K + 3])

        # centre row first, then upper / lower rows one at a time (short live ranges)
        acc = row_filter(1)
        acc = acc + jnp.where(row_ok_u,
                              pltpu.roll(row_filter(0), shift=W, axis=1), 0.0)
        acc = acc + jnp.where(row_ok_d,
                              pltpu.roll(row_filter(2), shift=NHW - W, axis=1), 0.0)
        h2_ref[pl.ds(r, CH), :] = _silu(acc + b2_c)
        return carry

    jax.lax.fori_loop(0, NCHUNK, chunk_a, 0, unroll=True)

    # ---- stage 3: Squeeze-Excitation gates, batched over samples
    h2 = h2_ref[...]                                          # (CEXP, NHW)
    col_idx = jax.lax.broadcasted_iota(jnp.int32, (CEXP, N), 1)
    pooled = jnp.zeros((CEXP, N), jnp.float32)
    for n in range(N):                                        # per-sample global avg pool
        s_n = jnp.sum(h2[:, n * HW:(n + 1) * HW], axis=1, keepdims=True) * (1.0 / HW)
        pooled = jnp.where(col_idx == n, s_n, pooled)         # (CEXP, N)

    b_fc1 = shifts_ref[0:CSQP, 3:4]                           # (CSQP, 1), rows >= CSQ are 0
    b_fc2 = shifts_ref[:, 2:3]                                # (CEXP, 1)
    t = _silu(jnp.dot(w_fc1_ref[...], pooled,
                      preferred_element_type=jnp.float32) + b_fc1)      # (CSQP, N)
    gates_ref[...] = jax.nn.sigmoid(
        jnp.dot(w_fc2_ref[...], t, preferred_element_type=jnp.float32) + b_fc2)

    # ---- stage 3b+4: SE scale + project 1x1, channel-chunked with MXU accumulation
    def chunk_b(c, acc):
        r = pl.multiple_of(c * CH, CH)
        g_c = gates_ref[pl.ds(r, CH), :]                      # (CH, N)
        sc = g_c[:, 0:1]
        for n in range(1, N):                                 # per-sample gate select
            sc = jnp.where(lane >= n * HW, g_c[:, n:n + 1], sc)
        h2s = h2_ref[pl.ds(r, CH), :] * sc                    # (CH, NHW)
        return acc + jnp.dot(w_proj_ref[c], h2s,
                             preferred_element_type=jnp.float32)

    proj = jax.lax.fori_loop(0, NCHUNK, chunk_b,
                             jnp.zeros((COUT, NHW), jnp.float32), unroll=True)

    # ---- stage 5: BN3 shift, DropPath=identity (eval), residual; lane-dense store
    out_ref[...] = proj + shifts_ref[0:COUT, 4:5] + x_ref[...]


# ---- wrapper -----------------------------------------------------------------
def inverted_residual(x_nchw, params):
    (w_exp, bn1_s, bn1_b, w_dw, bn2_s, bn2_b,
     w_fc1, b_fc1, w_fc2, b_fc2, w_proj, bn3_s, bn3_b) = params

    # channels-on-sublanes / pixels-on-lanes layout: (C, N*H*W)
    x_cp = jnp.transpose(x_nchw.astype(jnp.float32), (1, 0, 2, 3)).reshape(CIN, NHW)

    # fold eval-mode BN scales into the conv weights; (C_out, C_in) orientation
    w_exp_t  = (w_exp * bn1_s).T                                        # (CEXP, CIN)
    w_dw_t   = jnp.transpose(w_dw * bn2_s[0], (2, 0, 1)).reshape(CEXP, K * K)
    w_proj_t = (w_proj * bn3_s).T                                       # (COUT, CEXP)
    w_proj_ck = w_proj_t.reshape(COUT, NCHUNK, CH).transpose(1, 0, 2)   # (NCHUNK, COUT, CH)

    # SE weights with the squeeze dim zero-padded CSQ -> CSQP (padding is exact)
    w_fc1_t = jnp.zeros((CSQP, CEXP), jnp.float32).at[:CSQ, :].set(w_fc1.T)
    w_fc2_t = jnp.zeros((CEXP, CSQP), jnp.float32).at[:, :CSQ].set(w_fc2.T)

    # pack all per-channel shifts / biases into a single (CEXP, 5) operand:
    # col0=bn1 shift, col1=bn2 shift, col2=fc2 bias, col3=fc1 bias (padded),
    # col4=bn3 shift (padded)
    pad_to = lambda v, n: jnp.zeros((n,), jnp.float32).at[:v.shape[0]].set(v)
    shifts = jnp.stack([bn1_b[0], bn2_b[0], b_fc2[0],
                        pad_to(b_fc1[0], CEXP), pad_to(bn3_b[0], CEXP)], axis=1)

    full = lambda *shape: pl.BlockSpec(shape, lambda i: (0,) * len(shape))
    out = pl.pallas_call(
        inverted_residual_kernel,
        out_shape=jax.ShapeDtypeStruct((COUT, NHW), jnp.float32),
        grid_spec=pltpu.PrefetchScalarGridSpec(
            num_scalar_prefetch=0,
            grid=(1,),
            in_specs=[
                full(CIN, NHW),            # x                        (16, 512)
                full(CEXP, CIN),           # expand weight (BN folded)(96, 16)
                full(CEXP, K * K),         # depthwise weight (folded)(96, 9)
                full(CEXP, 5),             # packed shifts / biases   (96, 5)
                full(CSQP, CEXP),          # SE fc1 weight (padded)   (8, 96)
                full(CEXP, CSQP),          # SE fc2 weight (padded)   (96, 8)
                full(NCHUNK, COUT, CH),    # project weight, pre-chunked (6, 16, 16)
            ],
            out_specs=pl.BlockSpec((COUT, NHW), lambda i: (0, 0)),
            scratch_shapes=[
                pltpu.VMEM((CEXP, NHW), jnp.float32),   # h2 (post-depthwise activations)
                pltpu.VMEM((CEXP, N), jnp.float32),     # SE gates
            ],
        ),
        compiler_params=pltpu.CompilerParams(
            dimension_semantics=("arbitrary",)),
    )(x_cp, w_exp_t, w_dw_t, shifts, w_fc1_t, w_fc2_t, w_proj_ck)

    # (COUT, N*H*W) -> NCHW
    return jnp.transpose(out.reshape(COUT, N, H, W), (1, 0, 2, 3))


# ---- parameter construction (deterministic, BN expressed as scale/shift) -----
def make_params(key):
    ks = jax.random.split(key, 16)
    u = lambda k, shape, s=0.1: (jax.random.normal(k, shape, jnp.float32) * s)

    def bn_fold(kg, kb, km, kv, c):
        gamma = 1.0 + u(kg, (c,), 0.05)
        beta = u(kb, (c,), 0.05)
        mean = u(km, (c,), 0.05)
        var = 0.5 + jax.random.uniform(kv, (c,), jnp.float32)    # positive
        scale = gamma / jnp.sqrt(var + BN_EPS)
        shift = beta - mean * scale
        return scale.reshape(1, c), shift.reshape(1, c)

    w_exp = u(ks[0], (CIN, CEXP))                # Conv2d(CIN->CEXP, 1x1), bias=False
    bn1_s, bn1_b = bn_fold(ks[1], ks[2], ks[3], ks[4], CEXP)
    w_dw = u(ks[5], (K, K, CEXP))                # depthwise Conv2d(groups=CEXP), bias=False
    bn2_s, bn2_b = bn_fold(ks[6], ks[7], ks[8], ks[9], CEXP)
    w_fc1 = u(ks[10], (CEXP, CSQ))               # SE fc1 (1x1 conv, with bias)
    b_fc1 = u(ks[11], (1, CSQ))
    w_fc2 = u(ks[12], (CSQ, CEXP))               # SE fc2 (1x1 conv, with bias)
    b_fc2 = u(ks[13], (1, CEXP))
    w_proj = u(ks[14], (CEXP, COUT))             # Conv2d(CEXP->COUT, 1x1), bias=False
    bn3_s, bn3_b = bn_fold(*jax.random.split(ks[15], 4), COUT)

    return (w_exp, bn1_s, bn1_b, w_dw, bn2_s, bn2_b,
            w_fc1, b_fc1, w_fc2, b_fc2, w_proj, bn3_s, bn3_b)


# ---- pure-JAX reference for verification -------------------------------------
def reference(x_nchw, params):
    (w_exp, bn1_s, bn1_b, w_dw, bn2_s, bn2_b,
     w_fc1, b_fc1, w_fc2, b_fc2, w_proj, bn3_s, bn3_b) = params
    x = jnp.transpose(x_nchw, (0, 2, 3, 1)).astype(jnp.float32)  # NHWC
    h1 = _silu(jnp.einsum('nhwc,cd->nhwd', x, w_exp) * bn1_s[0] + bn1_b[0])
    padded = jnp.pad(h1, ((0, 0), (1, 1), (1, 1), (0, 0)))
    acc = jnp.zeros_like(h1)
    for ky in range(K):
        for kx in range(K):
            acc = acc + padded[:, ky:ky + H, kx:kx + W, :] * w_dw[ky, kx]
    h2 = _silu(acc * bn2_s[0] + bn2_b[0])
    s = jnp.mean(h2, axis=(1, 2), keepdims=True)
    s = _silu(jnp.einsum('nhwc,cd->nhwd', s, w_fc1) + b_fc1[0])
    s = jax.nn.sigmoid(jnp.einsum('nhwc,cd->nhwd', s, w_fc2) + b_fc2[0])
    h2 = h2 * s
    h3 = jnp.einsum('nhwc,cd->nhwd', h2, w_proj) * bn3_s[0] + bn3_b[0]
    h3 = h3 + x                                                  # DropPath = id (eval)
    return jnp.transpose(h3, (0, 3, 1, 2))


if __name__ == "__main__":
    key = jax.random.PRNGKey(0)
    kx, kp = jax.random.split(key)
    x = jax.random.normal(kx, (N, CIN, H, W), jnp.float32)   # NCHW, like PyTorch
    params = make_params(kp)

    out = jax.block_until_ready(inverted_residual(x, params))
    ref = jax.block_until_ready(reference(x, params))

    assert out.shape == (N, COUT, H, W), out.shape
    assert jnp.allclose(out, ref, atol=2e-4, rtol=2e-4), float(jnp.max(jnp.abs(out - ref)))
    print("KERNEL_OK")
</pallas_src>

<mosaic_0001>
module attributes {stable_mosaic.version = 11 : i64} {
  func.func @inverted_residual_kernel(%arg0: i32, %arg1: memref<16x512xf32, #tpu.memory_space<vmem>>, %arg2: memref<96x16xf32, #tpu.memory_space<vmem>>, %arg3: memref<96x9xf32, #tpu.memory_space<vmem>>, %arg4: memref<96x5xf32, #tpu.memory_space<vmem>>, %arg5: memref<8x96xf32, #tpu.memory_space<vmem>>, %arg6: memref<96x8xf32, #tpu.memory_space<vmem>>, %arg7: memref<6x16x16xf32, #tpu.memory_space<vmem>>, %arg8: memref<16x512xf32, #tpu.memory_space<vmem>>, %arg9: memref<96x512xf32, #tpu.memory_space<vmem>>, %arg10: memref<96x2xf32, #tpu.memory_space<vmem>>) attributes {dimension_semantics = [#tpu.dimension_semantics<arbitrary>], iteration_bounds = array<i64: 1>, scalar_prefetch = 0 : i64, scratch_operands = 2 : i64, tpu.core_type = #tpu.core_type<tc>, window_params = [{pipeline_mode = #tpu.pipeline_mode<synchronous>, transform_indices = @transform_0, window_bounds = array<i64: 16, 512>}, {pipeline_mode = #tpu.pipeline_mode<synchronous>, transform_indices = @transform_1, window_bounds = array<i64: 96, 16>}, {pipeline_mode = #tpu.pipeline_mode<synchronous>, transform_indices = @transform_2, window_bounds = array<i64: 96, 9>}, {pipeline_mode = #tpu.pipeline_mode<synchronous>, transform_indices = @transform_3, window_bounds = array<i64: 96, 5>}, {pipeline_mode = #tpu.pipeline_mode<synchronous>, transform_indices = @transform_4, window_bounds = array<i64: 8, 96>}, {pipeline_mode = #tpu.pipeline_mode<synchronous>, transform_indices = @transform_5, window_bounds = array<i64: 96, 8>}, {pipeline_mode = #tpu.pipeline_mode<synchronous>, transform_indices = @transform_6, window_bounds = array<i64: 6, 16, 16>}, {pipeline_mode = #tpu.pipeline_mode<synchronous>, transform_indices = @transform_7, window_bounds = array<i64: 16, 512>}]} {
    %0 = tpu.iota {dimensions = array<i32: 1>} : vector<1x512xi32>
    %c15_i32 = arith.constant 15 : i32
    %1 = vector.broadcast %c15_i32 : i32 to vector<1x512xi32>
    %2 = arith.andi %0, %1 : vector<1x512xi32>
    %c255_i32 = arith.constant 255 : i32
    %3 = vector.broadcast %c255_i32 : i32 to vector<1x512xi32>
    %4 = arith.andi %0, %3 : vector<1x512xi32>
    %c1_i32 = arith.constant 1 : i32
    %5 = vector.broadcast %c1_i32 : i32 to vector<1x512xi32>
    %6 = arith.cmpi sge, %2, %5 : vector<1x512xi32>
    %c14_i32 = arith.constant 14 : i32
    %7 = vector.broadcast %c14_i32 : i32 to vector<1x512xi32>
    %8 = arith.cmpi sle, %2, %7 : vector<1x512xi32>
    %c16_i32 = arith.constant 16 : i32
    %9 = vector.broadcast %c16_i32 : i32 to vector<1x512xi32>
    %10 = arith.cmpi sge, %4, %9 : vector<1x512xi32>
    %c240_i32 = arith.constant 240 : i32
    %11 = vector.broadcast %c240_i32 : i32 to vector<1x512xi32>
    %12 = arith.cmpi slt, %4, %11 : vector<1x512xi32>
    %c0 = arith.constant 0 : index
    %c0_0 = arith.constant 0 : index
    %13 = vector.load %arg1[%c0, %c0_0] : memref<16x512xf32, #tpu.memory_space<vmem>>, vector<16x512xf32>
    %c0_i32 = arith.constant 0 : i32
    %c16_i32_1 = arith.constant 16 : i32
    %14 = arith.muli %c0_i32, %c16_i32_1 : i32
    %15 = tpu.assume_multiple %14, 16 : i32
    %16 = arith.index_cast %15 : i32 to index
    %c0_2 = arith.constant 0 : index
    %17 = vector.load %arg2[%16, %c0_2] : memref<96x16xf32, #tpu.memory_space<vmem>>, vector<16x16xf32>
    %18 = arith.index_cast %15 : i32 to index
    %c0_3 = arith.constant 0 : index
    %19 = vector.load %arg3[%18, %c0_3] : memref<96x9xf32, #tpu.memory_space<vmem>>, vector<16x9xf32>
    %20 = arith.index_cast %15 : i32 to index
    %c0_4 = arith.constant 0 : index
    %21 = vector.load %arg4[%20, %c0_4] : memref<96x5xf32, #tpu.memory_space<vmem>>, vector<16x1xf32>
    %22 = arith.index_cast %15 : i32 to index
    %c1 = arith.constant 1 : index
    %23 = vector.load %arg4[%22, %c1] : memref<96x5xf32, #tpu.memory_space<vmem>>, vector<16x1xf32>
    %cst = arith.constant dense<0.000000e+00> : vector<16x512xf32>
    %24 = tpu.matmul %17, %13, %cst {dimension_numbers = #tpu.dot_dimension_numbers<[1], [0], [0], [1], [0, 0, 1, 1], [], []>} : vector<16x16xf32>, vector<16x512xf32>, vector<16x512xf32> -> vector<16x512xf32>
    %25 = vector.broadcast %21 : vector<16x1xf32> to vector<16x512xf32>
    %26 = arith.addf %24, %25 : vector<16x512xf32>
    %27 = arith.negf %26 : vector<16x512xf32>
    %28 = math.exp %27 : vector<16x512xf32>
    %cst_5 = arith.constant 1.000000e+00 : f32
    %29 = vector.broadcast %cst_5 : f32 to vector<16x512xf32>
    %30 = arith.addf %29, %28 : vector<16x512xf32>
    %31 = arith.divf %29, %30 : vector<16x512xf32>
    %32 = arith.mulf %26, %31 : vector<16x512xf32>
    %c1_i32_6 = arith.constant 1 : i32
    %33 = tpu.dynamic_rotate %32 by %c1_i32_6 dim 1 : vector<16x512xf32>, i32 -> vector<16x512xf32>
    %cst_7 = arith.constant 0.000000e+00 : f32
    %34 = vector.shape_cast %6 : vector<1x512xi1> to vector<1x512xi1>
    %35 = vector.broadcast %34 : vector<1x512xi1> to vector<16x512xi1>
    %36 = vector.broadcast %cst_7 : f32 to vector<16x512xf32>
    %37 = arith.select %35, %33, %36 : vector<16x512xi1>, vector<16x512xf32>
    %c511_i32 = arith.constant 511 : i32
    %38 = tpu.dynamic_rotate %32 by %c511_i32 dim 1 : vector<16x512xf32>, i32 -> vector<16x512xf32>
    %cst_8 = arith.constant 0.000000e+00 : f32
    %39 = vector.shape_cast %8 : vector<1x512xi1> to vector<1x512xi1>
    %40 = vector.broadcast %39 : vector<1x512xi1> to vector<16x512xi1>
    %41 = vector.broadcast %cst_8 : f32 to vector<16x512xf32>
    %42 = arith.select %40, %38, %41 : vector<16x512xi1>, vector<16x512xf32>
    %43 = vector.extract_strided_slice %19 {offsets = [0, 3], sizes = [16, 1], strides = [1, 1]} : vector<16x9xf32> to vector<16x1xf32>
    %44 = vector.broadcast %43 : vector<16x1xf32> to vector<16x512xf32>
    %45 = arith.mulf %37, %44 : vector<16x512xf32>
    %46 = vector.extract_strided_slice %19 {offsets = [0, 4], sizes = [16, 1], strides = [1, 1]} : vector<16x9xf32> to vector<16x1xf32>
    %47 = vector.broadcast %46 : vector<16x1xf32> to vector<16x512xf32>
    %48 = arith.mulf %32, %47 : vector<16x512xf32>
    %49 = arith.addf %45, %48 : vector<16x512xf32>
    %50 = vector.extract_strided_slice %19 {offsets = [0, 5], sizes = [16, 1], strides = [1, 1]} : vector<16x9xf32> to vector<16x1xf32>
    %51 = vector.broadcast %50 : vector<16x1xf32> to vector<16x512xf32>
    %52 = arith.mulf %42, %51 : vector<16x512xf32>
    %53 = arith.addf %49, %52 : vector<16x512xf32>
    %54 = vector.extract_strided_slice %19 {offsets = [0, 0], sizes = [16, 1], strides = [1, 1]} : vector<16x9xf32> to vector<16x1xf32>
    %55 = vector.broadcast %54 : vector<16x1xf32> to vector<16x512xf32>
    %56 = arith.mulf %37, %55 : vector<16x512xf32>
    %57 = vector.extract_strided_slice %19 {offsets = [0, 1], sizes = [16, 1], strides = [1, 1]} : vector<16x9xf32> to vector<16x1xf32>
    %58 = vector.broadcast %57 : vector<16x1xf32> to vector<16x512xf32>
    %59 = arith.mulf %32, %58 : vector<16x512xf32>
    %60 = arith.addf %56, %59 : vector<16x512xf32>
    %61 = vector.extract_strided_slice %19 {offsets = [0, 2], sizes = [16, 1], strides = [1, 1]} : vector<16x9xf32> to vector<16x1xf32>
    %62 = vector.broadcast %61 : vector<16x1xf32> to vector<16x512xf32>
    %63 = arith.mulf %42, %62 : vector<16x512xf32>
    %64 = arith.addf %60, %63 : vector<16x512xf32>
    %c16_i32_9 = arith.constant 16 : i32
    %65 = tpu.dynamic_rotate %64 by %c16_i32_9 dim 1 : vector<16x512xf32>, i32 -> vector<16x512xf32>
    %cst_10 = arith.constant 0.000000e+00 : f32
    %66 = vector.shape_cast %10 : vector<1x512xi1> to vector<1x512xi1>
    %67 = vector.broadcast %66 : vector<1x512xi1> to vector<16x512xi1>
    %68 = vector.broadcast %cst_10 : f32 to vector<16x512xf32>
    %69 = arith.select %67, %65, %68 : vector<16x512xi1>, vector<16x512xf32>
    %70 = arith.addf %53, %69 : vector<16x512xf32>
    %71 = vector.extract_strided_slice %19 {offsets = [0, 6], sizes = [16, 1], strides = [1, 1]} : vector<16x9xf32> to vector<16x1xf32>
    %72 = vector.broadcast %71 : vector<16x1xf32> to vector<16x512xf32>
    %73 = arith.mulf %37, %72 : vector<16x512xf32>
    %74 = vector.extract_strided_slice %19 {offsets = [0, 7], sizes = [16, 1], strides = [1, 1]} : vector<16x9xf32> to vector<16x1xf32>
    %75 = vector.broadcast %74 : vector<16x1xf32> to vector<16x512xf32>
    %76 = arith.mulf %32, %75 : vector<16x512xf32>
    %77 = arith.addf %73, %76 : vector<16x512xf32>
    %78 = vector.extract_strided_slice %19 {offsets = [0, 8], sizes = [16, 1], strides = [1, 1]} : vector<16x9xf32> to vector<16x1xf32>
    %79 = vector.broadcast %78 : vector<16x1xf32> to vector<16x512xf32>
    %80 = arith.mulf %42, %79 : vector<16x512xf32>
    %81 = arith.addf %77, %80 : vector<16x512xf32>
    %c496_i32 = arith.constant 496 : i32
    %82 = tpu.dynamic_rotate %81 by %c496_i32 dim 1 : vector<16x512xf32>, i32 -> vector<16x512xf32>
    %cst_11 = arith.constant 0.000000e+00 : f32
    %83 = vector.shape_cast %12 : vector<1x512xi1> to vector<1x512xi1>
    %84 = vector.broadcast %83 : vector<1x512xi1> to vector<16x512xi1>
    %85 = vector.broadcast %cst_11 : f32 to vector<16x512xf32>
    %86 = arith.select %84, %82, %85 : vector<16x512xi1>, vector<16x512xf32>
    %87 = arith.addf %70, %86 : vector<16x512xf32>
    %88 = vector.broadcast %23 : vector<16x1xf32> to vector<16x512xf32>
    %89 = arith.addf %87, %88 : vector<16x512xf32>
    %90 = arith.negf %89 : vector<16x512xf32>
    %91 = math.exp %90 : vector<16x512xf32>
    %cst_12 = arith.constant 1.000000e+00 : f32
    %92 = vector.broadcast %cst_12 : f32 to vector<16x512xf32>
    %93 = arith.addf %92, %91 : vector<16x512xf32>
    %94 = arith.divf %92, %93 : vector<16x512xf32>
    %95 = arith.mulf %89, %94 : vector<16x512xf32>
    %96 = arith.index_cast %15 : i32 to index
    %c0_13 = arith.constant 0 : index
    %97 = vector.load %arg9[%96, %c0_13] : memref<96x512xf32, #tpu.memory_space<vmem>>, vector<16x512xf32>
    tpu.vector_store %arg9[%96, %c0_13], %95 {strides = array<i32>} : memref<96x512xf32, #tpu.memory_space<vmem>>, vector<16x512xf32>,
    %c1_i32_14 = arith.constant 1 : i32
    %c16_i32_15 = arith.constant 16 : i32
    %98 = arith.muli %c1_i32_14, %c16_i32_15 : i32
    %99 = tpu.assume_multiple %98, 16 : i32
    %100 = arith.index_cast %99 : i32 to index
    %c0_16 = arith.constant 0 : index
    %101 = vector.load %arg2[%100, %c0_16] : memref<96x16xf32, #tpu.memory_space<vmem>>, vector<16x16xf32>
    %102 = arith.index_cast %99 : i32 to index
    %c0_17 = arith.constant 0 : index
    %103 = vector.load %arg3[%102, %c0_17] : memref<96x9xf32, #tpu.memory_space<vmem>>, vector<16x9xf32>
    %104 = arith.index_cast %99 : i32 to index
    %c0_18 = arith.constant 0 : index
    %105 = vector.load %arg4[%104, %c0_18] : memref<96x5xf32, #tpu.memory_space<vmem>>, vector<16x1xf32>
    %106 = arith.index_cast %99 : i32 to index
    %c1_19 = arith.constant 1 : index
    %107 = vector.load %arg4[%106, %c1_19] : memref<96x5xf32, #tpu.memory_space<vmem>>, vector<16x1xf32>
    %cst_20 = arith.constant dense<0.000000e+00> : vector<16x512xf32>
    %108 = tpu.matmul %101, %13, %cst_20 {dimension_numbers = #tpu.dot_dimension_numbers<[1], [0], [0], [1], [0, 0, 1, 1], [], []>} : vector<16x16xf32>, vector<16x512xf32>, vector<16x512xf32> -> vector<16x512xf32>
    %109 = vector.broadcast %105 : vector<16x1xf32> to vector<16x512xf32>
    %110 = arith.addf %108, %109 : vector<16x512xf32>
    %111 = arith.negf %110 : vector<16x512xf32>
    %112 = math.exp %111 : vector<16x512xf32>
    %cst_21 = arith.constant 1.000000e+00 : f32
    %113 = vector.broadcast %cst_21 : f32 to vector<16x512xf32>
    %114 = arith.addf %113, %112 : vector<16x512xf32>
    %115 = arith.divf %113, %114 : vector<16x512xf32>
    %116 = arith.mulf %110, %115 : vector<16x512xf32>
    %c1_i32_22 = arith.constant 1 : i32
    %117 = tpu.dynamic_rotate %116 by %c1_i32_22 dim 1 : vector<16x512xf32>, i32 -> vector<16x512xf32>
    %cst_23 = arith.constant 0.000000e+00 : f32
    %118 = vector.shape_cast %6 : vector<1x512xi1> to vector<1x512xi1>
    %119 = vector.broadcast %118 : vector<1x512xi1> to vector<16x512xi1>
    %120 = vector.broadcast %cst_23 : f32 to vector<16x512xf32>
    %121 = arith.select %119, %117, %120 : vector<16x512xi1>, vector<16x512xf32>
    %c511_i32_24 = arith.constant 511 : i32
    %122 = tpu.dynamic_rotate %116 by %c511_i32_24 dim 1 : vector<16x512xf32>, i32 -> vector<16x512xf32>
    %cst_25 = arith.constant 0.000000e+00 : f32
    %123 = vector.shape_cast %8 : vector<1x512xi1> to vector<1x512xi1>
    %124 = vector.broadcast %123 : vector<1x512xi1> to vector<16x512xi1>
    %125 = vector.broadcast %cst_25 : f32 to vector<16x512xf32>
    %126 = arith.select %124, %122, %125 : vector<16x512xi1>, vector<16x512xf32>
    %127 = vector.extract_strided_slice %103 {offsets = [0, 3], sizes = [16, 1], strides = [1, 1]} : vector<16x9xf32> to vector<16x1xf32>
    %128 = vector.broadcast %127 : vector<16x1xf32> to vector<16x512xf32>
    %129 = arith.mulf %121, %128 : vector<16x512xf32>
    %130 = vector.extract_strided_slice %103 {offsets = [0, 4], sizes = [16, 1], strides = [1, 1]} : vector<16x9xf32> to vector<16x1xf32>
    %131 = vector.broadcast %130 : vector<16x1xf32> to vector<16x512xf32>
    %132 = arith.mulf %116, %131 : vector<16x512xf32>
    %133 = arith.addf %129, %132 : vector<16x512xf32>
    %134 = vector.extract_strided_slice %103 {offsets = [0, 5], sizes = [16, 1], strides = [1, 1]} : vector<16x9xf32> to vector<16x1xf32>
    %135 = vector.broadcast %134 : vector<16x1xf32> to vector<16x512xf32>
    %136 = arith.mulf %126, %135 : vector<16x512xf32>
    %137 = arith.addf %133, %136 : vector<16x512xf32>
    %138 = vector.extract_strided_slice %103 {offsets = [0, 0], sizes = [16, 1], strides = [1, 1]} : vector<16x9xf32> to vector<16x1xf32>
    %139 = vector.broadcast %138 : vector<16x1xf32> to vector<16x512xf32>
    %140 = arith.mulf %121, %139 : vector<16x512xf32>
    %141 = vector.extract_strided_slice %103 {offsets = [0, 1], sizes = [16, 1], strides = [1, 1]} : vector<16x9xf32> to vector<16x1xf32>
    %142 = vector.broadcast %141 : vector<16x1xf32> to vector<16x512xf32>
    %143 = arith.mulf %116, %142 : vector<16x512xf32>
    %144 = arith.addf %140, %143 : vector<16x512xf32>
    %145 = vector.extract_strided_slice %103 {offsets = [0, 2], sizes = [16, 1], strides = [1, 1]} : vector<16x9xf32> to vector<16x1xf32>
    %146 = vector.broadcast %145 : vector<16x1xf32> to vector<16x512xf32>
    %147 = arith.mulf %126, %146 : vector<16x512xf32>
    %148 = arith.addf %144, %147 : vector<16x512xf32>
    %c16_i32_26 = arith.constant 16 : i32
    %149 = tpu.dynamic_rotate %148 by %c16_i32_26 dim 1 : vector<16x512xf32>, i32 -> vector<16x512xf32>
    %cst_27 = arith.constant 0.000000e+00 : f32
    %150 = vector.shape_cast %10 : vector<1x512xi1> to vector<1x512xi1>
    %151 = vector.broadcast %150 : vector<1x512xi1> to vector<16x512xi1>
    %152 = vector.broadcast %cst_27 : f32 to vector<16x512xf32>
    %153 = arith.select %151, %149, %152 : vector<16x512xi1>, vector<16x512xf32>
    %154 = arith.addf %137, %153 : vector<16x512xf32>
    %155 = vector.extract_strided_slice %103 {offsets = [0, 6], sizes = [16, 1], strides = [1, 1]} : vector<16x9xf32> to vector<16x1xf32>
    %156 = vector.broadcast %155 : vector<16x1xf32> to vector<16x512xf32>
    %157 = arith.mulf %121, %156 : vector<16x512xf32>
    %158 = vector.extract_strided_slice %103 {offsets = [0, 7], sizes = [16, 1], strides = [1, 1]} : vector<16x9xf32> to vector<16x1xf32>
    %159 = vector.broadcast %158 : vector<16x1xf32> to vector<16x512xf32>
    %160 = arith.mulf %116, %159 : vector<16x512xf32>
    %161 = arith.addf %157, %160 : vector<16x512xf32>
    %162 = vector.extract_strided_slice %103 {offsets = [0, 8], sizes = [16, 1], strides = [1, 1]} : vector<16x9xf32> to vector<16x1xf32>
    %163 = vector.broadcast %162 : vector<16x1xf32> to vector<16x512xf32>
    %164 = arith.mulf %126, %163 : vector<16x512xf32>
    %165 = arith.addf %161, %164 : vector<16x512xf32>
    %c496_i32_28 = arith.constant 496 : i32
    %166 = tpu.dynamic_rotate %165 by %c496_i32_28 dim 1 : vector<16x512xf32>, i32 -> vector<16x512xf32>
    %cst_29 = arith.constant 0.000000e+00 : f32
    %167 = vector.shape_cast %12 : vector<1x512xi1> to vector<1x512xi1>
    %168 = vector.broadcast %167 : vector<1x512xi1> to vector<16x512xi1>
    %169 = vector.broadcast %cst_29 : f32 to vector<16x512xf32>
    %170 = arith.select %168, %166, %169 : vector<16x512xi1>, vector<16x512xf32>
    %171 = arith.addf %154, %170 : vector<16x512xf32>
    %172 = vector.broadcast %107 : vector<16x1xf32> to vector<16x512xf32>
    %173 = arith.addf %171, %172 : vector<16x512xf32>
    %174 = arith.negf %173 : vector<16x512xf32>
    %175 = math.exp %174 : vector<16x512xf32>
    %cst_30 = arith.constant 1.000000e+00 : f32
    %176 = vector.broadcast %cst_30 : f32 to vector<16x512xf32>
    %177 = arith.addf %176, %175 : vector<16x512xf32>
    %178 = arith.divf %176, %177 : vector<16x512xf32>
    %179 = arith.mulf %173, %178 : vector<16x512xf32>
    %180 = arith.index_cast %99 : i32 to index
    %c0_31 = arith.constant 0 : index
    %181 = vector.load %arg9[%180, %c0_31] : memref<96x512xf32, #tpu.memory_space<vmem>>, vector<16x512xf32>
    tpu.vector_store %arg9[%180, %c0_31], %179 {strides = array<i32>} : memref<96x512xf32, #tpu.memory_space<vmem>>, vector<16x512xf32>,
    %c2_i32 = arith.constant 2 : i32
    %c16_i32_32 = arith.constant 16 : i32
    %182 = arith.muli %c2_i32, %c16_i32_32 : i32
    %183 = tpu.assume_multiple %182, 16 : i32
    %184 = arith.index_cast %183 : i32 to index
    %c0_33 = arith.constant 0 : index
    %185 = vector.load %arg2[%184, %c0_33] : memref<96x16xf32, #tpu.memory_space<vmem>>, vector<16x16xf32>
    %186 = arith.index_cast %183 : i32 to index
    %c0_34 = arith.constant 0 : index
    %187 = vector.load %arg3[%186, %c0_34] : memref<96x9xf32, #tpu.memory_space<vmem>>, vector<16x9xf32>
    %188 = arith.index_cast %183 : i32 to index
    %c0_35 = arith.constant 0 : index
    %189 = vector.load %arg4[%188, %c0_35] : memref<96x5xf32, #tpu.memory_space<vmem>>, vector<16x1xf32>
    %190 = arith.index_cast %183 : i32 to index
    %c1_36 = arith.constant 1 : index
    %191 = vector.load %arg4[%190, %c1_36] : memref<96x5xf32, #tpu.memory_space<vmem>>, vector<16x1xf32>
    %cst_37 = arith.constant dense<0.000000e+00> : vector<16x512xf32>
    %192 = tpu.matmul %185, %13, %cst_37 {dimension_numbers = #tpu.dot_dimension_numbers<[1], [0], [0], [1], [0, 0, 1, 1], [], []>} : vector<16x16xf32>, vector<16x512xf32>, vector<16x512xf32> -> vector<16x512xf32>
    %193 = vector.broadcast %189 : vector<16x1xf32> to vector<16x512xf32>
    %194 = arith.addf %192, %193 : vector<16x512xf32>
    %195 = arith.negf %194 : vector<16x512xf32>
    %196 = math.exp %195 : vector<16x512xf32>
    %cst_38 = arith.constant 1.000000e+00 : f32
    %197 = vector.broadcast %cst_38 : f32 to vector<16x512xf32>
    %198 = arith.addf %197, %196 : vector<16x512xf32>
    %199 = arith.divf %197, %198 : vector<16x512xf32>
    %200 = arith.mulf %194, %199 : vector<16x512xf32>
    %c1_i32_39 = arith.constant 1 : i32
    %201 = tpu.dynamic_rotate %200 by %c1_i32_39 dim 1 : vector<16x512xf32>, i32 -> vector<16x512xf32>
    %cst_40 = arith.constant 0.000000e+00 : f32
    %202 = vector.shape_cast %6 : vector<1x512xi1> to vector<1x512xi1>
    %203 = vector.broadcast %202 : vector<1x512xi1> to vector<16x512xi1>
    %204 = vector.broadcast %cst_40 : f32 to vector<16x512xf32>
    %205 = arith.select %203, %201, %204 : vector<16x512xi1>, vector<16x512xf32>
    %c511_i32_41 = arith.constant 511 : i32
    %206 = tpu.dynamic_rotate %200 by %c511_i32_41 dim 1 : vector<16x512xf32>, i32 -> vector<16x512xf32>
    %cst_42 = arith.constant 0.000000e+00 : f32
    %207 = vector.shape_cast %8 : vector<1x512xi1> to vector<1x512xi1>
    %208 = vector.broadcast %207 : vector<1x512xi1> to vector<16x512xi1>
    %209 = vector.broadcast %cst_42 : f32 to vector<16x512xf32>
    %210 = arith.select %208, %206, %209 : vector<16x512xi1>, vector<16x512xf32>
    %211 = vector.extract_strided_slice %187 {offsets = [0, 3], sizes = [16, 1], strides = [1, 1]} : vector<16x9xf32> to vector<16x1xf32>
    %212 = vector.broadcast %211 : vector<16x1xf32> to vector<16x512xf32>
    %213 = arith.mulf %205, %212 : vector<16x512xf32>
    %214 = vector.extract_strided_slice %187 {offsets = [0, 4], sizes = [16, 1], strides = [1, 1]} : vector<16x9xf32> to vector<16x1xf32>
    %215 = vector.broadcast %214 : vector<16x1xf32> to vector<16x512xf32>
    %216 = arith.mulf %200, %215 : vector<16x512xf32>
    %217 = arith.addf %213, %216 : vector<16x512xf32>
    %218 = vector.extract_strided_slice %187 {offsets = [0, 5], sizes = [16, 1], strides = [1, 1]} : vector<16x9xf32> to vector<16x1xf32>
    %219 = vector.broadcast %218 : vector<16x1xf32> to vector<16x512xf32>
    %220 = arith.mulf %210, %219 : vector<16x512xf32>
    %221 = arith.addf %217, %220 : vector<16x512xf32>
    %222 = vector.extract_strided_slice %187 {offsets = [0, 0], sizes = [16, 1], strides = [1, 1]} : vector<16x9xf32> to vector<16x1xf32>
    %223 = vector.broadcast %222 : vector<16x1xf32> to vector<16x512xf32>
    %224 = arith.mulf %205, %223 : vector<16x512xf32>
    %225 = vector.extract_strided_slice %187 {offsets = [0, 1], sizes = [16, 1], strides = [1, 1]} : vector<16x9xf32> to vector<16x1xf32>
    %226 = vector.broadcast %225 : vector<16x1xf32> to vector<16x512xf32>
    %227 = arith.mulf %200, %226 : vector<16x512xf32>
    %228 = arith.addf %224, %227 : vector<16x512xf32>
    %229 = vector.extract_strided_slice %187 {offsets = [0, 2], sizes = [16, 1], strides = [1, 1]} : vector<16x9xf32> to vector<16x1xf32>
    %230 = vector.broadcast %229 : vector<16x1xf32> to vector<16x512xf32>
    %231 = arith.mulf %210, %230 : vector<16x512xf32>
    %232 = arith.addf %228, %231 : vector<16x512xf32>
    %c16_i32_43 = arith.constant 16 : i32
    %233 = tpu.dynamic_rotate %232 by %c16_i32_43 dim 1 : vector<16x512xf32>, i32 -> vector<16x512xf32>
    %cst_44 = arith.constant 0.000000e+00 : f32
    %234 = vector.shape_cast %10 : vector<1x512xi1> to vector<1x512xi1>
    %235 = vector.broadcast %234 : vector<1x512xi1> to vector<16x512xi1>
    %236 = vector.broadcast %cst_44 : f32 to vector<16x512xf32>
    %237 = arith.select %235, %233, %236 : vector<16x512xi1>, vector<16x512xf32>
    %238 = arith.addf %221, %237 : vector<16x512xf32>
    %239 = vector.extract_strided_slice %187 {offsets = [0, 6], sizes = [16, 1], strides = [1, 1]} : vector<16x9xf32> to vector<16x1xf32>
    %240 = vector.broadcast %239 : vector<16x1xf32> to vector<16x512xf32>
    %241 = arith.mulf %205, %240 : vector<16x512xf32>
    %242 = vector.extract_strided_slice %187 {offsets = [0, 7], sizes = [16, 1], strides = [1, 1]} : vector<16x9xf32> to vector<16x1xf32>
    %243 = vector.broadcast %242 : vector<16x1xf32> to vector<16x512xf32>
    %244 = arith.mulf %200, %243 : vector<16x512xf32>
    %245 = arith.addf %241, %244 : vector<16x512xf32>
    %246 = vector.extract_strided_slice %187 {offsets = [0, 8], sizes = [16, 1], strides = [1, 1]} : vector<16x9xf32> to vector<16x1xf32>
    %247 = vector.broadcast %246 : vector<16x1xf32> to vector<16x512xf32>
    %248 = arith.mulf %210, %247 : vector<16x512xf32>
    %249 = arith.addf %245, %248 : vector<16x512xf32>
    %c496_i32_45 = arith.constant 496 : i32
    %250 = tpu.dynamic_rotate %249 by %c496_i32_45 dim 1 : vector<16x512xf32>, i32 -> vector<16x512xf32>
    %cst_46 = arith.constant 0.000000e+00 : f32
    %251 = vector.shape_cast %12 : vector<1x512xi1> to vector<1x512xi1>
    %252 = vector.broadcast %251 : vector<1x512xi1> to vector<16x512xi1>
    %253 = vector.broadcast %cst_46 : f32 to vector<16x512xf32>
    %254 = arith.select %252, %250, %253 : vector<16x512xi1>, vector<16x512xf32>
    %255 = arith.addf %238, %254 : vector<16x512xf32>
    %256 = vector.broadcast %191 : vector<16x1xf32> to vector<16x512xf32>
    %257 = arith.addf %255, %256 : vector<16x512xf32>
    %258 = arith.negf %257 : vector<16x512xf32>
    %259 = math.exp %258 : vector<16x512xf32>
    %cst_47 = arith.constant 1.000000e+00 : f32
    %260 = vector.broadcast %cst_47 : f32 to vector<16x512xf32>
    %261 = arith.addf %260, %259 : vector<16x512xf32>
    %262 = arith.divf %260, %261 : vector<16x512xf32>
    %263 = arith.mulf %257, %262 : vector<16x512xf32>
    %264 = arith.index_cast %183 : i32 to index
    %c0_48 = arith.constant 0 : index
    %265 = vector.load %arg9[%264, %c0_48] : memref<96x512xf32, #tpu.memory_space<vmem>>, vector<16x512xf32>
    tpu.vector_store %arg9[%264, %c0_48], %263 {strides = array<i32>} : memref<96x512xf32, #tpu.memory_space<vmem>>, vector<16x512xf32>,
    %c3_i32 = arith.constant 3 : i32
    %c16_i32_49 = arith.constant 16 : i32
    %266 = arith.muli %c3_i32, %c16_i32_49 : i32
    %267 = tpu.assume_multiple %266, 16 : i32
    %268 = arith.index_cast %267 : i32 to index
    %c0_50 = arith.constant 0 : index
    %269 = vector.load %arg2[%268, %c0_50] : memref<96x16xf32, #tpu.memory_space<vmem>>, vector<16x16xf32>
    %270 = arith.index_cast %267 : i32 to index
    %c0_51 = arith.constant 0 : index
    %271 = vector.load %arg3[%270, %c0_51] : memref<96x9xf32, #tpu.memory_space<vmem>>, vector<16x9xf32>
    %272 = arith.index_cast %267 : i32 to index
    %c0_52 = arith.constant 0 : index
    %273 = vector.load %arg4[%272, %c0_52] : memref<96x5xf32, #tpu.memory_space<vmem>>, vector<16x1xf32>
    %274 = arith.index_cast %267 : i32 to index
    %c1_53 = arith.constant 1 : index
    %275 = vector.load %arg4[%274, %c1_53] : memref<96x5xf32, #tpu.memory_space<vmem>>, vector<16x1xf32>
    %cst_54 = arith.constant dense<0.000000e+00> : vector<16x512xf32>
    %276 = tpu.matmul %269, %13, %cst_54 {dimension_numbers = #tpu.dot_dimension_numbers<[1], [0], [0], [1], [0, 0, 1, 1], [], []>} : vector<16x16xf32>, vector<16x512xf32>, vector<16x512xf32> -> vector<16x512xf32>
    %277 = vector.broadcast %273 : vector<16x1xf32> to vector<16x512xf32>
    %278 = arith.addf %276, %277 : vector<16x512xf32>
    %279 = arith.negf %278 : vector<16x512xf32>
    %280 = math.exp %279 : vector<16x512xf32>
    %cst_55 = arith.constant 1.000000e+00 : f32
    %281 = vector.broadcast %cst_55 : f32 to vector<16x512xf32>
    %282 = arith.addf %281, %280 : vector<16x512xf32>
    %283 = arith.divf %281, %282 : vector<16x512xf32>
    %284 = arith.mulf %278, %283 : vector<16x512xf32>
    %c1_i32_56 = arith.constant 1 : i32
    %285 = tpu.dynamic_rotate %284 by %c1_i32_56 dim 1 : vector<16x512xf32>, i32 -> vector<16x512xf32>
    %cst_57 = arith.constant 0.000000e+00 : f32
    %286 = vector.shape_cast %6 : vector<1x512xi1> to vector<1x512xi1>
    %287 = vector.broadcast %286 : vector<1x512xi1> to vector<16x512xi1>
    %288 = vector.broadcast %cst_57 : f32 to vector<16x512xf32>
    %289 = arith.select %287, %285, %288 : vector<16x512xi1>, vector<16x512xf32>
    %c511_i32_58 = arith.constant 511 : i32
    %290 = tpu.dynamic_rotate %284 by %c511_i32_58 dim 1 : vector<16x512xf32>, i32 -> vector<16x512xf32>
    %cst_59 = arith.constant 0.000000e+00 : f32
    %291 = vector.shape_cast %8 : vector<1x512xi1> to vector<1x512xi1>
    %292 = vector.broadcast %291 : vector<1x512xi1> to vector<16x512xi1>
    %293 = vector.broadcast %cst_59 : f32 to vector<16x512xf32>
    %294 = arith.select %292, %290, %293 : vector<16x512xi1>, vector<16x512xf32>
    %295 = vector.extract_strided_slice %271 {offsets = [0, 3], sizes = [16, 1], strides = [1, 1]} : vector<16x9xf32> to vector<16x1xf32>
    %296 = vector.broadcast %295 : vector<16x1xf32> to vector<16x512xf32>
    %297 = arith.mulf %289, %296 : vector<16x512xf32>
    %298 = vector.extract_strided_slice %271 {offsets = [0, 4], sizes = [16, 1], strides = [1, 1]} : vector<16x9xf32> to vector<16x1xf32>
    %299 = vector.broadcast %298 : vector<16x1xf32> to vector<16x512xf32>
    %300 = arith.mulf %284, %299 : vector<16x512xf32>
    %301 = arith.addf %297, %300 : vector<16x512xf32>
    %302 = vector.extract_strided_slice %271 {offsets = [0, 5], sizes = [16, 1], strides = [1, 1]} : vector<16x9xf32> to vector<16x1xf32>
    %303 = vector.broadcast %302 : vector<16x1xf32> to vector<16x512xf32>
    %304 = arith.mulf %294, %303 : vector<16x512xf32>
    %305 = arith.addf %301, %304 : vector<16x512xf32>
    %306 = vector.extract_strided_slice %271 {offsets = [0, 0], sizes = [16, 1], strides = [1, 1]} : vector<16x9xf32> to vector<16x1xf32>
    %307 = vector.broadcast %306 : vector<16x1xf32> to vector<16x512xf32>
    %308 = arith.mulf %289, %307 : vector<16x512xf32>
    %309 = vector.extract_strided_slice %271 {offsets = [0, 1], sizes = [16, 1], strides = [1, 1]} : vector<16x9xf32> to vector<16x1xf32>
    %310 = vector.broadcast %309 : vector<16x1xf32> to vector<16x512xf32>
    %311 = arith.mulf %284, %310 : vector<16x512xf32>
    %312 = arith.addf %308, %311 : vector<16x512xf32>
    %313 = vector.extract_strided_slice %271 {offsets = [0, 2], sizes = [16, 1], strides = [1, 1]} : vector<16x9xf32> to vector<16x1xf32>
    %314 = vector.broadcast %313 : vector<16x1xf32> to vector<16x512xf32>
    %315 = arith.mulf %294, %314 : vector<16x512xf32>
    %316 = arith.addf %312, %315 : vector<16x512xf32>
    %c16_i32_60 = arith.constant 16 : i32
    %317 = tpu.dynamic_rotate %316 by %c16_i32_60 dim 1 : vector<16x512xf32>, i32 -> vector<16x512xf32>
    %cst_61 = arith.constant 0.000000e+00 : f32
    %318 = vector.shape_cast %10 : vector<1x512xi1> to vector<1x512xi1>
    %319 = vector.broadcast %318 : vector<1x512xi1> to vector<16x512xi1>
    %320 = vector.broadcast %cst_61 : f32 to vector<16x512xf32>
    %321 = arith.select %319, %317, %320 : vector<16x512xi1>, vector<16x512xf32>
    %322 = arith.addf %305, %321 : vector<16x512xf32>
    %323 = vector.extract_strided_slice %271 {offsets = [0, 6], sizes = [16, 1], strides = [1, 1]} : vector<16x9xf32> to vector<16x1xf32>
    %324 = vector.broadcast %323 : vector<16x1xf32> to vector<16x512xf32>
    %325 = arith.mulf %289, %324 : vector<16x512xf32>
    %326 = vector.extract_strided_slice %271 {offsets = [0, 7], sizes = [16, 1], strides = [1, 1]} : vector<16x9xf32> to vector<16x1xf32>
    %327 = vector.broadcast %326 : vector<16x1xf32> to vector<16x512xf32>
    %328 = arith.mulf %284, %327 : vector<16x512xf32>
    %329 = arith.addf %325, %328 : vector<16x512xf32>
    %330 = vector.extract_strided_slice %271 {offsets = [0, 8], sizes = [16, 1], strides = [1, 1]} : vector<16x9xf32> to vector<16x1xf32>
    %331 = vector.broadcast %330 : vector<16x1xf32> to vector<16x512xf32>
    %332 = arith.mulf %294, %331 : vector<16x512xf32>
    %333 = arith.addf %329, %332 : vector<16x512xf32>
    %c496_i32_62 = arith.constant 496 : i32
    %334 = tpu.dynamic_rotate %333 by %c496_i32_62 dim 1 : vector<16x512xf32>, i32 -> vector<16x512xf32>
    %cst_63 = arith.constant 0.000000e+00 : f32
    %335 = vector.shape_cast %12 : vector<1x512xi1> to vector<1x512xi1>
    %336 = vector.broadcast %335 : vector<1x512xi1> to vector<16x512xi1>
    %337 = vector.broadcast %cst_63 : f32 to vector<16x512xf32>
    %338 = arith.select %336, %334, %337 : vector<16x512xi1>, vector<16x512xf32>
    %339 = arith.addf %322, %338 : vector<16x512xf32>
    %340 = vector.broadcast %275 : vector<16x1xf32> to vector<16x512xf32>
    %341 = arith.addf %339, %340 : vector<16x512xf32>
    %342 = arith.negf %341 : vector<16x512xf32>
    %343 = math.exp %342 : vector<16x512xf32>
    %cst_64 = arith.constant 1.000000e+00 : f32
    %344 = vector.broadcast %cst_64 : f32 to vector<16x512xf32>
    %345 = arith.addf %344, %343 : vector<16x512xf32>
    %346 = arith.divf %344, %345 : vector<16x512xf32>
    %347 = arith.mulf %341, %346 : vector<16x512xf32>
    %348 = arith.index_cast %267 : i32 to index
    %c0_65 = arith.constant 0 : index
    %349 = vector.load %arg9[%348, %c0_65] : memref<96x512xf32, #tpu.memory_space<vmem>>, vector<16x512xf32>
    tpu.vector_store %arg9[%348, %c0_65], %347 {strides = array<i32>} : memref<96x512xf32, #tpu.memory_space<vmem>>, vector<16x512xf32>,
    %c4_i32 = arith.constant 4 : i32
    %c16_i32_66 = arith.constant 16 : i32
    %350 = arith.muli %c4_i32, %c16_i32_66 : i32
    %351 = tpu.assume_multiple %350, 16 : i32
    %352 = arith.index_cast %351 : i32 to index
    %c0_67 = arith.constant 0 : index
    %353 = vector.load %arg2[%352, %c0_67] : memref<96x16xf32, #tpu.memory_space<vmem>>, vector<16x16xf32>
    %354 = arith.index_cast %351 : i32 to index
    %c0_68 = arith.constant 0 : index
    %355 = vector.load %arg3[%354, %c0_68] : memref<96x9xf32, #tpu.memory_space<vmem>>, vector<16x9xf32>
    %356 = arith.index_cast %351 : i32 to index
    %c0_69 = arith.constant 0 : index
    %357 = vector.load %arg4[%356, %c0_69] : memref<96x5xf32, #tpu.memory_space<vmem>>, vector<16x1xf32>
    %358 = arith.index_cast %351 : i32 to index
    %c1_70 = arith.constant 1 : index
    %359 = vector.load %arg4[%358, %c1_70] : memref<96x5xf32, #tpu.memory_space<vmem>>, vector<16x1xf32>
    %cst_71 = arith.constant dense<0.000000e+00> : vector<16x512xf32>
    %360 = tpu.matmul %353, %13, %cst_71 {dimension_numbers = #tpu.dot_dimension_numbers<[1], [0], [0], [1], [0, 0, 1, 1], [], []>} : vector<16x16xf32>, vector<16x512xf32>, vector<16x512xf32> -> vector<16x512xf32>
    %361 = vector.broadcast %357 : vector<16x1xf32> to vector<16x512xf32>
    %362 = arith.addf %360, %361 : vector<16x512xf32>
    %363 = arith.negf %362 : vector<16x512xf32>
    %364 = math.exp %363 : vector<16x512xf32>
    %cst_72 = arith.constant 1.000000e+00 : f32
    %365 = vector.broadcast %cst_72 : f32 to vector<16x512xf32>
    %366 = arith.addf %365, %364 : vector<16x512xf32>
    %367 = arith.divf %365, %366 : vector<16x512xf32>
    %368 = arith.mulf %362, %367 : vector<16x512xf32>
    %c1_i32_73 = arith.constant 1 : i32
    %369 = tpu.dynamic_rotate %368 by %c1_i32_73 dim 1 : vector<16x512xf32>, i32 -> vector<16x512xf32>
    %cst_74 = arith.constant 0.000000e+00 : f32
    %370 = vector.shape_cast %6 : vector<1x512xi1> to vector<1x512xi1>
    %371 = vector.broadcast %370 : vector<1x512xi1> to vector<16x512xi1>
    %372 = vector.broadcast %cst_74 : f32 to vector<16x512xf32>
    %373 = arith.select %371, %369, %372 : vector<16x512xi1>, vector<16x512xf32>
    %c511_i32_75 = arith.constant 511 : i32
    %374 = tpu.dynamic_rotate %368 by %c511_i32_75 dim 1 : vector<16x512xf32>, i32 -> vector<16x512xf32>
    %cst_76 = arith.constant 0.000000e+00 : f32
    %375 = vector.shape_cast %8 : vector<1x512xi1> to vector<1x512xi1>
    %376 = vector.broadcast %375 : vector<1x512xi1> to vector<16x512xi1>
    %377 = vector.broadcast %cst_76 : f32 to vector<16x512xf32>
    %378 = arith.select %376, %374, %377 : vector<16x512xi1>, vector<16x512xf32>
    %379 = vector.extract_strided_slice %355 {offsets = [0, 3], sizes = [16, 1], strides = [1, 1]} : vector<16x9xf32> to vector<16x1xf32>
    %380 = vector.broadcast %379 : vector<16x1xf32> to vector<16x512xf32>
    %381 = arith.mulf %373, %380 : vector<16x512xf32>
    %382 = vector.extract_strided_slice %355 {offsets = [0, 4], sizes = [16, 1], strides = [1, 1]} : vector<16x9xf32> to vector<16x1xf32>
    %383 = vector.broadcast %382 : vector<16x1xf32> to vector<16x512xf32>
    %384 = arith.mulf %368, %383 : vector<16x512xf32>
    %385 = arith.addf %381, %384 : vector<16x512xf32>
    %386 = vector.extract_strided_slice %355 {offsets = [0, 5], sizes = [16, 1], strides = [1, 1]} : vector<16x9xf32> to vector<16x1xf32>
    %387 = vector.broadcast %386 : vector<16x1xf32> to vector<16x512xf32>
    %388 = arith.mulf %378, %387 : vector<16x512xf32>
    %389 = arith.addf %385, %388 : vector<16x512xf32>
    %390 = vector.extract_strided_slice %355 {offsets = [0, 0], sizes = [16, 1], strides = [1, 1]} : vector<16x9xf32> to vector<16x1xf32>
    %391 = vector.broadcast %390 : vector<16x1xf32> to vector<16x512xf32>
    %392 = arith.mulf %373, %391 : vector<16x512xf32>
    %393 = vector.extract_strided_slice %355 {offsets = [0, 1], sizes = [16, 1], strides = [1, 1]} : vector<16x9xf32> to vector<16x1xf32>
    %394 = vector.broadcast %393 : vector<16x1xf32> to vector<16x512xf32>
    %395 = arith.mulf %368, %394 : vector<16x512xf32>
    %396 = arith.addf %392, %395 : vector<16x512xf32>
    %397 = vector.extract_strided_slice %355 {offsets = [0, 2], sizes = [16, 1], strides = [1, 1]} : vector<16x9xf32> to vector<16x1xf32>
    %398 = vector.broadcast %397 : vector<16x1xf32> to vector<16x512xf32>
    %399 = arith.mulf %378, %398 : vector<16x512xf32>
    %400 = arith.addf %396, %399 : vector<16x512xf32>
    %c16_i32_77 = arith.constant 16 : i32
    %401 = tpu.dynamic_rotate %400 by %c16_i32_77 dim 1 : vector<16x512xf32>, i32 -> vector<16x512xf32>
    %cst_78 = arith.constant 0.000000e+00 : f32
    %402 = vector.shape_cast %10 : vector<1x512xi1> to vector<1x512xi1>
    %403 = vector.broadcast %402 : vector<1x512xi1> to vector<16x512xi1>
    %404 = vector.broadcast %cst_78 : f32 to vector<16x512xf32>
    %405 = arith.select %403, %401, %404 : vector<16x512xi1>, vector<16x512xf32>
    %406 = arith.addf %389, %405 : vector<16x512xf32>
    %407 = vector.extract_strided_slice %355 {offsets = [0, 6], sizes = [16, 1], strides = [1, 1]} : vector<16x9xf32> to vector<16x1xf32>
    %408 = vector.broadcast %407 : vector<16x1xf32> to vector<16x512xf32>
    %409 = arith.mulf %373, %408 : vector<16x512xf32>
    %410 = vector.extract_strided_slice %355 {offsets = [0, 7], sizes = [16, 1], strides = [1, 1]} : vector<16x9xf32> to vector<16x1xf32>
    %411 = vector.broadcast %410 : vector<16x1xf32> to vector<16x512xf32>
    %412 = arith.mulf %368, %411 : vector<16x512xf32>
    %413 = arith.addf %409, %412 : vector<16x512xf32>
    %414 = vector.extract_strided_slice %355 {offsets = [0, 8], sizes = [16, 1], strides = [1, 1]} : vector<16x9xf32> to vector<16x1xf32>
    %415 = vector.broadcast %414 : vector<16x1xf32> to vector<16x512xf32>
    %416 = arith.mulf %378, %415 : vector<16x512xf32>
    %417 = arith.addf %413, %416 : vector<16x512xf32>
    %c496_i32_79 = arith.constant 496 : i32
    %418 = tpu.dynamic_rotate %417 by %c496_i32_79 dim 1 : vector<16x512xf32>, i32 -> vector<16x512xf32>
    %cst_80 = arith.constant 0.000000e+00 : f32
    %419 = vector.shape_cast %12 : vector<1x512xi1> to vector<1x512xi1>
    %420 = vector.broadcast %419 : vector<1x512xi1> to vector<16x512xi1>
    %421 = vector.broadcast %cst_80 : f32 to vector<16x512xf32>
    %422 = arith.select %420, %418, %421 : vector<16x512xi1>, vector<16x512xf32>
    %423 = arith.addf %406, %422 : vector<16x512xf32>
    %424 = vector.broadcast %359 : vector<16x1xf32> to vector<16x512xf32>
    %425 = arith.addf %423, %424 : vector<16x512xf32>
    %426 = arith.negf %425 : vector<16x512xf32>
    %427 = math.exp %426 : vector<16x512xf32>
    %cst_81 = arith.constant 1.000000e+00 : f32
    %428 = vector.broadcast %cst_81 : f32 to vector<16x512xf32>
    %429 = arith.addf %428, %427 : vector<16x512xf32>
    %430 = arith.divf %428, %429 : vector<16x512xf32>
    %431 = arith.mulf %425, %430 : vector<16x512xf32>
    %432 = arith.index_cast %351 : i32 to index
    %c0_82 = arith.constant 0 : index
    %433 = vector.load %arg9[%432, %c0_82] : memref<96x512xf32, #tpu.memory_space<vmem>>, vector<16x512xf32>
    tpu.vector_store %arg9[%432, %c0_82], %431 {strides = array<i32>} : memref<96x512xf32, #tpu.memory_space<vmem>>, vector<16x512xf32>,
    %c5_i32 = arith.constant 5 : i32
    %c16_i32_83 = arith.constant 16 : i32
    %434 = arith.muli %c5_i32, %c16_i32_83 : i32
    %435 = tpu.assume_multiple %434, 16 : i32
    %436 = arith.index_cast %435 : i32 to index
    %c0_84 = arith.constant 0 : index
    %437 = vector.load %arg2[%436, %c0_84] : memref<96x16xf32, #tpu.memory_space<vmem>>, vector<16x16xf32>
    %438 = arith.index_cast %435 : i32 to index
    %c0_85 = arith.constant 0 : index
    %439 = vector.load %arg3[%438, %c0_85] : memref<96x9xf32, #tpu.memory_space<vmem>>, vector<16x9xf32>
    %440 = arith.index_cast %435 : i32 to index
    %c0_86 = arith.constant 0 : index
    %441 = vector.load %arg4[%440, %c0_86] : memref<96x5xf32, #tpu.memory_space<vmem>>, vector<16x1xf32>
    %442 = arith.index_cast %435 : i32 to index
    %c1_87 = arith.constant 1 : index
    %443 = vector.load %arg4[%442, %c1_87] : memref<96x5xf32, #tpu.memory_space<vmem>>, vector<16x1xf32>
    %cst_88 = arith.constant dense<0.000000e+00> : vector<16x512xf32>
    %444 = tpu.matmul %437, %13, %cst_88 {dimension_numbers = #tpu.dot_dimension_numbers<[1], [0], [0], [1], [0, 0, 1, 1], [], []>} : vector<16x16xf32>, vector<16x512xf32>, vector<16x512xf32> -> vector<16x512xf32>
    %445 = vector.broadcast %441 : vector<16x1xf32> to vector<16x512xf32>
    %446 = arith.addf %444, %445 : vector<16x512xf32>
    %447 = arith.negf %446 : vector<16x512xf32>
    %448 = math.exp %447 : vector<16x512xf32>
    %cst_89 = arith.constant 1.000000e+00 : f32
    %449 = vector.broadcast %cst_89 : f32 to vector<16x512xf32>
    %450 = arith.addf %449, %448 : vector<16x512xf32>
    %451 = arith.divf %449, %450 : vector<16x512xf32>
    %452 = arith.mulf %446, %451 : vector<16x512xf32>
    %c1_i32_90 = arith.constant 1 : i32
    %453 = tpu.dynamic_rotate %452 by %c1_i32_90 dim 1 : vector<16x512xf32>, i32 -> vector<16x512xf32>
    %cst_91 = arith.constant 0.000000e+00 : f32
    %454 = vector.shape_cast %6 : vector<1x512xi1> to vector<1x512xi1>
    %455 = vector.broadcast %454 : vector<1x512xi1> to vector<16x512xi1>
    %456 = vector.broadcast %cst_91 : f32 to vector<16x512xf32>
    %457 = arith.select %455, %453, %456 : vector<16x512xi1>, vector<16x512xf32>
    %c511_i32_92 = arith.constant 511 : i32
    %458 = tpu.dynamic_rotate %452 by %c511_i32_92 dim 1 : vector<16x512xf32>, i32 -> vector<16x512xf32>
    %cst_93 = arith.constant 0.000000e+00 : f32
    %459 = vector.shape_cast %8 : vector<1x512xi1> to vector<1x512xi1>
    %460 = vector.broadcast %459 : vector<1x512xi1> to vector<16x512xi1>
    %461 = vector.broadcast %cst_93 : f32 to vector<16x512xf32>
    %462 = arith.select %460, %458, %461 : vector<16x512xi1>, vector<16x512xf32>
    %463 = vector.extract_strided_slice %439 {offsets = [0, 3], sizes = [16, 1], strides = [1, 1]} : vector<16x9xf32> to vector<16x1xf32>
    %464 = vector.broadcast %463 : vector<16x1xf32> to vector<16x512xf32>
    %465 = arith.mulf %457, %464 : vector<16x512xf32>
    %466 = vector.extract_strided_slice %439 {offsets = [0, 4], sizes = [16, 1], strides = [1, 1]} : vector<16x9xf32> to vector<16x1xf32>
    %467 = vector.broadcast %466 : vector<16x1xf32> to vector<16x512xf32>
    %468 = arith.mulf %452, %467 : vector<16x512xf32>
    %469 = arith.addf %465, %468 : vector<16x512xf32>
    %470 = vector.extract_strided_slice %439 {offsets = [0, 5], sizes = [16, 1], strides = [1, 1]} : vector<16x9xf32> to vector<16x1xf32>
    %471 = vector.broadcast %470 : vector<16x1xf32> to vector<16x512xf32>
    %472 = arith.mulf %462, %471 : vector<16x512xf32>
    %473 = arith.addf %469, %472 : vector<16x512xf32>
    %474 = vector.extract_strided_slice %439 {offsets = [0, 0], sizes = [16, 1], strides = [1, 1]} : vector<16x9xf32> to vector<16x1xf32>
    %475 = vector.broadcast %474 : vector<16x1xf32> to vector<16x512xf32>
    %476 = arith.mulf %457, %475 : vector<16x512xf32>
    %477 = vector.extract_strided_slice %439 {offsets = [0, 1], sizes = [16, 1], strides = [1, 1]} : vector<16x9xf32> to vector<16x1xf32>
    %478 = vector.broadcast %477 : vector<16x1xf32> to vector<16x512xf32>
    %479 = arith.mulf %452, %478 : vector<16x512xf32>
    %480 = arith.addf %476, %479 : vector<16x512xf32>
    %481 = vector.extract_strided_slice %439 {offsets = [0, 2], sizes = [16, 1], strides = [1, 1]} : vector<16x9xf32> to vector<16x1xf32>
    %482 = vector.broadcast %481 : vector<16x1xf32> to vector<16x512xf32>
    %483 = arith.mulf %462, %482 : vector<16x512xf32>
    %484 = arith.addf %480, %483 : vector<16x512xf32>
    %c16_i32_94 = arith.constant 16 : i32
    %485 = tpu.dynamic_rotate %484 by %c16_i32_94 dim 1 : vector<16x512xf32>, i32 -> vector<16x512xf32>
    %cst_95 = arith.constant 0.000000e+00 : f32
    %486 = vector.shape_cast %10 : vector<1x512xi1> to vector<1x512xi1>
    %487 = vector.broadcast %486 : vector<1x512xi1> to vector<16x512xi1>
    %488 = vector.broadcast %cst_95 : f32 to vector<16x512xf32>
    %489 = arith.select %487, %485, %488 : vector<16x512xi1>, vector<16x512xf32>
    %490 = arith.addf %473, %489 : vector<16x512xf32>
    %491 = vector.extract_strided_slice %439 {offsets = [0, 6], sizes = [16, 1], strides = [1, 1]} : vector<16x9xf32> to vector<16x1xf32>
    %492 = vector.broadcast %491 : vector<16x1xf32> to vector<16x512xf32>
    %493 = arith.mulf %457, %492 : vector<16x512xf32>
    %494 = vector.extract_strided_slice %439 {offsets = [0, 7], sizes = [16, 1], strides = [1, 1]} : vector<16x9xf32> to vector<16x1xf32>
    %495 = vector.broadcast %494 : vector<16x1xf32> to vector<16x512xf32>
    %496 = arith.mulf %452, %495 : vector<16x512xf32>
    %497 = arith.addf %493, %496 : vector<16x512xf32>
    %498 = vector.extract_strided_slice %439 {offsets = [0, 8], sizes = [16, 1], strides = [1, 1]} : vector<16x9xf32> to vector<16x1xf32>
    %499 = vector.broadcast %498 : vector<16x1xf32> to vector<16x512xf32>
    %500 = arith.mulf %462, %499 : vector<16x512xf32>
    %501 = arith.addf %497, %500 : vector<16x512xf32>
    %c496_i32_96 = arith.constant 496 : i32
    %502 = tpu.dynamic_rotate %501 by %c496_i32_96 dim 1 : vector<16x512xf32>, i32 -> vector<16x512xf32>
    %cst_97 = arith.constant 0.000000e+00 : f32
    %503 = vector.shape_cast %12 : vector<1x512xi1> to vector<1x512xi1>
    %504 = vector.broadcast %503 : vector<1x512xi1> to vector<16x512xi1>
    %505 = vector.broadcast %cst_97 : f32 to vector<16x512xf32>
    %506 = arith.select %504, %502, %505 : vector<16x512xi1>, vector<16x512xf32>
    %507 = arith.addf %490, %506 : vector<16x512xf32>
    %508 = vector.broadcast %443 : vector<16x1xf32> to vector<16x512xf32>
    %509 = arith.addf %507, %508 : vector<16x512xf32>
    %510 = arith.negf %509 : vector<16x512xf32>
    %511 = math.exp %510 : vector<16x512xf32>
    %cst_98 = arith.constant 1.000000e+00 : f32
    %512 = vector.broadcast %cst_98 : f32 to vector<16x512xf32>
    %513 = arith.addf %512, %511 : vector<16x512xf32>
    %514 = arith.divf %512, %513 : vector<16x512xf32>
    %515 = arith.mulf %509, %514 : vector<16x512xf32>
    %516 = arith.index_cast %435 : i32 to index
    %c0_99 = arith.constant 0 : index
    %517 = vector.load %arg9[%516, %c0_99] : memref<96x512xf32, #tpu.memory_space<vmem>>, vector<16x512xf32>
    tpu.vector_store %arg9[%516, %c0_99], %515 {strides = array<i32>} : memref<96x512xf32, #tpu.memory_space<vmem>>, vector<16x512xf32>,
    %c6_i32 = arith.constant 6 : i32
    %c0_100 = arith.constant 0 : index
    %c0_101 = arith.constant 0 : index
    %518 = vector.load %arg9[%c0_100, %c0_101] : memref<96x512xf32, #tpu.memory_space<vmem>>, vector<96x512xf32>
    %519 = tpu.iota {dimensions = array<i32: 1>} : vector<96x2xi32>
    %cst_102 = arith.constant 0.000000e+00 : f32
    %520 = vector.broadcast %cst_102 : f32 to vector<96x2xf32>
    %521 = vector.extract_strided_slice %518 {offsets = [0, 0], sizes = [96, 256], strides = [1, 1]} : vector<96x512xf32> to vector<96x256xf32>
    %cst_103 = arith.constant dense<0.000000e+00> : vector<96xf32>
    %522 = vector.multi_reduction <add>, %521, %cst_103 [1] : vector<96x256xf32> to vector<96xf32>
    %523 = vector.shape_cast %522 : vector<96xf32> to vector<96x1xf32>
    %cst_104 = arith.constant 3.906250e-03 : f32
    %524 = vector.broadcast %cst_104 : f32 to vector<96x1xf32>
    %525 = arith.mulf %523, %524 : vector<96x1xf32>
    %c0_i32_105 = arith.constant 0 : i32
    %526 = vector.broadcast %c0_i32_105 : i32 to vector<96x2xi32>
    %527 = arith.cmpi eq, %519, %526 : vector<96x2xi32>
    %528 = vector.shape_cast %525 : vector<96x1xf32> to vector<96x1xf32>
    %529 = vector.broadcast %528 : vector<96x1xf32> to vector<96x2xf32>
    %530 = arith.select %527, %529, %520 : vector<96x2xi1>, vector<96x2xf32>
    %531 = vector.extract_strided_slice %518 {offsets = [0, 256], sizes = [96, 256], strides = [1, 1]} : vector<96x512xf32> to vector<96x256xf32>
    %cst_106 = arith.constant dense<0.000000e+00> : vector<96xf32>
    %532 = vector.multi_reduction <add>, %531, %cst_106 [1] : vector<96x256xf32> to vector<96xf32>
    %533 = vector.shape_cast %532 : vector<96xf32> to vector<96x1xf32>
    %cst_107 = arith.constant 3.906250e-03 : f32
    %534 = vector.broadcast %cst_107 : f32 to vector<96x1xf32>
    %535 = arith.mulf %533, %534 : vector<96x1xf32>
    %c1_i32_108 = arith.constant 1 : i32
    %536 = vector.broadcast %c1_i32_108 : i32 to vector<96x2xi32>
    %537 = arith.cmpi eq, %519, %536 : vector<96x2xi32>
    %538 = vector.shape_cast %535 : vector<96x1xf32> to vector<96x1xf32>
    %539 = vector.broadcast %538 : vector<96x1xf32> to vector<96x2xf32>
    %540 = arith.select %537, %539, %530 : vector<96x2xi1>, vector<96x2xf32>
    %c0_109 = arith.constant 0 : index
    %c3 = arith.constant 3 : index
    %541 = vector.load %arg4[%c0_109, %c3] : memref<96x5xf32, #tpu.memory_space<vmem>>, vector<8x1xf32>
    %c0_110 = arith.constant 0 : index
    %c2 = arith.constant 2 : index
    %542 = vector.load %arg4[%c0_110, %c2] : memref<96x5xf32, #tpu.memory_space<vmem>>, vector<96x1xf32>
    %c0_111 = arith.constant 0 : index
    %c0_112 = arith.constant 0 : index
    %543 = vector.load %arg5[%c0_111, %c0_112] : memref<8x96xf32, #tpu.memory_space<vmem>>, vector<8x96xf32>
    %cst_113 = arith.constant dense<0.000000e+00> : vector<8x2xf32>
    %544 = tpu.matmul %543, %540, %cst_113 {dimension_numbers = #tpu.dot_dimension_numbers<[1], [0], [0], [1], [0, 0, 1, 1], [], []>} : vector<8x96xf32>, vector<96x2xf32>, vector<8x2xf32> -> vector<8x2xf32>
    %545 = vector.broadcast %541 : vector<8x1xf32> to vector<8x2xf32>
    %546 = arith.addf %544, %545 : vector<8x2xf32>
    %547 = arith.negf %546 : vector<8x2xf32>
    %548 = math.exp %547 : vector<8x2xf32>
    %cst_114 = arith.constant 1.000000e+00 : f32
    %549 = vector.broadcast %cst_114 : f32 to vector<8x2xf32>
    %550 = arith.addf %549, %548 : vector<8x2xf32>
    %551 = arith.divf %549, %550 : vector<8x2xf32>
    %552 = arith.mulf %546, %551 : vector<8x2xf32>
    %c0_115 = arith.constant 0 : index
    %c0_116 = arith.constant 0 : index
    %553 = vector.load %arg6[%c0_115, %c0_116] : memref<96x8xf32, #tpu.memory_space<vmem>>, vector<96x8xf32>
    %cst_117 = arith.constant dense<0.000000e+00> : vector<96x2xf32>
    %554 = tpu.matmul %553, %552, %cst_117 {dimension_numbers = #tpu.dot_dimension_numbers<[1], [0], [0], [1], [0, 0, 1, 1], [], []>} : vector<96x8xf32>, vector<8x2xf32>, vector<96x2xf32> -> vector<96x2xf32>
    %555 = vector.broadcast %542 : vector<96x1xf32> to vector<96x2xf32>
    %556 = arith.addf %554, %555 : vector<96x2xf32>
    %557 = arith.negf %556 : vector<96x2xf32>
    %558 = math.exp %557 : vector<96x2xf32>
    %cst_118 = arith.constant 1.000000e+00 : f32
    %559 = vector.broadcast %cst_118 : f32 to vector<96x2xf32>
    %560 = arith.addf %559, %558 : vector<96x2xf32>
    %561 = arith.divf %559, %560 : vector<96x2xf32>
    %c0_119 = arith.constant 0 : index
    %c0_120 = arith.constant 0 : index
    %562 = vector.load %arg10[%c0_119, %c0_120] : memref<96x2xf32, #tpu.memory_space<vmem>>, vector<96x2xf32>
    tpu.vector_store %arg10[%c0_119, %c0_120], %561 {strides = array<i32>} : memref<96x2xf32, #tpu.memory_space<vmem>>, vector<96x2xf32>,
    %cst_121 = arith.constant 0.000000e+00 : f32
    %563 = vector.broadcast %cst_121 : f32 to vector<16x512xf32>
    %c0_i32_122 = arith.constant 0 : i32
    %c16_i32_123 = arith.constant 16 : i32
    %564 = arith.muli %c0_i32_122, %c16_i32_123 : i32
    %565 = tpu.assume_multiple %564, 16 : i32
    %566 = arith.index_cast %565 : i32 to index
    %c0_124 = arith.constant 0 : index
    %567 = vector.load %arg10[%566, %c0_124] : memref<96x2xf32, #tpu.memory_space<vmem>>, vector<16x2xf32>
    %568 = vector.extract_strided_slice %567 {offsets = [0, 0], sizes = [16, 1], strides = [1, 1]} : vector<16x2xf32> to vector<16x1xf32>
    %c256_i32 = arith.constant 256 : i32
    %569 = vector.broadcast %c256_i32 : i32 to vector<1x512xi32>
    %570 = arith.cmpi sge, %0, %569 : vector<1x512xi32>
    %571 = vector.extract_strided_slice %567 {offsets = [0, 1], sizes = [16, 1], strides = [1, 1]} : vector<16x2xf32> to vector<16x1xf32>
    %572 = vector.shape_cast %570 : vector<1x512xi1> to vector<1x512xi1>
    %573 = vector.broadcast %572 : vector<1x512xi1> to vector<16x512xi1>
    %574 = vector.shape_cast %571 : vector<16x1xf32> to vector<16x1xf32>
    %575 = vector.broadcast %574 : vector<16x1xf32> to vector<16x512xf32>
    %576 = vector.shape_cast %568 : vector<16x1xf32> to vector<16x1xf32>
    %577 = vector.broadcast %576 : vector<16x1xf32> to vector<16x512xf32>
    %578 = arith.select %573, %575, %577 : vector<16x512xi1>, vector<16x512xf32>
    %579 = arith.index_cast %565 : i32 to index
    %c0_125 = arith.constant 0 : index
    %580 = vector.load %arg9[%579, %c0_125] : memref<96x512xf32, #tpu.memory_space<vmem>>, vector<16x512xf32>
    %581 = arith.mulf %580, %578 : vector<16x512xf32>
    %582 = arith.index_cast %c0_i32_122 : i32 to index
    %c0_126 = arith.constant 0 : index
    %c0_127 = arith.constant 0 : index
    %583 = vector.load %arg7[%582, %c0_126, %c0_127] : memref<6x16x16xf32, #tpu.memory_space<vmem>>, vector<1x16x16xf32>
    %584 = vector.shape_cast %583 : vector<1x16x16xf32> to vector<16x16xf32>
    %cst_128 = arith.constant dense<0.000000e+00> : vector<16x512xf32>
    %585 = tpu.matmul %584, %581, %cst_128 {dimension_numbers = #tpu.dot_dimension_numbers<[1], [0], [0], [1], [0, 0, 1, 1], [], []>} : vector<16x16xf32>, vector<16x512xf32>, vector<16x512xf32> -> vector<16x512xf32>
    %586 = arith.addf %563, %585 : vector<16x512xf32>
    %c1_i32_129 = arith.constant 1 : i32
    %c16_i32_130 = arith.constant 16 : i32
    %587 = arith.muli %c1_i32_129, %c16_i32_130 : i32
    %588 = tpu.assume_multiple %587, 16 : i32
    %589 = arith.index_cast %588 : i32 to index
    %c0_131 = arith.constant 0 : index
    %590 = vector.load %arg10[%589, %c0_131] : memref<96x2xf32, #tpu.memory_space<vmem>>, vector<16x2xf32>
    %591 = vector.extract_strided_slice %590 {offsets = [0, 0], sizes = [16, 1], strides = [1, 1]} : vector<16x2xf32> to vector<16x1xf32>
    %c256_i32_132 = arith.constant 256 : i32
    %592 = vector.broadcast %c256_i32_132 : i32 to vector<1x512xi32>
    %593 = arith.cmpi sge, %0, %592 : vector<1x512xi32>
    %594 = vector.extract_strided_slice %590 {offsets = [0, 1], sizes = [16, 1], strides = [1, 1]} : vector<16x2xf32> to vector<16x1xf32>
    %595 = vector.shape_cast %593 : vector<1x512xi1> to vector<1x512xi1>
    %596 = vector.broadcast %595 : vector<1x512xi1> to vector<16x512xi1>
    %597 = vector.shape_cast %594 : vector<16x1xf32> to vector<16x1xf32>
    %598 = vector.broadcast %597 : vector<16x1xf32> to vector<16x512xf32>
    %599 = vector.shape_cast %591 : vector<16x1xf32> to vector<16x1xf32>
    %600 = vector.broadcast %599 : vector<16x1xf32> to vector<16x512xf32>
    %601 = arith.select %596, %598, %600 : vector<16x512xi1>, vector<16x512xf32>
    %602 = arith.index_cast %588 : i32 to index
    %c0_133 = arith.constant 0 : index
    %603 = vector.load %arg9[%602, %c0_133] : memref<96x512xf32, #tpu.memory_space<vmem>>, vector<16x512xf32>
    %604 = arith.mulf %603, %601 : vector<16x512xf32>
    %605 = arith.index_cast %c1_i32_129 : i32 to index
    %c0_134 = arith.constant 0 : index
    %c0_135 = arith.constant 0 : index
    %606 = vector.load %arg7[%605, %c0_134, %c0_135] : memref<6x16x16xf32, #tpu.memory_space<vmem>>, vector<1x16x16xf32>
    %607 = vector.shape_cast %606 : vector<1x16x16xf32> to vector<16x16xf32>
    %cst_136 = arith.constant dense<0.000000e+00> : vector<16x512xf32>
    %608 = tpu.matmul %607, %604, %cst_136 {dimension_numbers = #tpu.dot_dimension_numbers<[1], [0], [0], [1], [0, 0, 1, 1], [], []>} : vector<16x16xf32>, vector<16x512xf32>, vector<16x512xf32> -> vector<16x512xf32>
    %609 = arith.addf %586, %608 : vector<16x512xf32>
    %c2_i32_137 = arith.constant 2 : i32
    %c16_i32_138 = arith.constant 16 : i32
    %610 = arith.muli %c2_i32_137, %c16_i32_138 : i32
    %611 = tpu.assume_multiple %610, 16 : i32
    %612 = arith.index_cast %611 : i32 to index
    %c0_139 = arith.constant 0 : index
    %613 = vector.load %arg10[%612, %c0_139] : memref<96x2xf32, #tpu.memory_space<vmem>>, vector<16x2xf32>
    %614 = vector.extract_strided_slice %613 {offsets = [0, 0], sizes = [16, 1], strides = [1, 1]} : vector<16x2xf32> to vector<16x1xf32>
    %c256_i32_140 = arith.constant 256 : i32
    %615 = vector.broadcast %c256_i32_140 : i32 to vector<1x512xi32>
    %616 = arith.cmpi sge, %0, %615 : vector<1x512xi32>
    %617 = vector.extract_strided_slice %613 {offsets = [0, 1], sizes = [16, 1], strides = [1, 1]} : vector<16x2xf32> to vector<16x1xf32>
    %618 = vector.shape_cast %616 : vector<1x512xi1> to vector<1x512xi1>
    %619 = vector.broadcast %618 : vector<1x512xi1> to vector<16x512xi1>
    %620 = vector.shape_cast %617 : vector<16x1xf32> to vector<16x1xf32>
    %621 = vector.broadcast %620 : vector<16x1xf32> to vector<16x512xf32>
    %622 = vector.shape_cast %614 : vector<16x1xf32> to vector<16x1xf32>
    %623 = vector.broadcast %622 : vector<16x1xf32> to vector<16x512xf32>
    %624 = arith.select %619, %621, %623 : vector<16x512xi1>, vector<16x512xf32>
    %625 = arith.index_cast %611 : i32 to index
    %c0_141 = arith.constant 0 : index
    %626 = vector.load %arg9[%625, %c0_141] : memref<96x512xf32, #tpu.memory_space<vmem>>, vector<16x512xf32>
    %627 = arith.mulf %626, %624 : vector<16x512xf32>
    %628 = arith.index_cast %c2_i32_137 : i32 to index
    %c0_142 = arith.constant 0 : index
    %c0_143 = arith.constant 0 : index
    %629 = vector.load %arg7[%628, %c0_142, %c0_143] : memref<6x16x16xf32, #tpu.memory_space<vmem>>, vector<1x16x16xf32>
    %630 = vector.shape_cast %629 : vector<1x16x16xf32> to vector<16x16xf32>
    %cst_144 = arith.constant dense<0.000000e+00> : vector<16x512xf32>
    %631 = tpu.matmul %630, %627, %cst_144 {dimension_numbers = #tpu.dot_dimension_numbers<[1], [0], [0], [1], [0, 0, 1, 1], [], []>} : vector<16x16xf32>, vector<16x512xf32>, vector<16x512xf32> -> vector<16x512xf32>
    %632 = arith.addf %609, %631 : vector<16x512xf32>
    %c3_i32_145 = arith.constant 3 : i32
    %c16_i32_146 = arith.constant 16 : i32
    %633 = arith.muli %c3_i32_145, %c16_i32_146 : i32
    %634 = tpu.assume_multiple %633, 16 : i32
    %635 = arith.index_cast %634 : i32 to index
    %c0_147 = arith.constant 0 : index
    %636 = vector.load %arg10[%635, %c0_147] : memref<96x2xf32, #tpu.memory_space<vmem>>, vector<16x2xf32>
    %637 = vector.extract_strided_slice %636 {offsets = [0, 0], sizes = [16, 1], strides = [1, 1]} : vector<16x2xf32> to vector<16x1xf32>
    %c256_i32_148 = arith.constant 256 : i32
    %638 = vector.broadcast %c256_i32_148 : i32 to vector<1x512xi32>
    %639 = arith.cmpi sge, %0, %638 : vector<1x512xi32>
    %640 = vector.extract_strided_slice %636 {offsets = [0, 1], sizes = [16, 1], strides = [1, 1]} : vector<16x2xf32> to vector<16x1xf32>
    %641 = vector.shape_cast %639 : vector<1x512xi1> to vector<1x512xi1>
    %642 = vector.broadcast %641 : vector<1x512xi1> to vector<16x512xi1>
    %643 = vector.shape_cast %640 : vector<16x1xf32> to vector<16x1xf32>
    %644 = vector.broadcast %643 : vector<16x1xf32> to vector<16x512xf32>
    %645 = vector.shape_cast %637 : vector<16x1xf32> to vector<16x1xf32>
    %646 = vector.broadcast %645 : vector<16x1xf32> to vector<16x512xf32>
    %647 = arith.select %642, %644, %646 : vector<16x512xi1>, vector<16x512xf32>
    %648 = arith.index_cast %634 : i32 to index
    %c0_149 = arith.constant 0 : index
    %649 = vector.load %arg9[%648, %c0_149] : memref<96x512xf32, #tpu.memory_space<vmem>>, vector<16x512xf32>
    %650 = arith.mulf %649, %647 : vector<16x512xf32>
    %651 = arith.index_cast %c3_i32_145 : i32 to index
    %c0_150 = arith.constant 0 : index
    %c0_151 = arith.constant 0 : index
    %652 = vector.load %arg7[%651, %c0_150, %c0_151] : memref<6x16x16xf32, #tpu.memory_space<vmem>>, vector<1x16x16xf32>
    %653 = vector.shape_cast %652 : vector<1x16x16xf32> to vector<16x16xf32>
    %cst_152 = arith.constant dense<0.000000e+00> : vector<16x512xf32>
    %654 = tpu.matmul %653, %650, %cst_152 {dimension_numbers = #tpu.dot_dimension_numbers<[1], [0], [0], [1], [0, 0, 1, 1], [], []>} : vector<16x16xf32>, vector<16x512xf32>, vector<16x512xf32> -> vector<16x512xf32>
    %655 = arith.addf %632, %654 : vector<16x512xf32>
    %c4_i32_153 = arith.constant 4 : i32
    %c16_i32_154 = arith.constant 16 : i32
    %656 = arith.muli %c4_i32_153, %c16_i32_154 : i32
    %657 = tpu.assume_multiple %656, 16 : i32
    %658 = arith.index_cast %657 : i32 to index
    %c0_155 = arith.constant 0 : index
    %659 = vector.load %arg10[%658, %c0_155] : memref<96x2xf32, #tpu.memory_space<vmem>>, vector<16x2xf32>
    %660 = vector.extract_strided_slice %659 {offsets = [0, 0], sizes = [16, 1], strides = [1, 1]} : vector<16x2xf32> to vector<16x1xf32>
    %c256_i32_156 = arith.constant 256 : i32
    %661 = vector.broadcast %c256_i32_156 : i32 to vector<1x512xi32>
    %662 = arith.cmpi sge, %0, %661 : vector<1x512xi32>
    %663 = vector.extract_strided_slice %659 {offsets = [0, 1], sizes = [16, 1], strides = [1, 1]} : vector<16x2xf32> to vector<16x1xf32>
    %664 = vector.shape_cast %662 : vector<1x512xi1> to vector<1x512xi1>
    %665 = vector.broadcast %664 : vector<1x512xi1> to vector<16x512xi1>
    %666 = vector.shape_cast %663 : vector<16x1xf32> to vector<16x1xf32>
    %667 = vector.broadcast %666 : vector<16x1xf32> to vector<16x512xf32>
    %668 = vector.shape_cast %660 : vector<16x1xf32> to vector<16x1xf32>
    %669 = vector.broadcast %668 : vector<16x1xf32> to vector<16x512xf32>
    %670 = arith.select %665, %667, %669 : vector<16x512xi1>, vector<16x512xf32>
    %671 = arith.index_cast %657 : i32 to index
    %c0_157 = arith.constant 0 : index
    %672 = vector.load %arg9[%671, %c0_157] : memref<96x512xf32, #tpu.memory_space<vmem>>, vector<16x512xf32>
    %673 = arith.mulf %672, %670 : vector<16x512xf32>
    %674 = arith.index_cast %c4_i32_153 : i32 to index
    %c0_158 = arith.constant 0 : index
    %c0_159 = arith.constant 0 : index
    %675 = vector.load %arg7[%674, %c0_158, %c0_159] : memref<6x16x16xf32, #tpu.memory_space<vmem>>, vector<1x16x16xf32>
    %676 = vector.shape_cast %675 : vector<1x16x16xf32> to vector<16x16xf32>
    %cst_160 = arith.constant dense<0.000000e+00> : vector<16x512xf32>
    %677 = tpu.matmul %676, %673, %cst_160 {dimension_numbers = #tpu.dot_dimension_numbers<[1], [0], [0], [1], [0, 0, 1, 1], [], []>} : vector<16x16xf32>, vector<16x512xf32>, vector<16x512xf32> -> vector<16x512xf32>
    %678 = arith.addf %655, %677 : vector<16x512xf32>
    %c5_i32_161 = arith.constant 5 : i32
    %c16_i32_162 = arith.constant 16 : i32
    %679 = arith.muli %c5_i32_161, %c16_i32_162 : i32
    %680 = tpu.assume_multiple %679, 16 : i32
    %681 = arith.index_cast %680 : i32 to index
    %c0_163 = arith.constant 0 : index
    %682 = vector.load %arg10[%681, %c0_163] : memref<96x2xf32, #tpu.memory_space<vmem>>, vector<16x2xf32>
    %683 = vector.extract_strided_slice %682 {offsets = [0, 0], sizes = [16, 1], strides = [1, 1]} : vector<16x2xf32> to vector<16x1xf32>
    %c256_i32_164 = arith.constant 256 : i32
    %684 = vector.broadcast %c256_i32_164 : i32 to vector<1x512xi32>
    %685 = arith.cmpi sge, %0, %684 : vector<1x512xi32>
    %686 = vector.extract_strided_slice %682 {offsets = [0, 1], sizes = [16, 1], strides = [1, 1]} : vector<16x2xf32> to vector<16x1xf32>
    %687 = vector.shape_cast %685 : vector<1x512xi1> to vector<1x512xi1>
    %688 = vector.broadcast %687 : vector<1x512xi1> to vector<16x512xi1>
    %689 = vector.shape_cast %686 : vector<16x1xf32> to vector<16x1xf32>
    %690 = vector.broadcast %689 : vector<16x1xf32> to vector<16x512xf32>
    %691 = vector.shape_cast %683 : vector<16x1xf32> to vector<16x1xf32>
    %692 = vector.broadcast %691 : vector<16x1xf32> to vector<16x512xf32>
    %693 = arith.select %688, %690, %692 : vector<16x512xi1>, vector<16x512xf32>
    %694 = arith.index_cast %680 : i32 to index
    %c0_165 = arith.constant 0 : index
    %695 = vector.load %arg9[%694, %c0_165] : memref<96x512xf32, #tpu.memory_space<vmem>>, vector<16x512xf32>
    %696 = arith.mulf %695, %693 : vector<16x512xf32>
    %697 = arith.index_cast %c5_i32_161 : i32 to index
    %c0_166 = arith.constant 0 : index
    %c0_167 = arith.constant 0 : index
    %698 = vector.load %arg7[%697, %c0_166, %c0_167] : memref<6x16x16xf32, #tpu.memory_space<vmem>>, vector<1x16x16xf32>
    %699 = vector.shape_cast %698 : vector<1x16x16xf32> to vector<16x16xf32>
    %cst_168 = arith.constant dense<0.000000e+00> : vector<16x512xf32>
    %700 = tpu.matmul %699, %696, %cst_168 {dimension_numbers = #tpu.dot_dimension_numbers<[1], [0], [0], [1], [0, 0, 1, 1], [], []>} : vector<16x16xf32>, vector<16x512xf32>, vector<16x512xf32> -> vector<16x512xf32>
    %701 = arith.addf %678, %700 : vector<16x512xf32>
    %c6_i32_169 = arith.constant 6 : i32
    %c0_170 = arith.constant 0 : index
    %c4 = arith.constant 4 : index
    %702 = vector.load %arg4[%c0_170, %c4] : memref<96x5xf32, #tpu.memory_space<vmem>>, vector<16x1xf32>
    %703 = vector.broadcast %702 : vector<16x1xf32> to vector<16x512xf32>
    %704 = arith.addf %701, %703 : vector<16x512xf32>
    %c0_171 = arith.constant 0 : index
    %c0_172 = arith.constant 0 : index
    %705 = vector.load %arg1[%c0_171, %c0_172] : memref<16x512xf32, #tpu.memory_space<vmem>>, vector<16x512xf32>
    %706 = arith.addf %704, %705 : vector<16x512xf32>
    %c0_173 = arith.constant 0 : index
    %c0_174 = arith.constant 0 : index
    %707 = vector.load %arg8[%c0_173, %c0_174] : memref<16x512xf32, #tpu.memory_space<vmem>>, vector<16x512xf32>
    tpu.vector_store %arg8[%c0_173, %c0_174], %706 {strides = array<i32>} : memref<16x512xf32, #tpu.memory_space<vmem>>, vector<16x512xf32>,
    return
  }
  func.func @transform_0(%arg0: i32) -> (i32, i32) {
    %c0_i32 = arith.constant 0 : i32
    %c0_i32_0 = arith.constant 0 : i32
    %c0_i32_1 = arith.constant 0 : i32
    return %c0_i32, %c0_i32_0 : i32, i32
  }
  func.func @transform_1(%arg0: i32) -> (i32, i32) {
    %c0_i32 = arith.constant 0 : i32
    %c0_i32_0 = arith.constant 0 : i32
    %c0_i32_1 = arith.constant 0 : i32
    return %c0_i32, %c0_i32_0 : i32, i32
  }
  func.func @transform_2(%arg0: i32) -> (i32, i32) {
    %c0_i32 = arith.constant 0 : i32
    %c0_i32_0 = arith.constant 0 : i32
    %c0_i32_1 = arith.constant 0 : i32
    return %c0_i32, %c0_i32_0 : i32, i32
  }
  func.func @transform_3(%arg0: i32) -> (i32, i32) {
    %c0_i32 = arith.constant 0 : i32
    %c0_i32_0 = arith.constant 0 : i32
    %c0_i32_1 = arith.constant 0 : i32
    return %c0_i32, %c0_i32_0 : i32, i32
  }
  func.func @transform_4(%arg0: i32) -> (i32, i32) {
    %c0_i32 = arith.constant 0 : i32
    %c0_i32_0 = arith.constant 0 : i32
    %c0_i32_1 = arith.constant 0 : i32
    return %c0_i32, %c0_i32_0 : i32, i32
  }
  func.func @transform_5(%arg0: i32) -> (i32, i32) {
    %c0_i32 = arith.constant 0 : i32
    %c0_i32_0 = arith.constant 0 : i32
    %c0_i32_1 = arith.constant 0 : i32
    return %c0_i32, %c0_i32_0 : i32, i32
  }
  func.func @transform_6(%arg0: i32) -> (i32, i32, i32) {
    %c0_i32 = arith.constant 0 : i32
    %c0_i32_0 = arith.constant 0 : i32
    %c0_i32_1 = arith.constant 0 : i32
    %c0_i32_2 = arith.constant 0 : i32
    return %c0_i32, %c0_i32_0, %c0_i32_1 : i32, i32, i32
  }
  func.func @transform_7(%arg0: i32) -> (i32, i32) {
    %c0_i32 = arith.constant 0 : i32
    %c0_i32_0 = arith.constant 0 : i32
    %c0_i32_1 = arith.constant 0 : i32
    return %c0_i32, %c0_i32_0 : i32, i32
  }
}

</mosaic_0001>

<bundles_post_ra>
// kernel: tpu_custom_call.1
= control target key start
LH: loop header
LB: loop body
LE: loop exit
PB: predicated region body
PF: predicated region fallthrough
CT: control target
= control target key end

     0   :  { %v12351_v3 = vmov 0   ;;  %v12344_v8 = vmov 0.0   ;;  %vm80_vm0 = vcmask 130048   ;;  %s12336_s0 = inlined_call_operand.vmem [shape: f32[16,512], index: 0, kind: input, shape index: {}]   ;;  %s12337_s1 = inlined_call_operand.vmem [shape: f32[96,16], index: 1, kind: input, shape index: {}]   ;;  %s12338_s2 = inlined_call_operand.vmem [shape: f32[96,9], index: 2, kind: input, shape index: {}]   ;;  %s12339_s3 = inlined_call_operand.vmem [shape: f32[96,5], index: 3, kind: input, shape index: {}]   ;;  %s12340_s4 = inlined_call_operand.vmem [shape: f32[8,96], index: 4, kind: input, shape index: {}]   ;;  %s12341_s5 = inlined_call_operand.vmem [shape: f32[96,8], index: 5, kind: input, shape index: {}]   ;;  %s12342_s6 = inlined_call_operand.vmem [shape: f32[6,16,16], index: 6, kind: input, shape index: {}]   ;;  %s12343_s7 = inlined_call_operand.hbm [shape: f32[16,512], index: 7, kind: output, shape index: {}]  }
   0x1   :  { %v6000_v0 = vld [vmem:[%s12339_s3 + $0x10] sm:$0xff]  ;;  %v57_v1 = vld [vmem:[%s12336_s0 + $0x8] sm:$0xff]  ;;  %6433 = vset.pattern.permute.xlu1 %v12351_v3  ;;  %v59_v5 = vld [vmem:[%s12336_s0 + $0x18] sm:$0xff]  ;;  %151 = vmatprep.mubr.f32.mxu0 %v12344_v8 }
   0x2   :  { %v61_v2 = vld [vmem:[%s12336_s0 + $0x28] sm:$0xff]  ;;  %v63_v6 = vld [vmem:[%s12336_s0 + $0x38] sm:$0xff]  ;;  %v56_v7 = vld [vmem:[%s12336_s0] sm:$0xff]  ;;  %765 = vperm.xlu1 %6433, %v6000_v0   ;;  %228 = vmatprep.mubr.f32.mxu1 %v12344_v8 }
   0x3   :  { %v7081_v4 = vpack.c.bf16 %v61_v2, %v57_v1  ;;  %v7093_v9 = vpack.c.bf16 %v63_v6, %v59_v5  ;;  %v60_v10 = vld [vmem:[%s12336_s0 + $0x20] sm:$0xff]  ;;  %v58_v11 = vld [vmem:[%s12336_s0 + $0x10] sm:$0xff]  ;;  %v6001_v15 = vld [vmem:[%s12339_s3 + $0x18] sm:$0xff]  ;;  %6432 = vset.pattern.permute.xlu0 %v12351_v3 }
   0x4   :  { %v62_v12 = vld [vmem:[%s12336_s0 + $0x30] sm:$0xff]  ;;  %v7106_v13 = vpack.c.bf16 %v60_v10, %v56_v7  ;;  %v64_v16 = vld [vmem:[%s12337_s1] sm:$0xff]  ;;  %v6027_v17 = vld [vmem:[%s12339_s3 + $0x28] sm:$0xff] }
   0x5   :  { %6260 = vmatprep.subr.bf16.mxu0 %v7081_v4  ;;  %v7108_v14 = vpack.c.bf16 %v62_v12, %v58_v11  ;;  %6264 = vmatprep.subr.bf16.mxu1 %v7093_v9  ;;  %v65_v18 = vld [vmem:[%s12337_s1 + $0x8] sm:$0xff]  ;;  %v6053_v19 = vld [vmem:[%s12339_s3 + $0x38] sm:$0xff]  ;;  %v68_v20 = vld [vmem:[%s12339_s3] sm:$0xff] }
   0x6   :  { %6262 = vmatpush1.bf16.msra.mxu0 %v7106_v13  ;;  %770 = vperm.xlu1 %6433, %v6001_v15   ;;  %v5996_v21 = vld [vmem:[%s12337_s1 + $0x10] sm:$0xff] }
   0x7   :  { %6266 = vmatpush1.bf16.msra.mxu1 %v7108_v14  ;;  %6268 = vmatprep.subr.bf16.mxu0 %v7081_v4 }
   0x8   :  { %6272 = vmatprep.subr.bf16.mxu1 %v7093_v9 }
   0x9   :  { %5976 = vmatmul.mubr.msk.f32.vlgmr.msra.gmra.mrb[0].mxu0 %vm80_vm0, %v64_v16 }
   0xa   :  { %5978 = vmatmul.mubr.msk.f32.vlgmr.msra.gmra.mrb[0].mxu1 %vm80_vm0, %v64_v16  ;;  %157 = vmatprep.mubr.f32.mxu0 %v12344_v8 }
   0xb   :  { %234 = vmatprep.mubr.f32.mxu1 %v12344_v8  ;;  %1426 = vperm.xlu1 %6433, %v6027_v17  }
   0xc   :  { %6270 = vmatpush1.bf16.msra.mxu0 %v7106_v13  ;;  %6274 = vmatpush1.bf16.msra.mxu1 %v7108_v14 }
   0xd   :  { %6276 = vmatprep.subr.bf16.mxu0 %v7081_v4  ;;  %5977 = vmatmul.mubr.msk.f32.gmra.mrb[2].mxu0 %vm80_vm0, %v65_v18 }
   0xe   :  { %5979 = vmatmul.mubr.msk.f32.gmra.mrb[2].mxu1 %vm80_vm0, %v65_v18  ;;  %843 = vmatprep.mubr.f32.mxu0 %v12344_v8 }
   0xf   :  { %920 = vmatprep.mubr.f32.mxu1 %v12344_v8 }
  0x10   :  { %12 = vsyncpa [#allocation5], 0  ;;  %2082 = vperm.xlu1 %6433, %v6053_v19   ;;  %6280 = vmatprep.subr.bf16.mxu1 %v7093_v9  ;;  %v6079_v22 = vld [vmem:[%s12339_s3 + $0x48] sm:$0xff]  ;;  %v5997_v23 = vld [vmem:[%s12337_s1 + $0x18] sm:$0xff]  ;;  %v12349_v31 = vmov 1   ;;  %v12347_v34 = vmov 2  }
  0x11   :  { %72 = vperm.xlu0 %6432, %v68_v20   ;;  %6002 = vmatmul.mubr.msk.f32.vlgmr.msra.gmra.mrb[4].mxu0 %vm80_vm0, %v5996_v21  ;;  %v6105_v24 = vld [vmem:[%s12339_s3 + $0x58] sm:$0xff]  ;;  %v69_v25 = vld [vmem:[%s12339_s3 + $0x8] sm:$0xff]  ;;  %v6022_v26 = vld [vmem:[%s12337_s1 + $0x20] sm:$0xff]  ;;  %v12346_v37 = vmov 6   ;;  %v12355_v43 = vmov 7   ;;  %v12353_v44 = vmov 8  }
  0x12   :  { %6004 = vmatmul.mubr.msk.f32.vlgmr.msra.gmra.mrb[4].mxu1 %vm80_vm0, %v5996_v21  ;;  %849 = vmatprep.mubr.f32.mxu0 %v12344_v8  ;;  %v7179_v27 = vld [vmem:[%s12338_s2 + $0x8] sm:$0xff]  ;;  %v6026_v29 = vld [vmem:[%s12339_s3 + $0x20] sm:$0xff]  ;;  %v6048_v30 = vld [vmem:[%s12337_s1 + $0x30] sm:$0xff]  ;;  %s7019_s15 = smov 1   ;;  %s7020_s16 = smov 127  }
  0x13   :  { %926 = vmatprep.mubr.f32.mxu1 %v12344_v8  ;;  %6278 = vmatpush1.bf16.msra.mxu0 %v7106_v13  ;;  %v6023_v28 = vld [vmem:[%s12337_s1 + $0x28] sm:$0xff]  ;;  %v6049_v32 = vld [vmem:[%s12337_s1 + $0x38] sm:$0xff]  ;;  %v66_v33 = vld [vmem:[%s12338_s2] sm:$0xff]  ;;  %s7028_s20 = smov [#allocation4]  }
  0x14   :  { %2738 = vperm.xlu1 %6433, %v6079_v22   ;;  %6282 = vmatpush1.bf16.msra.mxu1 %v7108_v14  ;;  %v6052_v35 = vld [vmem:[%s12339_s3 + $0x30] sm:$0xff]  ;;  %v6074_v36 = vld [vmem:[%s12337_s1 + $0x40] sm:$0xff]  ;;  %v6075_v38 = vld [vmem:[%s12337_s1 + $0x48] sm:$0xff]  ;;  %s5960_s21 = sshll.u32 %s7028_s20, 4  ;;  %s5961_s21 = int_to_ptr.vmem [resolvable:$true] %s5960_s21 }
  0x15   :  { %6284 = vmatprep.subr.bf16.mxu0 %v7081_v4  ;;  %6003 = vmatmul.mubr.msk.f32.gmra.mrb[6].mxu0 %vm80_vm0, %v5997_v23  ;;  %v6078_v39 = vld [vmem:[%s12339_s3 + $0x40] sm:$0xff]  ;;  %v6100_v40 = vld [vmem:[%s12337_s1 + $0x50] sm:$0xff]  ;;  %v6101_v42 = vld [vmem:[%s12337_s1 + $0x58] sm:$0xff]  ;;  %s6988_s22 = scalar_lea.vmem %s5961_s21, 1024  ;;  %p6993_p1 = scmp.lt.s32.totalorder %s5961_s21, %s5961_s21 }
  0x16   :  { %6005 = vmatmul.mubr.msk.f32.gmra.mrb[6].mxu1 %vm80_vm0, %v5997_v23  ;;  %1499 = vmatprep.mubr.f32.mxu0 %v12344_v8  ;;  %v6104_v41 = vld [vmem:[%s12339_s3 + $0x50] sm:$0xff]  ;;  %v5999_v46 = vld [vmem:[%s12338_s2 + $0x18] sm:$0xff]  ;;  %v6024_v47 = vld [vmem:[%s12338_s2 + $0x20] sm:$0xff]  ;;  %p6989_p0 = scmp.ne.s32.totalorder %s5961_s21, %s6988_s22  ;;  %p6994_p2 = scmp.lt.s32.totalorder %s6988_s22, %s6988_s22 }
  0x17   :  { %1576 = vmatprep.mubr.f32.mxu1 %v12344_v8  ;;  %6288 = vmatprep.subr.bf16.mxu1 %v7093_v9  ;;  %v5998_v45 = vld [vmem:[%s12338_s2 + $0x10] sm:$0xff]  ;;  %v6025_v48 = vld [vmem:[%s12338_s2 + $0x28] sm:$0xff]  ;;  %v6051_v49 = vld [vmem:[%s12338_s2 + $0x38] sm:$0xff] }
  0x18   :  { %3394 = vperm.xlu1 %6433, %v6105_v24   ;;  %77 = vperm.xlu0 %6432, %v69_v25   ;;  %v7291_v50 = vld [vmem:[%s12338_s2 + $0x48] sm:$0xff]  ;;  %v6050_v53 = vld [vmem:[%s12338_s2 + $0x30] sm:$0xff]  ;;  %v7334_v62 = vld [vmem:[%s12338_s2 + $0x40] sm:$0xff]  ;;  %p6995_p3 = por %p6994_p2, %p6993_p1 }
  0x19   :  { %6028 = vmatmul.mubr.msk.f32.vlgmr.msra.gmra.mrb[8].mxu0 %vm80_vm0, %v6022_v26 }
  0x1a   :  { %6030 = vmatmul.mubr.msk.f32.vlgmr.msra.gmra.mrb[8].mxu1 %vm80_vm0, %v6022_v26  ;;  %1505 = vmatprep.mubr.f32.mxu0 %v12344_v8  ;;  %p6996_p4 = pnand %p6995_p3, %p6989_p0 }
  0x1b   :  { %1582 = vmatprep.mubr.f32.mxu1 %v12344_v8  ;;  %6286 = vmatpush1.bf16.msra.mxu0 %v7106_v13 }
  0x1c   :  { %450 = vperm.xlu1 %6433, %v7179_v27   ;;  %6290 = vmatpush1.bf16.msra.mxu1 %v7108_v14 }
  0x1d   :  { %6292 = vmatprep.subr.bf16.mxu0 %v7081_v4  ;;  %6029 = vmatmul.mubr.msk.f32.gmra.mrb[10].mxu0 %vm80_vm0, %v6023_v28 }
  0x1e   :  { %6031 = vmatmul.mubr.msk.f32.gmra.mrb[10].mxu1 %vm80_vm0, %v6023_v28  ;;  %2155 = vmatprep.mubr.f32.mxu0 %v12344_v8 }
  0x1f   :  { %2232 = vmatprep.mubr.f32.mxu1 %v12344_v8  ;;  %6296 = vmatprep.subr.bf16.mxu1 %v7093_v9 }
  0x20   :  { %6435 = vset.pattern.permute.xlu1 %v12349_v31  ;;  %1421 = vperm.xlu0 %6432, %v6026_v29  }
  0x21   :  { %466 = vperm.xlu1 %6435, %v7179_v27   ;;  %6054 = vmatmul.mubr.msk.f32.vlgmr.msra.gmra.mrb[12].mxu0 %vm80_vm0, %v6048_v30 }
  0x22   :  { %6056 = vmatmul.mubr.msk.f32.vlgmr.msra.gmra.mrb[12].mxu1 %vm80_vm0, %v6048_v30  ;;  %2161 = vmatprep.mubr.f32.mxu0 %v12344_v8 }
  0x23   :  { %2238 = vmatprep.mubr.f32.mxu1 %v12344_v8  ;;  %6294 = vmatpush1.bf16.msra.mxu0 %v7106_v13 }
  0x24   :  { %6298 = vmatpush1.bf16.msra.mxu1 %v7108_v14  ;;  %6300 = vmatprep.subr.bf16.mxu0 %v7081_v4 }
  0x25   :  { %6436 = vset.pattern.permute.xlu1 %v12347_v34  ;;  %6055 = vmatmul.mubr.msk.f32.gmra.mrb[14].mxu0 %vm80_vm0, %v6049_v32 }
  0x26   :  { %6057 = vmatmul.mubr.msk.f32.gmra.mrb[14].mxu1 %vm80_vm0, %v6049_v32  ;;  %486 = vperm.xlu1 %6436, %v66_v33  }
  0x27   :  { %2811 = vmatprep.mubr.f32.mxu0 %v12344_v8  ;;  %2888 = vmatprep.mubr.f32.mxu1 %v12344_v8 }
  0x28   :  { %6304 = vmatprep.subr.bf16.mxu1 %v7093_v9  ;;  %2077 = vperm.xlu0 %6432, %v6052_v35  }
  0x29   :  { %6080 = vmatmul.mubr.msk.f32.vlgmr.msra.gmra.mrb[16].mxu0 %vm80_vm0, %v6074_v36 }
  0x2a   :  { %6082 = vmatmul.mubr.msk.f32.vlgmr.msra.gmra.mrb[16].mxu1 %vm80_vm0, %v6074_v36  ;;  %6437 = vset.pattern.permute.xlu1 %v12346_v37 }
  0x2b   :  { %2817 = vmatprep.mubr.f32.mxu0 %v12344_v8  ;;  %559 = vperm.xlu1 %6437, %v66_v33  }
  0x2c   :  { %2894 = vmatprep.mubr.f32.mxu1 %v12344_v8  ;;  %6302 = vmatpush1.bf16.msra.mxu0 %v7106_v13 }
  0x2d   :  { %6306 = vmatpush1.bf16.msra.mxu1 %v7108_v14  ;;  %6081 = vmatmul.mubr.msk.f32.gmra.mrb[18].mxu0 %vm80_vm0, %v6075_v38 }
  0x2e   :  { %6083 = vmatmul.mubr.msk.f32.gmra.mrb[18].mxu1 %vm80_vm0, %v6075_v38  ;;  %3467 = vmatprep.mubr.f32.mxu0 %v12344_v8 }
  0x2f   :  { %3544 = vmatprep.mubr.f32.mxu1 %v12344_v8  ;;  %563 = vperm.xlu1 %6437, %v7179_v27  }
  0x30   :  { %2733 = vperm.xlu0 %6432, %v6078_v39  }
  0x31   :  { %6106 = vmatmul.mubr.msk.f32.vlgmr.msra.gmra.mrb[20].mxu0 %vm80_vm0, %v6100_v40 }
  0x32   :  { %6108 = vmatmul.mubr.msk.f32.vlgmr.msra.gmra.mrb[20].mxu1 %vm80_vm0, %v6100_v40  ;;  %3473 = vmatprep.mubr.f32.mxu0 %v12344_v8 }
  0x33   :  { %3550 = vmatprep.mubr.f32.mxu1 %v12344_v8  ;;  %6438 = vset.pattern.permute.xlu1 %v12355_v43 }
  0x34   :  { %3389 = vperm.xlu0 %6432, %v6104_v41   ;;  %579 = vperm.xlu1 %6438, %v7179_v27  }
  0x35   :  { %6107 = vmatmul.mubr.msk.f32.gmra.mrb[22].mxu0 %vm80_vm0, %v6101_v42 }
  0x36   :  { %6109 = vmatmul.mubr.msk.f32.gmra.mrb[22].mxu1 %vm80_vm0, %v6101_v42 }
  0x38   :  { %446 = vperm.xlu0 %6432, %v66_v33   ;;  %6439 = vset.pattern.permute.xlu1 %v12353_v44 }
  0x39   :  { %599 = vperm.xlu1 %6439, %v66_v33  }
  0x3c   :  { %6434 = vset.pattern.permute.xlu0 %v12349_v31 }
  0x3d   :  { %462 = vperm.xlu0 %6434, %v66_v33   ;;  %6440 = vset.pattern.permute.xlu1 %v12351_v3 }
  0x3e   :  { %1120 = vperm.xlu1 %6440, %v5998_v45  }
  0x41   :  { %1136 = vperm.xlu0 %6434, %v5998_v45  }
  0x42   :  { %1124 = vperm.xlu1 %6440, %v5999_v46  }
  0x45   :  { %1792 = vperm.xlu0 %6434, %v6024_v47  }
  0x46   :  { %6441 = vset.pattern.permute.xlu1 %v12349_v31 }
  0x47   :  { %1140 = vperm.xlu1 %6441, %v5999_v46  }
  0x49   :  { %6447 = vset.pattern.permute.xlu0 %v12347_v34 }
  0x4a   :  { %490 = vperm.xlu0 %6447, %v7179_v27  }
  0x4b   :  { %6442 = vset.pattern.permute.xlu1 %v12347_v34 }
  0x4c   :  { %1160 = vperm.xlu1 %6442, %v5998_v45  }
  0x4e   :  { %1164 = vperm.xlu0 %6447, %v5999_v46  }
  0x50   :  { %6443 = vset.pattern.permute.xlu1 %v12346_v37 }
  0x51   :  { %1224 = vperm.xlu1 %6443, %v5998_v45  }
  0x52   :  { %1820 = vperm.xlu0 %6447, %v6025_v48  }
  0x55   :  { %1228 = vperm.xlu1 %6443, %v5999_v46  }
  0x56   :  { %2476 = vperm.xlu0 %6447, %v6051_v49  }
  0x59   :  { %6444 = vset.pattern.permute.xlu1 %v12355_v43 }
  0x5a   :  { %3132 = vperm.xlu0 %6447, %v7291_v50   ;;  %1244 = vperm.xlu1 %6444, %v5999_v46  }
  0x5e   :  { %6445 = vset.pattern.permute.xlu1 %v12353_v44 }
  0x5f   :  { %1264 = vperm.xlu1 %6445, %v5998_v45  }
  0x63   :  { %6446 = vset.pattern.permute.xlu1 %v12351_v3 }
  0x64   :  { %1776 = vperm.xlu1 %6446, %v6024_v47  }
  0x68   :  { %1780 = vperm.xlu1 %6446, %v6025_v48  }
  0x6c   :  { %6448 = vset.pattern.permute.xlu1 %v12349_v31 }
  0x6d   :  { %1796 = vperm.xlu1 %6448, %v6025_v48  }
  0x71   :  { %6449 = vset.pattern.permute.xlu1 %v12347_v34 }
  0x72   :  { %1816 = vperm.xlu1 %6449, %v6024_v47  }
  0x76   :  { %6450 = vset.pattern.permute.xlu1 %v12346_v37 }
  0x77   :  { %1880 = vperm.xlu1 %6450, %v6024_v47  }
  0x7b   :  { %1884 = vperm.xlu1 %6450, %v6025_v48  }
  0x7f   :  { %6451 = vset.pattern.permute.xlu1 %v12355_v43 }
  0x80   :  { %1900 = vperm.xlu1 %6451, %v6025_v48  }
  0x81   :  { %v7301_v51 = vpop.permute.xlu1 %765 }
  0x84   :  { %6452 = vset.pattern.permute.xlu1 %v12353_v44 }
  0x85   :  { %1920 = vperm.xlu1 %6452, %v6024_v47   ;;  %v7304_v52 = vpop.permute.xlu1 %770 }
  0x89   :  { %6453 = vset.pattern.permute.xlu1 %v12351_v3 }
  0x8a   :  { %2432 = vperm.xlu1 %6453, %v6050_v53   ;;  %v7310_v54 = vpop.permute.xlu1 %1426 }
  0x8e   :  { %2436 = vperm.xlu1 %6453, %v6051_v49  }
  0x8f   :  { %v7312_v55 = vpop.permute.xlu1 %2082 }
  0x90   :  { %v73_v7 = vpop.permute.xlu0 %72 }
  0x92   :  { %6454 = vset.pattern.permute.xlu1 %v12349_v31 }
  0x93   :  { %v7315_v56 = vpop.permute.xlu1 %2738  ;;  %2452 = vperm.xlu1 %6454, %v6051_v49  }
  0x97   :  { %v7317_v57 = vpop.permute.xlu1 %3394  ;;  %6455 = vset.pattern.permute.xlu1 %v12347_v34  ;;  %v78_v16 = vpop.permute.xlu0 %77 }
  0x98   :  { %2472 = vperm.xlu1 %6455, %v6050_v53  }
  0x9b   :  { %v7320_v58 = vpop.permute.xlu1 %450 }
  0x9c   :  { %12877 = vst [vmem:[#allocation7_spill] sm:$0xff] %v7320_v58  ;;  %6456 = vset.pattern.permute.xlu1 %v12346_v37 }
  0x9d   :  { %2536 = vperm.xlu1 %6456, %v6050_v53  }
  0xa0   :  { %v7323_v59 = vpop.permute.xlu1 %466 }
  0xa1   :  { %12878 = vst [vmem:[#allocation8_spill] sm:$0xff] %v7323_v59  ;;  %2540 = vperm.xlu1 %6456, %v6051_v49  }
  0xa5   :  { %6457 = vset.pattern.permute.xlu1 %v12355_v43  ;;  %v7326_v60 = vpop.permute.xlu1 %486 }
  0xa6   :  { %12879 = vst [vmem:[#allocation9_spill] sm:$0xff] %v7326_v60  ;;  %2556 = vperm.xlu1 %6457, %v6051_v49  }
  0xaa   :  { %6458 = vset.pattern.permute.xlu1 %v12353_v44  ;;  %v7329_v61 = vpop.permute.xlu1 %559 }
  0xab   :  { %12880 = vst [vmem:[#allocation10_spill] sm:$0xff] %v7329_v61  ;;  %2576 = vperm.xlu1 %6458, %v6050_v53  }
  0xae   :  { %v7337_v63 = vpop.permute.xlu1 %563 }
  0xaf   :  { %6459 = vset.pattern.permute.xlu1 %v12351_v3  ;;  %12881 = vst [vmem:[#allocation11_spill] sm:$0xff] %v7337_v63 }
  0xb0   :  { %3088 = vperm.xlu1 %6459, %v7334_v62  }
  0xb3   :  { %v7341_v0 = vpop.permute.xlu1 %579 }
  0xb4   :  { %3092 = vperm.xlu1 %6459, %v7291_v50   ;;  %12882 = vst [vmem:[#allocation12_spill] sm:$0xff] %v7341_v0 }
  0xb8   :  { %6460 = vset.pattern.permute.xlu1 %v12349_v31  ;;  %v7345_v1 = vpop.permute.xlu1 %599 }
  0xb9   :  { %3108 = vperm.xlu1 %6460, %v7291_v50   ;;  %12883 = vst [vmem:[#allocation13_spill] sm:$0xff] %v7345_v1 }
  0xbd   :  { %6461 = vset.pattern.permute.xlu1 %v12347_v34  ;;  %v7349_v2 = vpop.permute.xlu1 %1120 }
  0xbe   :  { %3128 = vperm.xlu1 %6461, %v7334_v62   ;;  %12884 = vst [vmem:[#allocation14_spill] sm:$0xff] %v7349_v2 }
  0xc1   :  { %v7352_v4 = vpop.permute.xlu1 %1124 }
  0xc2   :  { %6462 = vset.pattern.permute.xlu1 %v12346_v37  ;;  %12885 = vst [vmem:[#allocation15_spill] sm:$0xff] %v7352_v4 }
  0xc6   :  { %v7354_v5 = vpop.permute.xlu1 %1140 }
  0xc7   :  { %12886 = vst [vmem:[#allocation16_spill] sm:$0xff] %v7354_v5 }
  0xcb   :  { %v7356_v6 = vpop.permute.xlu1 %1160 }
  0xcc   :  { %12887 = vst [vmem:[#allocation17_spill] sm:$0xff] %v7356_v6 }
  0xd0   :  { %v7358_v9 = vpop.permute.xlu1 %1224 }
  0xd1   :  { %12888 = vst [vmem:[#allocation18_spill] sm:$0xff] %v7358_v9 }
  0xd4   :  { %v7366_v19 = vpop.permute.xlu1 %1228 }
  0xd5   :  { %12889 = vst [vmem:[#allocation19_spill] sm:$0xff] %v7366_v19 }
  0xd9   :  { %v7385_v39 = vpop.permute.xlu1 %1244 }
  0xda   :  { %12890 = vst [vmem:[#allocation20_spill] sm:$0xff] %v7385_v39 }
  0xdc   :  { %v153_v10 = vpop.f32.mrb[0].mxu0 }
  0xdd   :  { %v230_v11 = vpop.f32.mrb[0].mxu1  ;;  %v7360_v12 = vadd.f32 %v153_v10, %v73_v7  ;;  %v155_v14 = vpop.f32.mrb[1].mxu0 }
  0xde   :  { %v7362_v13 = vadd.f32 %v230_v11, %v73_v7  ;;  %v232_v15 = vpop.f32.mrb[1].mxu1  ;;  %v7376_v32 = vadd.f32 %v155_v14, %v73_v7 }
  0xdf   :  { %v5980_v17 = vmul.f32 -1.442695, %v7360_v12  ;;  %v7372_v26 = vadd.f32 %v232_v15, %v73_v7 }
  0xe0   :  { %v5982_v18 = vmul.f32 -1.442695, %v7362_v13  ;;  %v159_v20 = vpop.f32.mrb[2].mxu0  ;;  %v5981_v42 = vmul.f32 -1.442695, %v7376_v32 }
  0xe1   :  { %v236_v21 = vpop.f32.mrb[2].mxu1  ;;  %6521 = vpow2.f32 %v5980_v17  ;;  %v7368_v22 = vadd.f32 %v159_v20, %v78_v16  ;;  %v161_v24 = vpop.f32.mrb[3].mxu0  ;;  %v5983_v36 = vmul.f32 -1.442695, %v7372_v26 }
  0xe2   :  { %v7370_v23 = vadd.f32 %v236_v21, %v78_v16  ;;  %v238_v25 = vpop.f32.mrb[3].mxu1  ;;  %6523 = vpow2.f32 %v5982_v18  ;;  %v7392_v48 = vadd.f32 %v161_v24, %v78_v16  ;;  %v7401_v17 = vpop.permute.xlu1 %1264 }
  0xe3   :  { %v5984_v27 = vmul.f32 -1.442695, %v7368_v22  ;;  %v7383_v38 = vadd.f32 %v238_v25, %v78_v16  ;;  %12891 = vst [vmem:[#allocation21_spill] sm:$0xff] %v7401_v17 }
  0xe4   :  { %v5986_v28 = vmul.f32 -1.442695, %v7370_v23  ;;  %v845_v29 = vpop.f32.mrb[4].mxu0  ;;  %v5985_v16 = vmul.f32 -1.442695, %v7392_v48 }
  0xe5   :  { %v922_v30 = vpop.f32.mrb[4].mxu1  ;;  %6525 = vpow2.f32 %v5984_v27  ;;  %v7378_v33 = vpop.f32.mrb[5].mxu0  ;;  %v5987_v49 = vmul.f32 -1.442695, %v7383_v38 }
  0xe6   :  { %v7380_v35 = vpop.f32.mrb[5].mxu1  ;;  %6527 = vpow2.f32 %v5986_v28 }
  0xe7   :  { %6529 = vpow2.f32 %v5983_v36 }
  0xe8   :  { %v851_v40 = vpop.f32.mrb[6].mxu0  ;;  %6531 = vpow2.f32 %v5981_v42 }
  0xe9   :  { %v928_v41 = vpop.f32.mrb[6].mxu1  ;;  %v7388_v45 = vpop.f32.mrb[7].mxu0 }
  0xea   :  { %v7390_v46 = vpop.f32.mrb[7].mxu1 }
  0xeb   :  { %v6522_v47 = vpop.eup %6521  ;;  %v7510_v9 = vadd.f32 %v7390_v46, %v7304_v52 }
  0xec   :  { %v6524_v53 = vpop.eup %6523  ;;  %v265_v7 = vadd.f32 1.0, %v6522_v47  ;;  %v7395_v10 = vpop.f32.mrb[8].mxu0  ;;  %v7415_v47 = vadd.f32 %v845_v29, %v7301_v51 }
  0xed   :  { %v267_v11 = vadd.f32 1.0, %v6524_v53  ;;  %v7397_v14 = vpop.f32.mrb[8].mxu1  ;;  %v7399_v15 = vpop.f32.mrb[9].mxu0 }
  0xee   :  { %6533 = vrcp.f32 %v265_v7  ;;  %v7403_v18 = vpop.f32.mrb[9].mxu1  ;;  %v7417_v53 = vpop.permute.xlu1 %1776 }
  0xef   :  { %v6526_v20 = vpop.eup %6525  ;;  %6535 = vpow2.f32 %v5987_v49  ;;  %12892 = vst [vmem:[#allocation22_spill] sm:$0xff] %v7417_v53 }
  0xf0   :  { %v6528_v21 = vpop.eup %6527  ;;  %6537 = vrcp.f32 %v267_v11  ;;  %v269_v24 = vadd.f32 1.0, %v6526_v20  ;;  %v7406_v25 = vpop.f32.mrb[10].mxu0  ;;  %v7422_v11 = vadd.f32 %v922_v30, %v7301_v51 }
  0xf1   :  { %v271_v27 = vadd.f32 1.0, %v6528_v21  ;;  %v7408_v28 = vpop.f32.mrb[10].mxu1  ;;  %v7410_v36 = vpop.f32.mrb[11].mxu0 }
  0xf2   :  { %6539 = vrcp.f32 %v269_v24  ;;  %v7412_v42 = vpop.f32.mrb[11].mxu1  ;;  %v6530_v7 = vpop.eup %6529  ;;  %v7429_v24 = vadd.f32 %v851_v40, %v7304_v52  ;;  %v6008_v3 = vmul.f32 -1.442695, %v7422_v11 }
  0xf3   :  { %6541 = vpow2.f32 %v5985_v16  ;;  %v6532_v29 = vpop.eup %6531  ;;  %v268_v37 = vadd.f32 1.0, %v6530_v7  ;;  %v7448_v7 = vadd.f32 %v928_v41, %v7304_v52  ;;  %v7450_v4 = vpop.permute.xlu1 %1780 }
  0xf4   :  { %6543 = vrcp.f32 %v271_v27  ;;  %v7419_v49 = vpop.f32.mrb[12].mxu0  ;;  %v6006_v27 = vmul.f32 -1.442695, %v7415_v47  ;;  %v6010_v39 = vmul.f32 -1.442695, %v7429_v24  ;;  %v266_v5 = vadd.f32 1.0, %v6532_v29 }
  0xf5   :  { %v7424_v20 = vpop.f32.mrb[12].mxu1  ;;  %v7426_v21 = vpop.f32.mrb[13].mxu0  ;;  %12894 = vst [vmem:[#allocation24_spill] sm:$0xff] %v7450_v4 }
  0xf6   :  { %v7431_v16 = vpop.f32.mrb[13].mxu1  ;;  %6545 = vpow2.f32 %v6006_v27 }
  0xf7   :  { %6547 = vrcp.f32 %v268_v37 }
  0xf8   :  { %v6534_v8 = vpop.eup %6533  ;;  %v7434_v34 = vpop.f32.mrb[14].mxu0  ;;  %6549 = vpow2.f32 %v6008_v3 }
  0xf9   :  { %v6536_v31 = vpop.eup %6535  ;;  %v7437_v30 = vmul.f32 %v6534_v8, %v7360_v12  ;;  %v7440_v44 = vpop.f32.mrb[14].mxu1  ;;  %6551 = vpow2.f32 %v6010_v39  ;;  %v7486_v39 = vadd.f32 %v7378_v33, %v7301_v51 }
  0xfa   :  { %v7442_v43 = vpop.f32.mrb[15].mxu0  ;;  %v6538_v40 = vpop.eup %6537  ;;  %v272_v12 = vadd.f32 1.0, %v6536_v31  ;;  %6553 = vrcp.f32 %v266_v5  ;;  %v6012_v31 = vmul.f32 -1.442695, %v7448_v7 }
  0xfb   :  { %12893 = vst [vmem:[#allocation23_spill] sm:$0xff] %v7437_v30  ;;  %v7445_v19 = vpop.f32.mrb[15].mxu1  ;;  %297 = vrot.lane.b32.xlu1 %v7437_v30, %s7019_s15  ;;  %v7459_v29 = vmul.f32 %v6538_v40, %v7362_v13 }
  0xfc   :  { %v6540_v8 = vpop.eup %6539  ;;  %v7454_v0 = vpop.f32.mrb[16].mxu0  ;;  %6555 = vrcp.f32 %v272_v12 }
  0xfd   :  { %v7456_v63 = vpop.f32.mrb[16].mxu1  ;;  %v6542_v53 = vpop.eup %6541  ;;  %12895 = vst [vmem:[#allocation25_spill] sm:$0xff] %v7459_v29  ;;  %v7462_v41 = vmul.f32 %v6540_v8, %v7368_v22  ;;  %v7490_v8 = vadd.f32 %v7380_v35, %v7301_v51  ;;  %6557 = vpow2.f32 %v6012_v31  ;;  %v6007_v31 = vmul.f32 -1.442695, %v7486_v39 }
  0xfe   :  { %v7464_v27 = vpop.f32.mrb[17].mxu0  ;;  %v7466_v4 = vpop.f32.mrb[17].mxu1  ;;  %v270_v37 = vadd.f32 1.0, %v6542_v53 }
  0xff   :  { %12896 = vst [vmem:[#allocation26_spill] sm:$0xff] %v7462_v41  ;;  %v6544_v60 = vpop.eup %6543  ;;  %299 = vrot.lane.b32.xlu0 %v7462_v41, %s7019_s15  ;;  %305 = vrot.lane.b32.xlu1 %v7459_v29, %s7019_s15  ;;  %v7492_v53 = vpop.permute.xlu1 %1796  ;;  %v6009_v17 = vmul.f32 -1.442695, %v7490_v8 }
 0x100   :  { %v7473_v13 = vpop.f32.mrb[18].mxu0  ;;  %v7478_v22 = vmul.f32 %v6544_v60, %v7370_v23  ;;  %12898 = vst [vmem:[#allocation28_spill] sm:$0xff] %v7492_v53  ;;  %6559 = vrcp.f32 %v270_v37  ;;  %v6546_v33 = vpop.eup %6545 }
 0x101   :  { %v7475_v3 = vpop.f32.mrb[18].mxu1  ;;  %v7480_v40 = vpop.f32.mrb[19].mxu0  ;;  %v957_v6 = vadd.f32 1.0, %v6546_v33  ;;  %6561 = vpow2.f32 %v6007_v31  ;;  %v6013_v33 = vmul.f32 -1.442695, %v7510_v9 }
 0x102   :  { %12897 = vst [vmem:[#allocation27_spill] sm:$0xff] %v7478_v22  ;;  %v7482_v5 = vpop.f32.mrb[19].mxu1  ;;  %v6548_v35 = vpop.eup %6547  ;;  %6563 = vpow2.f32 %v6009_v17 }
 0x103   :  { %307 = vrot.lane.b32.xlu0 %v7478_v22, %s7019_s15  ;;  %338 = vrot.lane.b32.xlu1 %v7437_v30, %s7020_s16  ;;  %v6550_v53 = vpop.eup %6549  ;;  %v7521_v61 = vmul.f32 %v6548_v35, %v7372_v26  ;;  %6565 = vrcp.f32 %v957_v6 }
 0x104   :  { %v7498_v60 = vpop.f32.mrb[20].mxu0  ;;  %v6552_v37 = vpop.eup %6551 }
 0x105   :  { %v7500_v23 = vpop.f32.mrb[20].mxu1  ;;  %v7502_v12 = vpop.f32.mrb[21].mxu0  ;;  %12900 = vst [vmem:[#allocation30_spill] sm:$0xff] %v7521_v61  ;;  %v961_v26 = vadd.f32 1.0, %v6552_v37 }
 0x106   :  { %12899 = vst [vmem:[#allocation29_spill] sm:$0xff] %v7502_v12  ;;  %v7504_v51 = vpop.f32.mrb[21].mxu1  ;;  %v6554_v1 = vpop.eup %6553  ;;  %v959_v12 = vadd.f32 1.0, %v6550_v53 }
 0x107   :  { %340 = vrot.lane.b32.xlu0 %v7462_v41, %s7020_s16  ;;  %346 = vrot.lane.b32.xlu1 %v7459_v29, %s7020_s16  ;;  %v6556_v58 = vpop.eup %6555  ;;  %v7529_v29 = vadd.f32 %v7388_v45, %v7304_v52  ;;  %v7532_v41 = vpop.permute.xlu1 %1816  ;;  %v7539_v53 = vmul.f32 %v6554_v1, %v7376_v32 }
 0x108   :  { %v7516_v2 = vpop.f32.mrb[22].mxu0  ;;  %12901 = vst [vmem:[#allocation31_spill] sm:$0xff] %v7532_v41  ;;  %v6558_v35 = vpop.eup %6557  ;;  %v7542_v17 = vmul.f32 %v6556_v58, %v7383_v38  ;;  %6567 = vrcp.f32 %v959_v12 }
 0x109   :  { %v7518_v30 = vpop.f32.mrb[22].mxu1  ;;  %v7523_v59 = vpop.f32.mrb[23].mxu0  ;;  %12902 = vst [vmem:[#allocation32_spill] sm:$0xff] %v7539_v53  ;;  %v6011_v45 = vmul.f32 -1.442695, %v7529_v29  ;;  %6569 = vpow2.f32 %v6013_v33  ;;  %v963_v6 = vadd.f32 1.0, %v6558_v35 }
 0x10a   :  { %v7525_v46 = vpop.f32.mrb[23].mxu1  ;;  %12903 = vst [vmem:[#allocation33_spill] sm:$0xff] %v7542_v17  ;;  %v6560_v52 = vpop.eup %6559  ;;  %6571 = vrcp.f32 %v961_v26  ;;  %v7567_v26 = vadd.f32 %v7406_v25, %v7310_v54 }
 0x10b   :  { %348 = vrot.lane.b32.xlu0 %v7478_v22, %s7020_s16  ;;  %309 = vrot.lane.b32.xlu1 %v7521_v61, %s7019_s15  ;;  %v7550_v31 = vmul.f32 %v6560_v52, %v7392_v48  ;;  %v7552_v1 = vpop.permute.xlu1 %1880  ;;  %v1422_v58 = vpop.permute.xlu0 %1421  ;;  %6573 = vpow2.f32 %v6011_v45 }
 0x10c   :  { %12905 = vst [vmem:[#allocation35_spill] sm:$0xff] %v7552_v1  ;;  %v7555_v32 = vadd.f32 %v7395_v10, %v1422_v58  ;;  %v6562_v38 = vpop.eup %6561  ;;  %6575 = vrcp.f32 %v963_v6  ;;  %v7562_v48 = vadd.f32 %v7397_v14, %v1422_v58  ;;  %v6036_v25 = vmul.f32 -1.442695, %v7567_v26 }
 0x10d   :  { %12904 = vst [vmem:[#allocation34_spill] sm:$0xff] %v7550_v31  ;;  %v6564_v12 = vpop.eup %6563  ;;  %v958_v6 = vadd.f32 1.0, %v6562_v38 }
 0x10e   :  { %v6566_v37 = vpop.eup %6565  ;;  %v6032_v33 = vmul.f32 -1.442695, %v7555_v32  ;;  %v960_v52 = vadd.f32 1.0, %v6564_v12  ;;  %v6034_v41 = vmul.f32 -1.442695, %v7562_v48 }
 0x10f   :  { %311 = vrot.lane.b32.xlu0 %v7542_v17, %s7019_s15  ;;  %301 = vrot.lane.b32.xlu1 %v7539_v53, %s7019_s15  ;;  %v7569_v10 = vpop.permute.xlu1 %1884  ;;  %v7576_v14 = vmul.f32 %v6566_v37, %v7415_v47 }
 0x110   :  { %12906 = vst [vmem:[#allocation36_spill] sm:$0xff] %v7569_v10  ;;  %6577 = vpow2.f32 %v6032_v33  ;;  %v7582_v10 = vadd.f32 %v7408_v28, %v7310_v54 }
 0x111   :  { %12907 = vst [vmem:[#allocation37_spill] sm:$0xff] %v7576_v14  ;;  %6579 = vrcp.f32 %v960_v52 }
 0x112   :  { %v6568_v35 = vpop.eup %6567  ;;  %6581 = vrcp.f32 %v958_v6 }
 0x113   :  { %303 = vrot.lane.b32.xlu0 %v7550_v31, %s7019_s15  ;;  %342 = vrot.lane.b32.xlu1 %v7539_v53, %s7020_s16  ;;  %v6570_v45 = vpop.eup %6569  ;;  %v7589_v38 = vmul.f32 %v6568_v35, %v7422_v11  ;;  %v7594_v33 = vpop.permute.xlu1 %1900  ;;  %6583 = vpow2.f32 %v6034_v41  ;;  %v7614_v35 = vadd.f32 %v7399_v15, %v1422_v58 }
 0x114   :  { %v6572_v1 = vpop.eup %6571  ;;  %v964_v47 = vadd.f32 1.0, %v6570_v45  ;;  %12910 = vst [vmem:[#allocation40_spill] sm:$0xff] %v7594_v33  ;;  %6585 = vpow2.f32 %v6036_v25  ;;  %v7634_v33 = vadd.f32 %v7410_v36, %v7310_v54 }
 0x115   :  { %v6574_v12 = vpop.eup %6573  ;;  %12908 = vst [vmem:[#allocation38_spill] sm:$0xff] %v7589_v38  ;;  %v7592_v37 = vmul.f32 %v6572_v1, %v7429_v24  ;;  %v7605_v24 = vadd.f32 %v7403_v18, %v1422_v58  ;;  %v6033_v58 = vmul.f32 -1.442695, %v7614_v35 }
 0x116   :  { %v6576_v28 = vpop.eup %6575  ;;  %v962_v52 = vadd.f32 1.0, %v6574_v12  ;;  %6587 = vrcp.f32 %v964_v47 }
 0x117   :  { %344 = vrot.lane.b32.xlu0 %v7550_v31, %s7020_s16  ;;  %350 = vrot.lane.b32.xlu1 %v7521_v61, %s7020_s16  ;;  %12909 = vst [vmem:[#allocation39_spill] sm:$0xff] %v7592_v37  ;;  %v6038_v61 = vmul.f32 -1.442695, %v7582_v10  ;;  %v7602_v11 = vmul.f32 %v6576_v28, %v7448_v7  ;;  %v7607_v1 = vpop.permute.xlu1 %1920  ;;  %v7618_v7 = vadd.f32 %v7412_v42, %v7310_v54  ;;  %v6037_v54 = vmul.f32 -1.442695, %v7634_v33 }
 0x118   :  { %12912 = vst [vmem:[#allocation42_spill] sm:$0xff] %v7607_v1  ;;  %v7959_v1 = vld [vmem:[%s12338_s2 + $0x20] sm:$0xff] }
 0x119   :  { %12911 = vst [vmem:[#allocation41_spill] sm:$0xff] %v7602_v11  ;;  %6589 = vpow2.f32 %v6038_v61  ;;  %v6035_v61 = vmul.f32 -1.442695, %v7605_v24  ;;  %v6039_v28 = vmul.f32 -1.442695, %v7618_v7  ;;  %12955 = vst [vmem:[#allocation83_spill] sm:$0xff] %v7959_v1 }
 0x11a   :  { %6591 = vrcp.f32 %v962_v52  ;;  %v6578_v41 = vpop.eup %6577 }
 0x11b   :  { %352 = vrot.lane.b32.xlu0 %v7542_v17, %s7020_s16  ;;  %989 = vrot.lane.b32.xlu1 %v7576_v14, %s7019_s15  ;;  %v6580_v45 = vpop.eup %6579  ;;  %v1613_v25 = vadd.f32 1.0, %v6578_v41  ;;  %v7629_v12 = vpop.permute.xlu1 %2432  ;;  %6593 = vpow2.f32 %v6035_v61 }
 0x11c   :  { %v6582_v18 = vpop.eup %6581  ;;  %v7626_v15 = vmul.f32 %v6580_v45, %v7490_v8  ;;  %12914 = vst [vmem:[#allocation44_spill] sm:$0xff] %v7629_v12 }
 0x11d   :  { %v6584_v6 = vpop.eup %6583  ;;  %6595 = vrcp.f32 %v1613_v25  ;;  %v7641_v45 = vmul.f32 %v6582_v18, %v7486_v39 }
 0x11e   :  { %v6586_v47 = vpop.eup %6585  ;;  %12913 = vst [vmem:[#allocation43_spill] sm:$0xff] %v7626_v15  ;;  %v1615_v52 = vadd.f32 1.0, %v6584_v6  ;;  %6597 = vpow2.f32 %v6033_v58 }
 0x11f   :  { %991 = vrot.lane.b32.xlu0 %v7592_v37, %s7019_s15  ;;  %997 = vrot.lane.b32.xlu1 %v7589_v38, %s7019_s15  ;;  %v1617_v8 = vadd.f32 1.0, %v6586_v47  ;;  %12915 = vst [vmem:[#allocation45_spill] sm:$0xff] %v7641_v45  ;;  %6599 = vpow2.f32 %v6039_v28  ;;  %v7647_v36 = vpop.permute.xlu1 %2436 }
 0x120   :  { %v6588_v42 = vpop.eup %6587  ;;  %6601 = vrcp.f32 %v1615_v52  ;;  %12917 = vst [vmem:[#allocation47_spill] sm:$0xff] %v7647_v36 }
 0x121   :  { %v7644_v12 = vmul.f32 %v6588_v42, %v7510_v9  ;;  %6603 = vrcp.f32 %v1617_v8  ;;  %v2078_v9 = vpop.permute.xlu0 %2077 }
 0x122   :  { %6605 = vpow2.f32 %v6037_v54  ;;  %v7657_v6 = vadd.f32 %v7419_v49, %v2078_v9  ;;  %v7664_v47 = vadd.f32 %v7424_v20, %v2078_v9  ;;  %v7671_v49 = vadd.f32 %v7434_v34, %v7312_v55 }
 0x123   :  { %999 = vrot.lane.b32.xlu0 %v7602_v11, %s7019_s15  ;;  %1021 = vrot.lane.b32.xlu1 %v7576_v14, %s7020_s16  ;;  %v6590_v41 = vpop.eup %6589  ;;  %12916 = vst [vmem:[#allocation46_spill] sm:$0xff] %v7644_v12  ;;  %v7666_v58 = vpop.permute.xlu1 %2452  ;;  %v7684_v34 = vadd.f32 %v7431_v16, %v2078_v9 }
 0x124   :  { %v6592_v61 = vpop.eup %6591  ;;  %v1619_v39 = vadd.f32 1.0, %v6590_v41  ;;  %12919 = vst [vmem:[#allocation49_spill] sm:$0xff] %v7666_v58  ;;  %v6058_v28 = vmul.f32 -1.442695, %v7657_v6  ;;  %v6060_v54 = vmul.f32 -1.442695, %v7664_v47 }
 0x125   :  { %v7654_v18 = vmul.f32 %v6592_v61, %v7529_v29  ;;  %v6594_v25 = vpop.eup %6593  ;;  %v7677_v41 = vpop.permute.xlu0 %2733  ;;  %v6062_v58 = vmul.f32 -1.442695, %v7671_v49 }
 0x126   :  { %6607 = vrcp.f32 %v1619_v39  ;;  %v1616_v8 = vadd.f32 1.0, %v6594_v25 }
 0x127   :  { %1023 = vrot.lane.b32.xlu0 %v7592_v37, %s7020_s16  ;;  %1029 = vrot.lane.b32.xlu1 %v7589_v38, %s7020_s16  ;;  %12918 = vst [vmem:[#allocation48_spill] sm:$0xff] %v7654_v18  ;;  %v6596_v29 = vpop.eup %6595  ;;  %6609 = vpow2.f32 %v6058_v28  ;;  %v7691_v25 = vpop.permute.xlu1 %2472  ;;  %v6061_v28 = vmul.f32 -1.442695, %v7684_v34  ;;  %v8099_v38 = vadd.f32 %v7525_v46, %v7317_v57  ;;  %v8119_v46 = vadd.f32 %v7523_v59, %v7317_v57 }
 0x128   :  { %v6598_v42 = vpop.eup %6597  ;;  %v7680_v61 = vmul.f32 %v6596_v29, %v7555_v32  ;;  %12921 = vst [vmem:[#allocation51_spill] sm:$0xff] %v7691_v25  ;;  %6611 = vrcp.f32 %v1616_v8 }
 0x129   :  { %v6600_v52 = vpop.eup %6599  ;;  %v1614_v36 = vadd.f32 1.0, %v6598_v42  ;;  %6613 = vpow2.f32 %v6060_v54  ;;  %v7704_v25 = vpop.permute.xlu0 %3389  ;;  %v6115_v59 = vmul.f32 -1.442695, %v8119_v46 }
 0x12a   :  { %v6602_v20 = vpop.eup %6601  ;;  %12920 = vst [vmem:[#allocation50_spill] sm:$0xff] %v7680_v61  ;;  %v1620_v32 = vadd.f32 1.0, %v6600_v52 }
 0x12b   :  { %1031 = vrot.lane.b32.xlu0 %v7602_v11, %s7020_s16  ;;  %1001 = vrot.lane.b32.xlu1 %v7626_v15, %s7019_s15  ;;  %v6604_v39 = vpop.eup %6603  ;;  %v7689_v11 = vadd.f32 %v7440_v44, %v7312_v55  ;;  %v7698_v16 = vmul.f32 %v6602_v20, %v7562_v48  ;;  %6615 = vrcp.f32 %v1614_v36  ;;  %v7717_v36 = vpop.permute.xlu1 %2536 }
 0x12c   :  { %v6606_v29 = vpop.eup %6605  ;;  %v7701_v42 = vmul.f32 %v6604_v39, %v7567_v26  ;;  %6617 = vpow2.f32 %v6062_v58  ;;  %12925 = vst [vmem:[#allocation55_spill] sm:$0xff] %v7717_v36 }
 0x12d   :  { %12922 = vst [vmem:[#allocation52_spill] sm:$0xff] %v7698_v16  ;;  %v6064_v52 = vmul.f32 -1.442695, %v7689_v11  ;;  %v1618_v48 = vadd.f32 1.0, %v6606_v29  ;;  %6619 = vrcp.f32 %v1620_v32  ;;  %v7724_v58 = vpop.permute.xlu0 %446 }
 0x12e   :  { %12923 = vst [vmem:[#allocation53_spill] sm:$0xff] %v7701_v42  ;;  %6621 = vpow2.f32 %v6061_v28  ;;  %12926 = vst [vmem:[#allocation56_spill] sm:$0xff] %v7724_v58 }
 0x12f   :  { %1003 = vrot.lane.b32.xlu0 %v7644_v12, %s7019_s15  ;;  %993 = vrot.lane.b32.xlu1 %v7641_v45, %s7019_s15  ;;  %6623 = vpow2.f32 %v6064_v52  ;;  %v7730_v54 = vpop.permute.xlu1 %2540 }
 0x130   :  { %v6608_v44 = vpop.eup %6607  ;;  %6625 = vrcp.f32 %v1618_v48  ;;  %12927 = vst [vmem:[#allocation57_spill] sm:$0xff] %v7730_v54 }
 0x131   :  { %v7715_v26 = vmul.f32 %v6608_v44, %v7582_v10  ;;  %v7728_v10 = vadd.f32 %v7445_v19, %v7312_v55  ;;  %v7739_v28 = vpop.permute.xlu0 %462  ;;  %v7743_v19 = vadd.f32 %v7442_v43, %v7312_v55 }
 0x132   :  { %12929 = vst [vmem:[#allocation59_spill] sm:$0xff] %v7739_v28 }
 0x133   :  { %995 = vrot.lane.b32.xlu0 %v7654_v18, %s7019_s15  ;;  %1025 = vrot.lane.b32.xlu1 %v7641_v45, %s7020_s16  ;;  %12924 = vst [vmem:[#allocation54_spill] sm:$0xff] %v7715_v26  ;;  %v7758_v55 = vpop.permute.xlu1 %2556 }
 0x134   :  { %12933 = vst [vmem:[#allocation63_spill] sm:$0xff] %v7758_v55 }
 0x135   :  { %v7756_v43 = vpop.permute.xlu0 %1136 }
 0x136   :  { %12932 = vst [vmem:[#allocation62_spill] sm:$0xff] %v7756_v43 }
 0x137   :  { %1027 = vrot.lane.b32.xlu0 %v7654_v18, %s7020_s16  ;;  %1033 = vrot.lane.b32.xlu1 %v7626_v15, %s7020_s16  ;;  %v7707_v18 = vadd.f32 %v7426_v21, %v2078_v9  ;;  %v6610_v9 = vpop.eup %6609  ;;  %v6117_v15 = vmul.f32 -1.442695, %v8099_v38 }
 0x138   :  { %v6612_v8 = vpop.eup %6611  ;;  %v2269_v32 = vadd.f32 1.0, %v6610_v9 }
 0x139   :  { %v6059_v21 = vmul.f32 -1.442695, %v7707_v18  ;;  %v6614_v20 = vpop.eup %6613  ;;  %v7737_v44 = vmul.f32 %v6612_v8, %v7605_v24 }
 0x13a   :  { %v6616_v39 = vpop.eup %6615  ;;  %v2271_v48 = vadd.f32 1.0, %v6614_v20 }
 0x13b   :  { %1035 = vrot.lane.b32.xlu0 %v7644_v12, %s7020_s16  ;;  %1645 = vrot.lane.b32.xlu1 %v7680_v61, %s7019_s15  ;;  %6627 = vpow2.f32 %v6059_v21  ;;  %v6618_v29 = vpop.eup %6617  ;;  %12928 = vst [vmem:[#allocation58_spill] sm:$0xff] %v7737_v44  ;;  %v6065_v21 = vmul.f32 -1.442695, %v7728_v10  ;;  %v7751_v54 = vmul.f32 %v6616_v39, %v7614_v35 }
 0x13c   :  { %v6620_v52 = vpop.eup %6619  ;;  %6629 = vrcp.f32 %v2269_v32  ;;  %v2273_v24 = vadd.f32 1.0, %v6618_v29  ;;  %v7768_v32 = vpop.permute.xlu0 %1792 }
 0x13d   :  { %v6622_v9 = vpop.eup %6621  ;;  %12930 = vst [vmem:[#allocation60_spill] sm:$0xff] %v7751_v54  ;;  %v7754_v20 = vmul.f32 %v6620_v52, %v7618_v7  ;;  %6631 = vrcp.f32 %v2271_v48  ;;  %12935 = vst [vmem:[#allocation65_spill] sm:$0xff] %v7768_v32  ;;  %v7770_v29 = vpop.permute.xlu1 %2576 }
 0x13e   :  { %v6624_v8 = vpop.eup %6623  ;;  %6633 = vpow2.f32 %v6065_v21  ;;  %12936 = vst [vmem:[#allocation66_spill] sm:$0xff] %v7770_v29 }
 0x13f   :  { %1647 = vrot.lane.b32.xlu0 %v7701_v42, %s7019_s15  ;;  %1653 = vrot.lane.b32.xlu1 %v7698_v16, %s7019_s15  ;;  %12931 = vst [vmem:[#allocation61_spill] sm:$0xff] %v7754_v20  ;;  %v6626_v36 = vpop.eup %6625  ;;  %6635 = vrcp.f32 %v2273_v24  ;;  %v2275_v35 = vadd.f32 1.0, %v6624_v8 }
 0x140   :  { %v7766_v39 = vmul.f32 %v6626_v36, %v7634_v33  ;;  %v7776_v48 = vpop.permute.xlu0 %490 }
 0x142   :  { %12934 = vst [vmem:[#allocation64_spill] sm:$0xff] %v7766_v39 }
 0x143   :  { %1655 = vrot.lane.b32.xlu0 %v7715_v26, %s7019_s15  ;;  %1677 = vrot.lane.b32.xlu1 %v7680_v61, %s7020_s16  ;;  %v12956_v61 = vmov 0  }
 0x144   :  { %v7791_v24 = vpop.permute.xlu0 %1164 }
 0x145   :  { %v6628_v7 = vpop.eup %6627  ;;  %12939 = vst [vmem:[#allocation69_spill] sm:$0xff] %v7791_v24 }
 0x146   :  { %v2270_v52 = vadd.f32 1.0, %v6628_v7  ;;  %v6630_v21 = vpop.eup %6629 }
 0x147   :  { %1679 = vrot.lane.b32.xlu0 %v7701_v42, %s7020_s16  ;;  %1685 = vrot.lane.b32.xlu1 %v7698_v16, %s7020_s16  ;;  %v2272_v42 = vadd.f32 1.0, %v6622_v9  ;;  %v7778_v9 = vpop.permute.xlu1 %3088  ;;  %v6632_v33 = vpop.eup %6631 }
 0x148   :  { %12937 = vst [vmem:[#allocation67_spill] sm:$0xff] %v7778_v9  ;;  %v7794_v9 = vmul.f32 %v6632_v33, %v7664_v47  ;;  %v7811_v33 = vpop.permute.xlu0 %1820 }
 0x149   :  { %12945 = vst [vmem:[#allocation75_spill] sm:$0xff] %v7811_v33 }
 0x14a   :  { %12940 = vst [vmem:[#allocation70_spill] sm:$0xff] %v7794_v9 }
 0x14b   :  { %1687 = vrot.lane.b32.xlu0 %v7715_v26, %s7020_s16  ;;  %1657 = vrot.lane.b32.xlu1 %v7737_v44, %s7019_s15  ;;  %v6063_v26 = vmul.f32 -1.442695, %v7743_v19 }
 0x14d   :  { %6637 = vpow2.f32 %v6063_v26  ;;  %v7785_v26 = vmul.f32 %v6630_v21, %v7657_v6  ;;  %v7799_v6 = vpop.permute.xlu1 %3092 }
 0x14e   :  { %6639 = vrcp.f32 %v2272_v42  ;;  %v6634_v42 = vpop.eup %6633  ;;  %12942 = vst [vmem:[#allocation72_spill] sm:$0xff] %v7799_v6 }
 0x14f   :  { %1659 = vrot.lane.b32.xlu0 %v7754_v20, %s7019_s15  ;;  %1649 = vrot.lane.b32.xlu1 %v7751_v54, %s7019_s15  ;;  %6641 = vrcp.f32 %v2275_v35  ;;  %12938 = vst [vmem:[#allocation68_spill] sm:$0xff] %v7785_v26  ;;  %v6636_v36 = vpop.eup %6635  ;;  %v2276_v35 = vadd.f32 1.0, %v6634_v42 }
 0x150   :  { %6643 = vrcp.f32 %v2270_v52  ;;  %v7797_v52 = vmul.f32 %v6636_v36, %v7671_v49 }
 0x151   :  { %6645 = vrcp.f32 %v2276_v35  ;;  %v7813_v36 = vpop.permute.xlu1 %3108 }
 0x152   :  { %12941 = vst [vmem:[#allocation71_spill] sm:$0xff] %v7797_v52  ;;  %12946 = vst [vmem:[#allocation76_spill] sm:$0xff] %v7813_v36 }
 0x153   :  { %1651 = vrot.lane.b32.xlu0 %v7766_v39, %s7019_s15  ;;  %1681 = vrot.lane.b32.xlu1 %v7751_v54, %s7020_s16 }
 0x157   :  { %1683 = vrot.lane.b32.xlu0 %v7766_v39, %s7020_s16  ;;  %1689 = vrot.lane.b32.xlu1 %v7737_v44, %s7020_s16  ;;  %v6638_v8 = vpop.eup %6637 }
 0x158   :  { %v6640_v7 = vpop.eup %6639  ;;  %v2274_v55 = vadd.f32 1.0, %v6638_v8 }
 0x159   :  { %v6642_v21 = vpop.eup %6641  ;;  %v7806_v42 = vmul.f32 %v6640_v7, %v7684_v34  ;;  %v7822_v34 = vpop.permute.xlu0 %2476 }
 0x15a   :  { %v7809_v47 = vmul.f32 %v6642_v21, %v7689_v11  ;;  %v6644_v49 = vpop.eup %6643  ;;  %6647 = vrcp.f32 %v2274_v55  ;;  %12948 = vst [vmem:[#allocation78_spill] sm:$0xff] %v7822_v34  ;;  %v7828_v11 = vpop.permute.xlu1 %3128 }
 0x15b   :  { %1691 = vrot.lane.b32.xlu0 %v7754_v20, %s7020_s16  ;;  %2301 = vrot.lane.b32.xlu1 %v7785_v26, %s7019_s15  ;;  %12943 = vst [vmem:[#allocation73_spill] sm:$0xff] %v7806_v42  ;;  %v7820_v8 = vmul.f32 %v6644_v49, %v7707_v18  ;;  %12949 = vst [vmem:[#allocation79_spill] sm:$0xff] %v7828_v11  ;;  %v6646_v35 = vpop.eup %6645  ;;  %v7845_v49 = vadd.f32 %v7473_v13, %v7315_v56 }
 0x15c   :  { %12944 = vst [vmem:[#allocation74_spill] sm:$0xff] %v7809_v47  ;;  %v7834_v55 = vmul.f32 %v6646_v35, %v7728_v10  ;;  %v7856_v35 = vadd.f32 %v7454_v0, %v7677_v41  ;;  %v7864_v13 = vadd.f32 %v7475_v3, %v7315_v56  ;;  %v7881_v3 = vadd.f32 %v7482_v5, %v7315_v56 }
 0x15d   :  { %12947 = vst [vmem:[#allocation77_spill] sm:$0xff] %v7820_v8  ;;  %v7836_v18 = vpop.permute.xlu0 %3132  ;;  %v6088_v6 = vmul.f32 -1.442695, %v7845_v49  ;;  %v7899_v5 = vadd.f32 %v7480_v40, %v7315_v56 }
 0x15e   :  { %12950 = vst [vmem:[#allocation80_spill] sm:$0xff] %v7834_v55  ;;  %12951 = vst [vmem:[#allocation81_spill] sm:$0xff] %v7836_v18  ;;  %v12953_v18 = vmov 7   ;;  %v6084_v0 = vmul.f32 -1.442695, %v7856_v35 }
 0x15f   :  { %2303 = vrot.lane.b32.xlu0 %v7797_v52, %s7019_s15  ;;  %2309 = vrot.lane.b32.xlu1 %v7794_v9, %s7019_s15  ;;  %6649 = vpow2.f32 %v6088_v6  ;;  %v6090_v29 = vmul.f32 -1.442695, %v7864_v13  ;;  %v7893_v6 = vadd.f32 %v7466_v4, %v7677_v41  ;;  %v6089_v40 = vmul.f32 -1.442695, %v7899_v5 }
 0x160   :  { %6651 = vpow2.f32 %v6084_v0  ;;  %v7907_v0 = vld [vmem:[%s12338_s2 + $0x58] sm:$0xff] }
 0x161   :  { %6653 = vpow2.f32 %v6090_v29  ;;  %v7915_v29 = vadd.f32 %v7464_v27, %v7677_v41  ;;  %v6087_v56 = vmul.f32 -1.442695, %v7893_v6  ;;  %v7931_v27 = vld [vmem:[%s12338_s2] sm:$0xff] }
 0x163   :  { %2311 = vrot.lane.b32.xlu0 %v7809_v47, %s7019_s15  ;;  %2313 = vrot.lane.b32.xlu1 %v7806_v42, %s7019_s15 }
 0x164   :  { %v6648_v21 = vpop.eup %6647 }
 0x165   :  { %v7848_v11 = vmul.f32 %v6648_v21, %v7743_v19 }
 0x167   :  { %2335 = vrot.lane.b32.xlu0 %v7797_v52, %s7020_s16  ;;  %2305 = vrot.lane.b32.xlu1 %v7820_v8, %s7019_s15  ;;  %12952 = vst [vmem:[#allocation82_spill] sm:$0xff] %v7848_v11  ;;  %v12954_v52 = vmov 8  }
 0x169   :  { %v6650_v39 = vpop.eup %6649 }
 0x16b   :  { %2343 = vrot.lane.b32.xlu0 %v7809_v47, %s7020_s16  ;;  %3192 = vperm.xlu1 %6462, %v7334_v62   ;;  %v7874_v47 = vadd.f32 %v7456_v63, %v7677_v41  ;;  %v6652_v41 = vpop.eup %6651 }
 0x16c   :  { %v2925_v33 = vadd.f32 1.0, %v6652_v41 }
 0x16d   :  { %v7838_v7 = vpop.permute.xlu1 %297  ;;  %v6086_v63 = vmul.f32 -1.442695, %v7874_v47 }
 0x16f   :  { %2315 = vrot.lane.b32.xlu0 %v7834_v55, %s7019_s15  ;;  %3196 = vperm.xlu1 %6462, %v7291_v50   ;;  %6655 = vpow2.f32 %v6086_v63  ;;  %v6085_v63 = vmul.f32 -1.442695, %v7915_v29 }
 0x171   :  { %v7850_v36 = vpop.permute.xlu0 %299  ;;  %v7852_v10 = vpop.permute.xlu1 %305 }
 0x173   :  { %2307 = vrot.lane.b32.xlu0 %v7848_v11, %s7019_s15  ;;  %6463 = vset.pattern.permute.xlu1 %v12953_v18 }
 0x174   :  { %3212 = vperm.xlu1 %6463, %v7291_v50  }
 0x175   :  { %v7867_v19 = vpop.permute.xlu0 %307  ;;  %v7869_v21 = vpop.permute.xlu1 %338 }
 0x177   :  { %2339 = vrot.lane.b32.xlu0 %v7848_v11, %s7020_s16  ;;  %v6091_v11 = vmul.f32 -1.442695, %v7881_v3 }
 0x178   :  { %2333 = vrot.lane.b32.xlu1 %v7785_v26, %s7020_s16 }
 0x179   :  { %v7885_v50 = vpop.permute.xlu0 %340  ;;  %v7887_v34 = vpop.permute.xlu1 %346  ;;  %6464 = vset.pattern.permute.xlu1 %v12954_v52  ;;  %6657 = vpow2.f32 %v6091_v11  ;;  %v2929_v11 = vadd.f32 1.0, %v6650_v39 }
 0x17a   :  { %6659 = vpow2.f32 %v6087_v56  ;;  %v6654_v56 = vpop.eup %6653 }
 0x17b   :  { %2347 = vrot.lane.b32.xlu0 %v7834_v55, %s7020_s16  ;;  %6661 = vpow2.f32 %v6089_v40  ;;  %v7943_v40 = vld [vmem:[%s12338_s2 + $0x10] sm:$0xff]  ;;  %v6656_v12 = vpop.eup %6655  ;;  %v2931_v39 = vadd.f32 1.0, %v6654_v56 }
 0x17c   :  { %2337 = vrot.lane.b32.xlu1 %v7820_v8, %s7020_s16  ;;  %6663 = vpow2.f32 %v6085_v63  ;;  %v7954_v63 = vld [vmem:[%s12338_s2 + $0x50] sm:$0xff]  ;;  %v2927_v41 = vadd.f32 1.0, %v6656_v12 }
 0x17d   :  { %v7909_v4 = vpop.permute.xlu0 %348  ;;  %v7911_v26 = vpop.permute.xlu1 %309  ;;  %6665 = vrcp.f32 %v2929_v11 }
 0x17e   :  { %6667 = vrcp.f32 %v2925_v33  ;;  %v7971_v33 = vld [vmem:[%s12338_s2 + $0x30] sm:$0xff] }
 0x17f   :  { %3788 = vperm.xlu0 %6447, %v7907_v0   ;;  %6669 = vrcp.f32 %v2931_v39  ;;  %12957 = vst [vmem:[#allocation84_spill] sm:$0xff] %v7971_v33 }
 0x180   :  { %2345 = vrot.lane.b32.xlu1 %v7806_v42, %s7020_s16  ;;  %6671 = vrcp.f32 %v2927_v41 }
 0x181   :  { %v7922_v55 = vpop.permute.xlu0 %311  ;;  %v7924_v8 = vpop.permute.xlu1 %301 }
 0x183   :  { %6468 = vset.pattern.permute.xlu0 %v12953_v18  ;;  %v6658_v37 = vpop.eup %6657 }
 0x184   :  { %575 = vperm.xlu0 %6468, %v7931_v27   ;;  %2341 = vrot.lane.b32.xlu1 %v7794_v9, %s7020_s16  ;;  %v6660_v11 = vpop.eup %6659  ;;  %v2932_v56 = vadd.f32 1.0, %v6658_v37 }
 0x185   :  { %v7936_v42 = vpop.permute.xlu0 %303  ;;  %v7938_v20 = vpop.permute.xlu1 %342  ;;  %v2928_v12 = vadd.f32 1.0, %v6660_v11 }
 0x186   :  { %v6662_v32 = vpop.eup %6661  ;;  %6673 = vrcp.f32 %v2932_v56  ;;  %v12961_v56 = vmov 1  }
 0x187   :  { %v6664_v39 = vpop.eup %6663  ;;  %v2930_v37 = vadd.f32 1.0, %v6662_v32  ;;  %6675 = vrcp.f32 %v2928_v12 }
 0x188   :  { %1240 = vperm.xlu0 %6468, %v7943_v40   ;;  %3232 = vperm.xlu1 %6464, %v7334_v62   ;;  %v6666_v28 = vpop.eup %6665  ;;  %v2926_v58 = vadd.f32 1.0, %v6664_v39 }
 0x189   :  { %v7947_v9 = vpop.permute.xlu0 %344  ;;  %v7949_v24 = vpop.permute.xlu1 %350  ;;  %6677 = vrcp.f32 %v2930_v37  ;;  %v7985_v32 = vmul.f32 %v6666_v28, %v7845_v49 }
 0x18a   :  { %6679 = vrcp.f32 %v2926_v58  ;;  %v12965_v58 = vmov 2  }
 0x18b   :  { %12960 = vst [vmem:[#allocation87_spill] sm:$0xff] %v7985_v32 }
 0x18c   :  { %1896 = vperm.xlu0 %6468, %v7959_v1   ;;  %6465 = vset.pattern.permute.xlu1 %v12956_v61  ;;  %v8078_v1 = vadd.f32 %v7518_v30, %v7317_v57 }
 0x18d   :  { %v7963_v16 = vpop.permute.xlu0 %352  ;;  %v7965_v54 = vpop.permute.xlu1 %989  ;;  %3744 = vperm.xlu1 %6465, %v7954_v63  }
 0x18e   :  { %v6116_v30 = vmul.f32 -1.442695, %v8078_v1 }
 0x190   :  { %2552 = vperm.xlu0 %6468, %v7971_v33   ;;  %v6668_v33 = vpop.eup %6667 }
 0x191   :  { %v7974_v61 = vpop.permute.xlu0 %991  ;;  %v7976_v44 = vpop.permute.xlu1 %997  ;;  %3748 = vperm.xlu1 %6465, %v7907_v0  }
 0x192   :  { %12958 = vst [vmem:[#allocation85_spill] sm:$0xff] %v7974_v61  ;;  %v6670_v61 = vpop.eup %6669 }
 0x193   :  { %v6672_v37 = vpop.eup %6671  ;;  %v7999_v28 = vmul.f32 %v6670_v61, %v7864_v13 }
 0x194   :  { %3208 = vperm.xlu0 %6468, %v7334_v62   ;;  %v7992_v62 = vmul.f32 %v6668_v33, %v7856_v35  ;;  %v6674_v49 = vpop.eup %6673  ;;  %v8007_v35 = vmul.f32 %v6672_v37, %v7874_v47 }
 0x195   :  { %v7980_v41 = vpop.permute.xlu0 %999  ;;  %v7982_v11 = vpop.permute.xlu1 %1021  ;;  %6466 = vset.pattern.permute.xlu1 %v12961_v56  ;;  %12964 = vst [vmem:[#allocation90_spill] sm:$0xff] %v7999_v28  ;;  %v8014_v61 = vmul.f32 %v6674_v49, %v7881_v3  ;;  %v12977_v56 = vmov 6  }
 0x196   :  { %12959 = vst [vmem:[#allocation86_spill] sm:$0xff] %v7980_v41  ;;  %3764 = vperm.xlu1 %6466, %v7907_v0   ;;  %12962 = vst [vmem:[#allocation88_spill] sm:$0xff] %v7992_v62 }
 0x197   :  { %12966 = vst [vmem:[#allocation91_spill] sm:$0xff] %v8007_v35  ;;  %12968 = vst [vmem:[#allocation93_spill] sm:$0xff] %v8014_v61 }
 0x198   :  { %2959 = vrot.lane.b32.xlu0 %v7985_v32, %s7019_s15 }
 0x199   :  { %v7994_v12 = vpop.permute.xlu0 %1023  ;;  %v7996_v39 = vpop.permute.xlu1 %1029 }
 0x19a   :  { %12963 = vst [vmem:[#allocation89_spill] sm:$0xff] %v7994_v12  ;;  %2957 = vrot.lane.b32.xlu1 %v7992_v62, %s7019_s15  ;;  %v6676_v12 = vpop.eup %6675 }
 0x19b   :  { %6467 = vset.pattern.permute.xlu1 %v12965_v58  ;;  %v6678_v13 = vpop.eup %6677  ;;  %v8021_v58 = vmul.f32 %v6676_v12, %v7893_v6 }
 0x19c   :  { %2967 = vrot.lane.b32.xlu0 %v7999_v28, %s7019_s15  ;;  %v8028_v14 = vmul.f32 %v6678_v13, %v7899_v5  ;;  %v8046_v5 = vadd.f32 %v7498_v60, %v7704_v25 }
 0x19d   :  { %v8009_v33 = vpop.permute.xlu0 %1031  ;;  %v8011_v41 = vpop.permute.xlu1 %1001  ;;  %12969 = vst [vmem:[#allocation94_spill] sm:$0xff] %v8021_v58 }
 0x19e   :  { %12967 = vst [vmem:[#allocation92_spill] sm:$0xff] %v8009_v33  ;;  %2965 = vrot.lane.b32.xlu1 %v8007_v35, %s7019_s15  ;;  %v6680_v33 = vpop.eup %6679  ;;  %12971 = vst [vmem:[#allocation96_spill] sm:$0xff] %v8028_v14 }
 0x19f   :  { %v8035_v3 = vmul.f32 %v6680_v33, %v7915_v29  ;;  %v6110_v29 = vmul.f32 -1.442695, %v8046_v5  ;;  %v8057_v33 = vadd.f32 %v7516_v2, %v7317_v57 }
 0x1a0   :  { %2971 = vrot.lane.b32.xlu0 %v8014_v61, %s7019_s15 }
 0x1a1   :  { %v8023_v47 = vpop.permute.xlu0 %1003  ;;  %v8025_v37 = vpop.permute.xlu1 %993  ;;  %12972 = vst [vmem:[#allocation97_spill] sm:$0xff] %v8035_v3  ;;  %6681 = vpow2.f32 %v6110_v29  ;;  %v6114_v2 = vmul.f32 -1.442695, %v8057_v33  ;;  %v8093_v29 = vadd.f32 %v7504_v51, %v7704_v25 }
 0x1a2   :  { %12970 = vst [vmem:[#allocation95_spill] sm:$0xff] %v8023_v47  ;;  %2969 = vrot.lane.b32.xlu1 %v8021_v58, %s7019_s15  ;;  %v8071_v47 = vadd.f32 %v7500_v23, %v7704_v25 }
 0x1a3   :  { %6683 = vpow2.f32 %v6114_v2  ;;  %v12982_v2 = vld [vmem:[#allocation29_spill] sm:$0xff]  ;;  %v6113_v43 = vmul.f32 -1.442695, %v8093_v29 }
 0x1a4   :  { %2963 = vrot.lane.b32.xlu0 %v8028_v14, %s7019_s15  ;;  %v8113_v45 = vadd.f32 %v12982_v2, %v7704_v25 }
 0x1a5   :  { %v8037_v49 = vpop.permute.xlu0 %995  ;;  %v8039_v6 = vpop.permute.xlu1 %1025 }
 0x1a6   :  { %12973 = vst [vmem:[#allocation98_spill] sm:$0xff] %v8037_v49  ;;  %2961 = vrot.lane.b32.xlu1 %v8035_v3, %s7019_s15  ;;  %v8062_v49 = vld [vmem:[%s12338_s2 + $0x8] sm:$0xff] }
 0x1a8   :  { %3864 = vperm.xlu0 %6468, %v7954_v63  }
 0x1a9   :  { %v8048_v12 = vpop.permute.xlu0 %1027  ;;  %v8050_v13 = vpop.permute.xlu1 %1033 }
 0x1aa   :  { %12974 = vst [vmem:[#allocation99_spill] sm:$0xff] %v8048_v12  ;;  %3784 = vperm.xlu1 %6467, %v7954_v63  }
 0x1ab   :  { %v6682_v57 = vpop.eup %6681 }
 0x1ac   :  { %6470 = vset.pattern.permute.xlu0 %v12954_v52 }
 0x1ad   :  { %603 = vperm.xlu0 %6470, %v8062_v49   ;;  %v8065_v60 = vpop.permute.xlu0 %1035  ;;  %v8067_v12 = vpop.permute.xlu1 %1645 }
 0x1ae   :  { %12975 = vst [vmem:[#allocation100_spill] sm:$0xff] %v8065_v60  ;;  %12976 = vst [vmem:[#allocation101_spill] sm:$0xff] %v8067_v12  ;;  %6469 = vset.pattern.permute.xlu1 %v12977_v56  ;;  %v8083_v60 = vld [vmem:[%s12338_s2 + $0x18] sm:$0xff]  ;;  %v6112_v56 = vmul.f32 -1.442695, %v8071_v47 }
 0x1af   :  { %3848 = vperm.xlu1 %6469, %v7954_v63  }
 0x1b0   :  { %6685 = vpow2.f32 %v6112_v56  ;;  %v8126_v56 = vld [vmem:[%s12338_s2 + $0x38] sm:$0xff] }
 0x1b1   :  { %1268 = vperm.xlu0 %6470, %v8083_v60   ;;  %v8086_v23 = vpop.permute.xlu0 %1647  ;;  %v8088_v12 = vpop.permute.xlu1 %1653  ;;  %6687 = vpow2.f32 %v6116_v30  ;;  %12983 = vst [vmem:[#allocation29_spill] sm:$0xff] %v8126_v56  ;;  %v8140_v30 = vld [vmem:[%s12338_s2 + $0x48] sm:$0xff] }
 0x1b2   :  { %12978 = vst [vmem:[#allocation102_spill] sm:$0xff] %v8086_v23  ;;  %12979 = vst [vmem:[#allocation103_spill] sm:$0xff] %v8088_v12  ;;  %v8104_v23 = vld [vmem:[%s12338_s2 + $0x28] sm:$0xff]  ;;  %6689 = vpow2.f32 %v6113_v43  ;;  %v6684_v43 = vpop.eup %6683 }
 0x1b3   :  { %3852 = vperm.xlu1 %6469, %v7907_v0   ;;  %6691 = vpow2.f32 %v6117_v15 }
 0x1b5   :  { %1924 = vperm.xlu0 %6470, %v8104_v23   ;;  %v8107_v12 = vpop.permute.xlu0 %1655  ;;  %v8109_v51 = vpop.permute.xlu1 %1677 }
 0x1b6   :  { %12980 = vst [vmem:[#allocation104_spill] sm:$0xff] %v8107_v12  ;;  %12981 = vst [vmem:[#allocation105_spill] sm:$0xff] %v8109_v51 }
 0x1b7   :  { %6471 = vset.pattern.permute.xlu1 %v12953_v18  ;;  %v6111_v18 = vmul.f32 -1.442695, %v8113_v45 }
 0x1b8   :  { %3868 = vperm.xlu1 %6471, %v7907_v0  }
 0x1b9   :  { %2580 = vperm.xlu0 %6470, %v8126_v56   ;;  %v8129_v25 = vpop.permute.xlu0 %1679  ;;  %v8131_v2 = vpop.permute.xlu1 %1685  ;;  %v3581_v56 = vadd.f32 1.0, %v6682_v57  ;;  %6693 = vpow2.f32 %v6111_v18 }
 0x1ba   :  { %12984 = vst [vmem:[#allocation106_spill] sm:$0xff] %v8129_v25  ;;  %12985 = vst [vmem:[#allocation107_spill] sm:$0xff] %v8131_v2  ;;  %v6686_v15 = vpop.eup %6685  ;;  %6695 = vpow2.f32 %v6115_v59  ;;  %v3585_v2 = vadd.f32 1.0, %v6684_v43 }
 0x1bb   :  { %6697 = vrcp.f32 %v3581_v56  ;;  %v6688_v51 = vpop.eup %6687  ;;  %v3583_v57 = vadd.f32 1.0, %v6686_v15 }
 0x1bc   :  { %2989 = vrot.lane.b32.xlu1 %v7992_v62, %s7020_s16  ;;  %v6690_v18 = vpop.eup %6689  ;;  %6699 = vrcp.f32 %v3585_v2  ;;  %v3587_v59 = vadd.f32 1.0, %v6688_v51 }
 0x1bd   :  { %3236 = vperm.xlu0 %6470, %v8140_v30   ;;  %v8143_v12 = vpop.permute.xlu0 %1687  ;;  %v8145_v25 = vpop.permute.xlu1 %1657  ;;  %6472 = vset.pattern.permute.xlu1 %v12954_v52  ;;  %6701 = vrcp.f32 %v3583_v57 }
 0x1be   :  { %12986 = vst [vmem:[#allocation108_spill] sm:$0xff] %v8143_v12  ;;  %6703 = vrcp.f32 %v3587_v59 }
 0x1c0   :  { %2993 = vrot.lane.b32.xlu1 %v8035_v3, %s7020_s16  ;;  %v6692_v3 = vpop.eup %6691 }
 0x1c1   :  { %2991 = vrot.lane.b32.xlu0 %v7985_v32, %s7020_s16  ;;  %v8152_v62 = vpop.permute.xlu0 %1659  ;;  %v8154_v12 = vpop.permute.xlu1 %1649  ;;  %v3584_v32 = vadd.f32 1.0, %v6690_v18 }
 0x1c2   :  { %12987 = vst [vmem:[#allocation109_spill] sm:$0xff] %v8152_v62 }
 0x1c3   :  { %v6694_v56 = vpop.eup %6693  ;;  %6705 = vrcp.f32 %v3584_v32 }
 0x1c4   :  { %3001 = vrot.lane.b32.xlu1 %v8021_v58, %s7020_s16  ;;  %v3588_v58 = vadd.f32 1.0, %v6692_v3 }
 0x1c5   :  { %2995 = vrot.lane.b32.xlu0 %v8028_v14, %s7020_s16  ;;  %v8160_v52 = vpop.permute.xlu0 %1651  ;;  %v8162_v43 = vpop.permute.xlu1 %1681 }
 0x1c6   :  { %12988 = vst [vmem:[#allocation110_spill] sm:$0xff] %v8160_v52  ;;  %v6696_v14 = vpop.eup %6695  ;;  %v3582_v52 = vadd.f32 1.0, %v6694_v56  ;;  %6707 = vrcp.f32 %v3588_v58 }
 0x1c7   :  { %v6698_v51 = vpop.eup %6697  ;;  %v3586_v57 = vadd.f32 1.0, %v6696_v14  ;;  %v12491_v14 = vmov 3  }
 0x1c8   :  { %2997 = vrot.lane.b32.xlu1 %v8007_v35, %s7020_s16  ;;  %v8178_v35 = vmul.f32 %v6698_v51, %v8046_v5  ;;  %6709 = vrcp.f32 %v3582_v52  ;;  %v6700_v3 = vpop.eup %6699 }
 0x1c9   :  { %3003 = vrot.lane.b32.xlu0 %v8014_v61, %s7020_s16  ;;  %v8168_v15 = vpop.permute.xlu0 %1683  ;;  %v8173_v18 = vpop.permute.xlu1 %1689  ;;  %6711 = vrcp.f32 %v3586_v57 }
 0x1ca   :  { %12989 = vst [vmem:[#allocation111_spill] sm:$0xff] %v8168_v15  ;;  %12991 = vst [vmem:[#allocation113_spill] sm:$0xff] %v8178_v35  ;;  %v6702_v59 = vpop.eup %6701 }
 0x1cb   :  { %v6704_v58 = vpop.eup %6703  ;;  %v8190_v5 = vmul.f32 %v6702_v59, %v8071_v47 }
 0x1cc   :  { %3888 = vperm.xlu1 %6472, %v7954_v63   ;;  %v8187_v63 = vmul.f32 %v6700_v3, %v8057_v33  ;;  %v8201_v51 = vmul.f32 %v6704_v58, %v8078_v1  ;;  %v12493_v33 = vmov 4  }
 0x1cd   :  { %v8171_v2 = vpop.permute.xlu0 %1691  ;;  %2999 = vrot.lane.b32.xlu0 %v7999_v28, %s7020_s16  ;;  %12994 = vst [vmem:[#allocation116_spill] sm:$0xff] %v8190_v5  ;;  %v8192_v52 = vpop.permute.xlu1 %2301 }
 0x1ce   :  { %12990 = vst [vmem:[#allocation112_spill] sm:$0xff] %v8171_v2  ;;  %12993 = vst [vmem:[#allocation115_spill] sm:$0xff] %v8187_v63  ;;  %v6706_v56 = vpop.eup %6705 }
 0x1cf   :  { %12995 = vst [vmem:[#allocation117_spill] sm:$0xff] %v8192_v52  ;;  %12997 = vst [vmem:[#allocation119_spill] sm:$0xff] %v8201_v51  ;;  %v8205_v47 = vmul.f32 %v6706_v56, %v8093_v29 }
 0x1d0   :  { %3613 = vrot.lane.b32.xlu1 %v8178_v35, %s7019_s15  ;;  %v6708_v57 = vpop.eup %6707 }
 0x1d1   :  { %v8182_v32 = vpop.permute.xlu0 %2303  ;;  %3892 = vperm.xlu0 %6470, %v7907_v0   ;;  %6473 = vset.pattern.permute.xlu1 %v12491_v14  ;;  %12998 = vst [vmem:[#allocation120_spill] sm:$0xff] %v8205_v47  ;;  %v8209_v59 = vpop.permute.xlu1 %2309  ;;  %v8214_v14 = vmul.f32 %v6708_v57, %v8099_v38 }
 0x1d2   :  { %12992 = vst [vmem:[#allocation114_spill] sm:$0xff] %v8182_v32  ;;  %v6710_v3 = vpop.eup %6709  ;;  %12999 = vst [vmem:[#allocation121_spill] sm:$0xff] %v8209_v59  ;;  %v13033_v59 = vmov 4  }
 0x1d3   :  { %13000 = vst [vmem:[#allocation122_spill] sm:$0xff] %v8214_v14  ;;  %v6712_v1 = vpop.eup %6711  ;;  %v8217_v58 = vmul.f32 %v6710_v3, %v8113_v45  ;;  %v27_v45 = vlaneseq }
 0x1d4   :  { %3615 = vrot.lane.b32.xlu1 %v8187_v63, %s7019_s15  ;;  %v8226_v29 = vmul.f32 %v6712_v1, %v8119_v46 }
 0x1d5   :  { %3621 = vrot.lane.b32.xlu0 %v8190_v5, %s7019_s15  ;;  %v8198_v0 = vpop.permute.xlu0 %2311  ;;  %13001 = vst [vmem:[#allocation123_spill] sm:$0xff] %v8217_v58  ;;  %v8228_v56 = vpop.permute.xlu1 %2313  ;;  %v8246_v3 = vand.u32 127, %v27_v45 }
 0x1d6   :  { %12996 = vst [vmem:[#allocation118_spill] sm:$0xff] %v8198_v0  ;;  %6475 = vset.pattern.permute.xlu0 %v12493_v33  ;;  %13003 = vst [vmem:[#allocation125_spill] sm:$0xff] %v8226_v29 }
 0x1d7   :  { %13004 = vst [vmem:[#allocation126_spill] sm:$0xff] %v8228_v56  ;;  %vm313_vm1 = vcmp.lt.s32.totalorder %v8246_v3, 1  ;;  %vm354_vm2 = vcmp.lt.s32.totalorder %v8246_v3, 127  ;;  %vm525_vm11 = vcmp.lt.s32.totalorder %v8246_v3, 16  ;;  %vm638_vm13 = vcmp.lt.s32.totalorder %v8246_v3, 112 }
 0x1d8   :  { %3623 = vrot.lane.b32.xlu1 %v8201_v51, %s7019_s15  ;;  %v362_v0 = vsel %vm354_vm2, %v7963_v16, %v7885_v50 }
 0x1d9   :  { %3625 = vrot.lane.b32.xlu0 %v8205_v47, %s7019_s15  ;;  %v8219_v33 = vpop.permute.xlu0 %2335  ;;  %v8238_v57 = vpop.permute.xlu1 %2305 }
 0x1da   :  { %13002 = vst [vmem:[#allocation124_spill] sm:$0xff] %v8219_v33  ;;  %13006 = vst [vmem:[#allocation128_spill] sm:$0xff] %v8238_v57 }
 0x1dc   :  { %3627 = vrot.lane.b32.xlu1 %v8214_v14, %s7019_s15 }
 0x1dd   :  { %3617 = vrot.lane.b32.xlu0 %v8217_v58, %s7019_s15  ;;  %v8232_v38 = vpop.permute.xlu0 %2343 }
 0x1de   :  { %13005 = vst [vmem:[#allocation127_spill] sm:$0xff] %v8232_v38  ;;  %v8302_v38 = vadd.s32 256, %v8246_v3 }
 0x1e0   :  { %3619 = vrot.lane.b32.xlu1 %v8226_v29, %s7019_s15  ;;  %13020 = vst [vmem:[#allocation138_spill] sm:$0xff] %v8302_v38  ;;  %s7024_s15 = smov 16  }
 0x1e1   :  { %3645 = vrot.lane.b32.xlu0 %v8178_v35, %s7020_s16  ;;  %v8242_v46 = vpop.permute.xlu0 %2315 }
 0x1e2   :  { %13007 = vst [vmem:[#allocation129_spill] sm:$0xff] %v8242_v46  ;;  %v13029_v46 = vld [vmem:[#allocation8_spill] sm:$0xff] }
 0x1e4   :  { %3647 = vrot.lane.b32.xlu1 %v8187_v63, %s7020_s16  ;;  %v8255_v63 = vadd.s32 384, %v8246_v3 }
 0x1e5   :  { %3649 = vrot.lane.b32.xlu0 %v8217_v58, %s7020_s16  ;;  %v32_v58 = vand.u32 15, %v8246_v3  ;;  %v8258_v35 = vpop.permute.xlu0 %2307 }
 0x1e6   :  { %13009 = vst [vmem:[#allocation131_spill] sm:$0xff] %v8255_v63  ;;  %13010 = vst [vmem:[#allocation132_spill] sm:$0xff] %v8258_v35 }
 0x1e7   :  { %vm8273_vm3 = vcmp.ge.s32.totalorder %v32_v58, 1  ;;  %vm8295_vm4 = vcmp.le.s32.totalorder %v32_v58, 14 }
 0x1e8   :  { %3651 = vrot.lane.b32.xlu1 %v8226_v29, %s7020_s16  ;;  %v321_v29 = vsel %vm313_vm1, %v7922_v55, %v7850_v36 }
 0x1e9   :  { %3657 = vrot.lane.b32.xlu0 %v8205_v47, %s7020_s16  ;;  %v8299_v61 = vpop.permute.xlu0 %2339 }
 0x1ea   :  { %v8250_v1 = vpop.permute.xlu1 %3192  ;;  %13019 = vst [vmem:[#allocation137_spill] sm:$0xff] %v8299_v61  ;;  %v13028_v61 = vld [vmem:[#allocation26_spill] sm:$0xff] }
 0x1eb   :  { %13008 = vst [vmem:[#allocation130_spill] sm:$0xff] %v8250_v1  ;;  %v360_v1 = vsel %vm354_vm2, %v7885_v50, %v7947_v9  ;;  %v473_v32 = vmul.f32 %v13029_v46, %v13028_v61  ;;  %v13068_v61 = vmov 5   ;;  %v6987_v50 = vld [vmem:[%s12338_s2 + $0x50] sm:$0xff] }
 0x1ec   :  { %3659 = vrot.lane.b32.xlu1 %v8214_v14, %s7020_s16  ;;  %v35_v14 = vand.u32 15, %v8255_v63  ;;  %v315_v63 = vsel %vm313_vm1, %v7867_v19, %v7922_v55  ;;  %v13025_v55 = vld [vmem:[#allocation7_spill] sm:$0xff] }
 0x1ed   :  { %3653 = vrot.lane.b32.xlu0 %v8190_v5, %s7020_s16  ;;  %v8278_v5 = vadd.s32 128, %v8246_v3 }
 0x1ee   :  { %v8262_v45 = vpop.permute.xlu1 %3196  ;;  %vm8309_vm5 = vcmp.ge.s32.totalorder %v35_v14, 1  ;;  %vm8335_vm6 = vcmp.le.s32.totalorder %v35_v14, 14  ;;  %v358_v14 = vsel %vm354_vm2, %v7947_v9, %v7909_v4  ;;  %v317_v9 = vsel %vm313_vm1, %v7936_v42, %v7867_v19 }
 0x1ef   :  { %13011 = vst [vmem:[#allocation133_spill] sm:$0xff] %v8262_v45  ;;  %13014 = vst [vmem:[#allocation134_spill] sm:$0xff] %v8278_v5  ;;  %v8287_v45 = vsel %vm8273_vm3, %v321_v29, 0.0  ;;  %v8306_v29 = vsel %vm8295_vm4, %v360_v1, 0.0  ;;  %v33_v35 = vand.u32 15, %v8278_v5  ;;  %v8323_v1 = vsel %vm8309_vm5, %v315_v63, 0.0 }
 0x1f0   :  { %3655 = vrot.lane.b32.xlu1 %v8201_v51, %s7020_s16  ;;  %13015 = vst [vmem:[#allocation135_spill] sm:$0xff] %v8287_v45  ;;  %13021 = vst [vmem:[#allocation139_spill] sm:$0xff] %v8306_v29  ;;  %v457_v58 = vmul.f32 %v13025_v55, %v8287_v45  ;;  %v319_v5 = vsel %vm313_vm1, %v7850_v36, %v7936_v42  ;;  %v497_v57 = vmul.f32 %v7776_v48, %v8306_v29  ;;  %s7025_s16 = smov 112  }
 0x1f1   :  { %402 = vperm.xlu0 %6475, %v8062_v49   ;;  %13026 = vst [vmem:[#allocation7_spill] sm:$0xff] %v8323_v1  ;;  %v34_v63 = vand.u32 15, %v8302_v38  ;;  %v460_v56 = vmul.f32 %v13025_v55, %v8323_v1  ;;  %vm8347_vm7 = vcmp.ge.s32.totalorder %v33_v35, 1  ;;  %v8355_v38 = vpop.permute.xlu0 %2347  ;;  %vm8371_vm8 = vcmp.le.s32.totalorder %v33_v35, 14 }
 0x1f2   :  { %v481_v52 = vadd.f32 %v473_v32, %v457_v58  ;;  %13036 = vst [vmem:[#allocation142_spill] sm:$0xff] %v8355_v38  ;;  %v8363_v32 = vsel %vm8347_vm7, %v319_v5, 0.0  ;;  %v8379_v62 = vsel %vm8371_vm8, %v358_v14, 0.0  ;;  %v356_v19 = vsel %vm354_vm2, %v7909_v4, %v7963_v16 }
 0x1f3   :  { %v8289_v51 = vpop.permute.xlu1 %3212  ;;  %13037 = vst [vmem:[#allocation143_spill] sm:$0xff] %v8363_v32  ;;  %13041 = vst [vmem:[#allocation145_spill] sm:$0xff] %v8379_v62  ;;  %vm8381_vm9 = vcmp.ge.s32.totalorder %v34_v63, 1  ;;  %v458_v42 = vmul.f32 %v13025_v55, %v8363_v32  ;;  %v12541_v35 = vmov 5   ;;  %v318_v16 = vsel %vm313_vm1, %v7838_v7, %v7924_v8 }
 0x1f4   :  { %13016 = vst [vmem:[#allocation136_spill] sm:$0xff] %v8289_v51  ;;  %386 = vperm.xlu1 %6473, %v8062_v49   ;;  %v13022_v51 = vmov 0  ;;  %v505_v15 = vadd.f32 %v497_v57, %v481_v52  ;;  %v8399_v57 = vsel %vm8381_vm9, %v317_v9, 0.0  ;;  %v498_v4 = vmul.f32 %v7776_v48, %v8379_v62 }
 0x1f5   :  { %v13023_v51 = vsel %vm8309_vm5, 4294967295, %v13022_v51  ;;  %1076 = vperm.xlu0 %6475, %v8083_v60   ;;  %13045 = vst [vmem:[#allocation147_spill] sm:$0xff] %v8399_v57  ;;  %vm8410_vm10 = vcmp.le.s32.totalorder %v34_v63, 14  ;;  %v8427_v63 = vsel %vm8347_vm7, %v318_v16, 0.0  ;;  %v13052_v16 = vld [vmem:[#allocation10_spill] sm:$0xff] }
 0x1f6   :  { %13024 = vst [vmem:[#allocation140_spill] sm:$0xff] %v13023_v51  ;;  %v8416_v9 = vsel %vm8410_vm10, %v356_v19, 0.0  ;;  %13050 = vst [vmem:[#allocation150_spill] sm:$0xff] %v8427_v63 }
 0x1f7   :  { %v8325_v33 = vpop.permute.xlu1 %2333  ;;  %13049 = vst [vmem:[#allocation149_spill] sm:$0xff] %v8416_v9 }
 0x1f8   :  { %13027 = vst [vmem:[#allocation141_spill] sm:$0xff] %v8325_v33  ;;  %v8342_v33 = vsel %vm8335_vm6, %v362_v0, 0.0  ;;  %6474 = vset.pattern.permute.xlu1 %v13033_v59  ;;  %v476_v0 = vmul.f32 %v13029_v46, %v7542_v17 }
 0x1f9   :  { %13032 = vst [vmem:[#allocation8_spill] sm:$0xff] %v8342_v33  ;;  %1732 = vperm.xlu0 %6475, %v8104_v23   ;;  %398 = vperm.xlu1 %6474, %v7931_v27   ;;  %v500_v2 = vmul.f32 %v7776_v48, %v8342_v33  ;;  %v13059_v33 = vld [vmem:[#allocation13_spill] sm:$0xff] }
 0x1fa   :  { %v484_v5 = vadd.f32 %v476_v0, %v460_v56  ;;  %v474_v56 = vmul.f32 %v13029_v46, %v7550_v31 }
 0x1fb   :  { %v8365_v58 = vpop.permute.xlu1 %2337 }
 0x1fc   :  { %13038 = vst [vmem:[#allocation144_spill] sm:$0xff] %v8365_v58  ;;  %v508_v0 = vadd.f32 %v500_v2, %v484_v5  ;;  %v475_v2 = vmul.f32 %v13029_v46, %v7478_v22 }
 0x1fd   :  { %6476 = vset.pattern.permute.xlu1 %v12541_v35  ;;  %511 = vrot.lane.b32.xlu0 %v505_v15, %s7024_s15  ;;  %v482_v35 = vadd.f32 %v474_v56, %v458_v42  ;;  %v499_v42 = vmul.f32 %v7776_v48, %v8416_v9  ;;  %v1037_v9 = vsel %vm354_vm2, %v7996_v39, %v8050_v13 }
 0x1fe   :  { %v8393_v52 = vpop.permute.xlu0 %3788  ;;  %422 = vperm.xlu1 %6476, %v7931_v27   ;;  %v459_v27 = vmul.f32 %v13025_v55, %v8399_v57  ;;  %v357_v55 = vsel %vm354_vm2, %v7938_v20, %v7887_v34 }
 0x1ff   :  { %13044 = vst [vmem:[#allocation146_spill] sm:$0xff] %v8393_v52  ;;  %v8402_v14 = vpop.permute.xlu1 %2345  ;;  %v316_v52 = vsel %vm313_vm1, %v7924_v8, %v7852_v10  ;;  %v506_v56 = vadd.f32 %v498_v4, %v482_v35  ;;  %v8454_v48 = vsel %vm8371_vm8, %v357_v55, 0.0  ;;  %v13055_v35 = vmov 3  }
 0x200   :  { %13046 = vst [vmem:[#allocation148_spill] sm:$0xff] %v8402_v14  ;;  %v483_v46 = vadd.f32 %v475_v2, %v459_v27  ;;  %v8450_v14 = vsel %vm8381_vm9, %v316_v52, 0.0  ;;  %13054 = vst [vmem:[#allocation152_spill] sm:$0xff] %v8454_v48  ;;  %v355_v27 = vsel %vm354_vm2, %v7887_v34, %v7949_v24  ;;  %v13057_v2 = vld [vmem:[#allocation25_spill] sm:$0xff]  ;;  %v607_v17 = vmul.f32 %v13059_v33, %v8454_v48 }
 0x201   :  { %523 = vrot.lane.b32.xlu0 %v508_v0, %s7024_s15  ;;  %v567_v0 = vmul.f32 %v13052_v16, %v8427_v63  ;;  %13053 = vst [vmem:[#allocation10_spill] sm:$0xff] %v8450_v14  ;;  %v568_v55 = vmul.f32 %v13052_v16, %v8450_v14  ;;  %v314_v34 = vsel %vm313_vm1, %v7852_v10, %v7911_v26 }
 0x202   :  { %426 = vperm.xlu1 %6476, %v8062_v49   ;;  %v320_v49 = vsel %vm313_vm1, %v7911_v26, %v7838_v7  ;;  %v507_v52 = vadd.f32 %v499_v42, %v483_v46  ;;  %v8482_v42 = vsel %vm8410_vm10, %v355_v27, 0.0  ;;  %v13062_v46 = vld [vmem:[#allocation23_spill] sm:$0xff] }
 0x203   :  { %v576_v5 = vpop.permute.xlu0 %575  ;;  %v8439_v19 = vpop.permute.xlu1 %2341  ;;  %v8478_v1 = vsel %vm8273_vm3, %v320_v49, 0.0  ;;  %13061 = vst [vmem:[#allocation155_spill] sm:$0xff] %v8482_v42 }
 0x204   :  { %v583_v8 = vmul.f32 %v576_v5, %v7539_v53  ;;  %13051 = vst [vmem:[#allocation151_spill] sm:$0xff] %v8439_v19  ;;  %13060 = vst [vmem:[#allocation13_spill] sm:$0xff] %v8478_v1  ;;  %v566_v27 = vmul.f32 %v13052_v16, %v8478_v1 }
 0x205   :  { %515 = vrot.lane.b32.xlu0 %v506_v56, %s7024_s15  ;;  %v584_v56 = vmul.f32 %v576_v5, %v13057_v2 }
 0x206   :  { %6477 = vset.pattern.permute.xlu1 %v13055_v35  ;;  %v591_v19 = vadd.f32 %v583_v8, %v567_v0  ;;  %v359_v0 = vsel %vm354_vm2, %v7869_v21, %v7938_v20  ;;  %v8502_v20 = vsel %vm8309_vm5, %v314_v34, 0.0 }
 0x207   :  { %v8457_v4 = vpop.permute.xlu0 %1240  ;;  %1060 = vperm.xlu1 %6477, %v8083_v60   ;;  %v8465_v7 = vpop.permute.xlu1 %3232  ;;  %v592_v10 = vadd.f32 %v584_v56, %v568_v55  ;;  %13064 = vst [vmem:[#allocation157_spill] sm:$0xff] %v8502_v20  ;;  %v1005_v55 = vsel %vm313_vm1, %v7976_v44, %v8011_v41  ;;  %v569_v45 = vmul.f32 %v13052_v16, %v8502_v20 }
 0x208   :  { %13056 = vst [vmem:[#allocation153_spill] sm:$0xff] %v8457_v4  ;;  %13058 = vst [vmem:[#allocation154_spill] sm:$0xff] %v8465_v7  ;;  %v615_v26 = vadd.f32 %v607_v17, %v591_v19  ;;  %v608_v7 = vmul.f32 %v13059_v33, %v8482_v42  ;;  %v8506_v17 = vsel %vm8295_vm4, %v359_v0, 0.0  ;;  %v361_v19 = vsel %vm354_vm2, %v7949_v24, %v7869_v21 }
 0x209   :  { %519 = vrot.lane.b32.xlu0 %v507_v52, %s7024_s15  ;;  %v582_v52 = vmul.f32 %v576_v5, %v13062_v46  ;;  %13065 = vst [vmem:[#allocation158_spill] sm:$0xff] %v8506_v17  ;;  %v606_v24 = vmul.f32 %v13059_v33, %v8506_v17  ;;  %v1043_v21 = vsel %vm354_vm2, %v8050_v13, %v7982_v11 }
 0x20a   :  { %v616_v34 = vadd.f32 %v608_v7, %v592_v10  ;;  %v8538_v7 = vsel %vm8309_vm5, %v1005_v55, 0.0 }
 0x20b   :  { %v8484_v8 = vpop.permute.xlu0 %1896  ;;  %6478 = vset.pattern.permute.xlu1 %v13033_v59  ;;  %v590_v29 = vadd.f32 %v582_v52, %v566_v27  ;;  %13071 = vst [vmem:[#allocation162_spill] sm:$0xff] %v8538_v7  ;;  %v1009_v52 = vsel %vm313_vm1, %v7965_v54, %v8025_v37 }
 0x20c   :  { %1072 = vperm.xlu1 %6478, %v7943_v40   ;;  %v8493_v49 = vpop.permute.xlu1 %3744 }
 0x20d   :  { %13063 = vst [vmem:[#allocation156_spill] sm:$0xff] %v8493_v49  ;;  %626 = vrot.lane.b32.xlu0 %v615_v26, %s7025_s16  ;;  %v13067_v26 = vld [vmem:[#allocation30_spill] sm:$0xff]  ;;  %v614_v10 = vadd.f32 %v606_v24, %v590_v29 }
 0x20e   :  { %v585_v49 = vmul.f32 %v576_v5, %v13067_v26  ;;  %v8534_v5 = vsel %vm8335_vm6, %v361_v19, 0.0 }
 0x20f   :  { %v8512_v56 = vpop.permute.xlu0 %2552  ;;  %13070 = vst [vmem:[#allocation161_spill] sm:$0xff] %v8534_v5  ;;  %v609_v19 = vmul.f32 %v13059_v33, %v8534_v5  ;;  %v13078_v33 = vld [vmem:[#allocation43_spill] sm:$0xff] }
 0x210   :  { %13066 = vst [vmem:[#allocation159_spill] sm:$0xff] %v8512_v56  ;;  %6479 = vset.pattern.permute.xlu1 %v13068_v61  ;;  %v8520_v0 = vpop.permute.xlu1 %3748  ;;  %v593_v27 = vadd.f32 %v585_v49, %v569_v45  ;;  %v8564_v45 = vsel %vm8347_vm7, %v1009_v52, 0.0  ;;  %v13079_v49 = vld [vmem:[#allocation62_spill] sm:$0xff] }
 0x211   :  { %13069 = vst [vmem:[#allocation160_spill] sm:$0xff] %v8520_v0  ;;  %1096 = vperm.xlu1 %6479, %v7943_v40   ;;  %630 = vrot.lane.b32.xlu0 %v616_v34, %s7025_s16  ;;  %v8548_v40 = vsel %vm8335_vm6, %v1043_v21, 0.0  ;;  %v13074_v34 = vld [vmem:[#allocation14_spill] sm:$0xff]  ;;  %v1039_v0 = vsel %vm354_vm2, %v8039_v6, %v7996_v39  ;;  %13076 = vst [vmem:[#allocation166_spill] sm:$0xff] %v8564_v45  ;;  %v1146_v24 = vmul.f32 %v13079_v49, %v13078_v33 }
 0x212   :  { %13073 = vst [vmem:[#allocation164_spill] sm:$0xff] %v8548_v40  ;;  %v1130_v55 = vmul.f32 %v13074_v34, %v8538_v7  ;;  %v1007_v21 = vsel %vm313_vm1, %v8025_v37, %v7976_v44 }
 0x213   :  { %v8540_v16 = vpop.permute.xlu0 %3208  ;;  %v8592_v37 = vsel %vm8381_vm9, %v1007_v21, 0.0 }
 0x214   :  { %13072 = vst [vmem:[#allocation163_spill] sm:$0xff] %v8540_v16  ;;  %v1154_v52 = vadd.f32 %v1146_v24, %v1130_v55  ;;  %13083 = vst [vmem:[#allocation170_spill] sm:$0xff] %v8592_v37  ;;  %v8603_v55 = vsel %vm8410_vm10, %v1037_v9, 0.0  ;;  %v13090_v9 = vld [vmem:[#allocation83_spill] sm:$0xff] }
 0x215   :  { %1100 = vperm.xlu1 %6479, %v8083_v60   ;;  %v8559_v16 = vpop.permute.xlu1 %3764  ;;  %622 = vrot.lane.b32.xlu0 %v614_v10, %s7025_s16  ;;  %v13080_v60 = vld [vmem:[#allocation17_spill] sm:$0xff]  ;;  %v8578_v10 = vsel %vm8371_vm8, %v1039_v0, 0.0  ;;  %13086 = vst [vmem:[#allocation172_spill] sm:$0xff] %v8603_v55 }
 0x216   :  { %13075 = vst [vmem:[#allocation165_spill] sm:$0xff] %v8559_v16  ;;  %v1170_v56 = vmul.f32 %v13080_v60, %v8548_v40  ;;  %v617_v16 = vadd.f32 %v609_v19, %v593_v27  ;;  %13081 = vst [vmem:[#allocation168_spill] sm:$0xff] %v8578_v10  ;;  %v13085_v27 = vld [vmem:[#allocation45_spill] sm:$0xff]  ;;  %v1168_v39 = vmul.f32 %v13080_v60, %v8578_v10 }
 0x217   :  { %v8566_v29 = vpop.permute.xlu0 %2959  ;;  %v1144_v19 = vmul.f32 %v13079_v49, %v13085_v27 }
 0x218   :  { %13077 = vst [vmem:[#allocation167_spill] sm:$0xff] %v8566_v29  ;;  %v1128_v29 = vmul.f32 %v13074_v34, %v8564_v45  ;;  %v1178_v13 = vadd.f32 %v1170_v56, %v1154_v52  ;;  %v1169_v56 = vmul.f32 %v13080_v60, %v8603_v55 }
 0x219   :  { %6480 = vset.pattern.permute.xlu1 %v13055_v35  ;;  %v8587_v44 = vpop.permute.xlu1 %2957  ;;  %634 = vrot.lane.b32.xlu0 %v617_v16, %s7025_s16  ;;  %v1129_v16 = vmul.f32 %v13074_v34, %v8592_v37  ;;  %v13106_v34 = vld [vmem:[#allocation105_spill] sm:$0xff] }
 0x21a   :  { %13082 = vst [vmem:[#allocation169_spill] sm:$0xff] %v8587_v44  ;;  %1716 = vperm.xlu1 %6480, %v8104_v23   ;;  %v1152_v24 = vadd.f32 %v1144_v19, %v1128_v29  ;;  %v1011_v19 = vsel %vm313_vm1, %v8011_v41, %v7965_v54 }
 0x21b   :  { %v8595_v0 = vpop.permute.xlu0 %2967  ;;  %v8640_v54 = vsel %vm8273_vm3, %v1011_v19, 0.0 }
 0x21c   :  { %13084 = vst [vmem:[#allocation171_spill] sm:$0xff] %v8595_v0  ;;  %v13089_v0 = vld [vmem:[#allocation38_spill] sm:$0xff]  ;;  %v1176_v52 = vadd.f32 %v1168_v39, %v1152_v24  ;;  %13096 = vst [vmem:[#allocation177_spill] sm:$0xff] %v8640_v54 }
 0x21d   :  { %v8607_v21 = vpop.permute.xlu1 %2965  ;;  %1195 = vrot.lane.b32.xlu0 %v1178_v13, %s7024_s15  ;;  %v1145_v10 = vmul.f32 %v13079_v49, %v13089_v0  ;;  %v1249_v13 = vmul.f32 %v8457_v4, %v13089_v0  ;;  %v13094_v39 = vld [vmem:[#allocation18_spill] sm:$0xff] }
 0x21e   :  { %13087 = vst [vmem:[#allocation173_spill] sm:$0xff] %v8607_v21  ;;  %6481 = vset.pattern.permute.xlu1 %v13033_v59  ;;  %v13093_v21 = vmov 1   ;;  %v1231_v19 = vmul.f32 %v13094_v39, %v8640_v54 }
 0x21f   :  { %v8611_v44 = vpop.permute.xlu0 %2971  ;;  %1728 = vperm.xlu1 %6481, %v13090_v9   ;;  %v1153_v45 = vadd.f32 %v1145_v10, %v1129_v16  ;;  %v6966_v10 = vld [vmem:[%s12339_s3] sm:$0xff]  ;;  %v1233_v16 = vmul.f32 %v13094_v39, %v8592_v37  ;;  %v13099_v37 = vld [vmem:[#allocation56_spill] sm:$0xff] }
 0x220   :  { %13088 = vst [vmem:[#allocation174_spill] sm:$0xff] %v8611_v44  ;;  %v453_v0 = vmul.f32 %v13099_v37, %v8478_v1 }
 0x221   :  { %v8618_v27 = vpop.permute.xlu1 %2969  ;;  %1187 = vrot.lane.b32.xlu0 %v1176_v52, %s7024_s15  ;;  %v1177_v44 = vadd.f32 %v1169_v56, %v1153_v45  ;;  %v1041_v45 = vsel %vm354_vm2, %v7982_v11, %v8039_v6  ;;  %v13098_v56 = vld [vmem:[#allocation37_spill] sm:$0xff]  ;;  %v13102_v6 = vld [vmem:[#allocation59_spill] sm:$0xff] }
 0x222   :  { %13091 = vst [vmem:[#allocation83_spill] sm:$0xff] %v8618_v27  ;;  %v1247_v52 = vmul.f32 %v8457_v4, %v13098_v56 }
 0x223   :  { %v8621_v29 = vpop.permute.xlu0 %2963  ;;  %6482 = vset.pattern.permute.xlu1 %v13093_v21 }
 0x224   :  { %13092 = vst [vmem:[#allocation175_spill] sm:$0xff] %v8621_v29  ;;  %672 = vperm.xlu1 %6482, %v6966_v10   ;;  %v1257_v10 = vadd.f32 %v1249_v13, %v1233_v16  ;;  %v469_v13 = vmul.f32 %v13102_v6, %v13062_v46  ;;  %v13103_v16 = vld [vmem:[#allocation9_spill] sm:$0xff]  ;;  %v8668_v29 = vsel %vm8295_vm4, %v1041_v45, 0.0  ;;  %v1255_v49 = vadd.f32 %v1247_v52, %v1231_v19 }
 0x225   :  { %v8635_v24 = vpop.permute.xlu1 %2961  ;;  %1191 = vrot.lane.b32.xlu0 %v1177_v44, %s7024_s15  ;;  %v6967_v44 = vld [vmem:[%s12339_s3 + $0x8] sm:$0xff]  ;;  %v493_v1 = vmul.f32 %v13103_v16, %v8506_v17  ;;  %v456_v46 = vmul.f32 %v13099_v37, %v8502_v20  ;;  %v1234_v45 = vmul.f32 %v13094_v39, %v8538_v7  ;;  %v13109_v19 = vld [vmem:[#allocation101_spill] sm:$0xff] }
 0x226   :  { %13095 = vst [vmem:[#allocation176_spill] sm:$0xff] %v8635_v24  ;;  %v477_v17 = vadd.f32 %v469_v13, %v453_v0  ;;  %v472_v0 = vmul.f32 %v13102_v6, %v13067_v26  ;;  %v1665_v13 = vsel %vm313_vm1, %v13109_v19, %v8154_v12 }
 0x227   :  { %v8642_v41 = vpop.permute.xlu0 %3864 }
 0x228   :  { %13097 = vst [vmem:[#allocation178_spill] sm:$0xff] %v8642_v41  ;;  %676 = vperm.xlu1 %6482, %v6967_v44   ;;  %v13100_v41 = vld [vmem:[#allocation21_spill] sm:$0xff]  ;;  %v13105_v44 = vld [vmem:[#allocation103_spill] sm:$0xff]  ;;  %v480_v26 = vadd.f32 %v472_v0, %v456_v46 }
 0x229   :  { %v1273_v24 = vmul.f32 %v13100_v41, %v8603_v55  ;;  %3044 = vperm.xlu0 %6475, %v8140_v30   ;;  %v8660_v11 = vpop.permute.xlu1 %3784  ;;  %13104 = vst [vmem:[#allocation21_spill] sm:$0xff] %v8668_v29  ;;  %v1661_v27 = vsel %vm313_vm1, %v13105_v44, %v8145_v25  ;;  %v1250_v55 = vmul.f32 %v8457_v4, %v13078_v33  ;;  %v13113_v4 = vld [vmem:[#allocation107_spill] sm:$0xff]  ;;  %v13115_v46 = vld [vmem:[#allocation65_spill] sm:$0xff] }
 0x22a   :  { %13101 = vst [vmem:[#allocation56_spill] sm:$0xff] %v8660_v11  ;;  %v1271_v56 = vmul.f32 %v13100_v41, %v8668_v29  ;;  %v1699_v33 = vsel %vm354_vm2, %v8173_v18, %v13106_v34  ;;  %v8697_v52 = vsel %vm8309_vm5, %v1661_v27, 0.0  ;;  %v1274_v27 = vmul.f32 %v13100_v41, %v8548_v40 }
 0x22b   :  { %v1281_v11 = vadd.f32 %v1273_v24, %v1257_v10  ;;  %v496_v24 = vmul.f32 %v13103_v16, %v8534_v5  ;;  %13107 = vst [vmem:[#allocation59_spill] sm:$0xff] %v8697_v52  ;;  %v1258_v20 = vadd.f32 %v1250_v55, %v1234_v45  ;;  %v8709_v5 = vsel %vm8335_vm6, %v1699_v33, 0.0 }
 0x22c   :  { %v8676_v60 = vpop.permute.xlu0 %603  ;;  %6483 = vset.pattern.permute.xlu1 %v13068_v61  ;;  %v1279_v7 = vadd.f32 %v1271_v56, %v1255_v49  ;;  %13111 = vst [vmem:[#allocation105_spill] sm:$0xff] %v8709_v5  ;;  %v1695_v51 = vsel %vm354_vm2, %v8162_v43, %v13113_v4  ;;  %v454_v33 = vmul.f32 %v13099_v37, %v8427_v63  ;;  %v8727_v49 = vsel %vm8347_vm7, %v1665_v13, 0.0 }
 0x22d   :  { %1756 = vperm.xlu1 %6483, %v8104_v23   ;;  %1295 = vrot.lane.b32.xlu0 %v1281_v11, %s7025_s16  ;;  %v501_v11 = vadd.f32 %v493_v1, %v477_v17  ;;  %v13114_v1 = vld [vmem:[#allocation58_spill] sm:$0xff]  ;;  %13116 = vst [vmem:[#allocation101_spill] sm:$0xff] %v8727_v49  ;;  %v1663_v56 = vsel %vm313_vm1, %v8154_v12, %v13105_v44 }
 0x22e   :  { %v8699_v10 = vpop.permute.xlu1 %3848  ;;  %v1802_v17 = vmul.f32 %v13115_v46, %v13114_v1  ;;  %v1282_v63 = vadd.f32 %v1274_v27, %v1258_v20  ;;  %v470_v13 = vmul.f32 %v13102_v6, %v7539_v53  ;;  %v494_v40 = vmul.f32 %v13103_v16, %v8454_v48 }
 0x22f   :  { %13108 = vst [vmem:[#allocation9_spill] sm:$0xff] %v8699_v10  ;;  %v13112_v10 = vld [vmem:[#allocation22_spill] sm:$0xff]  ;;  %v455_v20 = vmul.f32 %v13099_v37, %v8450_v14  ;;  %v495_v37 = vmul.f32 %v13103_v16, %v8482_v42 }
 0x230   :  { %v8705_v23 = vpop.permute.xlu0 %1268  ;;  %v1786_v39 = vmul.f32 %v13112_v10, %v8697_v52  ;;  %v1784_v12 = vmul.f32 %v13112_v10, %v8727_v49  ;;  %v478_v44 = vadd.f32 %v470_v13, %v454_v33 }
 0x231   :  { %13110 = vst [vmem:[#allocation103_spill] sm:$0xff] %v8705_v23  ;;  %509 = vrot.lane.b32.xlu1 %v501_v11, %s7024_s15  ;;  %1287 = vrot.lane.b32.xlu0 %v1279_v7, %s7025_s16  ;;  %v13118_v7 = vld [vmem:[#allocation31_spill] sm:$0xff]  ;;  %v504_v11 = vadd.f32 %v496_v24, %v480_v26  ;;  %v1693_v26 = vsel %vm354_vm2, %v13113_v4, %v8173_v18 }
 0x232   :  { %v8729_v55 = vpop.permute.xlu1 %3852  ;;  %6484 = vset.pattern.permute.xlu1 %v13055_v35  ;;  %v1826_v45 = vmul.f32 %v13118_v7, %v8709_v5  ;;  %v1810_v23 = vadd.f32 %v1802_v17, %v1786_v39  ;;  %v13121_v39 = vld [vmem:[#allocation60_spill] sm:$0xff]  ;;  %v8776_v33 = vsel %vm8410_vm10, %v1693_v26, 0.0 }
 0x233   :  { %13117 = vst [vmem:[#allocation22_spill] sm:$0xff] %v8729_v55  ;;  %v8746_v55 = vsel %vm8371_vm8, %v1695_v51, 0.0  ;;  %v8760_v51 = vsel %vm8381_vm9, %v1663_v56, 0.0  ;;  %v1800_v24 = vmul.f32 %v13115_v46, %v13121_v39  ;;  %13123 = vst [vmem:[#allocation179_spill] sm:$0xff] %v8776_v33  ;;  %v502_v56 = vadd.f32 %v494_v40, %v478_v44 }
 0x234   :  { %v8738_v0 = vpop.permute.xlu0 %1924  ;;  %13119 = vst [vmem:[#allocation107_spill] sm:$0xff] %v8746_v55  ;;  %13120 = vst [vmem:[#allocation65_spill] sm:$0xff] %v8760_v51  ;;  %v1824_v27 = vmul.f32 %v13118_v7, %v8746_v55  ;;  %v1834_v4 = vadd.f32 %v1826_v45, %v1810_v23  ;;  %v13124_v23 = vld [vmem:[#allocation52_spill] sm:$0xff]  ;;  %v1825_v16 = vmul.f32 %v13118_v7, %v8776_v33 }
 0x235   :  { %521 = vrot.lane.b32.xlu1 %v504_v11, %s7024_s15  ;;  %1299 = vrot.lane.b32.xlu0 %v1282_v63, %s7025_s16  ;;  %v471_v63 = vmul.f32 %v13102_v6, %v13057_v2  ;;  %v1785_v11 = vmul.f32 %v13112_v10, %v8760_v51  ;;  %v1808_v13 = vadd.f32 %v1800_v24, %v1784_v12 }
 0x236   :  { %v1801_v6 = vmul.f32 %v13115_v46, %v13124_v23  ;;  %v1667_v2 = vsel %vm313_vm1, %v8145_v25, %v13109_v19  ;;  %v1905_v53 = vmul.f32 %v8484_v8, %v13124_v23  ;;  %v13439_v47 = vld [vmem:[#allocation9_spill] sm:$0xff] }
 0x237   :  { %v8766_v17 = vpop.permute.xlu1 %3868  ;;  %v479_v14 = vadd.f32 %v471_v63, %v455_v20  ;;  %v1832_v40 = vadd.f32 %v1824_v27, %v1808_v13  ;;  %v13130_v27 = vld [vmem:[#allocation11_spill] sm:$0xff]  ;;  %v13132_v13 = vld [vmem:[#allocation12_spill] sm:$0xff]  ;;  %v8846_v25 = vsel %vm8273_vm3, %v1667_v2, 0.0 }
 0x238   :  { %13122 = vst [vmem:[#allocation31_spill] sm:$0xff] %v8766_v17  ;;  %v8768_v18 = vpop.permute.xlu0 %2580  ;;  %v1809_v42 = vadd.f32 %v1801_v6, %v1785_v11  ;;  %v587_v6 = vmul.f32 %v13132_v13, %v7550_v31 }
 0x239   :  { %1851 = vrot.lane.b32.xlu0 %v1834_v4, %s7024_s15  ;;  %513 = vrot.lane.b32.xlu1 %v502_v56, %s7024_s15  ;;  %v503_v44 = vadd.f32 %v495_v37, %v479_v14  ;;  %v13128_v4 = vld [vmem:[#allocation84_spill] sm:$0xff]  ;;  %v8805_v14 = vld [vmem:[%s12338_s2 + $0x58] sm:$0xff] }
 0x23a   :  { %v1833_v24 = vadd.f32 %v1825_v16, %v1809_v42  ;;  %v571_v42 = vmul.f32 %v13130_v27, %v8363_v32  ;;  %v611_v16 = vmul.f32 %v8676_v60, %v8379_v62  ;;  %v13135_v62 = vld [vmem:[#allocation149_spill] sm:$0xff]  ;;  %v13137_v32 = vld [vmem:[#allocation135_spill] sm:$0xff] }
 0x23b   :  { %v8786_v45 = vpop.permute.xlu1 %2989 }
 0x23c   :  { %13125 = vst [vmem:[#allocation180_spill] sm:$0xff] %v8786_v45  ;;  %v8788_v26 = vpop.permute.xlu0 %3236  ;;  %v6973_v45 = vld [vmem:[%s12339_s3 + $0x10] sm:$0xff] }
 0x23d   :  { %13126 = vst [vmem:[#allocation181_spill] sm:$0xff] %v8788_v26  ;;  %1843 = vrot.lane.b32.xlu0 %v1832_v40, %s7024_s15  ;;  %517 = vrot.lane.b32.xlu1 %v503_v44, %s7024_s15  ;;  %v572_v40 = vmul.f32 %v13130_v27, %v8399_v57  ;;  %v595_v44 = vadd.f32 %v587_v6, %v571_v42  ;;  %v13136_v57 = vld [vmem:[#allocation35_spill] sm:$0xff] }
 0x23e   :  { %v612_v42 = vmul.f32 %v8676_v60, %v13135_v62  ;;  %v1889_v31 = vmul.f32 %v13136_v57, %v8760_v51 }
 0x23f   :  { %v8792_v12 = vpop.permute.xlu1 %2993  ;;  %v619_v6 = vadd.f32 %v611_v16, %v595_v44  ;;  %v1697_v16 = vsel %vm354_vm2, %v13106_v34, %v8162_v43  ;;  %v13140_v44 = vld [vmem:[#allocation50_spill] sm:$0xff] }
 0x240   :  { %13127 = vst [vmem:[#allocation182_spill] sm:$0xff] %v8792_v12  ;;  %v8794_v20 = vpop.permute.xlu0 %2991  ;;  %v1913_v23 = vadd.f32 %v1905_v53, %v1889_v31  ;;  %v13144_v43 = vld [vmem:[#allocation42_spill] sm:$0xff] }
 0x241   :  { %1847 = vrot.lane.b32.xlu0 %v1833_v24, %s7024_s15  ;;  %2367 = vperm.xlu1 %6484, %v13128_v4   ;;  %v13133_v24 = vld [vmem:[#allocation29_spill] sm:$0xff]  ;;  %v1929_v34 = vmul.f32 %v13144_v43, %v8776_v33 }
 0x242   :  { %13138 = vst [vmem:[#allocation29_spill] sm:$0xff] %v8846_v25 }
 0x243   :  { %v8798_v63 = vpop.permute.xlu1 %3001  ;;  %v1937_v33 = vadd.f32 %v1929_v34, %v1913_v23 }
 0x244   :  { %13129 = vst [vmem:[#allocation84_spill] sm:$0xff] %v8798_v63  ;;  %v8800_v56 = vpop.permute.xlu0 %2995 }
 0x245   :  { %3700 = vperm.xlu0 %6475, %v8805_v14   ;;  %6485 = vset.pattern.permute.xlu1 %v13033_v59 }
 0x246   :  { %2384 = vperm.xlu1 %6485, %v13128_v4  }
 0x247   :  { %v8812_v37 = vpop.permute.xlu1 %2997 }
 0x248   :  { %13131 = vst [vmem:[#allocation11_spill] sm:$0xff] %v8812_v37  ;;  %v8814_v11 = vpop.permute.xlu0 %3003 }
 0x249   :  { %6494 = vset.pattern.permute.xlu0 %v13068_v61 }
 0x24a   :  { %1752 = vperm.xlu0 %6494, %v13090_v9   ;;  %2388 = vperm.xlu1 %6485, %v13133_v24   ;;  %v588_v9 = vmul.f32 %v13132_v13, %v7478_v22  ;;  %v1887_v22 = vmul.f32 %v13136_v57, %v8846_v25 }
 0x24b   :  { %v8825_v4 = vpop.permute.xlu1 %3888 }
 0x24c   :  { %13134 = vst [vmem:[#allocation12_spill] sm:$0xff] %v8825_v4  ;;  %v8827_v48 = vpop.permute.xlu0 %2999  ;;  %v570_v4 = vmul.f32 %v13130_v27, %v13137_v32  ;;  %v596_v17 = vadd.f32 %v588_v9, %v572_v40  ;;  %v13142_v40 = vld [vmem:[#allocation26_spill] sm:$0xff]  ;;  %v13143_v9 = vld [vmem:[#allocation139_spill] sm:$0xff] }
 0x24d   :  { %v586_v2 = vmul.f32 %v13132_v13, %v13142_v40  ;;  %v13145_v32 = vld [vmem:[#allocation7_spill] sm:$0xff] }
 0x24e   :  { %2412 = vperm.xlu0 %6494, %v13133_v24   ;;  %628 = vrot.lane.b32.xlu1 %v619_v6, %s7025_s16  ;;  %v1903_v24 = vmul.f32 %v8484_v8, %v13140_v44  ;;  %v610_v6 = vmul.f32 %v8676_v60, %v13143_v9  ;;  %v620_v62 = vadd.f32 %v612_v42, %v596_v17 }
 0x24f   :  { %v8849_v19 = vpop.permute.xlu1 %3613  ;;  %6486 = vset.pattern.permute.xlu1 %v13093_v21  ;;  %v573_v53 = vmul.f32 %v13130_v27, %v13145_v32  ;;  %v594_v31 = vadd.f32 %v586_v2, %v570_v4  ;;  %v1906_v17 = vmul.f32 %v8484_v8, %v13114_v1  ;;  %v13150_v27 = vld [vmem:[#allocation8_spill] sm:$0xff] }
 0x250   :  { %13139 = vst [vmem:[#allocation35_spill] sm:$0xff] %v8849_v19  ;;  %v8857_v51 = vpop.permute.xlu0 %3892  ;;  %v1911_v40 = vadd.f32 %v1903_v24, %v1887_v22  ;;  %v13149_v19 = vld [vmem:[#allocation33_spill] sm:$0xff]  ;;  %v613_v4 = vmul.f32 %v8676_v60, %v13150_v27  ;;  %v1930_v60 = vmul.f32 %v13144_v43, %v8709_v5  ;;  %v13170_v32 = vld [vmem:[#allocation100_spill] sm:$0xff] }
 0x251   :  { %13141 = vst [vmem:[#allocation183_spill] sm:$0xff] %v8857_v51  ;;  %v8873_v51 = vsel %vm8295_vm4, %v1697_v16, 0.0  ;;  %v589_v26 = vmul.f32 %v13132_v13, %v13149_v19  ;;  %v618_v2 = vadd.f32 %v610_v6, %v594_v31  ;;  %v1890_v16 = vmul.f32 %v13136_v57, %v8697_v52  ;;  %v13156_v31 = vld [vmem:[#allocation95_spill] sm:$0xff] }
 0x252   :  { %3068 = vperm.xlu0 %6494, %v8140_v30   ;;  %13146 = vst [vmem:[#allocation42_spill] sm:$0xff] %v8873_v51  ;;  %632 = vrot.lane.b32.xlu1 %v620_v62, %s7025_s16  ;;  %v1927_v62 = vmul.f32 %v13144_v43, %v8873_v51 }
 0x253   :  { %v8876_v9 = vpop.permute.xlu1 %3615  ;;  %v597_v1 = vadd.f32 %v589_v26, %v573_v53  ;;  %v1914_v24 = vadd.f32 %v1906_v17, %v1890_v16  ;;  %v13155_v53 = vld [vmem:[#allocation85_spill] sm:$0xff]  ;;  %v13158_v17 = vld [vmem:[#allocation14_spill] sm:$0xff]  ;;  %v13159_v16 = vld [vmem:[#allocation99_spill] sm:$0xff] }
 0x254   :  { %13147 = vst [vmem:[#allocation184_spill] sm:$0xff] %v8876_v9  ;;  %v8880_v42 = vpop.permute.xlu0 %3621  ;;  %v1935_v13 = vadd.f32 %v1927_v62, %v1911_v40  ;;  %v13160_v62 = vld [vmem:[#allocation89_spill] sm:$0xff]  ;;  %v13176_v9 = vld [vmem:[#allocation98_spill] sm:$0xff] }
 0x255   :  { %13148 = vst [vmem:[#allocation185_spill] sm:$0xff] %v8880_v42  ;;  %v621_v34 = vadd.f32 %v613_v4, %v597_v1  ;;  %v1938_v26 = vadd.f32 %v1930_v60, %v1914_v24  ;;  %v6969_v1 = vld [vmem:[%s12339_s3 + $0x18] sm:$0xff]  ;;  %v1127_v4 = vmul.f32 %v13158_v17, %v8640_v54  ;;  %v13163_v60 = vld [vmem:[#allocation37_spill] sm:$0xff] }
 0x256   :  { %1951 = vrot.lane.b32.xlu0 %v1937_v33, %s7025_s16  ;;  %624 = vrot.lane.b32.xlu1 %v618_v2, %s7025_s16  ;;  %v1012_v2 = vsel %vm313_vm1, %v13156_v31, %v13155_v53  ;;  %v13166_v17 = vld [vmem:[#allocation17_spill] sm:$0xff] }
 0x257   :  { %v8892_v23 = vpop.permute.xlu1 %3623  ;;  %v1167_v54 = vmul.f32 %v13166_v17, %v8668_v29  ;;  %v6970_v17 = vld [vmem:[%s12338_s2 + $0x30] sm:$0xff] }
 0x258   :  { %13151 = vst [vmem:[#allocation186_spill] sm:$0xff] %v8892_v23  ;;  %v8894_v22 = vpop.permute.xlu0 %3625  ;;  %v1010_v23 = vsel %vm313_vm1, %v13155_v53, %v13176_v9 }
 0x259   :  { %13152 = vst [vmem:[#allocation187_spill] sm:$0xff] %v8894_v22  ;;  %v13180_v22 = vld [vmem:[#allocation92_spill] sm:$0xff] }
 0x25a   :  { %1943 = vrot.lane.b32.xlu0 %v1935_v13, %s7025_s16  ;;  %636 = vrot.lane.b32.xlu1 %v621_v34, %s7025_s16  ;;  %v1042_v13 = vsel %vm354_vm2, %v13160_v62, %v13159_v16  ;;  %v8924_v34 = vsel %vm8273_vm3, %v1012_v2, 0.0  ;;  %v1040_v53 = vsel %vm354_vm2, %v13159_v16, %v13180_v22 }
 0x25b   :  { %v8900_v6 = vpop.permute.xlu1 %3627  ;;  %13162 = vst [vmem:[#allocation14_spill] sm:$0xff] %v8924_v34  ;;  %v8937_v27 = vsel %vm8295_vm4, %v1042_v13, 0.0 }
 0x25c   :  { %13153 = vst [vmem:[#allocation188_spill] sm:$0xff] %v8900_v6  ;;  %v8902_v33 = vpop.permute.xlu0 %3617  ;;  %13167 = vst [vmem:[#allocation99_spill] sm:$0xff] %v8937_v27 }
 0x25d   :  { %13154 = vst [vmem:[#allocation189_spill] sm:$0xff] %v8902_v33 }
 0x25e   :  { %1955 = vrot.lane.b32.xlu0 %v1938_v26, %s7025_s16  ;;  %1332 = vperm.xlu1 %6486, %v6969_v1   ;;  %v13164_v26 = vld [vmem:[#allocation62_spill] sm:$0xff] }
 0x25f   :  { %v8912_v40 = vpop.permute.xlu1 %3619  ;;  %v1143_v52 = vmul.f32 %v13164_v26, %v13163_v60  ;;  %v13165_v1 = vld [vmem:[#allocation86_spill] sm:$0xff]  ;;  %v13169_v26 = vld [vmem:[#allocation15_spill] sm:$0xff] }
 0x260   :  { %13157 = vst [vmem:[#allocation85_spill] sm:$0xff] %v8912_v40  ;;  %v8920_v24 = vpop.permute.xlu0 %3645  ;;  %v1006_v5 = vsel %vm313_vm1, %v13165_v1, %v13156_v31  ;;  %v1131_v60 = vmul.f32 %v13169_v26, %v8924_v34  ;;  %v1044_v31 = vsel %vm354_vm2, %v13170_v32, %v13160_v62  ;;  %v13177_v62 = vld [vmem:[#allocation69_spill] sm:$0xff] }
 0x261   :  { %13161 = vst [vmem:[#allocation95_spill] sm:$0xff] %v8920_v24  ;;  %v1151_v19 = vadd.f32 %v1143_v52, %v1127_v4  ;;  %v8955_v40 = vsel %vm8309_vm5, %v1006_v5, 0.0  ;;  %v13174_v52 = vld [vmem:[#allocation39_spill] sm:$0xff]  ;;  %v13175_v4 = vld [vmem:[#allocation16_spill] sm:$0xff]  ;;  %v1171_v6 = vmul.f32 %v13177_v62, %v8937_v27  ;;  %v8968_v24 = vsel %vm8335_vm6, %v1044_v31, 0.0 }
 0x262   :  { %3724 = vperm.xlu0 %6494, %v8805_v14   ;;  %6487 = vset.pattern.permute.xlu1 %v13068_v61  ;;  %13173 = vst [vmem:[#allocation86_spill] sm:$0xff] %v8955_v40  ;;  %13178 = vst [vmem:[#allocation17_spill] sm:$0xff] %v8968_v24  ;;  %v1174_v16 = vmul.f32 %v13177_v62, %v8968_v24 }
 0x263   :  { %v8940_v2 = vpop.permute.xlu1 %3647  ;;  %2408 = vperm.xlu1 %6487, %v6970_v17   ;;  %v1175_v33 = vadd.f32 %v1167_v54, %v1151_v19  ;;  %v8983_v54 = vsel %vm8347_vm7, %v1010_v23, 0.0  ;;  %v13183_v19 = vld [vmem:[#allocation46_spill] sm:$0xff] }
 0x264   :  { %13168 = vst [vmem:[#allocation89_spill] sm:$0xff] %v8940_v2  ;;  %v8951_v13 = vpop.permute.xlu0 %3649  ;;  %v1147_v2 = vmul.f32 %v13175_v4, %v13174_v52  ;;  %13182 = vst [vmem:[#allocation140_spill] sm:$0xff] %v8983_v54  ;;  %v1150_v31 = vmul.f32 %v13175_v4, %v13183_v19 }
 0x265   :  { %13171 = vst [vmem:[#allocation62_spill] sm:$0xff] %v8951_v13  ;;  %v1134_v13 = vmul.f32 %v13169_v26, %v8955_v40 }
 0x266   :  { %6497 = vset.pattern.permute.xlu0 %v13093_v21  ;;  %v1155_v42 = vadd.f32 %v1147_v2, %v1131_v60  ;;  %v1008_v60 = vsel %vm313_vm1, %v13176_v9, %v13165_v1  ;;  %v8996_v2 = vsel %vm8371_vm8, %v1040_v53, 0.0  ;;  %v1132_v9 = vmul.f32 %v13169_v26, %v8983_v54  ;;  %v13188_v53 = vld [vmem:[#allocation48_spill] sm:$0xff] }
 0x267   :  { %v8970_v5 = vpop.permute.xlu1 %3651  ;;  %2448 = vperm.xlu0 %6497, %v6970_v17   ;;  %1183 = vrot.lane.b32.xlu1 %v1175_v33, %s7024_s15  ;;  %13184 = vst [vmem:[#allocation16_spill] sm:$0xff] %v8996_v2  ;;  %v9003_v17 = vld [vmem:[%s12338_s2 + $0x40] sm:$0xff]  ;;  %v9017_v1 = vsel %vm8381_vm9, %v1008_v60, 0.0 }
 0x268   :  { %13179 = vst [vmem:[#allocation15_spill] sm:$0xff] %v8970_v5  ;;  %v8979_v37 = vpop.permute.xlu0 %3657  ;;  %6488 = vset.pattern.permute.xlu1 %v13055_v35  ;;  %v1179_v33 = vadd.f32 %v1171_v6, %v1155_v42  ;;  %v1158_v5 = vadd.f32 %v1150_v31, %v1134_v13  ;;  %v1038_v42 = vsel %vm354_vm2, %v13180_v22, %v13170_v32  ;;  %13187 = vst [vmem:[#allocation92_spill] sm:$0xff] %v9017_v1  ;;  %v9032_v22 = vld [vmem:[%s12338_s2 + $0x50] sm:$0xff] }
 0x269   :  { %13181 = vst [vmem:[#allocation100_spill] sm:$0xff] %v8979_v37  ;;  %v1172_v13 = vmul.f32 %v13177_v62, %v8996_v2  ;;  %v9025_v37 = vsel %vm8410_vm10, %v1038_v42, 0.0  ;;  %v1133_v60 = vmul.f32 %v13169_v26, %v9017_v1 }
 0x26a   :  { %v1182_v31 = vadd.f32 %v1174_v16, %v1158_v5  ;;  %13189 = vst [vmem:[#allocation190_spill] sm:$0xff] %v9025_v37  ;;  %v13192_v16 = vld [vmem:[#allocation41_spill] sm:$0xff] }
 0x26b   :  { %v8998_v23 = vpop.permute.xlu1 %3659  ;;  %3104 = vperm.xlu0 %6497, %v9003_v17   ;;  %1185 = vrot.lane.b32.xlu1 %v1179_v33, %s7024_s15  ;;  %v1149_v42 = vmul.f32 %v13175_v4, %v13192_v16 }
 0x26c   :  { %13185 = vst [vmem:[#allocation98_spill] sm:$0xff] %v8998_v23  ;;  %v9013_v6 = vpop.permute.xlu0 %3653  ;;  %v1148_v23 = vmul.f32 %v13175_v4, %v13188_v53  ;;  %v6974_v4 = vld [vmem:[%s12339_s3 + $0x20] sm:$0xff] }
 0x26d   :  { %13186 = vst [vmem:[#allocation69_spill] sm:$0xff] %v9013_v6  ;;  %v1157_v26 = vadd.f32 %v1149_v42, %v1133_v60  ;;  %v13200_v60 = vld [vmem:[#allocation166_spill] sm:$0xff] }
 0x26e   :  { %v1156_v33 = vadd.f32 %v1148_v23, %v1132_v9  ;;  %v13201_v42 = vld [vmem:[#allocation18_spill] sm:$0xff] }
 0x26f   :  { %v9027_v32 = vpop.permute.xlu1 %3655  ;;  %3760 = vperm.xlu0 %6497, %v9032_v22   ;;  %1197 = vrot.lane.b32.xlu1 %v1182_v31, %s7024_s15  ;;  %v13197_v31 = vld [vmem:[#allocation45_spill] sm:$0xff] }
 0x270   :  { %13190 = vst [vmem:[#allocation191_spill] sm:$0xff] %v9027_v32  ;;  %v9038_v5 = vpop.permute.xlu0 %402  ;;  %v1173_v32 = vmul.f32 %v13177_v62, %v9025_v37  ;;  %v1180_v6 = vadd.f32 %v1172_v13, %v1156_v33  ;;  %v13198_v33 = vld [vmem:[#allocation153_spill] sm:$0xff] }
 0x271   :  { %13191 = vst [vmem:[#allocation192_spill] sm:$0xff] %v9038_v5 }
 0x272   :  { %v1181_v9 = vadd.f32 %v1173_v32, %v1157_v26  ;;  %v1232_v26 = vmul.f32 %v13201_v42, %v13200_v60  ;;  %v13208_v60 = vld [vmem:[#allocation103_spill] sm:$0xff] }
 0x273   :  { %v9044_v63 = vpop.permute.xlu1 %386  ;;  %1328 = vperm.xlu0 %6497, %v6973_v45   ;;  %1189 = vrot.lane.b32.xlu1 %v1180_v6, %s7024_s15  ;;  %v1248_v45 = vmul.f32 %v13198_v33, %v13197_v31  ;;  %v6975_v6 = vld [vmem:[%s12339_s3 + $0x30] sm:$0xff]  ;;  %v13204_v33 = vld [vmem:[#allocation19_spill] sm:$0xff]  ;;  %v13443_v28 = vld [vmem:[#allocation98_spill] sm:$0xff] }
 0x274   :  { %13193 = vst [vmem:[#allocation193_spill] sm:$0xff] %v9044_v63  ;;  %v9050_v23 = vpop.permute.xlu0 %1076  ;;  %v1236_v31 = vmul.f32 %v13204_v33, %v8983_v54 }
 0x275   :  { %13194 = vst [vmem:[#allocation194_spill] sm:$0xff] %v9050_v23  ;;  %v13207_v23 = vld [vmem:[#allocation20_spill] sm:$0xff] }
 0x276   :  { %v1252_v42 = vmul.f32 %v13207_v23, %v13188_v53  ;;  %v1277_v53 = vmul.f32 %v13208_v60, %v9025_v37 }
 0x277   :  { %1984 = vperm.xlu0 %6497, %v6974_v4   ;;  %1193 = vrot.lane.b32.xlu1 %v1181_v9, %s7024_s15  ;;  %v1256_v4 = vadd.f32 %v1248_v45, %v1232_v26  ;;  %v1276_v45 = vmul.f32 %v13208_v60, %v8996_v2 }
 0x278   :  { %v9056_v62 = vpop.permute.xlu0 %1732  ;;  %v9058_v13 = vpop.permute.xlu1 %398  ;;  %v1260_v54 = vadd.f32 %v1252_v42, %v1236_v31  ;;  %v1251_v31 = vmul.f32 %v13207_v23, %v13174_v52  ;;  %v1275_v42 = vmul.f32 %v13208_v60, %v8937_v27  ;;  %v13310_v52 = vld [vmem:[#allocation142_spill] sm:$0xff] }
 0x279   :  { %13195 = vst [vmem:[#allocation195_spill] sm:$0xff] %v9056_v62  ;;  %13196 = vst [vmem:[#allocation196_spill] sm:$0xff] %v9058_v13  ;;  %v13205_v62 = vld [vmem:[#allocation168_spill] sm:$0xff] }
 0x27a   :  { %v1284_v2 = vadd.f32 %v1276_v45, %v1260_v54  ;;  %v1238_v54 = vmul.f32 %v13204_v33, %v8955_v40 }
 0x27b   :  { %2640 = vperm.xlu0 %6497, %v6975_v6   ;;  %3028 = vperm.xlu1 %6488, %v8140_v30   ;;  %v1272_v6 = vmul.f32 %v13100_v41, %v13205_v62  ;;  %v1253_v62 = vmul.f32 %v13207_v23, %v13192_v16 }
 0x27c   :  { %v9066_v32 = vpop.permute.xlu0 %511 }
 0x27d   :  { %13199 = vst [vmem:[#allocation153_spill] sm:$0xff] %v9066_v32  ;;  %v9070_v9 = vpop.permute.xlu1 %422  ;;  %v1280_v26 = vadd.f32 %v1272_v6, %v1256_v4  ;;  %v1235_v6 = vmul.f32 %v13204_v33, %v8924_v34 }
 0x27e   :  { %13202 = vst [vmem:[#allocation18_spill] sm:$0xff] %v9070_v9 }
 0x27f   :  { %6489 = vset.pattern.permute.xlu1 %v13033_v59  ;;  %v1259_v45 = vadd.f32 %v1251_v31, %v1235_v6  ;;  %v6976_v31 = vld [vmem:[%s12339_s3 + $0x28] sm:$0xff] }
 0x280   :  { %v9073_v13 = vpop.permute.xlu0 %523  ;;  %3040 = vperm.xlu1 %6489, %v9003_v17  }
 0x281   :  { %13203 = vst [vmem:[#allocation197_spill] sm:$0xff] %v9073_v13  ;;  %v9080_v30 = vpop.permute.xlu1 %426  ;;  %v1237_v13 = vmul.f32 %v13204_v33, %v9017_v1 }
 0x282   :  { %13206 = vst [vmem:[#allocation19_spill] sm:$0xff] %v9080_v30 }
 0x283   :  { %v1261_v1 = vadd.f32 %v1253_v62, %v1237_v13  ;;  %v1278_v62 = vmul.f32 %v13208_v60, %v8968_v24  ;;  %v1283_v13 = vadd.f32 %v1275_v42, %v1259_v45  ;;  %v13222_v45 = vld [vmem:[#allocation111_spill] sm:$0xff] }
 0x284   :  { %v9086_v9 = vpop.permute.xlu0 %515  ;;  %1291 = vrot.lane.b32.xlu1 %v1280_v26, %s7025_s16  ;;  %v13235_v24 = vld [vmem:[#allocation75_spill] sm:$0xff]  ;;  %v13469_v15 = vld [vmem:[#allocation153_spill] sm:$0xff] }
 0x285   :  { %13209 = vst [vmem:[#allocation20_spill] sm:$0xff] %v9086_v9  ;;  %6490 = vset.pattern.permute.xlu1 %v13093_v21  ;;  %v13312_v9 = vld [vmem:[#allocation127_spill] sm:$0xff] }
 0x286   :  { %v9091_v41 = vpop.permute.xlu1 %1060 }
 0x287   :  { %13210 = vst [vmem:[#allocation103_spill] sm:$0xff] %v9091_v41  ;;  %v1285_v41 = vadd.f32 %v1277_v53, %v1261_v1 }
 0x288   :  { %v9098_v4 = vpop.permute.xlu0 %519  ;;  %1293 = vrot.lane.b32.xlu1 %v1284_v2, %s7025_s16  ;;  %v1254_v2 = vmul.f32 %v13207_v23, %v13183_v19  ;;  %v13219_v23 = vld [vmem:[#allocation109_spill] sm:$0xff] }
 0x289   :  { %13211 = vst [vmem:[#allocation198_spill] sm:$0xff] %v9098_v4  ;;  %v13311_v4 = vld [vmem:[#allocation51_spill] sm:$0xff] }
 0x28a   :  { %v1262_v1 = vadd.f32 %v1254_v2, %v1238_v54  ;;  %v1783_v54 = vmul.f32 %v13112_v10, %v8846_v25  ;;  %v13223_v2 = vld [vmem:[#allocation106_spill] sm:$0xff]  ;;  %v1823_v10 = vmul.f32 %v13118_v7, %v8873_v51 }
 0x28b   :  { %v9107_v26 = vpop.permute.xlu1 %1072 }
 0x28c   :  { %13212 = vst [vmem:[#allocation199_spill] sm:$0xff] %v9107_v26  ;;  %v9109_v16 = vpop.permute.xlu0 %626  ;;  %1297 = vrot.lane.b32.xlu1 %v1285_v41, %s7025_s16  ;;  %v1286_v53 = vadd.f32 %v1278_v62, %v1262_v1  ;;  %v13218_v41 = vld [vmem:[#allocation102_spill] sm:$0xff]  ;;  %v1698_v62 = vsel %vm354_vm2, %v13223_v2, %v13222_v45  ;;  %v1799_v1 = vmul.f32 %v13115_v46, %v13140_v44  ;;  %v13229_v44 = vld [vmem:[#allocation112_spill] sm:$0xff] }
 0x28d   :  { %13213 = vst [vmem:[#allocation200_spill] sm:$0xff] %v9109_v16  ;;  %v1668_v60 = vsel %vm313_vm1, %v13219_v23, %v13218_v41 }
 0x290   :  { %v9118_v37 = vpop.permute.xlu1 %1096  ;;  %v9120_v27 = vpop.permute.xlu0 %630  ;;  %1289 = vrot.lane.b32.xlu1 %v1283_v13, %s7025_s16  ;;  %v9147_v13 = vsel %vm8273_vm3, %v1668_v60, 0.0  ;;  %v1807_v60 = vadd.f32 %v1799_v1, %v1783_v54  ;;  %v13234_v54 = vld [vmem:[#allocation110_spill] sm:$0xff] }
 0x291   :  { %13214 = vst [vmem:[#allocation201_spill] sm:$0xff] %v9118_v37  ;;  %13215 = vst [vmem:[#allocation202_spill] sm:$0xff] %v9120_v27  ;;  %v1666_v1 = vsel %vm313_vm1, %v13218_v41, %v13234_v54  ;;  %v13238_v37 = vld [vmem:[#allocation108_spill] sm:$0xff] }
 0x292   :  { %13224 = vst [vmem:[#allocation111_spill] sm:$0xff] %v9147_v13  ;;  %v1696_v26 = vsel %vm354_vm2, %v13222_v45, %v13238_v37  ;;  %v9200_v41 = vsel %vm8347_vm7, %v1666_v1, 0.0  ;;  %v1694_v40 = vsel %vm354_vm2, %v13238_v37, %v13229_v44 }
 0x293   :  { %13239 = vst [vmem:[#allocation75_spill] sm:$0xff] %v9200_v41  ;;  %v9217_v1 = vsel %vm8371_vm8, %v1696_v26, 0.0  ;;  %v9240_v37 = vsel %vm8410_vm10, %v1694_v40, 0.0 }
 0x294   :  { %v9123_v16 = vpop.permute.xlu1 %1100  ;;  %v9125_v33 = vpop.permute.xlu0 %622  ;;  %1301 = vrot.lane.b32.xlu1 %v1286_v53, %s7025_s16  ;;  %v13225_v53 = vld [vmem:[#allocation104_spill] sm:$0xff]  ;;  %13243 = vst [vmem:[#allocation206_spill] sm:$0xff] %v9217_v1  ;;  %13248 = vst [vmem:[#allocation210_spill] sm:$0xff] %v9240_v37  ;;  %v1829_v34 = vmul.f32 %v13235_v24, %v9240_v37 }
 0x295   :  { %13216 = vst [vmem:[#allocation203_spill] sm:$0xff] %v9123_v16  ;;  %13217 = vst [vmem:[#allocation204_spill] sm:$0xff] %v9125_v33  ;;  %v13228_v33 = vld [vmem:[#allocation24_spill] sm:$0xff] }
 0x296   :  { %v1787_v46 = vmul.f32 %v13228_v33, %v9147_v13 }
 0x298   :  { %v9132_v6 = vpop.permute.xlu0 %634  ;;  %1988 = vperm.xlu1 %6490, %v6976_v31   ;;  %v1662_v31 = vsel %vm313_vm1, %v13225_v53, %v13219_v23  ;;  %v1700_v23 = vsel %vm354_vm2, %v13229_v44, %v13223_v2 }
 0x299   :  { %13220 = vst [vmem:[#allocation102_spill] sm:$0xff] %v9132_v6  ;;  %v9137_v42 = vpop.permute.xlu1 %1716  ;;  %v9161_v6 = vsel %vm8295_vm4, %v1698_v62, 0.0  ;;  %v9173_v7 = vsel %vm8309_vm5, %v1662_v31, 0.0  ;;  %v13232_v62 = vld [vmem:[#allocation53_spill] sm:$0xff]  ;;  %v9189_v31 = vsel %vm8335_vm6, %v1700_v23, 0.0 }
 0x29a   :  { %13221 = vst [vmem:[#allocation109_spill] sm:$0xff] %v9137_v42  ;;  %13227 = vst [vmem:[#allocation104_spill] sm:$0xff] %v9161_v6  ;;  %v1827_v16 = vmul.f32 %v13235_v24, %v9161_v6  ;;  %v1830_v45 = vmul.f32 %v13235_v24, %v9189_v31 }
 0x29b   :  { %13230 = vst [vmem:[#allocation24_spill] sm:$0xff] %v9173_v7  ;;  %13237 = vst [vmem:[#allocation110_spill] sm:$0xff] %v9189_v31 }
 0x29c   :  { %v9157_v25 = vpop.permute.xlu0 %1195  ;;  %6491 = vset.pattern.permute.xlu1 %v13068_v61 }
 0x29d   :  { %13226 = vst [vmem:[#allocation106_spill] sm:$0xff] %v9157_v25  ;;  %3064 = vperm.xlu1 %6491, %v9003_v17   ;;  %v13233_v25 = vld [vmem:[#allocation28_spill] sm:$0xff]  ;;  %v1831_v17 = vadd.f32 %v1823_v10, %v1807_v60  ;;  %v13241_v60 = vld [vmem:[#allocation61_spill] sm:$0xff] }
 0x29e   :  { %v9175_v51 = vpop.permute.xlu1 %1728  ;;  %v1803_v42 = vmul.f32 %v13233_v25, %v13232_v62  ;;  %v1806_v23 = vmul.f32 %v13233_v25, %v13241_v60 }
 0x29f   :  { %13231 = vst [vmem:[#allocation112_spill] sm:$0xff] %v9175_v51  ;;  %v1790_v51 = vmul.f32 %v13228_v33, %v9173_v7 }
 0x2a0   :  { %v9185_v2 = vpop.permute.xlu0 %1187  ;;  %v1811_v27 = vadd.f32 %v1803_v42, %v1787_v46  ;;  %v1664_v42 = vsel %vm313_vm1, %v13234_v54, %v13225_v53 }
 0x2a1   :  { %13236 = vst [vmem:[#allocation28_spill] sm:$0xff] %v9185_v2  ;;  %1839 = vrot.lane.b32.xlu1 %v1831_v17, %s7024_s15  ;;  %v1788_v2 = vmul.f32 %v13228_v33, %v9200_v41  ;;  %v9228_v53 = vsel %vm8381_vm9, %v1664_v42, 0.0 }
 0x2a2   :  { %6492 = vset.pattern.permute.xlu1 %v13055_v35  ;;  %v1835_v17 = vadd.f32 %v1827_v16, %v1811_v27  ;;  %13244 = vst [vmem:[#allocation207_spill] sm:$0xff] %v9228_v53  ;;  %v13246_v16 = vld [vmem:[#allocation64_spill] sm:$0xff]  ;;  %v1789_v44 = vmul.f32 %v13228_v33, %v9228_v53 }
 0x2a3   :  { %v9202_v10 = vpop.permute.xlu1 %672  ;;  %v1804_v26 = vmul.f32 %v13233_v25, %v13246_v16 }
 0x2a4   :  { %13240 = vst [vmem:[#allocation108_spill] sm:$0xff] %v9202_v10  ;;  %v9213_v46 = vpop.permute.xlu0 %1191  ;;  %v1814_v10 = vadd.f32 %v1806_v23, %v1790_v51  ;;  %v1828_v51 = vmul.f32 %v13235_v24, %v9217_v1  ;;  %v1904_v24 = vmul.f32 %v8484_v8, %v13121_v39 }
 0x2a5   :  { %13242 = vst [vmem:[#allocation205_spill] sm:$0xff] %v9213_v46  ;;  %1841 = vrot.lane.b32.xlu1 %v1835_v17, %s7024_s15  ;;  %v1812_v42 = vadd.f32 %v1804_v26, %v1788_v2  ;;  %v13249_v17 = vld [vmem:[#allocation54_spill] sm:$0xff] }
 0x2a6   :  { %v1838_v23 = vadd.f32 %v1830_v45, %v1814_v10  ;;  %v1805_v46 = vmul.f32 %v13233_v25, %v13249_v17 }
 0x2a7   :  { %v9230_v27 = vpop.permute.xlu1 %676  ;;  %v1836_v10 = vadd.f32 %v1828_v51, %v1812_v42 }
 0x2a8   :  { %13245 = vst [vmem:[#allocation208_spill] sm:$0xff] %v9230_v27  ;;  %v9236_v54 = vpop.permute.xlu0 %3044  ;;  %v1813_v45 = vadd.f32 %v1805_v46, %v1789_v44  ;;  %v1888_v46 = vmul.f32 %v13136_v57, %v8727_v49  ;;  %v13261_v57 = vld [vmem:[#allocation40_spill] sm:$0xff] }
 0x2a9   :  { %13247 = vst [vmem:[#allocation209_spill] sm:$0xff] %v9236_v54  ;;  %1853 = vrot.lane.b32.xlu1 %v1838_v23, %s7024_s15  ;;  %v1909_v49 = vmul.f32 %v13261_v57, %v13249_v17 }
 0x2aa   :  { %v1837_v2 = vadd.f32 %v1829_v34, %v1813_v45  ;;  %v1912_v44 = vadd.f32 %v1904_v24, %v1888_v46  ;;  %v13258_v34 = vld [vmem:[#allocation36_spill] sm:$0xff]  ;;  %v1908_v45 = vmul.f32 %v13261_v57, %v13246_v16 }
 0x2ab   :  { %v1892_v42 = vmul.f32 %v13258_v34, %v9200_v41  ;;  %v1893_v46 = vmul.f32 %v13258_v34, %v9228_v53 }
 0x2ac   :  { %v9249_v27 = vpop.permute.xlu1 %1756  ;;  %v9251_v54 = vpop.permute.xlu0 %1295 }
 0x2ad   :  { %13250 = vst [vmem:[#allocation211_spill] sm:$0xff] %v9249_v27  ;;  %13251 = vst [vmem:[#allocation212_spill] sm:$0xff] %v9251_v54  ;;  %1845 = vrot.lane.b32.xlu1 %v1836_v10, %s7024_s15  ;;  %v1928_v10 = vmul.f32 %v13144_v43, %v8746_v55  ;;  %v1933_v55 = vmul.f32 %v8738_v0, %v9240_v37 }
 0x2af   :  { %v1936_v24 = vadd.f32 %v1928_v10, %v1912_v44  ;;  %v1891_v44 = vmul.f32 %v13258_v34, %v9147_v13  ;;  %v1917_v10 = vadd.f32 %v1909_v49, %v1893_v46  ;;  %v1910_v49 = vmul.f32 %v13261_v57, %v13241_v60  ;;  %v13305_v13 = vld [vmem:[#allocation151_spill] sm:$0xff] }
 0x2b0   :  { %v9254_v40 = vpop.permute.xlu1 %509  ;;  %v9256_v33 = vpop.permute.xlu0 %1287 }
 0x2b1   :  { %13252 = vst [vmem:[#allocation213_spill] sm:$0xff] %v9254_v40  ;;  %13253 = vst [vmem:[#allocation214_spill] sm:$0xff] %v9256_v33  ;;  %1849 = vrot.lane.b32.xlu1 %v1837_v2, %s7024_s15  ;;  %v1932_v2 = vmul.f32 %v8738_v0, %v9217_v1  ;;  %v13295_v33 = vld [vmem:[#allocation124_spill] sm:$0xff] }
 0x2b4   :  { %v9259_v26 = vpop.permute.xlu1 %521  ;;  %v9261_v25 = vpop.permute.xlu0 %1299 }
 0x2b5   :  { %13254 = vst [vmem:[#allocation215_spill] sm:$0xff] %v9259_v26  ;;  %13255 = vst [vmem:[#allocation216_spill] sm:$0xff] %v9261_v25  ;;  %3684 = vperm.xlu1 %6492, %v8805_v14  }
 0x2b8   :  { %v9268_v51 = vpop.permute.xlu0 %1851  ;;  %v9270_v23 = vpop.permute.xlu1 %513 }
 0x2b9   :  { %13256 = vst [vmem:[#allocation217_spill] sm:$0xff] %v9268_v51  ;;  %13257 = vst [vmem:[#allocation218_spill] sm:$0xff] %v9270_v23  ;;  %6493 = vset.pattern.permute.xlu1 %v13033_v59  ;;  %v1916_v59 = vadd.f32 %v1908_v45, %v1892_v42  ;;  %v1907_v45 = vmul.f32 %v13261_v57, %v13232_v62  ;;  %v13291_v23 = vld [vmem:[#allocation49_spill] sm:$0xff] }
 0x2ba   :  { %3696 = vperm.xlu1 %6493, %v9032_v22  }
 0x2bb   :  { %v1940_v54 = vadd.f32 %v1932_v2, %v1916_v59  ;;  %v1894_v59 = vmul.f32 %v13258_v34, %v9173_v7  ;;  %v1915_v2 = vadd.f32 %v1907_v45, %v1891_v44  ;;  %v13302_v7 = vld [vmem:[#allocation73_spill] sm:$0xff] }
 0x2bc   :  { %v9278_v8 = vpop.permute.xlu0 %1843  ;;  %v9280_v14 = vpop.permute.xlu1 %517 }
 0x2bd   :  { %13259 = vst [vmem:[#allocation36_spill] sm:$0xff] %v9278_v8  ;;  %13260 = vst [vmem:[#allocation219_spill] sm:$0xff] %v9280_v14  ;;  %v1941_v8 = vadd.f32 %v1933_v55, %v1917_v10  ;;  %v1918_v55 = vadd.f32 %v1910_v49, %v1894_v59 }
 0x2be   :  { %1947 = vrot.lane.b32.xlu1 %v1936_v24, %s7025_s16  ;;  %v1931_v24 = vmul.f32 %v8738_v0, %v9161_v6 }
 0x2bf   :  { %6495 = vset.pattern.permute.xlu1 %v13093_v21 }
 0x2c0   :  { %v9289_v43 = vpop.permute.xlu0 %1847  ;;  %v9296_v51 = vpop.permute.xlu1 %2367 }
 0x2c1   :  { %13262 = vst [vmem:[#allocation40_spill] sm:$0xff] %v9289_v43  ;;  %13263 = vst [vmem:[#allocation220_spill] sm:$0xff] %v9296_v51 }
 0x2c2   :  { %1949 = vrot.lane.b32.xlu1 %v1940_v54, %s7025_s16  ;;  %v1934_v54 = vmul.f32 %v8738_v0, %v9189_v31  ;;  %v6977_v0 = vld [vmem:[%s12339_s3 + $0x38] sm:$0xff] }
 0x2c3   :  { %v13297_v31 = vld [vmem:[#allocation118_spill] sm:$0xff] }
 0x2c4   :  { %v9301_v42 = vpop.permute.xlu0 %3700  ;;  %v1942_v34 = vadd.f32 %v1934_v54, %v1918_v55  ;;  %v13278_v54 = vld [vmem:[#allocation117_spill] sm:$0xff]  ;;  %v13279_v55 = vld [vmem:[#allocation126_spill] sm:$0xff] }
 0x2c5   :  { %13264 = vst [vmem:[#allocation221_spill] sm:$0xff] %v9301_v42  ;;  %v9307_v43 = vpop.permute.xlu1 %2384  ;;  %v1939_v42 = vadd.f32 %v1931_v24, %v1915_v2 }
 0x2c6   :  { %13265 = vst [vmem:[#allocation222_spill] sm:$0xff] %v9307_v43  ;;  %1953 = vrot.lane.b32.xlu1 %v1941_v8, %s7025_s16  ;;  %v13290_v43 = vld [vmem:[#allocation71_spill] sm:$0xff] }
 0x2c9   :  { %v9316_v46 = vpop.permute.xlu0 %1752  ;;  %v9318_v51 = vpop.permute.xlu1 %2388 }
 0x2ca   :  { %13266 = vst [vmem:[#allocation223_spill] sm:$0xff] %v9316_v46  ;;  %13267 = vst [vmem:[#allocation224_spill] sm:$0xff] %v9318_v51  ;;  %1945 = vrot.lane.b32.xlu1 %v1939_v42, %s7025_s16  ;;  %v13288_v51 = vld [vmem:[#allocation141_spill] sm:$0xff] }
 0x2cd   :  { %v9321_v10 = vpop.permute.xlu0 %2412  ;;  %v9323_v44 = vpop.permute.xlu1 %628 }
 0x2ce   :  { %13268 = vst [vmem:[#allocation225_spill] sm:$0xff] %v9321_v10  ;;  %13269 = vst [vmem:[#allocation226_spill] sm:$0xff] %v9323_v44  ;;  %1957 = vrot.lane.b32.xlu1 %v1942_v34, %s7025_s16  ;;  %v2323_v34 = vsel %vm313_vm1, %v13279_v55, %v13278_v54  ;;  %v13287_v10 = vld [vmem:[#allocation144_spill] sm:$0xff]  ;;  %v13316_v44 = vld [vmem:[#allocation70_spill] sm:$0xff] }
 0x2d1   :  { %v9326_v8 = vpop.permute.xlu0 %3068  ;;  %v9328_v57 = vpop.permute.xlu1 %632 }
 0x2d2   :  { %13270 = vst [vmem:[#allocation227_spill] sm:$0xff] %v9326_v8  ;;  %13271 = vst [vmem:[#allocation228_spill] sm:$0xff] %v9328_v57  ;;  %2644 = vperm.xlu1 %6495, %v6977_v0   ;;  %v13280_v0 = vld [vmem:[#allocation121_spill] sm:$0xff] }
 0x2d5   :  { %v9333_v45 = vpop.permute.xlu0 %1951  ;;  %v9335_v24 = vpop.permute.xlu1 %624 }
 0x2d6   :  { %13272 = vst [vmem:[#allocation229_spill] sm:$0xff] %v9333_v45  ;;  %13273 = vst [vmem:[#allocation230_spill] sm:$0xff] %v9335_v24  ;;  %6496 = vset.pattern.permute.xlu1 %v13068_v61  ;;  %v2317_v61 = vsel %vm313_vm1, %v13280_v0, %v13279_v55  ;;  %v9360_v45 = vsel %vm8273_vm3, %v2323_v34, 0.0 }
 0x2d7   :  { %3720 = vperm.xlu1 %6496, %v9032_v22   ;;  %v9368_v8 = vsel %vm8309_vm5, %v2317_v61, 0.0  ;;  %v13289_v61 = vld [vmem:[#allocation148_spill] sm:$0xff] }
 0x2d8   :  { %13283 = vst [vmem:[#allocation126_spill] sm:$0xff] %v9368_v8  ;;  %v2355_v46 = vsel %vm354_vm2, %v13289_v61, %v13288_v51 }
 0x2d9   :  { %v9339_v42 = vpop.permute.xlu0 %1943  ;;  %v9341_v59 = vpop.permute.xlu1 %636  ;;  %v9420_v6 = vsel %vm8335_vm6, %v2355_v46, 0.0  ;;  %v13306_v46 = vld [vmem:[#allocation77_spill] sm:$0xff] }
 0x2da   :  { %13274 = vst [vmem:[#allocation231_spill] sm:$0xff] %v9339_v42  ;;  %13275 = vst [vmem:[#allocation232_spill] sm:$0xff] %v9341_v59  ;;  %v13309_v59 = vld [vmem:[#allocation132_spill] sm:$0xff] }
 0x2db   :  { %6498 = vset.pattern.permute.xlu1 %v13093_v21  ;;  %v13282_v21 = vld [vmem:[#allocation128_spill] sm:$0xff]  ;;  %13300 = vst [vmem:[#allocation141_spill] sm:$0xff] %v9420_v6 }
 0x2dc   :  { %v2319_v55 = vsel %vm313_vm1, %v13282_v21, %v13280_v0  ;;  %v13292_v0 = vld [vmem:[#allocation44_spill] sm:$0xff] }
 0x2dd   :  { %v9344_v2 = vpop.permute.xlu0 %1955  ;;  %v9346_v49 = vpop.permute.xlu1 %1332  ;;  %v2439_v14 = vmul.f32 %v13292_v0, %v9360_v45  ;;  %v2442_v40 = vmul.f32 %v13292_v0, %v9368_v8 }
 0x2de   :  { %13276 = vst [vmem:[#allocation233_spill] sm:$0xff] %v9344_v2  ;;  %13277 = vst [vmem:[#allocation234_spill] sm:$0xff] %v9346_v49  ;;  %v2321_v49 = vsel %vm313_vm1, %v13278_v54, %v13282_v21  ;;  %v13284_v2 = vld [vmem:[#allocation114_spill] sm:$0xff]  ;;  %v2353_v54 = vsel %vm354_vm2, %v13288_v51, %v13287_v10  ;;  %v2459_v21 = vmul.f32 %v13291_v23, %v13290_v43  ;;  %v9404_v51 = vsel %vm8381_vm9, %v2319_v55, 0.0  ;;  %v13301_v55 = vld [vmem:[#allocation68_spill] sm:$0xff] }
 0x2df   :  { %v9394_v25 = vsel %vm8347_vm7, %v2321_v49, 0.0  ;;  %13296 = vst [vmem:[#allocation114_spill] sm:$0xff] %v9404_v51  ;;  %v9416_v27 = vsel %vm8295_vm4, %v2353_v54, 0.0  ;;  %v2351_v54 = vsel %vm354_vm2, %v13287_v10, %v13305_v13  ;;  %v2356_v10 = vsel %vm354_vm2, %v13310_v52, %v13295_v33 }
 0x2e0   :  { %13293 = vst [vmem:[#allocation128_spill] sm:$0xff] %v9394_v25  ;;  %13299 = vst [vmem:[#allocation144_spill] sm:$0xff] %v9416_v27  ;;  %v2479_v24 = vmul.f32 %v13311_v4, %v9416_v27  ;;  %v9476_v12 = vsel %vm8335_vm6, %v2356_v10, 0.0 }
 0x2e1   :  { %v9356_v22 = vpop.permute.xlu0 %3724  ;;  %13318 = vst [vmem:[#allocation118_spill] sm:$0xff] %v9476_v12 }
 0x2e2   :  { %13281 = vst [vmem:[#allocation117_spill] sm:$0xff] %v9356_v22  ;;  %v13285_v22 = vld [vmem:[#allocation129_spill] sm:$0xff]  ;;  %v9378_v42 = vpop.permute.xlu1 %2408 }
 0x2e3   :  { %v2324_v34 = vsel %vm313_vm1, %v13285_v22, %v13284_v2  ;;  %13286 = vst [vmem:[#allocation121_spill] sm:$0xff] %v9378_v42  ;;  %v13294_v42 = vld [vmem:[#allocation137_spill] sm:$0xff]  ;;  %v2318_v37 = vsel %vm313_vm1, %v13297_v31, %v13285_v22  ;;  %v2440_v22 = vmul.f32 %v13292_v0, %v9394_v25 }
 0x2e4   :  { %v2354_v26 = vsel %vm354_vm2, %v13295_v33, %v13294_v42  ;;  %v9412_v49 = vsel %vm8273_vm3, %v2324_v34, 0.0  ;;  %v9439_v17 = vsel %vm8309_vm5, %v2318_v37, 0.0  ;;  %v2482_v37 = vmul.f32 %v13311_v4, %v9420_v6 }
 0x2e5   :  { %13298 = vst [vmem:[#allocation129_spill] sm:$0xff] %v9412_v49  ;;  %v9430_v34 = vsel %vm8295_vm4, %v2354_v26, 0.0  ;;  %13307 = vst [vmem:[#allocation44_spill] sm:$0xff] %v9439_v17  ;;  %v2322_v26 = vsel %vm313_vm1, %v13284_v2, %v13309_v59  ;;  %v9467_v33 = vsel %vm8371_vm8, %v2351_v54, 0.0 }
 0x2e6   :  { %v2449_v1 = vpop.permute.xlu0 %2448  ;;  %v9424_v41 = vpop.permute.xlu1 %1183  ;;  %13304 = vst [vmem:[#allocation49_spill] sm:$0xff] %v9430_v34  ;;  %13314 = vst [vmem:[#allocation137_spill] sm:$0xff] %v9467_v33 }
 0x2e7   :  { %v2455_v39 = vmul.f32 %v2449_v1, %v13301_v55  ;;  %v2458_v53 = vmul.f32 %v2449_v1, %v13302_v7  ;;  %13303 = vst [vmem:[#allocation148_spill] sm:$0xff] %v9424_v41  ;;  %v2456_v60 = vmul.f32 %v2449_v1, %v13306_v46  ;;  %v13308_v41 = vld [vmem:[#allocation47_spill] sm:$0xff]  ;;  %v2457_v57 = vmul.f32 %v2449_v1, %v13316_v44 }
 0x2e8   :  { %v2443_v16 = vmul.f32 %v13308_v41, %v9412_v49  ;;  %v9484_v1 = vsel %vm8347_vm7, %v2322_v26, 0.0 }
 0x2e9   :  { %v2466_v62 = vadd.f32 %v2458_v53, %v2442_v40  ;;  %v2463_v19 = vadd.f32 %v2455_v39, %v2439_v14  ;;  %v2352_v39 = vsel %vm354_vm2, %v13294_v42, %v13312_v9  ;;  %v13313_v53 = vld [vmem:[#allocation78_spill] sm:$0xff]  ;;  %v2349_v14 = vsel %vm354_vm2, %v13305_v13, %v13289_v61  ;;  %v13317_v42 = vld [vmem:[#allocation80_spill] sm:$0xff]  ;;  %13319 = vst [vmem:[#allocation68_spill] sm:$0xff] %v9484_v1 }
 0x2ea   :  { %v2483_v40 = vmul.f32 %v13313_v53, %v9430_v34  ;;  %v9469_v2 = vpop.permute.xlu1 %1185  ;;  %v2464_v5 = vadd.f32 %v2456_v60, %v2440_v22  ;;  %v2462_v63 = vmul.f32 %v13291_v23, %v13317_v42  ;;  %v2467_v35 = vadd.f32 %v2459_v21, %v2443_v16 }
 0x2eb   :  { %13315 = vst [vmem:[#allocation124_spill] sm:$0xff] %v9469_v2  ;;  %v2490_v32 = vadd.f32 %v2482_v37, %v2466_v62  ;;  %v2487_v30 = vadd.f32 %v2479_v24, %v2463_v19  ;;  %v2441_v13 = vmul.f32 %v13292_v0, %v9404_v51  ;;  %v2446_v61 = vmul.f32 %v13308_v41, %v9439_v17 }
 0x2ec   :  { %v2480_v19 = vmul.f32 %v13311_v4, %v9467_v33  ;;  %v2320_v62 = vsel %vm313_vm1, %v13309_v59, %v13297_v31  ;;  %v9496_v60 = vsel %vm8371_vm8, %v2352_v39, 0.0  ;;  %v9500_v16 = vsel %vm8410_vm10, %v2349_v14, 0.0  ;;  %v13324_v31 = vld [vmem:[#allocation55_spill] sm:$0xff] }
 0x2ed   :  { %2507 = vrot.lane.b32.xlu0 %v2490_v32, %s7024_s15  ;;  %2495 = vrot.lane.b32.xlu1 %v2487_v30, %s7024_s15  ;;  %13320 = vst [vmem:[#allocation151_spill] sm:$0xff] %v9496_v60  ;;  %13321 = vst [vmem:[#allocation77_spill] sm:$0xff] %v9500_v16  ;;  %v2491_v21 = vadd.f32 %v2483_v40, %v2467_v35  ;;  %v2486_v32 = vmul.f32 %v13313_v53, %v9476_v12  ;;  %v13323_v30 = vld [vmem:[#allocation159_spill] sm:$0xff]  ;;  %v9524_v39 = vsel %vm8381_vm9, %v2320_v62, 0.0 }
 0x2ee   :  { %v9502_v24 = vpop.permute.xlu1 %1197  ;;  %v2560_v0 = vmul.f32 %v13323_v30, %v13306_v46  ;;  %v2488_v22 = vadd.f32 %v2480_v19, %v2464_v5  ;;  %v2465_v54 = vadd.f32 %v2457_v57, %v2441_v13  ;;  %v2544_v59 = vmul.f32 %v13324_v31, %v9394_v25  ;;  %v13325_v5 = vld [vmem:[#allocation82_spill] sm:$0xff]  ;;  %13326 = vst [vmem:[#allocation132_spill] sm:$0xff] %v9524_v39 }
 0x2ef   :  { %13322 = vst [vmem:[#allocation47_spill] sm:$0xff] %v9502_v24  ;;  %v2444_v26 = vmul.f32 %v13308_v41, %v9484_v1  ;;  %v2470_v10 = vadd.f32 %v2462_v63, %v2446_v61  ;;  %v2350_v35 = vsel %vm354_vm2, %v13312_v9, %v13310_v52  ;;  %v2481_v37 = vmul.f32 %v13311_v4, %v9500_v16  ;;  %v13371_v24 = vld [vmem:[#allocation79_spill] sm:$0xff] }
 0x2f0   :  { %v2460_v57 = vmul.f32 %v13291_v23, %v13325_v5  ;;  %v2484_v63 = vmul.f32 %v13313_v53, %v9496_v60  ;;  %v2561_v52 = vmul.f32 %v13323_v30, %v13316_v44  ;;  %v2568_v14 = vadd.f32 %v2560_v0, %v2544_v59 }
 0x2f1   :  { %2499 = vrot.lane.b32.xlu0 %v2488_v22, %s7024_s15  ;;  %2497 = vrot.lane.b32.xlu1 %v2491_v21, %s7024_s15  ;;  %v2489_v9 = vadd.f32 %v2481_v37, %v2465_v54  ;;  %v2494_v4 = vadd.f32 %v2486_v32, %v2470_v10  ;;  %v9534_v61 = vsel %vm8410_vm10, %v2350_v35, 0.0  ;;  %v2545_v19 = vmul.f32 %v13324_v31, %v9404_v51  ;;  %v13329_v21 = vld [vmem:[#allocation66_spill] sm:$0xff] }
 0x2f2   :  { %v9528_v40 = vpop.permute.xlu1 %1189  ;;  %v2468_v13 = vadd.f32 %v2460_v57, %v2444_v26  ;;  %13328 = vst [vmem:[#allocation51_spill] sm:$0xff] %v9534_v61  ;;  %v2445_v62 = vmul.f32 %v13308_v41, %v9524_v39  ;;  %v2584_v22 = vmul.f32 %v13329_v21, %v9467_v33  ;;  %v13330_v32 = vld [vmem:[#allocation74_spill] sm:$0xff]  ;;  %v2485_v26 = vmul.f32 %v13313_v53, %v9534_v61  ;;  %v13333_v53 = vld [vmem:[#allocation63_spill] sm:$0xff] }
 0x2f3   :  { %13327 = vst [vmem:[#allocation142_spill] sm:$0xff] %v9528_v40  ;;  %v2461_v0 = vmul.f32 %v13291_v23, %v13330_v32  ;;  %v2559_v10 = vmul.f32 %v13323_v30, %v13301_v55  ;;  %v2569_v35 = vadd.f32 %v2561_v52, %v2545_v19  ;;  %v2543_v37 = vmul.f32 %v13324_v31, %v9360_v45 }
 0x2f4   :  { %v2492_v59 = vadd.f32 %v2484_v63, %v2468_v13  ;;  %v2592_v41 = vadd.f32 %v2584_v22, %v2568_v14  ;;  %v2585_v23 = vmul.f32 %v13329_v21, %v9500_v16  ;;  %v2564_v63 = vmul.f32 %v13333_v53, %v13325_v5  ;;  %v9654_v16 = vpop.permute.xlu0 %3104 }
 0x2f5   :  { %2503 = vrot.lane.b32.xlu0 %v2489_v9, %s7024_s15  ;;  %2509 = vrot.lane.b32.xlu1 %v2494_v4, %s7024_s15  ;;  %v2469_v57 = vadd.f32 %v2461_v0, %v2445_v62  ;;  %v13332_v9 = vld [vmem:[#allocation57_spill] sm:$0xff]  ;;  %v2562_v52 = vmul.f32 %v13323_v30, %v13302_v7  ;;  %v2588_v13 = vmul.f32 %v8768_v18, %v9496_v60  ;;  %v13363_v60 = vld [vmem:[#allocation67_spill] sm:$0xff] }
 0x2f6   :  { %v9546_v54 = vpop.permute.xlu1 %1193  ;;  %v2548_v4 = vmul.f32 %v13332_v9, %v9484_v1  ;;  %v2593_v19 = vadd.f32 %v2585_v23, %v2569_v35  ;;  %v2567_v22 = vadd.f32 %v2559_v10, %v2543_v37  ;;  %v2546_v0 = vmul.f32 %v13324_v31, %v9368_v8  ;;  %v13336_v10 = vld [vmem:[#allocation174_spill] sm:$0xff] }
 0x2f7   :  { %13331 = vst [vmem:[#allocation127_spill] sm:$0xff] %v9546_v54  ;;  %v2493_v62 = vadd.f32 %v2485_v26, %v2469_v57  ;;  %v2583_v1 = vmul.f32 %v13329_v21, %v9416_v27  ;;  %v2565_v30 = vmul.f32 %v13333_v53, %v13330_v32  ;;  %v13335_v26 = vld [vmem:[#allocation167_spill] sm:$0xff]  ;;  %v2589_v37 = vmul.f32 %v8768_v18, %v9534_v61  ;;  %v13353_v27 = vld [vmem:[#allocation173_spill] sm:$0xff] }
 0x2f8   :  { %v2570_v35 = vadd.f32 %v2562_v52, %v2546_v0  ;;  %v2980_v31 = vsel %vm313_vm1, %v13336_v10, %v13335_v26  ;;  %v3010_v52 = vsel %vm354_vm2, %v8794_v20, %v8800_v56  ;;  %v13338_v0 = vld [vmem:[#allocation171_spill] sm:$0xff] }
 0x2f9   :  { %2603 = vrot.lane.b32.xlu0 %v2592_v41, %s7025_s16  ;;  %2501 = vrot.lane.b32.xlu1 %v2492_v59, %s7024_s15  ;;  %v2549_v59 = vmul.f32 %v13332_v9, %v9524_v39  ;;  %v2572_v41 = vadd.f32 %v2564_v63, %v2548_v4  ;;  %v2591_v4 = vadd.f32 %v2583_v1, %v2567_v22  ;;  %v13343_v39 = vld [vmem:[#allocation72_spill] sm:$0xff] }
 0x2fa   :  { %v9564_v14 = vpop.permute.xlu1 %3028  ;;  %v2547_v63 = vmul.f32 %v13332_v9, %v9412_v49  ;;  %v2974_v1 = vsel %vm313_vm1, %v13338_v0, %v13336_v10  ;;  %v2587_v22 = vmul.f32 %v8768_v18, %v9430_v34  ;;  %v9614_v10 = vsel %vm8295_vm4, %v3010_v52, 0.0  ;;  %v13346_v52 = vld [vmem:[#allocation169_spill] sm:$0xff] }
 0x2fb   :  { %13334 = vst [vmem:[#allocation78_spill] sm:$0xff] %v9564_v14  ;;  %v2596_v23 = vadd.f32 %v2588_v13, %v2572_v41  ;;  %v9602_v13 = vsel %vm8273_vm3, %v2980_v31, 0.0  ;;  %13341 = vst [vmem:[#allocation57_spill] sm:$0xff] %v9614_v10  ;;  %v9618_v31 = vsel %vm8309_vm5, %v2974_v1, 0.0  ;;  %v13347_v1 = vld [vmem:[#allocation83_spill] sm:$0xff] }
 0x2fc   :  { %13339 = vst [vmem:[#allocation55_spill] sm:$0xff] %v9602_v13  ;;  %13342 = vst [vmem:[#allocation63_spill] sm:$0xff] %v9618_v31  ;;  %v3099_v49 = vmul.f32 %v13343_v39, %v9602_v13  ;;  %v2973_v54 = vsel %vm313_vm1, %v13353_v27, %v13347_v1 }
 0x2fd   :  { %2607 = vrot.lane.b32.xlu0 %v2593_v19, %s7025_s16  ;;  %2505 = vrot.lane.b32.xlu1 %v2493_v62, %s7024_s15  ;;  %v2573_v19 = vadd.f32 %v2565_v30, %v2549_v59  ;;  %v2586_v62 = vmul.f32 %v13329_v21, %v9420_v6  ;;  %v2563_v21 = vmul.f32 %v13333_v53, %v13290_v43 }
 0x2fe   :  { %v3102_v6 = vmul.f32 %v13343_v39, %v9618_v31 }
 0x2ff   :  { %v9584_v57 = vpop.permute.xlu1 %3040  ;;  %v2594_v41 = vadd.f32 %v2586_v62, %v2570_v35  ;;  %v2597_v30 = vadd.f32 %v2589_v37, %v2573_v19  ;;  %v3012_v35 = vsel %vm354_vm2, %v8814_v11, %v8794_v20  ;;  %v13344_v37 = vld [vmem:[#allocation87_spill] sm:$0xff]  ;;  %v2590_v62 = vmul.f32 %v8768_v18, %v9476_v12 }
 0x300   :  { %13337 = vst [vmem:[#allocation159_spill] sm:$0xff] %v9584_v57  ;;  %v13351_v57 = vld [vmem:[#allocation93_spill] sm:$0xff]  ;;  %v9652_v33 = vsel %vm8335_vm6, %v3012_v35, 0.0 }
 0x301   :  { %2599 = vrot.lane.b32.xlu0 %v2591_v4, %s7025_s16  ;;  %2605 = vrot.lane.b32.xlu1 %v2596_v23, %s7025_s16  ;;  %v2550_v4 = vmul.f32 %v13332_v9, %v9439_v17  ;;  %v2571_v23 = vadd.f32 %v2563_v21, %v2547_v63  ;;  %v2566_v9 = vmul.f32 %v13333_v53, %v13317_v42  ;;  %v13345_v63 = vld [vmem:[#allocation76_spill] sm:$0xff]  ;;  %v13348_v17 = vld [vmem:[#allocation175_spill] sm:$0xff] }
 0x302   :  { %v3115_v19 = vmul.f32 %v13345_v63, %v13344_v37  ;;  %v2979_v21 = vsel %vm313_vm1, %v13347_v1, %v13346_v52  ;;  %v2978_v20 = vsel %vm313_vm1, %v13335_v26, %v13348_v17  ;;  %v3118_v14 = vmul.f32 %v13345_v63, %v13351_v57  ;;  %13352 = vst [vmem:[#allocation174_spill] sm:$0xff] %v9652_v33 }
 0x303   :  { %v9608_v59 = vpop.permute.xlu1 %1291  ;;  %v2574_v18 = vadd.f32 %v2566_v9, %v2550_v4  ;;  %v6978_v4 = vld [vmem:[%s12339_s3 + $0x40] sm:$0xff]  ;;  %v9678_v35 = vsel %vm8347_vm7, %v2978_v20, 0.0  ;;  %v13356_v9 = vld [vmem:[#allocation182_spill] sm:$0xff] }
 0x304   :  { %13340 = vst [vmem:[#allocation66_spill] sm:$0xff] %v9608_v59  ;;  %v2595_v59 = vadd.f32 %v2587_v22, %v2571_v23  ;;  %v3123_v26 = vadd.f32 %v3115_v19, %v3099_v49  ;;  %v3008_v22 = vsel %vm354_vm2, %v8800_v56, %v8827_v48  ;;  %v9670_v49 = vsel %vm8273_vm3, %v2979_v21, 0.0  ;;  %13355 = vst [vmem:[#allocation72_spill] sm:$0xff] %v9678_v35  ;;  %v13357_v19 = vld [vmem:[#allocation180_spill] sm:$0xff] }
 0x305   :  { %2611 = vrot.lane.b32.xlu0 %v2594_v41, %s7025_s16  ;;  %2609 = vrot.lane.b32.xlu1 %v2597_v30, %s7025_s16  ;;  %v13349_v41 = vld [vmem:[#allocation81_spill] sm:$0xff]  ;;  %13354 = vst [vmem:[#allocation171_spill] sm:$0xff] %v9670_v49  ;;  %v2976_v23 = vsel %vm313_vm1, %v13348_v17, %v13338_v0  ;;  %v2598_v56 = vadd.f32 %v2590_v62, %v2574_v18  ;;  %v13358_v21 = vld [vmem:[#allocation88_spill] sm:$0xff]  ;;  %v9694_v62 = vsel %vm8371_vm8, %v3008_v22, 0.0  ;;  %v9698_v18 = vsel %vm8309_vm5, %v2973_v54, 0.0 }
 0x306   :  { %v3139_v30 = vmul.f32 %v13349_v41, %v9614_v10  ;;  %v3009_v1 = vsel %vm354_vm2, %v13357_v19, %v13356_v9  ;;  %v13360_v17 = vld [vmem:[#allocation96_spill] sm:$0xff]  ;;  %v3126_v20 = vadd.f32 %v3118_v14, %v3102_v6  ;;  %13361 = vst [vmem:[#allocation76_spill] sm:$0xff] %v9694_v62  ;;  %13362 = vst [vmem:[#allocation169_spill] sm:$0xff] %v9698_v18  ;;  %v9712_v6 = vsel %vm8381_vm9, %v2976_v23, 0.0 }
 0x307   :  { %v9644_v53 = vpop.permute.xlu1 %1293  ;;  %v3116_v0 = vmul.f32 %v13345_v63, %v13360_v17  ;;  %v3095_v34 = vmul.f32 %v13363_v60, %v9670_v49  ;;  %v3100_v42 = vmul.f32 %v13343_v39, %v9678_v35  ;;  %13364 = vst [vmem:[#allocation83_spill] sm:$0xff] %v9712_v6  ;;  %v13365_v54 = vld [vmem:[#allocation176_spill] sm:$0xff] }
 0x308   :  { %13350 = vst [vmem:[#allocation167_spill] sm:$0xff] %v9644_v53  ;;  %v3147_v61 = vadd.f32 %v3139_v30, %v3123_v26  ;;  %v3006_v30 = vsel %vm354_vm2, %v8827_v48, %v8814_v11  ;;  %v2977_v14 = vsel %vm313_vm1, %v13346_v52, %v13365_v54  ;;  %v9720_v26 = vsel %vm8295_vm4, %v3009_v1, 0.0  ;;  %v13367_v22 = vld [vmem:[#allocation84_spill] sm:$0xff] }
 0x309   :  { %3296 = vperm.xlu0 %6497, %v6978_v4   ;;  %2601 = vrot.lane.b32.xlu1 %v2595_v59, %s7025_s16  ;;  %v3142_v59 = vmul.f32 %v13349_v41, %v9652_v33  ;;  %v3111_v4 = vmul.f32 %v9654_v16, %v13358_v21  ;;  %13366 = vst [vmem:[#allocation175_spill] sm:$0xff] %v9720_v26  ;;  %v9736_v1 = vsel %vm8410_vm10, %v3006_v30, 0.0 }
 0x30a   :  { %v3011_v48 = vsel %vm354_vm2, %v13367_v22, %v13357_v19  ;;  %v3140_v11 = vmul.f32 %v13349_v41, %v9694_v62  ;;  %v3098_v52 = vmul.f32 %v13363_v60, %v9698_v18  ;;  %13370 = vst [vmem:[#allocation93_spill] sm:$0xff] %v9736_v1  ;;  %v3101_v19 = vmul.f32 %v13343_v39, %v9712_v6 }
 0x30b   :  { %v9688_v12 = vpop.permute.xlu1 %1297  ;;  %v3150_v32 = vadd.f32 %v3142_v59, %v3126_v20  ;;  %v3119_v5 = vadd.f32 %v3111_v4, %v3095_v34  ;;  %v3124_v43 = vadd.f32 %v3116_v0, %v3100_v42  ;;  %v3135_v2 = vmul.f32 %v13371_v24, %v9720_v26  ;;  %v6979_v34 = vld [vmem:[%s12339_s3 + $0x48] sm:$0xff]  ;;  %v13372_v59 = vld [vmem:[#allocation90_spill] sm:$0xff] }
 0x30c   :  { %13359 = vst [vmem:[#allocation87_spill] sm:$0xff] %v9688_v12  ;;  %v3117_v4 = vmul.f32 %v13345_v63, %v13372_v59  ;;  %v2975_v20 = vsel %vm313_vm1, %v13365_v54, %v13353_v27  ;;  %v9754_v42 = vsel %vm8347_vm7, %v2977_v14, 0.0  ;;  %v9758_v39 = vsel %vm8335_vm6, %v3011_v48, 0.0  ;;  %v13377_v54 = vld [vmem:[#allocation97_spill] sm:$0xff] }
 0x30d   :  { %3153 = vrot.lane.b32.xlu0 %v3147_v61, %s7024_s15  ;;  %2613 = vrot.lane.b32.xlu1 %v2598_v56, %s7025_s16  ;;  %v13368_v61 = vld [vmem:[#allocation94_spill] sm:$0xff]  ;;  %13373 = vst [vmem:[#allocation173_spill] sm:$0xff] %v9754_v42  ;;  %13374 = vst [vmem:[#allocation182_spill] sm:$0xff] %v9758_v39  ;;  %v3148_v30 = vadd.f32 %v3140_v11, %v3124_v43  ;;  %v3143_v63 = vadd.f32 %v3135_v2, %v3119_v5  ;;  %v13378_v48 = vld [vmem:[#allocation133_spill] sm:$0xff]  ;;  %v9780_v5 = vsel %vm8381_vm9, %v2975_v20, 0.0 }
 0x30e   :  { %v3114_v23 = vmul.f32 %v9654_v16, %v13368_v61  ;;  %v3112_v14 = vmul.f32 %v9654_v16, %v13377_v54  ;;  %v3125_v40 = vadd.f32 %v3117_v4, %v3101_v19  ;;  %v3204_v53 = vmul.f32 %v13378_v48, %v9678_v35  ;;  %v13379_v43 = vld [vmem:[#allocation136_spill] sm:$0xff]  ;;  %13380 = vst [vmem:[#allocation96_spill] sm:$0xff] %v9780_v5 }
 0x30f   :  { %v9730_v56 = vpop.permute.xlu1 %1289  ;;  %v3220_v2 = vmul.f32 %v13379_v43, %v13360_v17 }
 0x310   :  { %13369 = vst [vmem:[#allocation81_spill] sm:$0xff] %v9730_v56  ;;  %v13376_v56 = vld [vmem:[#allocation11_spill] sm:$0xff] }
 0x311   :  { %3165 = vrot.lane.b32.xlu0 %v3150_v32, %s7024_s15  ;;  %3300 = vperm.xlu1 %6498, %v6979_v34   ;;  %v3141_v32 = vmul.f32 %v13349_v41, %v9736_v1  ;;  %v3122_v34 = vadd.f32 %v3114_v23, %v3098_v52  ;;  %v3007_v27 = vsel %vm354_vm2, %v13356_v9, %v13376_v56  ;;  %v13382_v23 = vld [vmem:[#allocation181_spill] sm:$0xff] }
 0x312   :  { %v3138_v41 = vmul.f32 %v13371_v24, %v9758_v39  ;;  %v3096_v9 = vmul.f32 %v13363_v60, %v9754_v42  ;;  %v9786_v11 = vsel %vm8371_vm8, %v3007_v27, 0.0  ;;  %v3244_v52 = vmul.f32 %v13382_v23, %v9694_v62  ;;  %v13438_v62 = vld [vmem:[#allocation31_spill] sm:$0xff] }
 0x313   :  { %v9762_v0 = vpop.permute.xlu1 %1301  ;;  %13381 = vst [vmem:[#allocation67_spill] sm:$0xff] %v9786_v11  ;;  %v3149_v4 = vadd.f32 %v3141_v32, %v3125_v40  ;;  %v3005_v20 = vsel %vm354_vm2, %v13376_v56, %v13367_v22  ;;  %v3205_v27 = vmul.f32 %v13378_v48, %v9712_v6  ;;  %v3228_v12 = vadd.f32 %v3220_v2, %v3204_v53  ;;  %v13426_v6 = vld [vmem:[#allocation119_spill] sm:$0xff] }
 0x314   :  { %13375 = vst [vmem:[#allocation180_spill] sm:$0xff] %v9762_v0  ;;  %v3120_v0 = vadd.f32 %v3112_v14, %v3096_v9  ;;  %v3097_v40 = vmul.f32 %v13363_v60, %v9780_v5  ;;  %v3136_v32 = vmul.f32 %v13371_v24, %v9786_v11  ;;  %v3221_v22 = vmul.f32 %v13379_v43, %v13372_v59  ;;  %v13387_v9 = vld [vmem:[#allocation130_spill] sm:$0xff] }
 0x315   :  { %3157 = vrot.lane.b32.xlu0 %v3148_v30, %s7024_s15  ;;  %3151 = vrot.lane.b32.xlu1 %v3143_v63, %s7024_s15  ;;  %v3146_v30 = vadd.f32 %v3138_v41, %v3122_v34  ;;  %v13384_v63 = vld [vmem:[#allocation91_spill] sm:$0xff]  ;;  %v3245_v53 = vmul.f32 %v13382_v23, %v9736_v1  ;;  %v3252_v56 = vadd.f32 %v3244_v52, %v3228_v12  ;;  %v13434_v1 = vld [vmem:[#allocation89_spill] sm:$0xff] }
 0x316   :  { %v3113_v35 = vmul.f32 %v9654_v16, %v13384_v63  ;;  %v9810_v16 = vsel %vm8410_vm10, %v3005_v20, 0.0  ;;  %v3144_v14 = vadd.f32 %v3136_v32, %v3120_v0  ;;  %v3203_v60 = vmul.f32 %v13378_v48, %v9602_v13  ;;  %v13388_v52 = vld [vmem:[#allocation163_spill] sm:$0xff]  ;;  %v13428_v13 = vld [vmem:[#allocation188_spill] sm:$0xff] }
 0x317   :  { %v9790_v19 = vpop.permute.xlu1 %1988  ;;  %13385 = vst [vmem:[#allocation84_spill] sm:$0xff] %v9810_v16  ;;  %v3229_v2 = vadd.f32 %v3221_v22, %v3205_v27  ;;  %v3219_v12 = vmul.f32 %v13379_v43, %v13344_v37  ;;  %v3216_v20 = vmul.f32 %v13388_v52, %v13377_v54  ;;  %v13389_v27 = vld [vmem:[#allocation154_spill] sm:$0xff] }
 0x318   :  { %13383 = vst [vmem:[#allocation176_spill] sm:$0xff] %v9790_v19  ;;  %v3121_v41 = vadd.f32 %v3113_v35, %v3097_v40  ;;  %v3243_v35 = vmul.f32 %v13382_v23, %v9614_v10  ;;  %v3240_v40 = vmul.f32 %v13389_v27, %v9786_v11  ;;  %v13414_v11 = vld [vmem:[#allocation123_spill] sm:$0xff] }
 0x319   :  { %3161 = vrot.lane.b32.xlu0 %v3149_v4, %s7024_s15  ;;  %3163 = vrot.lane.b32.xlu1 %v3146_v30, %s7024_s15  ;;  %v3200_v4 = vmul.f32 %v13387_v9, %v9754_v42  ;;  %v3137_v30 = vmul.f32 %v13371_v24, %v9810_v16  ;;  %v3253_v0 = vadd.f32 %v3245_v53, %v3229_v2 }
 0x31a   :  { %v3206_v24 = vmul.f32 %v13378_v48, %v9618_v31  ;;  %v3222_v53 = vmul.f32 %v13379_v43, %v13351_v57  ;;  %v3246_v2 = vmul.f32 %v13382_v23, %v9652_v33  ;;  %v3241_v48 = vmul.f32 %v13389_v27, %v9810_v16  ;;  %v13413_v16 = vld [vmem:[#allocation69_spill] sm:$0xff]  ;;  %v13430_v33 = vld [vmem:[#allocation184_spill] sm:$0xff] }
 0x31b   :  { %v3145_v22 = vadd.f32 %v3137_v30, %v3121_v41  ;;  %v3224_v42 = vadd.f32 %v3216_v20, %v3200_v4  ;;  %v3217_v41 = vmul.f32 %v13388_v52, %v13384_v63  ;;  %v3199_v4 = vmul.f32 %v13387_v9, %v9670_v49  ;;  %v13417_v63 = vld [vmem:[#allocation134_spill] sm:$0xff] }
 0x31c   :  { %v9814_v34 = vpop.permute.xlu1 %3064 }
 0x31d   :  { %13386 = vst [vmem:[#allocation79_spill] sm:$0xff] %v9814_v34  ;;  %3261 = vrot.lane.b32.xlu0 %v3252_v56, %s7025_s16  ;;  %3155 = vrot.lane.b32.xlu1 %v3144_v14, %s7024_s15  ;;  %v3227_v56 = vadd.f32 %v3219_v12, %v3203_v60  ;;  %v3201_v14 = vmul.f32 %v13387_v9, %v9780_v5 }
 0x31e   :  { %v3248_v30 = vadd.f32 %v3240_v40, %v3224_v42  ;;  %v3230_v12 = vadd.f32 %v3222_v53, %v3206_v24  ;;  %v3202_v42 = vmul.f32 %v13387_v9, %v9698_v18  ;;  %v3242_v24 = vmul.f32 %v13389_v27, %v9758_v39  ;;  %v6980_v9 = vld [vmem:[%s12339_s3 + $0x58] sm:$0xff]  ;;  %v13408_v18 = vld [vmem:[#allocation120_spill] sm:$0xff] }
 0x31f   :  { %v3225_v43 = vadd.f32 %v3217_v41, %v3201_v14  ;;  %v13394_v14 = vld [vmem:[#allocation187_spill] sm:$0xff] }
 0x320   :  { %v9832_v32 = vpop.permute.xlu1 %1839  ;;  %v3254_v23 = vadd.f32 %v3246_v2, %v3230_v12 }
 0x321   :  { %13390 = vst [vmem:[#allocation90_spill] sm:$0xff] %v9832_v32  ;;  %3265 = vrot.lane.b32.xlu0 %v3253_v0, %s7025_s16  ;;  %3159 = vrot.lane.b32.xlu1 %v3145_v22, %s7024_s15  ;;  %v3251_v32 = vadd.f32 %v3243_v35, %v3227_v56  ;;  %v3215_v35 = vmul.f32 %v13388_v52, %v13358_v21  ;;  %v13393_v56 = vld [vmem:[#allocation35_spill] sm:$0xff] }
 0x322   :  { %v3239_v0 = vmul.f32 %v13389_v27, %v9720_v26  ;;  %v3249_v22 = vadd.f32 %v3241_v48, %v3225_v43  ;;  %v3635_v53 = vsel %vm313_vm1, %v13394_v14, %v13393_v56  ;;  %v3761_v48 = vpop.permute.xlu0 %3760  ;;  %v13397_v27 = vld [vmem:[#allocation185_spill] sm:$0xff]  ;;  %v13399_v43 = vld [vmem:[#allocation95_spill] sm:$0xff] }
 0x323   :  { %v3223_v40 = vadd.f32 %v3215_v35, %v3199_v4  ;;  %v3629_v12 = vsel %vm313_vm1, %v13397_v27, %v13394_v14  ;;  %v13398_v4 = vld [vmem:[#allocation62_spill] sm:$0xff]  ;;  %v13400_v35 = vld [vmem:[#allocation113_spill] sm:$0xff]  ;;  %v6981_v14 = vld [vmem:[%s12338_s2] sm:$0xff] }
 0x324   :  { %v9848_v60 = vpop.permute.xlu1 %1841  ;;  %v13418_v21 = vld [vmem:[#allocation131_spill] sm:$0xff] }
 0x325   :  { %13391 = vst [vmem:[#allocation11_spill] sm:$0xff] %v9848_v60  ;;  %3257 = vrot.lane.b32.xlu0 %v3251_v32, %s7025_s16  ;;  %3259 = vrot.lane.b32.xlu1 %v3248_v30, %s7025_s16  ;;  %v3218_v32 = vmul.f32 %v13388_v52, %v13368_v61  ;;  %v3247_v41 = vadd.f32 %v3239_v0, %v3223_v40  ;;  %v9880_v52 = vsel %vm8273_vm3, %v3635_v53, 0.0  ;;  %v13402_v40 = vmov 3  }
 0x326   :  { %13396 = vst [vmem:[#allocation181_spill] sm:$0xff] %v9880_v52  ;;  %v3767_v0 = vmul.f32 %v3761_v48, %v13400_v35 }
 0x327   :  { %v3226_v30 = vadd.f32 %v3218_v32, %v3202_v42  ;;  %v13403_v32 = vld [vmem:[#allocation156_spill] sm:$0xff] }
 0x328   :  { %v9858_v20 = vpop.permute.xlu1 %1853  ;;  %v3751_v53 = vmul.f32 %v13403_v32, %v9880_v52 }
 0x329   :  { %13392 = vst [vmem:[#allocation133_spill] sm:$0xff] %v9858_v20  ;;  %3269 = vrot.lane.b32.xlu0 %v3254_v23, %s7025_s16  ;;  %3263 = vrot.lane.b32.xlu1 %v3249_v22, %s7025_s16  ;;  %v3665_v23 = vsel %vm354_vm2, %v13399_v43, %v13398_v4  ;;  %v3250_v42 = vadd.f32 %v3242_v24, %v3226_v30  ;;  %v13406_v24 = vld [vmem:[#allocation189_spill] sm:$0xff]  ;;  %v13427_v20 = vld [vmem:[#allocation122_spill] sm:$0xff] }
 0x32a   :  { %v3633_v30 = vsel %vm313_vm1, %v13393_v56, %v13406_v24  ;;  %v6982_v56 = vld [vmem:[%s12339_s3 + $0x50] sm:$0xff] }
 0x32c   :  { %v9872_v2 = vpop.permute.xlu1 %1845 }
 0x32d   :  { %13395 = vst [vmem:[#allocation136_spill] sm:$0xff] %v9872_v2  ;;  %3956 = vperm.xlu0 %6497, %v6980_v9   ;;  %3255 = vrot.lane.b32.xlu1 %v3247_v41, %s7025_s16  ;;  %v9902_v41 = vsel %vm8309_vm5, %v3629_v12, 0.0  ;;  %v9906_v9 = vsel %vm8295_vm4, %v3665_v23, 0.0  ;;  %v3775_v12 = vadd.f32 %v3767_v0, %v3751_v53  ;;  %v13410_v23 = vld [vmem:[#allocation56_spill] sm:$0xff]  ;;  %v3631_v0 = vsel %vm313_vm1, %v13406_v24, %v13397_v27  ;;  %v13415_v27 = vld [vmem:[#allocation138_spill] sm:$0xff] }
 0x32e   :  { %13404 = vst [vmem:[#allocation163_spill] sm:$0xff] %v9902_v41  ;;  %13405 = vst [vmem:[#allocation154_spill] sm:$0xff] %v9906_v9  ;;  %v3754_v49 = vmul.f32 %v13403_v32, %v9902_v41  ;;  %v3791_v39 = vmul.f32 %v13410_v23, %v9906_v9  ;;  %v9935_v53 = vsel %vm8347_vm7, %v3633_v30, 0.0  ;;  %v9965_v19 = vsel %vm8381_vm9, %v3631_v0, 0.0 }
 0x32f   :  { %13411 = vst [vmem:[#allocation187_spill] sm:$0xff] %v9935_v53  ;;  %v3752_v30 = vmul.f32 %v13403_v32, %v9935_v53  ;;  %13422 = vst [vmem:[#allocation95_spill] sm:$0xff] %v9965_v19  ;;  %v3858_v29 = vmul.f32 %v13439_v47, %v9902_v41  ;;  %v3857_v7 = vmul.f32 %v13439_v47, %v9965_v19 }
 0x330   :  { %v9891_v22 = vpop.permute.xlu1 %1849  ;;  %v3799_v34 = vadd.f32 %v3791_v39, %v3775_v12  ;;  %v13419_v39 = vld [vmem:[#allocation115_spill] sm:$0xff]  ;;  %v13421_v12 = vld [vmem:[#allocation125_spill] sm:$0xff] }
 0x331   :  { %13401 = vst [vmem:[#allocation130_spill] sm:$0xff] %v9891_v22  ;;  %6499 = vset.pattern.permute.xlu0 %v13402_v40  ;;  %3267 = vrot.lane.b32.xlu1 %v3250_v42, %s7025_s16  ;;  %v13407_v42 = vld [vmem:[#allocation100_spill] sm:$0xff]  ;;  %v3875_v10 = vmul.f32 %v13438_v62, %v13419_v39 }
 0x332   :  { %381 = vperm.xlu0 %6499, %v6981_v14   ;;  %v3667_v40 = vsel %vm354_vm2, %v13407_v42, %v13399_v43  ;;  %v3770_v14 = vmul.f32 %v3761_v48, %v13408_v18  ;;  %v6983_v43 = vld [vmem:[%s12338_s2 + $0x10] sm:$0xff]  ;;  %v3661_v54 = vsel %vm354_vm2, %v13413_v16, %v13407_v42  ;;  %v13425_v22 = vld [vmem:[#allocation116_spill] sm:$0xff] }
 0x333   :  { %v3769_v2 = vmul.f32 %v3761_v48, %v13425_v22 }
 0x334   :  { %v9917_v5 = vpop.permute.xlu1 %3684  ;;  %v3778_v26 = vadd.f32 %v3770_v14, %v3754_v49  ;;  %v13420_v49 = vld [vmem:[#allocation165_spill] sm:$0xff] }
 0x335   :  { %13409 = vst [vmem:[#allocation35_spill] sm:$0xff] %v9917_v5  ;;  %3952 = vperm.xlu1 %6498, %v6982_v56   ;;  %v9939_v5 = vsel %vm8335_vm6, %v3667_v40, 0.0  ;;  %v3663_v56 = vsel %vm354_vm2, %v13398_v4, %v13413_v16  ;;  %v3771_v14 = vmul.f32 %v13420_v49, %v13419_v39  ;;  %v9961_v24 = vmul.f32 %v13420_v49, %v13421_v12  ;;  %v6984_v4 = vld [vmem:[%s12338_s2 + $0x20] sm:$0xff] }
 0x336   :  { %1055 = vperm.xlu0 %6499, %v6983_v43   ;;  %13412 = vst [vmem:[#allocation185_spill] sm:$0xff] %v9939_v5  ;;  %v3768_v43 = vmul.f32 %v3761_v48, %v13414_v11  ;;  %v3794_v40 = vmul.f32 %v13410_v23, %v9939_v5  ;;  %v3774_v60 = vmul.f32 %v13420_v49, %v13427_v20 }
 0x337   :  { %v3636_v16 = vsel %vm313_vm1, %v13428_v13, %v13430_v33 }
 0x338   :  { %v3802_v0 = vadd.f32 %v3794_v40, %v3778_v26  ;;  %v3776_v31 = vadd.f32 %v3768_v43, %v3752_v30  ;;  %v13432_v26 = vld [vmem:[#allocation178_spill] sm:$0xff]  ;;  %v3753_v30 = vmul.f32 %v13403_v32, %v9965_v19 }
 0x339   :  { %v9948_v61 = vpop.permute.xlu1 %3696  ;;  %3807 = vrot.lane.b32.xlu1 %v3799_v34, %s7024_s15  ;;  %v13424_v34 = vmov 2   ;;  %v3871_v42 = vmul.f32 %v13432_v26, %v13400_v35  ;;  %v3872_v43 = vmul.f32 %v13432_v26, %v13414_v11  ;;  %v10015_v11 = vsel %vm8410_vm10, %v3661_v54, 0.0  ;;  %v6985_v32 = vld [vmem:[%s12338_s2 + $0x38] sm:$0xff] }
 0x33a   :  { %13416 = vst [vmem:[#allocation62_spill] sm:$0xff] %v9948_v61  ;;  %v9969_v61 = vsel %vm8371_vm8, %v3663_v56, 0.0  ;;  %1711 = vperm.xlu0 %6499, %v6984_v4   ;;  %6500 = vset.pattern.permute.xlu1 %v13424_v34  ;;  %v9982_v56 = vmul.f32 %v13420_v49, %v13426_v6  ;;  %v13429_v4 = vld [vmem:[#allocation186_spill] sm:$0xff]  ;;  %v3873_v49 = vmul.f32 %v13432_v26, %v13425_v22  ;;  %13435 = vst [vmem:[#allocation100_spill] sm:$0xff] %v10015_v11 }
 0x33b   :  { %13423 = vst [vmem:[#allocation156_spill] sm:$0xff] %v9969_v61  ;;  %v3630_v34 = vsel %vm313_vm1, %v13429_v4, %v13428_v13  ;;  %v3792_v40 = vmul.f32 %v13410_v23, %v9969_v61  ;;  %v3874_v13 = vmul.f32 %v13432_v26, %v13408_v18  ;;  %v3777_v22 = vadd.f32 %v3769_v2, %v3753_v30  ;;  %v13441_v30 = vld [vmem:[#allocation160_spill] sm:$0xff] }
 0x33c   :  { %v10026_v26 = vsel %vm8309_vm5, %v3630_v34, 0.0  ;;  %v10032_v54 = vmul.f32 %v13438_v62, %v13421_v12  ;;  %v3793_v34 = vmul.f32 %v13410_v23, %v10015_v11  ;;  %v13444_v23 = vld [vmem:[#allocation22_spill] sm:$0xff]  ;;  %vm4222_vm5 = vcmask 785408  }
 0x33d   :  { %v9994_v48 = vpop.permute.xlu1 %1947  ;;  %3819 = vrot.lane.b32.xlu1 %v3802_v0, %s7024_s15  ;;  %v10022_v0 = vsel %vm8273_vm3, %v3636_v16, 0.0  ;;  %13437 = vst [vmem:[#allocation69_spill] sm:$0xff] %v10026_v26  ;;  %v3800_v18 = vadd.f32 %v3792_v40, %v3776_v31  ;;  %v3855_v16 = vmul.f32 %v13439_v47, %v9880_v52  ;;  %v3856_v31 = vmul.f32 %v13439_v47, %v9935_v53 }
 0x33e   :  { %13431 = vst [vmem:[#allocation189_spill] sm:$0xff] %v9994_v48  ;;  %v13433_v48 = vld [vmem:[#allocation15_spill] sm:$0xff]  ;;  %2372 = vperm.xlu0 %6499, %v6985_v32   ;;  %13436 = vst [vmem:[#allocation56_spill] sm:$0xff] %v10022_v0  ;;  %v10036_v32 = vmul.f32 %v13438_v62, %v13426_v6  ;;  %v3755_v40 = vmul.f32 %v13441_v30, %v10022_v0  ;;  %v3758_v52 = vmul.f32 %v13441_v30, %v10026_v26 }
 0x33f   :  { %v3666_v35 = vsel %vm354_vm2, %v13434_v1, %v13433_v48  ;;  %v3859_v53 = vmul.f32 %v13444_v23, %v10022_v0  ;;  %v3801_v39 = vadd.f32 %v3793_v34, %v3777_v22  ;;  %v3879_v51 = vadd.f32 %v3871_v42, %v3855_v16 }
 0x340   :  { %v10048_v2 = vsel %vm8295_vm4, %v3666_v35, 0.0  ;;  %v3668_v35 = vsel %vm354_vm2, %v13443_v28, %v13434_v1  ;;  %v3878_v1 = vmul.f32 %v13438_v62, %v13427_v20  ;;  %v10085_v25 = vadd.f32 %v3874_v13, %v3858_v29  ;;  %v13449_v13 = vld [vmem:[#allocation191_spill] sm:$0xff] }
 0x341   :  { %v10040_v8 = vpop.permute.xlu1 %1949  ;;  %3811 = vrot.lane.b32.xlu1 %v3800_v18, %s7024_s15  ;;  %v6986_v18 = vld [vmem:[%s12338_s2 + $0x40] sm:$0xff]  ;;  %v10093_v62 = vsel %vm8335_vm6, %v3668_v35, 0.0  ;;  %v3862_v42 = vmul.f32 %v13444_v23, %v10026_v26  ;;  %v3664_v36 = vsel %vm354_vm2, %v13433_v48, %v13449_v13  ;;  %v3881_v16 = vadd.f32 %v3873_v49, %v3857_v7  ;;  %v13454_v49 = vld [vmem:[#allocation193_spill] sm:$0xff]  ;;  %v13456_v35 = vld [vmem:[#allocation26_spill] sm:$0xff] }
 0x342   :  { %13440 = vst [vmem:[#allocation138_spill] sm:$0xff] %v10040_v8  ;;  %v13442_v8 = vld [vmem:[#allocation85_spill] sm:$0xff]  ;;  %3023 = vperm.xlu0 %6499, %v6986_v18   ;;  %v13446_v18 = vld [vmem:[#allocation146_spill] sm:$0xff]  ;;  %v10130_v7 = vsel %vm8371_vm8, %v3664_v36, 0.0  ;;  %v3662_v38 = vsel %vm354_vm2, %v13449_v13, %v13443_v28  ;;  %v13458_v36 = vld [vmem:[#allocation143_spill] sm:$0xff]  ;;  %vm7027_vm2 = vmmov 0  }
 0x343   :  { %v3634_v41 = vsel %vm313_vm1, %v13430_v33, %v13442_v8  ;;  %v3632_v6 = vsel %vm313_vm1, %v13442_v8, %v13429_v4  ;;  %v13445_v33 = vld [vmem:[#allocation12_spill] sm:$0xff]  ;;  %v3795_v44 = vmul.f32 %v13446_v18, %v10048_v2  ;;  %v3880_v8 = vadd.f32 %v3872_v43, %v3856_v31 }
 0x344   :  { %v3896_v12 = vmul.f32 %v13445_v33, %v9969_v61  ;;  %v10089_v22 = vsel %vm8347_vm7, %v3634_v41, 0.0  ;;  %v3779_v4 = vadd.f32 %v3771_v14, %v3755_v40  ;;  %v10100_v47 = vsel %vm8381_vm9, %v3632_v6, 0.0 }
 0x345   :  { %v10083_v0 = vpop.permute.xlu1 %1953  ;;  %13447 = vst [vmem:[#allocation134_spill] sm:$0xff] %v10089_v22  ;;  %3815 = vrot.lane.b32.xlu1 %v3801_v39, %s7024_s15  ;;  %13448 = vst [vmem:[#allocation131_spill] sm:$0xff] %v10100_v47  ;;  %v3782_v41 = vadd.f32 %v3774_v60, %v3758_v52  ;;  %v3883_v39 = vadd.f32 %v3875_v10, %v3859_v53  ;;  %v3897_v14 = vmul.f32 %v13445_v33, %v10015_v11  ;;  %vm4374_vm6 = vcmask 64512  }
 0x346   :  { %3679 = vperm.xlu0 %6499, %v6987_v50   ;;  %v13450_v43 = vand.u32 255, %v8246_v3  ;;  %v3904_v6 = vadd.f32 %v3896_v12, %v3880_v8  ;;  %v3756_v48 = vmul.f32 %v13441_v30, %v10089_v22  ;;  %v3798_v29 = vmul.f32 %v13446_v18, %v10093_v62  ;;  %v13453_v12 = vld [vmem:[#allocation135_spill] sm:$0xff]  ;;  %v13457_v8 = vld [vmem:[#allocation192_spill] sm:$0xff] }
 0x347   :  { %v3803_v60 = vadd.f32 %v3795_v44, %v3779_v4  ;;  %v3757_v52 = vmul.f32 %v13441_v30, %v10100_v47  ;;  %v3860_v53 = vmul.f32 %v13444_v23, %v10089_v22  ;;  %v393_v31 = vmul.f32 %v13454_v49, %v13453_v12  ;;  %v13455_v30 = vld [vmem:[#allocation183_spill] sm:$0xff] }
 0x348   :  { %vm10113_vm12 = vcmp.ge.s32.totalorder %v13450_v43, 16  ;;  %v3861_v34 = vmul.f32 %v13444_v23, %v10100_v47  ;;  %v3895_v44 = vmul.f32 %v13445_v33, %v9906_v9  ;;  %v3899_v40 = vmul.f32 %v13455_v30, %v10048_v2  ;;  %v13459_v23 = vld [vmem:[#allocation139_spill] sm:$0xff] }
 0x349   :  { %v10122_v10 = vpop.permute.xlu1 %1945  ;;  %3915 = vrot.lane.b32.xlu1 %v3904_v6, %s7025_s16  ;;  %v409_v4 = vmul.f32 %v13457_v8, %v13456_v35  ;;  %v394_v50 = vmul.f32 %v13454_v49, %v13458_v36  ;;  %v13460_v43 = vld [vmem:[#allocation19_spill] sm:$0xff]  ;;  %v13461_v12 = vand.u32 255, %v13417_v63  ;;  %v3905_v11 = vadd.f32 %v3897_v14, %v3881_v16  ;;  %v13467_v14 = vld [vmem:[#allocation34_spill] sm:$0xff]  ;;  %v13468_v16 = vld [vmem:[#allocation145_spill] sm:$0xff] }
 0x34a   :  { %3809 = vrot.lane.b32.xlu0 %v3803_v60, %s7024_s15  ;;  %v433_v6 = vmul.f32 %v13460_v43, %v13459_v23  ;;  %v3898_v28 = vmul.f32 %v13445_v33, %v9939_v5  ;;  %v3902_v13 = vmul.f32 %v13455_v30, %v10093_v62  ;;  %v3796_v60 = vmul.f32 %v13446_v18, %v10130_v7  ;;  %v13627_v22 = vld [vmem:[#allocation107_spill] sm:$0xff] }
 0x34b   :  { %vm10154_vm14 = vcmp.lt.s32.totalorder %v13461_v12, 240  ;;  %v13464_v35 = vand.u32 255, %v13415_v27  ;;  %v3806_v63 = vadd.f32 %v3798_v29, %v3782_v41  ;;  %v10172_v23 = vsel %vm8410_vm10, %v3662_v38, 0.0  ;;  %v13470_v38 = vld [vmem:[#allocation197_spill] sm:$0xff] }
 0x34c   :  { %v410_v33 = vmul.f32 %v13457_v8, %v13467_v14  ;;  %v434_v12 = vmul.f32 %v13460_v43, %v13468_v16  ;;  %v417_v5 = vadd.f32 %v409_v4, %v393_v31  ;;  %v3886_v61 = vadd.f32 %v3878_v1, %v3862_v42  ;;  %v10189_v4 = vpop.permute.xlu0 %1328 }
 0x34d   :  { %vm10166_vm15 = vcmp.ge.s32.totalorder %v13464_v35, 16  ;;  %3919 = vrot.lane.b32.xlu1 %v3905_v11, %s7025_s16  ;;  %v3780_v27 = vadd.f32 %v9961_v24, %v3756_v48  ;;  %v3781_v35 = vadd.f32 %v9982_v56, %v3757_v52  ;;  %v3884_v41 = vadd.f32 %v10032_v54, %v3860_v53  ;;  %v10182_v29 = vpop.permute.xlu1 %1957  ;;  %13471 = vst [vmem:[#allocation165_spill] sm:$0xff] %v10189_v4  ;;  %v13475_v53 = vld [vmem:[#allocation228_spill] sm:$0xff] }
 0x34e   :  { %3821 = vrot.lane.b32.xlu0 %v3806_v63, %s7024_s15  ;;  %v533_v14 = vsel %vm525_vm11, %v13470_v38, %v13469_v15  ;;  %v418_v16 = vadd.f32 %v410_v33, %v394_v50  ;;  %v441_v31 = vadd.f32 %v433_v6, %v417_v5  ;;  %v3903_v11 = vadd.f32 %v3895_v44, %v3879_v51  ;;  %v13476_v5 = vld [vmem:[#allocation226_spill] sm:$0xff]  ;;  %v13478_v44 = vld [vmem:[#allocation20_spill] sm:$0xff]  ;;  %v13482_v33 = vld [vmem:[#allocation149_spill] sm:$0xff] }
 0x34f   :  { %v3885_v24 = vadd.f32 %v10036_v32, %v3861_v34  ;;  %v3797_v56 = vmul.f32 %v13446_v18, %v10172_v23  ;;  %v3804_v54 = vadd.f32 %v3796_v60, %v3780_v27  ;;  %v10194_v1 = vadd.f32 %v3899_v40, %v3883_v39  ;;  %v13477_v39 = vld [vmem:[#allocation147_spill] sm:$0xff]  ;;  %v13479_v50 = vld [vmem:[#allocation230_spill] sm:$0xff] }
 0x350   :  { %v442_v42 = vadd.f32 %v434_v12, %v418_v16  ;;  %v13472_v48 = vand.u32 255, %v13418_v21  ;;  %v642_v51 = vsel %vm638_vm13, %v13476_v5, %v13475_v53  ;;  %v3906_v32 = vadd.f32 %v3898_v28, %v10085_v25  ;;  %v13483_v27 = vld [vmem:[#allocation198_spill] sm:$0xff] }
 0x351   :  { %3911 = vrot.lane.b32.xlu1 %v3903_v11, %s7025_s16  ;;  %v10208_v18 = vadd.f32 %v3902_v13, %v3886_v61  ;;  %v395_v34 = vmul.f32 %v13454_v49, %v13477_v39  ;;  %v546_v21 = vsel %vm10113_vm12, %v533_v14, 0.0  ;;  %v531_v40 = vsel %vm525_vm11, %v13469_v15, %v13478_v44  ;;  %v13480_v61 = vld [vmem:[#allocation27_spill] sm:$0xff]  ;;  %v10237_v16 = vpop.permute.xlu1 %2644 }
 0x352   :  { %vm10198_vm1 = vcmp.lt.s32.totalorder %v13472_v48, 240  ;;  %v644_v6 = vsel %vm638_vm13, %v13479_v50, %v13476_v5  ;;  %3813 = vrot.lane.b32.xlu0 %v3804_v54, %s7024_s15  ;;  %v3900_v25 = vmul.f32 %v13455_v30, %v10130_v7  ;;  %v411_v28 = vmul.f32 %v13457_v8, %v13480_v61  ;;  %v13481_v13 = vld [vmem:[#allocation7_spill] sm:$0xff]  ;;  %13484 = vst [vmem:[#allocation122_spill] sm:$0xff] %v10237_v16  ;;  %v13485_v54 = vld [vmem:[#allocation33_spill] sm:$0xff] }
 0x353   :  { %v396_v60 = vmul.f32 %v13454_v49, %v13481_v13  ;;  %v554_v63 = vadd.f32 %v546_v21, %v441_v31  ;;  %v435_v12 = vmul.f32 %v13460_v43, %v13482_v33  ;;  %v529_v15 = vsel %vm525_vm11, %v13478_v44, %v13483_v27  ;;  %v13486_v49 = vld [vmem:[#allocation8_spill] sm:$0xff]  ;;  %v10243_v21 = vpop.permute.xlu0 %1984  ;;  %v13488_v61 = vld [vmem:[#allocation39_spill] sm:$0xff] }
 0x354   :  { %v660_v14 = vsel %vm10154_vm14, %v642_v51, 0.0  ;;  %v3805_v11 = vadd.f32 %v3797_v56, %v3781_v35  ;;  %v412_v48 = vmul.f32 %v13457_v8, %v13485_v54  ;;  %v555_v5 = vadd.f32 %v531_v40, %v442_v42  ;;  %13487 = vst [vmem:[#allocation188_spill] sm:$0xff] %v10243_v21  ;;  %v13489_v51 = vld [vmem:[#allocation194_spill] sm:$0xff]  ;;  %v13490_v33 = vld [vmem:[#allocation48_spill] sm:$0xff] }
 0x355   :  { %v436_v31 = vmul.f32 %v13460_v43, %v13486_v49  ;;  %v667_v39 = vadd.f32 %v644_v6, %v554_v63  ;;  %3923 = vrot.lane.b32.xlu1 %v3906_v32, %s7025_s16  ;;  %v3901_v44 = vmul.f32 %v13455_v30, %v10172_v23  ;;  %v1083_v13 = vmul.f32 %v13489_v51, %v13488_v61  ;;  %v13491_v40 = vld [vmem:[#allocation232_spill] sm:$0xff]  ;;  %v13492_v30 = vld [vmem:[#allocation41_spill] sm:$0xff] }
 0x356   :  { %v1084_v35 = vmul.f32 %v13489_v51, %v13490_v33  ;;  %v419_v56 = vadd.f32 %v411_v28, %v395_v34  ;;  %3817 = vrot.lane.b32.xlu0 %v3805_v11, %s7024_s15  ;;  %v420_v8 = vadd.f32 %v412_v48, %v396_v60  ;;  %v548_v43 = vsel %vm10166_vm15, %v529_v15, 0.0  ;;  %v13493_v60 = vld [vmem:[#allocation46_spill] sm:$0xff]  ;;  %v13495_v48 = vld [vmem:[#allocation53_spill] sm:$0xff] }
 0x357   :  { %v668_v42 = vadd.f32 %v660_v14, %v555_v5  ;;  %v646_v32 = vsel %vm638_vm13, %v13491_v40, %v13479_v50  ;;  %v1085_v6 = vmul.f32 %v13489_v51, %v13492_v30  ;;  %v527_v34 = vsel %vm525_vm11, %v13483_v27, %v13470_v38  ;;  %v13494_v14 = vld [vmem:[#allocation208_spill] sm:$0xff]  ;;  %v10280_v38 = vpop.permute.xlu1 %3720  ;;  %v10294_v33 = vpop.permute.xlu0 %2640 }
 0x358   :  { %v443_v63 = vadd.f32 %v435_v12, %v419_v56  ;;  %v3908_v28 = vadd.f32 %v3900_v25, %v3884_v41  ;;  %v1086_v11 = vmul.f32 %v13489_v51, %v13493_v60  ;;  %v444_v15 = vadd.f32 %v436_v31, %v420_v8  ;;  %v13496_v12 = vld [vmem:[#allocation195_spill] sm:$0xff]  ;;  %13497 = vst [vmem:[#allocation186_spill] sm:$0xff] %v10280_v38  ;;  %v13498_v27 = vld [vmem:[#allocation64_spill] sm:$0xff]  ;;  %v13501_v56 = vld [vmem:[#allocation61_spill] sm:$0xff] }
 0x359   :  { %v10268_v54 = vadd.f32 %v13494_v14, %v667_v39  ;;  %v640_v50 = vsel %vm638_vm13, %v13475_v53, %v13491_v40  ;;  %v10276_v5 = vmul.f32 %v13496_v12, %v13495_v48  ;;  %v662_v41 = vsel %vm10198_vm1, %v646_v32, 0.0  ;;  %v13499_v39 = vld [vmem:[#allocation54_spill] sm:$0xff]  ;;  %13500 = vst [vmem:[#allocation184_spill] sm:$0xff] %v10294_v33  ;;  %v13504_v40 = vld [vmem:[#allocation140_spill] sm:$0xff]  ;;  %v13507_v48 = vld [vmem:[#allocation23_spill] sm:$0xff] }
 0x35a   :  { %v556_v49 = vadd.f32 %v548_v43, %v443_v63  ;;  %3917 = vrot.lane.b32.xlu0 %v3908_v28, %s7025_s16  ;;  %v3909_v25 = vadd.f32 %v3901_v44, %v3885_v24  ;;  %v10285_v31 = vmul.f32 %v13496_v12, %v13498_v27  ;;  %v10289_v53 = vmul.f32 %v13496_v12, %v13499_v39  ;;  %v13502_v43 = vld [vmem:[#allocation14_spill] sm:$0xff]  ;;  %v13503_v24 = vld [vmem:[#allocation103_spill] sm:$0xff]  ;;  %v13505_v63 = vld [vmem:[#allocation92_spill] sm:$0xff] }
 0x35b   :  { %v557_v61 = vadd.f32 %v527_v34, %v444_v15  ;;  %v10292_v51 = vadd.f32 %v13494_v14, %v668_v42  ;;  %v10298_v8 = vmul.f32 %v13496_v12, %v13501_v56  ;;  %v1067_v44 = vmul.f32 %v13503_v24, %v13502_v43  ;;  %v13506_v34 = vld [vmem:[#allocation86_spill] sm:$0xff]  ;;  %v13508_v27 = vld [vmem:[#allocation196_spill] sm:$0xff]  ;;  %v13512_v43 = vld [vmem:[#allocation25_spill] sm:$0xff] }
 0x35c   :  { %v1068_v32 = vmul.f32 %v13503_v24, %v13504_v40  ;;  %v669_v30 = vadd.f32 %v640_v50, %v556_v49  ;;  %v1069_v28 = vmul.f32 %v13503_v24, %v13505_v63  ;;  %v1070_v42 = vmul.f32 %v13503_v24, %v13506_v34  ;;  %v13510_v39 = vld [vmem:[#allocation32_spill] sm:$0xff]  ;;  %v13514_v49 = vld [vmem:[#allocation30_spill] sm:$0xff] }
 0x35d   :  { %v5992_v60 = vmul.f32 -1.442695, %v10268_v54  ;;  %v670_v15 = vadd.f32 %v662_v41, %v557_v61  ;;  %v10311_v12 = vmul.f32 %v13508_v27, %v13507_v48  ;;  %v10315_v56 = vmul.f32 %v13508_v27, %v13510_v39  ;;  %v13516_v41 = vld [vmem:[#allocation158_spill] sm:$0xff]  ;;  %v13519_v34 = vld [vmem:[#allocation152_spill] sm:$0xff]  ;;  %v13521_v39 = vld [vmem:[#allocation155_spill] sm:$0xff] }
 0x35e   :  { %v10319_v50 = vmul.f32 %v13508_v27, %v13512_v43  ;;  %v10323_v40 = vmul.f32 %v13508_v27, %v13514_v49  ;;  %3921 = vrot.lane.b32.xlu0 %v3909_v25, %s7025_s16  ;;  %v13517_v61 = vld [vmem:[#allocation18_spill] sm:$0xff]  ;;  %v5993_v16 = vmul.f32 -1.442695, %v10292_v51  ;;  %v13523_v49 = vld [vmem:[#allocation161_spill] sm:$0xff]  ;;  %v10348_v21 = vadd.f32 %v13494_v14, %v669_v30 }
 0x35f   :  { %13509 = vst [vmem:[#allocation178_spill] sm:$0xff] %v10311_v12  ;;  %13511 = vst [vmem:[#allocation15_spill] sm:$0xff] %v10315_v56  ;;  %v10326_v24 = vpop.permute.xlu1 %2495  ;;  %v10330_v63 = vmul.f32 %v13517_v61, %v13516_v41  ;;  %v10334_v48 = vmul.f32 %v13517_v61, %v13519_v34  ;;  %v10338_v43 = vmul.f32 %v13517_v61, %v13521_v39  ;;  %v10341_v27 = vpop.permute.xlu0 %2507  ;;  %6713 = vpow2.f32 %v5992_v60  ;;  %v13541_v60 = vld [vmem:[#allocation99_spill] sm:$0xff]  ;;  %v13553_v12 = vld [vmem:[#allocation204_spill] sm:$0xff] }
 0x360   :  { %13513 = vst [vmem:[#allocation89_spill] sm:$0xff] %v10319_v50  ;;  %13515 = vst [vmem:[#allocation31_spill] sm:$0xff] %v10323_v40  ;;  %v10345_v25 = vmul.f32 %v13517_v61, %v13523_v49  ;;  %v1091_v41 = vadd.f32 %v1083_v13, %v1067_v44  ;;  %v1092_v4 = vadd.f32 %v1084_v35, %v1068_v32  ;;  %v13528_v50 = vld [vmem:[#allocation45_spill] sm:$0xff]  ;;  %v13530_v61 = vld [vmem:[#allocation38_spill] sm:$0xff]  ;;  %6715 = vpow2.f32 %v5993_v16 }
 0x361   :  { %13518 = vst [vmem:[#allocation9_spill] sm:$0xff] %v10330_v63  ;;  %13520 = vst [vmem:[#allocation160_spill] sm:$0xff] %v10334_v48  ;;  %v10351_v34 = vadd.f32 %v13494_v14, %v670_v15  ;;  %v1093_v48 = vadd.f32 %v1085_v6, %v1069_v28  ;;  %v1094_v39 = vadd.f32 %v1086_v11, %v1070_v42  ;;  %v13526_v63 = vld [vmem:[#allocation199_spill] sm:$0xff]  ;;  %v13535_v11 = vld [vmem:[#allocation21_spill] sm:$0xff]  ;;  %vm4130_vm3 = vcmp.eq.s32.totalorder %v8246_v3, 0 }
 0x362   :  { %13522 = vst [vmem:[#allocation85_spill] sm:$0xff] %v10338_v43  ;;  %13524 = vst [vmem:[#allocation98_spill] sm:$0xff] %v10345_v25  ;;  %v13525_v43 = vld [vmem:[#allocation37_spill] sm:$0xff]  ;;  %v10359_v56 = vmul.f32 %v13526_v63, %v13528_v50  ;;  %v10363_v30 = vmul.f32 %v13526_v63, %v13530_v61  ;;  %v13532_v13 = vld [vmem:[#allocation43_spill] sm:$0xff]  ;;  %3913 = vrot.lane.b32.xlu0 %v10194_v1, %s7025_s16  ;;  %v5994_v1 = vmul.f32 -1.442695, %v10348_v21 }
 0x363   :  { %v10355_v40 = vmul.f32 %v13526_v63, %v13525_v43  ;;  %v10367_v35 = vmul.f32 %v13526_v63, %v13532_v13  ;;  %v10371_v6 = vpop.permute.xlu1 %2497  ;;  %v13536_v14 = vld [vmem:[#allocation201_spill] sm:$0xff]  ;;  %v13538_v32 = vld [vmem:[#allocation202_spill] sm:$0xff]  ;;  %v13539_v28 = vld [vmem:[#allocation200_spill] sm:$0xff]  ;;  %v10403_v25 = vpop.permute.xlu0 %2499  ;;  %vm4191_vm4 = vcmp.eq.s32.totalorder %v8246_v3, 1  ;;  %vm4608_vm7 = vcmask 15360  }
 0x364   :  { %13529 = vst [vmem:[#allocation12_spill] sm:$0xff] %v10359_v56  ;;  %13531 = vst [vmem:[#allocation146_spill] sm:$0xff] %v10363_v30  ;;  %v10375_v44 = vmul.f32 %v13536_v14, %v13535_v11  ;;  %v10381_v42 = vsel %vm638_vm13, %v13539_v28, %v13538_v32  ;;  %v13542_v15 = vld [vmem:[#allocation203_spill] sm:$0xff]  ;;  %v13543_v63 = vld [vmem:[#allocation190_spill] sm:$0xff]  ;;  %6717 = vpow2.f32 %v5994_v1 }
 0x365   :  { %13527 = vst [vmem:[#allocation22_spill] sm:$0xff] %v10355_v40  ;;  %13533 = vst [vmem:[#allocation191_spill] sm:$0xff] %v10367_v35  ;;  %v1107_v50 = vmul.f32 %v13542_v15, %v13541_v60  ;;  %v1109_v43 = vmul.f32 %v13542_v15, %v13543_v63  ;;  %v13544_v49 = vld [vmem:[#allocation16_spill] sm:$0xff]  ;;  %v13545_v13 = vld [vmem:[#allocation17_spill] sm:$0xff]  ;;  %v5995_v63 = vmul.f32 -1.442695, %v10351_v34 }
 0x366   :  { %13534 = vst [vmem:[#allocation135_spill] sm:$0xff] %v10371_v6  ;;  %13537 = vst [vmem:[#allocation193_spill] sm:$0xff] %v10375_v44  ;;  %v1108_v61 = vmul.f32 %v13542_v15, %v13544_v49  ;;  %v1110_v11 = vmul.f32 %v13542_v15, %v13545_v13  ;;  %v13546_v44 = vld [vmem:[#allocation168_spill] sm:$0xff]  ;;  %v13550_v16 = vld [vmem:[#allocation111_spill] sm:$0xff]  ;;  %3925 = vrot.lane.b32.xlu0 %v10208_v18, %s7025_s16 }
 0x367   :  { %13540 = vst [vmem:[#allocation183_spill] sm:$0xff] %v10381_v42  ;;  %v10394_v35 = vmul.f32 %v13536_v14, %v13546_v44  ;;  %v13548_v30 = vld [vmem:[#allocation172_spill] sm:$0xff]  ;;  %v13551_v60 = vld [vmem:[#allocation109_spill] sm:$0xff]  ;;  %13552 = vst [vmem:[#allocation143_spill] sm:$0xff] %v10403_v25  ;;  %6719 = vpow2.f32 %v5995_v63 }
 0x368   :  { %v10398_v56 = vmul.f32 %v13536_v14, %v13548_v30  ;;  %v1723_v40 = vmul.f32 %v13551_v60, %v13550_v16  ;;  %v13554_v49 = vld [vmem:[#allocation102_spill] sm:$0xff]  ;;  %v13556_v13 = vld [vmem:[#allocation75_spill] sm:$0xff]  ;;  %v13559_v16 = vld [vmem:[#allocation164_spill] sm:$0xff]  ;;  %v10436_v18 = vadd.f32 %v1108_v61, %v1092_v4 }
 0x369   :  { %13547 = vst [vmem:[#allocation26_spill] sm:$0xff] %v10394_v35  ;;  %v10409_v15 = vsel %vm638_vm13, %v13554_v49, %v13553_v12  ;;  %v1724_v44 = vmul.f32 %v13551_v60, %v13556_v13  ;;  %v13557_v35 = vld [vmem:[#allocation207_spill] sm:$0xff]  ;;  %v10421_v38 = vmul.f32 %v13536_v14, %v13559_v16  ;;  %v10430_v13 = vsel %vm638_vm13, %v13553_v12, %v13539_v28  ;;  %v13564_v28 = vld [vmem:[#allocation205_spill] sm:$0xff]  ;;  %v13565_v4 = vld [vmem:[#allocation28_spill] sm:$0xff] }
 0x36a   :  { %13549 = vst [vmem:[#allocation192_spill] sm:$0xff] %v10398_v56  ;;  %13555 = vst [vmem:[#allocation139_spill] sm:$0xff] %v10409_v15  ;;  %v1725_v30 = vmul.f32 %v13551_v60, %v13557_v35  ;;  %v13558_v56 = vld [vmem:[#allocation24_spill] sm:$0xff]  ;;  %v10432_v35 = vadd.f32 %v1107_v50, %v1091_v41  ;;  %v10440_v14 = vadd.f32 %v1110_v11, %v1094_v39  ;;  %v13567_v1 = vld [vmem:[#allocation50_spill] sm:$0xff] }
 0x36b   :  { %v1726_v6 = vmul.f32 %v13551_v60, %v13558_v56  ;;  %13560 = vst [vmem:[#allocation19_spill] sm:$0xff] %v10421_v38  ;;  %13561 = vst [vmem:[#allocation34_spill] sm:$0xff] %v10430_v13  ;;  %v10434_v56 = vpop.permute.xlu1 %2509  ;;  %v10438_v60 = vadd.f32 %v1109_v43, %v1093_v48  ;;  %v10446_v16 = vsel %vm638_vm13, %v13538_v32, %v13554_v49  ;;  %v6714_v43 = vpop.eup %6713  ;;  %v13568_v61 = vld [vmem:[#allocation112_spill] sm:$0xff]  ;;  %v13573_v49 = vld [vmem:[#allocation211_spill] sm:$0xff] }
 0x36c   :  { %13562 = vst [vmem:[#allocation145_spill] sm:$0xff] %v10434_v56  ;;  %13563 = vst [vmem:[#allocation153_spill] sm:$0xff] %v10446_v16  ;;  %v1747_v41 = vadd.f32 %v10276_v5, %v1723_v40  ;;  %v10456_v48 = vsel %vm525_vm11, %v13565_v4, %v13564_v28  ;;  %v1748_v39 = vadd.f32 %v10285_v31, %v1724_v44  ;;  %v13570_v63 = vld [vmem:[#allocation60_spill] sm:$0xff]  ;;  %v13574_v12 = vld [vmem:[#allocation206_spill] sm:$0xff]  ;;  %v10473_v31 = vpop.permute.xlu0 %2503 }
 0x36d   :  { %13566 = vst [vmem:[#allocation197_spill] sm:$0xff] %v10456_v48  ;;  %v1749_v50 = vadd.f32 %v10289_v53, %v1725_v30  ;;  %v1750_v32 = vadd.f32 %v10298_v8, %v1726_v6  ;;  %v10463_v11 = vmul.f32 %v13568_v61, %v13567_v1  ;;  %v10467_v5 = vmul.f32 %v13568_v61, %v13570_v63  ;;  %v13572_v40 = vld [vmem:[#allocation104_spill] sm:$0xff]  ;;  %v13578_v6 = vld [vmem:[#allocation58_spill] sm:$0xff]  ;;  %v4206_v3 = vld [vmem:[%s12339_s3 + $0x10] sm:$0xff] }
 0x36e   :  { %v1763_v9 = vmul.f32 %v13573_v49, %v13572_v40  ;;  %v1764_v42 = vmul.f32 %v13573_v49, %v13574_v12  ;;  %13575 = vst [vmem:[#allocation147_spill] sm:$0xff] %v10473_v31  ;;  %v13576_v53 = vld [vmem:[#allocation52_spill] sm:$0xff]  ;;  %v10481_v44 = vmul.f32 %v13568_v61, %v13578_v6  ;;  %v13580_v30 = vld [vmem:[#allocation210_spill] sm:$0xff]  ;;  %v6716_v40 = vpop.eup %6715 }
 0x36f   :  { %13569 = vst [vmem:[#allocation228_spill] sm:$0xff] %v10463_v11  ;;  %13571 = vst [vmem:[#allocation226_spill] sm:$0xff] %v10467_v5  ;;  %v10477_v8 = vmul.f32 %v13568_v61, %v13576_v53  ;;  %v1765_v1 = vmul.f32 %v13573_v49, %v13580_v30  ;;  %v13581_v63 = vld [vmem:[#allocation110_spill] sm:$0xff]  ;;  %v13584_v61 = vld [vmem:[#allocation209_spill] sm:$0xff] }
 0x370   :  { %13579 = vst [vmem:[#allocation230_spill] sm:$0xff] %v10481_v44  ;;  %v1766_v15 = vmul.f32 %v13573_v49, %v13581_v63  ;;  %v13582_v13 = vld [vmem:[#allocation106_spill] sm:$0xff]  ;;  %v10498_v6 = vmul.f32 %v13584_v61, %v13344_v37  ;;  %v10502_v30 = vmul.f32 %v13584_v61, %v13360_v17  ;;  %v10504_v49 = vpop.permute.xlu1 %2501  ;;  %v10508_v63 = vmul.f32 %v13584_v61, %v13372_v59  ;;  %v13590_v48 = vld [vmem:[#allocation216_spill] sm:$0xff]  ;;  %v13592_v44 = vld [vmem:[#allocation219_spill] sm:$0xff] }
 0x371   :  { %13577 = vst [vmem:[#allocation20_spill] sm:$0xff] %v10477_v8  ;;  %v10491_v12 = vsel %vm525_vm11, %v13564_v28, %v13582_v13  ;;  %13585 = vst [vmem:[#allocation7_spill] sm:$0xff] %v10504_v49  ;;  %v13586_v28 = vld [vmem:[#allocation213_spill] sm:$0xff]  ;;  %v13589_v53 = vld [vmem:[#allocation214_spill] sm:$0xff]  ;;  %v715_v17 = vadd.f32 1.0, %v6714_v43  ;;  %v10524_v38 = vmul.f32 %v13584_v61, %v13351_v57  ;;  %v10532_v5 = vadd.f32 %v1763_v9, %v1747_v41 }
 0x372   :  { %13583 = vst [vmem:[#allocation27_spill] sm:$0xff] %v10491_v12  ;;  %v13587_v12 = vld [vmem:[#allocation215_spill] sm:$0xff]  ;;  %v10520_v37 = vsel %vm638_vm13, %v13590_v48, %v13589_v53  ;;  %v13593_v59 = vld [vmem:[#allocation218_spill] sm:$0xff]  ;;  %v10534_v11 = vadd.f32 %v1764_v42, %v1748_v39  ;;  %v13595_v49 = vld [vmem:[#allocation40_spill] sm:$0xff]  ;;  %v716_v43 = vadd.f32 1.0, %v6716_v40  ;;  %v10542_v47 = vadd.f32 %v1765_v1, %v1749_v50  ;;  %v10564_v39 = vpop.permute.xlu0 %2603  ;;  %v6718_v50 = vpop.eup %6717 }
 0x373   :  { %v10514_v16 = vsel %vm525_vm11, %v13587_v12, %v13586_v28  ;;  %13591 = vst [vmem:[#allocation198_spill] sm:$0xff] %v10520_v37  ;;  %v10530_v8 = vsel %vm525_vm11, %v13593_v59, %v13592_v44  ;;  %v13596_v56 = vld [vmem:[#allocation36_spill] sm:$0xff]  ;;  %v10544_v57 = vadd.f32 %v1766_v15, %v1750_v32  ;;  %v10562_v15 = vsel %vm525_vm11, %v13586_v28, %v13593_v59  ;;  %v13602_v1 = vld [vmem:[#allocation217_spill] sm:$0xff]  ;;  %v6720_v28 = vpop.eup %6719  ;;  %v13672_v25 = vld [vmem:[#allocation234_spill] sm:$0xff] }
 0x374   :  { %13588 = vst [vmem:[#allocation149_spill] sm:$0xff] %v10514_v16  ;;  %13594 = vst [vmem:[#allocation33_spill] sm:$0xff] %v10530_v8  ;;  %v10540_v26 = vsel %vm525_vm11, %v13596_v56, %v13595_v49  ;;  %v13598_v9 = vld [vmem:[#allocation212_spill] sm:$0xff]  ;;  %v10570_v32 = vsel %vm525_vm11, %v13592_v44, %v13587_v12  ;;  %v10579_v40 = vsel %vm525_vm11, %v13595_v49, %v13602_v1  ;;  %6721 = vrcp.f32 %v715_v17  ;;  %v13605_v12 = vld [vmem:[#allocation222_spill] sm:$0xff]  ;;  %v10590_v37 = vpop.permute.xlu1 %2505 }
 0x375   :  { %13597 = vst [vmem:[#allocation8_spill] sm:$0xff] %v10540_v26  ;;  %v10553_v42 = vsel %vm638_vm13, %v13598_v9, %v13590_v48  ;;  %13600 = vst [vmem:[#allocation194_spill] sm:$0xff] %v10562_v15  ;;  %v13604_v41 = vld [vmem:[#allocation220_spill] sm:$0xff]  ;;  %v2391_v61 = vmul.f32 %v13605_v12, %v13301_v55  ;;  %v2392_v48 = vmul.f32 %v13605_v12, %v13306_v46  ;;  %v13608_v17 = vld [vmem:[#allocation70_spill] sm:$0xff]  ;;  %6723 = vrcp.f32 %v716_v43 }
 0x376   :  { %13599 = vst [vmem:[#allocation39_spill] sm:$0xff] %v10553_v42  ;;  %13601 = vst [vmem:[#allocation48_spill] sm:$0xff] %v10570_v32  ;;  %v2375_v44 = vmul.f32 %v13604_v41, %v9360_v45  ;;  %v13607_v42 = vld [vmem:[#allocation128_spill] sm:$0xff]  ;;  %v13609_v32 = vld [vmem:[#allocation73_spill] sm:$0xff]  ;;  %v718_v43 = vadd.f32 1.0, %v6720_v28 }
 0x377   :  { %13603 = vst [vmem:[#allocation232_spill] sm:$0xff] %v10579_v40  ;;  %13606 = vst [vmem:[#allocation41_spill] sm:$0xff] %v10590_v37  ;;  %v2376_v49 = vmul.f32 %v13604_v41, %v13607_v42  ;;  %v2393_v40 = vmul.f32 %v13605_v12, %v13608_v17  ;;  %v2394_v59 = vmul.f32 %v13605_v12, %v13609_v32  ;;  %v13610_v26 = vld [vmem:[#allocation114_spill] sm:$0xff]  ;;  %v13612_v15 = vld [vmem:[#allocation115_spill] sm:$0xff]  ;;  %v717_v37 = vadd.f32 1.0, %v6718_v50 }
 0x378   :  { %v2377_v45 = vmul.f32 %v13604_v41, %v13610_v26  ;;  %v13611_v8 = vld [vmem:[#allocation126_spill] sm:$0xff]  ;;  %v13613_v46 = vld [vmem:[#allocation221_spill] sm:$0xff]  ;;  %v13617_v17 = vld [vmem:[#allocation119_spill] sm:$0xff] }
 0x379   :  { %v2378_v55 = vmul.f32 %v13604_v41, %v13611_v8  ;;  %v10604_v16 = vmul.f32 %v13613_v46, %v13612_v15  ;;  %v13615_v1 = vld [vmem:[#allocation125_spill] sm:$0xff]  ;;  %v10612_v56 = vmul.f32 %v13613_v46, %v13617_v17  ;;  %v13619_v32 = vld [vmem:[#allocation87_spill] sm:$0xff]  ;;  %v10620_v8 = vmul.f32 %v13613_v46, %v13427_v20  ;;  %v13622_v41 = vld [vmem:[#allocation142_spill] sm:$0xff]  ;;  %v10628_v17 = vpop.permute.xlu0 %2607 }
 0x37a   :  { %v10608_v42 = vmul.f32 %v13613_v46, %v13615_v1  ;;  %v13620_v12 = vld [vmem:[#allocation167_spill] sm:$0xff]  ;;  %v13623_v15 = vld [vmem:[#allocation124_spill] sm:$0xff]  ;;  %v2399_v1 = vadd.f32 %v2391_v61, %v2375_v44  ;;  %v13624_v28 = vld [vmem:[#allocation42_spill] sm:$0xff]  ;;  %v2401_v20 = vadd.f32 %v2393_v40, %v2377_v45  ;;  %6725 = vrcp.f32 %v717_v37 }
 0x37b   :  { %13614 = vst [vmem:[#allocation46_spill] sm:$0xff] %v10604_v16  ;;  %13618 = vst [vmem:[#allocation53_spill] sm:$0xff] %v10612_v56  ;;  %v1306_v26 = vsel %vm638_vm13, %v13620_v12, %v13619_v32  ;;  %v1204_v50 = vsel %vm525_vm11, %v13623_v15, %v13622_v41  ;;  %v13625_v56 = vld [vmem:[#allocation223_spill] sm:$0xff]  ;;  %v10638_v46 = vadd.f32 %v2394_v59, %v2378_v55  ;;  %v13636_v45 = vld [vmem:[#allocation224_spill] sm:$0xff]  ;;  %6727 = vrcp.f32 %v718_v43 }
 0x37c   :  { %13616 = vst [vmem:[#allocation208_spill] sm:$0xff] %v10608_v42  ;;  %13621 = vst [vmem:[#allocation195_spill] sm:$0xff] %v10620_v8  ;;  %v10626_v42 = vadd.f32 %v2392_v48, %v2376_v49  ;;  %v10632_v16 = vmul.f32 %v13625_v56, %v13624_v28  ;;  %v10636_v33 = vmul.f32 %v13625_v56, %v13627_v22  ;;  %v13629_v8 = vld [vmem:[#allocation179_spill] sm:$0xff]  ;;  %v1316_v44 = vsel %vm10154_vm14, %v1306_v26, 0.0  ;;  %v10650_v49 = vpop.permute.xlu1 %2605  ;;  %v13633_v22 = vld [vmem:[#allocation105_spill] sm:$0xff] }
 0x37d   :  { %v10642_v53 = vmul.f32 %v13625_v56, %v13629_v8  ;;  %v13631_v61 = vld [vmem:[#allocation47_spill] sm:$0xff]  ;;  %13632 = vst [vmem:[#allocation14_spill] sm:$0xff] %v10650_v49  ;;  %v10654_v40 = vmul.f32 %v13625_v56, %v13633_v22  ;;  %v1220_v37 = vadd.f32 %v1204_v50, %v10436_v18  ;;  %v13638_v8 = vld [vmem:[#allocation82_spill] sm:$0xff]  ;;  %v13644_v56 = vld [vmem:[#allocation49_spill] sm:$0xff] }
 0x37e   :  { %13626 = vst [vmem:[#allocation64_spill] sm:$0xff] %v10632_v16  ;;  %13628 = vst [vmem:[#allocation54_spill] sm:$0xff] %v10636_v33  ;;  %v1206_v48 = vsel %vm525_vm11, %v13631_v61, %v13623_v15  ;;  %v13635_v59 = vld [vmem:[#allocation71_spill] sm:$0xff]  ;;  %v10663_v28 = vmul.f32 %v13636_v45, %v13638_v8  ;;  %v13640_v15 = vld [vmem:[#allocation74_spill] sm:$0xff] }
 0x37f   :  { %13630 = vst [vmem:[#allocation61_spill] sm:$0xff] %v10642_v53  ;;  %13634 = vst [vmem:[#allocation103_spill] sm:$0xff] %v10654_v40  ;;  %v10658_v55 = vmul.f32 %v13636_v45, %v13635_v59  ;;  %v10667_v26 = vmul.f32 %v13636_v45, %v13640_v15  ;;  %v13642_v53 = vld [vmem:[#allocation80_spill] sm:$0xff]  ;;  %v13645_v22 = vld [vmem:[#allocation225_spill] sm:$0xff]  ;;  %v6722_v59 = vpop.eup %6721  ;;  %v1211_v15 = vsel %vm10113_vm12, %v1206_v48, 0.0 }
 0x380   :  { %13639 = vst [vmem:[#allocation92_spill] sm:$0xff] %v10663_v28  ;;  %v10671_v33 = vmul.f32 %v13636_v45, %v13642_v53  ;;  %v10675_v40 = vmul.f32 %v13645_v22, %v13644_v56  ;;  %v13647_v43 = vld [vmem:[#allocation151_spill] sm:$0xff]  ;;  %v13651_v28 = vld [vmem:[#allocation118_spill] sm:$0xff]  ;;  %v13654_v56 = vld [vmem:[#allocation233_spill] sm:$0xff]  ;;  %v1219_v31 = vadd.f32 %v1211_v15, %v10432_v35 }
 0x381   :  { %13637 = vst [vmem:[#allocation140_spill] sm:$0xff] %v10658_v55  ;;  %13641 = vst [vmem:[#allocation86_spill] sm:$0xff] %v10667_v26  ;;  %v10679_v18 = vmul.f32 %v13645_v22, %v13647_v43  ;;  %v13649_v50 = vld [vmem:[#allocation51_spill] sm:$0xff]  ;;  %v1324_v26 = vadd.f32 %v1316_v44, %v1220_v37  ;;  %v10689_v53 = vmul.f32 %v13645_v22, %v13651_v28  ;;  %v10697_v43 = vpop.permute.xlu0 %2599  ;;  %v6724_v44 = vpop.eup %6723  ;;  %v13662_v55 = vld [vmem:[#allocation93_spill] sm:$0xff] }
 0x382   :  { %13643 = vst [vmem:[#allocation23_spill] sm:$0xff] %v10671_v33  ;;  %13646 = vst [vmem:[#allocation196_spill] sm:$0xff] %v10675_v40  ;;  %v10683_v8 = vmul.f32 %v13645_v22, %v13649_v50  ;;  %v13653_v45 = vld [vmem:[#allocation231_spill] sm:$0xff]  ;;  %v13661_v22 = vld [vmem:[#allocation81_spill] sm:$0xff] }
 0x383   :  { %13648 = vst [vmem:[#allocation32_spill] sm:$0xff] %v10679_v18  ;;  %13652 = vst [vmem:[#allocation30_spill] sm:$0xff] %v10689_v53  ;;  %v10695_v40 = vsel %vm638_vm13, %v13654_v56, %v13653_v45  ;;  %v13657_v18 = vld [vmem:[#allocation57_spill] sm:$0xff]  ;;  %v13658_v33 = vld [vmem:[#allocation227_spill] sm:$0xff]  ;;  %v1308_v53 = vsel %vm638_vm13, %v13661_v22, %v13620_v12  ;;  %v10732_v12 = vpop.permute.xlu1 %2609 }
 0x384   :  { %13650 = vst [vmem:[#allocation25_spill] sm:$0xff] %v10683_v8  ;;  %13655 = vst [vmem:[#allocation158_spill] sm:$0xff] %v10695_v40  ;;  %v10701_v50 = vmul.f32 %v13658_v33, %v13657_v18  ;;  %v13659_v8 = vld [vmem:[#allocation76_spill] sm:$0xff]  ;;  %v13660_v37 = vld [vmem:[#allocation127_spill] sm:$0xff]  ;;  %v10717_v16 = vmul.f32 %v13658_v33, %v13662_v55  ;;  %v10735_v55 = vmul.f32 %v6722_v59, %v10268_v54 }
 0x385   :  { %13656 = vst [vmem:[#allocation18_spill] sm:$0xff] %v10697_v43  ;;  %v10705_v48 = vmul.f32 %v13658_v33, %v13659_v8  ;;  %v1202_v28 = vsel %vm525_vm11, %v13622_v41, %v13660_v37  ;;  %v13663_v18 = vld [vmem:[#allocation174_spill] sm:$0xff]  ;;  %v13665_v8 = vld [vmem:[#allocation229_spill] sm:$0xff]  ;;  %v13667_v41 = vld [vmem:[#allocation144_spill] sm:$0xff]  ;;  %v1323_v15 = vadd.f32 %v1308_v53, %v1219_v31  ;;  %v6726_v53 = vpop.eup %6725 }
 0x386   :  { %v10721_v49 = vmul.f32 %v13658_v33, %v13663_v18  ;;  %v10727_v45 = vsel %vm638_vm13, %v13665_v8, %v13654_v56  ;;  %v13668_v43 = vld [vmem:[#allocation121_spill] sm:$0xff]  ;;  %13669 = vst [vmem:[#allocation161_spill] sm:$0xff] %v10732_v12  ;;  %13670 = vst [vmem:[#allocation37_spill] sm:$0xff] %v10735_v55  ;;  %v10743_v56 = vadd.f32 %v13672_v25, %v1324_v26  ;;  %v1213_v35 = vsel %vm10166_vm15, %v1202_v28, 0.0  ;;  %v13677_v28 = vld [vmem:[#allocation180_spill] sm:$0xff] }
 0x387   :  { %13666 = vst [vmem:[#allocation155_spill] sm:$0xff] %v10727_v45  ;;  %v2415_v9 = vmul.f32 %v13668_v43, %v13667_v41  ;;  %v13671_v18 = vld [vmem:[#allocation77_spill] sm:$0xff]  ;;  %v10754_v12 = vmul.f32 %v6724_v44, %v10292_v51  ;;  %v1304_v51 = vsel %vm638_vm13, %v13619_v32, %v13677_v28  ;;  %v10780_v44 = vpop.permute.xlu0 %2611  ;;  %v1221_v32 = vadd.f32 %v1213_v35, %v10438_v60  ;;  %v10806_v60 = vpop.permute.xlu1 %2601 }
 0x388   :  { %13664 = vst [vmem:[#allocation152_spill] sm:$0xff] %v10721_v49  ;;  %v2417_v49 = vmul.f32 %v13668_v43, %v13671_v18  ;;  %v13673_v45 = vld [vmem:[#allocation117_spill] sm:$0xff] }
 0x389   :  { %v10747_v41 = vmul.f32 %v13673_v45, %v10048_v2  ;;  %v13674_v54 = vld [vmem:[#allocation137_spill] sm:$0xff]  ;;  %13675 = vst [vmem:[#allocation199_spill] sm:$0xff] %v10754_v12  ;;  %v10760_v26 = vmul.f32 %v13673_v45, %v10130_v7  ;;  %v10764_v2 = vmul.f32 %v13673_v45, %v10172_v23  ;;  %v10768_v31 = vmul.f32 %v13673_v45, %v10093_v62  ;;  %v6728_v62 = vpop.eup %6727 }
 0x38a   :  { %v2416_v59 = vmul.f32 %v13668_v43, %v13674_v54  ;;  %v13676_v33 = vld [vmem:[#allocation141_spill] sm:$0xff]  ;;  %v1310_v7 = vsel %vm638_vm13, %v13677_v28, %v13661_v22  ;;  %v4085_v23 = vadd.f32 %v10754_v12, %v10735_v55  ;;  %v1200_v45 = vsel %vm525_vm11, %v13660_v37, %v13631_v61  ;;  %v13679_v54 = vld [vmem:[#allocation78_spill] sm:$0xff]  ;;  %v13681_v37 = vld [vmem:[#allocation72_spill] sm:$0xff] }
 0x38b   :  { %v2418_v18 = vmul.f32 %v13668_v43, %v13676_v33  ;;  %v10778_v43 = vadd.f32 %v2415_v9, %v2399_v1  ;;  %v13678_v33 = vld [vmem:[#allocation55_spill] sm:$0xff]  ;;  %v6019_v22 = vmul.f32 -1.442695, %v10743_v56  ;;  %v13680_v9 = vld [vmem:[#allocation148_spill] sm:$0xff]  ;;  %v10799_v28 = vadd.f32 %v13672_v25, %v1323_v15  ;;  %v13683_v8 = vld [vmem:[#allocation133_spill] sm:$0xff] }
 0x38c   :  { %v3035_v40 = vmul.f32 %v13679_v54, %v13678_v33  ;;  %v10796_v1 = vsel %vm525_vm11, %v13582_v13, %v13680_v9  ;;  %v10802_v55 = vadd.f32 %v2416_v59, %v10626_v42  ;;  %v10804_v61 = vadd.f32 %v2417_v49, %v2401_v20  ;;  %4086 = vadd.xlane.f32.xlu0 %v4085_v23  ;;  %v13682_v13 = vld [vmem:[#allocation11_spill] sm:$0xff]  ;;  %v10819_v49 = vpop.permute.xlu0 %3296 }
 0x38d   :  { %v3036_v35 = vmul.f32 %v13679_v54, %v13681_v37  ;;  %v1318_v33 = vsel %vm10198_vm1, %v1310_v7, 0.0  ;;  %v1325_v12 = vadd.f32 %v1304_v51, %v1221_v32  ;;  %v1862_v15 = vsel %vm525_vm11, %v13683_v8, %v13682_v13  ;;  %v13684_v59 = vld [vmem:[#allocation83_spill] sm:$0xff]  ;;  %13685 = vst [vmem:[#allocation45_spill] sm:$0xff] %v10819_v49  ;;  %v13689_v32 = vld [vmem:[#allocation138_spill] sm:$0xff] }
 0x38e   :  { %v1222_v42 = vadd.f32 %v1200_v45, %v10440_v14  ;;  %v3037_v20 = vmul.f32 %v13679_v54, %v13684_v59  ;;  %v10822_v23 = vmul.f32 %v6726_v53, %v10348_v21  ;;  %v10825_v37 = vmul.f32 %v6728_v62, %v10351_v34  ;;  %v13688_v7 = vld [vmem:[#allocation63_spill] sm:$0xff]  ;;  %v13690_v53 = vld [vmem:[#allocation136_spill] sm:$0xff] }
 0x38f   :  { %v3038_v51 = vmul.f32 %v13679_v54, %v13688_v7  ;;  %6729 = vpow2.f32 %v6019_v22  ;;  %v1962_v14 = vsel %vm638_vm13, %v13689_v32, %v10083_v0  ;;  %v3059_v45 = vadd.f32 %v10498_v6, %v3035_v40  ;;  %v13692_v22 = vld [vmem:[#allocation130_spill] sm:$0xff] }
 0x390   :  { %13686 = vst [vmem:[#allocation38_spill] sm:$0xff] %v10822_v23  ;;  %13687 = vst [vmem:[#allocation43_spill] sm:$0xff] %v10825_v37  ;;  %v6018_v59 = vmul.f32 -1.442695, %v10799_v28  ;;  %v1326_v49 = vadd.f32 %v1318_v33, %v1222_v42  ;;  %v1867_v21 = vsel %vm10113_vm12, %v1862_v15, 0.0  ;;  %v1860_v34 = vsel %vm525_vm11, %v13682_v13, %v13690_v53 }
 0x391   :  { %v10845_v62 = vsel %vm525_vm11, %v13680_v9, %v13565_v4  ;;  %v10848_v54 = vadd.f32 %v13672_v25, %v1325_v12  ;;  %v10851_v6 = vadd.f32 %v2418_v18, %v10638_v46  ;;  %v3060_v40 = vadd.f32 %v10502_v30, %v3036_v35  ;;  %v10864_v12 = vpop.permute.xlu1 %2613  ;;  %v3154_v9 = vpop.permute.xlu0 %3153 }
 0x392   :  { %v1858_v33 = vsel %vm525_vm11, %v13690_v53, %v13692_v22  ;;  %v1972_v13 = vsel %vm10154_vm14, %v1962_v14, 0.0  ;;  %v1964_v4 = vsel %vm638_vm13, %v10122_v10, %v13689_v32  ;;  %v3061_v46 = vadd.f32 %v10508_v63, %v3037_v20  ;;  %v13695_v14 = vld [vmem:[#allocation88_spill] sm:$0xff] }
 0x393   :  { %13691 = vst [vmem:[#allocation21_spill] sm:$0xff] %v10848_v54  ;;  %v1875_v18 = vadd.f32 %v1867_v21, %v10532_v5  ;;  %v1876_v35 = vadd.f32 %v1860_v34, %v10534_v11  ;;  %v10874_v15 = vadd.f32 %v10825_v37, %v10822_v23  ;;  %6731 = vpow2.f32 %v6018_v59  ;;  %v13696_v21 = vld [vmem:[#allocation159_spill] sm:$0xff] }
 0x394   :  { %v10877_v42 = vadd.f32 %v13672_v25, %v1326_v49  ;;  %v10880_v7 = vadd.f32 %v10701_v50, %v3059_v45  ;;  %v3062_v63 = vadd.f32 %v10524_v38, %v3038_v51  ;;  %v6020_v20 = vmul.f32 -1.442695, %v10848_v54  ;;  %v13697_v45 = vld [vmem:[#allocation97_spill] sm:$0xff]  ;;  %v13737_v54 = vld [vmem:[#allocation208_spill] sm:$0xff] }
 0x395   :  { %13693 = vst [vmem:[#allocation201_spill] sm:$0xff] %v10874_v15  ;;  %v1869_v5 = vsel %vm10166_vm15, %v1858_v33, 0.0  ;;  %v1980_v32 = vadd.f32 %v1972_v13, %v1876_v35  ;;  %v1979_v11 = vadd.f32 %v1964_v4, %v1875_v18  ;;  %v10888_v53 = vmul.f32 %v13696_v21, %v13695_v14  ;;  %v3166_v50 = vpop.permute.xlu0 %3165  ;;  %v10894_v49 = vpop.permute.xlu1 %3300  ;;  %v13699_v33 = vld [vmem:[#allocation94_spill] sm:$0xff] }
 0x396   :  { %13694 = vst [vmem:[#allocation202_spill] sm:$0xff] %v10877_v42  ;;  %v1966_v25 = vsel %vm638_vm13, %v10182_v29, %v10122_v10  ;;  %v10897_v38 = vadd.f32 %v10705_v48, %v3060_v40  ;;  %v10900_v51 = vadd.f32 %v10717_v16, %v3061_v46  ;;  %v10904_v59 = vmul.f32 %v13696_v21, %v13697_v45  ;;  %v13698_v16 = vld [vmem:[#allocation91_spill] sm:$0xff]  ;;  %v13701_v46 = vld [vmem:[#allocation176_spill] sm:$0xff] }
 0x397   :  { %v1856_v34 = vsel %vm525_vm11, %v13692_v22, %v13683_v8  ;;  %v1960_v10 = vsel %vm638_vm13, %v10083_v0, %v10182_v29  ;;  %v10916_v48 = vsel %vm525_vm11, %v3166_v50, %v3154_v9  ;;  %v10920_v40 = vmul.f32 %v13696_v21, %v13698_v16  ;;  %v13707_v16 = vld [vmem:[#allocation212_spill] sm:$0xff] }
 0x398   :  { %v10924_v13 = vmul.f32 %v13696_v21, %v13699_v33  ;;  %v6021_v4 = vmul.f32 -1.442695, %v10877_v42  ;;  %v1877_v8 = vadd.f32 %v1869_v5, %v10542_v47  ;;  %6733 = vpow2.f32 %v6020_v20  ;;  %v13708_v33 = vld [vmem:[#allocation66_spill] sm:$0xff] }
 0x399   :  { %v6730_v22 = vpop.eup %6729  ;;  %v10929_v0 = vadd.f32 %v13701_v46, %v1980_v32  ;;  %v10932_v29 = vadd.f32 %v13701_v46, %v1979_v11  ;;  %v1974_v18 = vsel %vm10198_vm1, %v1966_v25, 0.0  ;;  %v1878_v35 = vadd.f32 %v1856_v34, %v10544_v57  ;;  %v3158_v20 = vpop.permute.xlu0 %3157  ;;  %v13704_v32 = vld [vmem:[#allocation143_spill] sm:$0xff]  ;;  %v13706_v34 = vld [vmem:[#allocation152_spill] sm:$0xff] }
 0x39a   :  { %13700 = vst [vmem:[#allocation200_spill] sm:$0xff] %v10924_v13  ;;  %v1981_v14 = vadd.f32 %v1960_v10, %v1877_v8  ;;  %v2517_v21 = vsel %vm525_vm11, %v10341_v27, %v10326_v24  ;;  %v2617_v47 = vsel %vm638_vm13, %v10564_v39, %v10628_v17  ;;  %v10945_v5 = vpop.permute.xlu1 %3151  ;;  %v2515_v11 = vsel %vm525_vm11, %v10326_v24, %v13704_v32  ;;  %v13705_v57 = vld [vmem:[#allocation147_spill] sm:$0xff] }
 0x39b   :  { %13702 = vst [vmem:[#allocation99_spill] sm:$0xff] %v10929_v0  ;;  %13703 = vst [vmem:[#allocation203_spill] sm:$0xff] %v10932_v29  ;;  %v2513_v25 = vsel %vm525_vm11, %v13704_v32, %v13705_v57  ;;  %v3172_v45 = vsel %vm525_vm11, %v3154_v9, %v3158_v20  ;;  %v10958_v10 = vadd.f32 %v13706_v34, %v3062_v63  ;;  %v1372_v30 = vadd.f32 1.0, %v6730_v22  ;;  %v13711_v22 = vld [vmem:[#allocation18_spill] sm:$0xff] }
 0x39c   :  { %v10964_v8 = vsel %vm638_vm13, %v13708_v33, %v13707_v16  ;;  %6735 = vpow2.f32 %v6021_v4  ;;  %v1982_v24 = vadd.f32 %v1974_v18, %v1878_v35  ;;  %v6045_v23 = vmul.f32 -1.442695, %v10929_v0 }
 0x39d   :  { %13709 = vst [vmem:[#allocation190_spill] sm:$0xff] %v10964_v8  ;;  %v6044_v37 = vmul.f32 -1.442695, %v10932_v29  ;;  %v2519_v32 = vsel %vm10113_vm12, %v2517_v21, 0.0  ;;  %v2624_v9 = vsel %vm10154_vm14, %v2617_v47, 0.0  ;;  %v6732_v63 = vpop.eup %6731  ;;  %v10973_v34 = vadd.f32 %v13701_v46, %v1981_v14  ;;  %v3162_v35 = vpop.permute.xlu0 %3161  ;;  %v13847_v8 = vld [vmem:[#allocation103_spill] sm:$0xff] }
 0x39e   :  { %v2528_v16 = vadd.f32 %v2515_v11, %v10802_v55  ;;  %v2521_v4 = vsel %vm10166_vm15, %v2513_v25, 0.0  ;;  %v2621_v18 = vsel %vm638_vm13, %v10780_v44, %v13711_v22  ;;  %v10982_v0 = vpop.permute.xlu1 %3163  ;;  %v2511_v21 = vsel %vm525_vm11, %v13705_v57, %v10341_v27 }
 0x39f   :  { %13710 = vst [vmem:[#allocation16_spill] sm:$0xff] %v10973_v34  ;;  %v2619_v55 = vsel %vm638_vm13, %v13711_v22, %v10564_v39  ;;  %v10994_v14 = vsel %vm525_vm11, %v3162_v35, %v3166_v50  ;;  %v10998_v47 = vsel %vm525_vm11, %v3158_v20, %v3162_v35  ;;  %v11001_v11 = vadd.f32 %v13701_v46, %v1982_v24  ;;  %v13713_v20 = vld [vmem:[#allocation214_spill] sm:$0xff]  ;;  %v13717_v22 = vld [vmem:[#allocation184_spill] sm:$0xff]  ;;  %v13719_v35 = vld [vmem:[#allocation67_spill] sm:$0xff] }
 0x3a0   :  { %v2527_v25 = vadd.f32 %v2519_v32, %v10778_v43  ;;  %v2632_v29 = vadd.f32 %v2624_v9, %v2528_v16  ;;  %v2615_v27 = vsel %vm638_vm13, %v10628_v17, %v10780_v44  ;;  %v1371_v39 = vadd.f32 1.0, %v6732_v63  ;;  %v13715_v63 = vld [vmem:[#allocation79_spill] sm:$0xff] }
 0x3a1   :  { %13712 = vst [vmem:[#allocation17_spill] sm:$0xff] %v11001_v11  ;;  %6737 = vpow2.f32 %v6045_v23  ;;  %v2529_v50 = vadd.f32 %v2521_v4, %v10804_v61  ;;  %v2626_v57 = vsel %vm10198_vm1, %v2621_v18, 0.0  ;;  %v11015_v46 = vsel %vm638_vm13, %v13713_v20, %v13708_v33  ;;  %v3262_v9 = vpop.permute.xlu0 %3261  ;;  %v13714_v23 = vld [vmem:[#allocation175_spill] sm:$0xff] }
 0x3a2   :  { %v6046_v43 = vmul.f32 -1.442695, %v10973_v34  ;;  %v2530_v24 = vadd.f32 %v2511_v21, %v10851_v6  ;;  %v2631_v32 = vadd.f32 %v2619_v55, %v2527_v25  ;;  %v11019_v17 = vpop.permute.xlu1 %3155  ;;  %v6734_v44 = vpop.eup %6733  ;;  %6739 = vrcp.f32 %v1372_v30  ;;  %v13721_v55 = vld [vmem:[#allocation84_spill] sm:$0xff]  ;;  %v13723_v25 = vld [vmem:[#allocation182_spill] sm:$0xff]  ;;  %v13731_v61 = vld [vmem:[#allocation131_spill] sm:$0xff] }
 0x3a3   :  { %v11026_v16 = vmul.f32 %v13715_v63, %v13714_v23  ;;  %v2633_v33 = vadd.f32 %v2615_v27, %v2529_v50  ;;  %6741 = vpow2.f32 %v6044_v37  ;;  %v6047_v4 = vmul.f32 -1.442695, %v11001_v11  ;;  %v13725_v50 = vld [vmem:[#allocation56_spill] sm:$0xff]  ;;  %v13726_v23 = vld [vmem:[#allocation35_spill] sm:$0xff]  ;;  %v13732_v11 = vld [vmem:[#allocation69_spill] sm:$0xff] }
 0x3a4   :  { %v11030_v6 = vadd.f32 %v13717_v22, %v2632_v29  ;;  %v2634_v18 = vadd.f32 %v2626_v57, %v2530_v24  ;;  %6743 = vrcp.f32 %v1371_v39  ;;  %v11034_v21 = vmul.f32 %v13715_v63, %v13719_v35  ;;  %v13733_v34 = vld [vmem:[#allocation36_spill] sm:$0xff] }
 0x3a5   :  { %13716 = vst [vmem:[#allocation168_spill] sm:$0xff] %v11026_v16  ;;  %v11038_v30 = vmul.f32 %v13715_v63, %v13721_v55  ;;  %v11042_v20 = vmul.f32 %v13715_v63, %v13723_v25  ;;  %v1373_v27 = vadd.f32 1.0, %v6734_v44  ;;  %v3691_v29 = vmul.f32 %v13726_v23, %v13725_v50  ;;  %v3266_v57 = vpop.permute.xlu0 %3265 }
 0x3a6   :  { %13718 = vst [vmem:[#allocation172_spill] sm:$0xff] %v11030_v6  ;;  %13720 = vst [vmem:[#allocation111_spill] sm:$0xff] %v11034_v21  ;;  %v6736_v37 = vpop.eup %6735  ;;  %6745 = vpow2.f32 %v6046_v43  ;;  %v11047_v39 = vadd.f32 %v13717_v22, %v2631_v32  ;;  %v11049_v24 = vpop.permute.xlu1 %3159  ;;  %v11052_v35 = vadd.f32 %v13717_v22, %v2633_v33  ;;  %v3179_v63 = vsel %vm10113_vm12, %v10916_v48, 0.0  ;;  %v13730_v33 = vld [vmem:[#allocation134_spill] sm:$0xff] }
 0x3a7   :  { %13722 = vst [vmem:[#allocation109_spill] sm:$0xff] %v11038_v30  ;;  %13724 = vst [vmem:[#allocation204_spill] sm:$0xff] %v11042_v20  ;;  %v3188_v55 = vadd.f32 %v3172_v45, %v10897_v38  ;;  %v3274_v44 = vsel %vm638_vm13, %v3262_v9, %v3266_v57  ;;  %6747 = vpow2.f32 %v6047_v4  ;;  %v6067_v43 = vmul.f32 -1.442695, %v11030_v6  ;;  %v13734_v4 = vld [vmem:[#allocation90_spill] sm:$0xff] }
 0x3a8   :  { %13727 = vst [vmem:[#allocation102_spill] sm:$0xff] %v11047_v39  ;;  %13728 = vst [vmem:[#allocation75_spill] sm:$0xff] %v11052_v35  ;;  %v11062_v32 = vadd.f32 %v13717_v22, %v2634_v18  ;;  %v3284_v25 = vsel %vm10154_vm14, %v3274_v44, 0.0  ;;  %v3692_v50 = vmul.f32 %v13726_v23, %v13730_v33  ;;  %v3693_v48 = vmul.f32 %v13726_v23, %v13731_v61  ;;  %v13735_v22 = vld [vmem:[#allocation217_spill] sm:$0xff] }
 0x3a9   :  { %v3694_v38 = vmul.f32 %v13726_v23, %v13732_v11  ;;  %v3292_v45 = vadd.f32 %v3284_v25, %v3188_v55  ;;  %v11076_v6 = vsel %vm525_vm11, %v13734_v4, %v13733_v34  ;;  %v11082_v18 = vsel %vm525_vm11, %v13735_v22, %v13734_v4  ;;  %v3258_v33 = vpop.permute.xlu0 %3257 }
 0x3aa   :  { %13729 = vst [vmem:[#allocation207_spill] sm:$0xff] %v11062_v32  ;;  %v6066_v44 = vmul.f32 -1.442695, %v11047_v39  ;;  %v3187_v61 = vadd.f32 %v3179_v63, %v10880_v7  ;;  %v11086_v42 = vpop.permute.xlu1 %3259  ;;  %6749 = vrcp.f32 %v1373_v27  ;;  %v6068_v23 = vmul.f32 -1.442695, %v11052_v35  ;;  %v13736_v63 = vld [vmem:[#allocation46_spill] sm:$0xff] }
 0x3ab   :  { %v6738_v11 = vpop.eup %6737  ;;  %v3181_v34 = vsel %vm10166_vm15, %v10998_v47, 0.0  ;;  %v3276_v55 = vsel %vm638_vm13, %v3258_v33, %v3262_v9  ;;  %v1374_v25 = vadd.f32 1.0, %v6736_v37  ;;  %6751 = vpow2.f32 %v6067_v43  ;;  %v13738_v27 = vld [vmem:[#allocation53_spill] sm:$0xff]  ;;  %v13739_v35 = vld [vmem:[#allocation195_spill] sm:$0xff] }
 0x3ac   :  { %v6069_v4 = vmul.f32 -1.442695, %v11062_v32  ;;  %v3291_v22 = vadd.f32 %v3276_v55, %v3187_v61  ;;  %v6740_v7 = vpop.eup %6739  ;;  %v3715_v39 = vadd.f32 %v13736_v63, %v3691_v29  ;;  %v3716_v15 = vadd.f32 %v13737_v54, %v3692_v50  ;;  %v13751_v63 = vld [vmem:[#allocation113_spill] sm:$0xff] }
 0x3ad   :  { %v3717_v20 = vadd.f32 %v13738_v27, %v3693_v48  ;;  %v3718_v30 = vadd.f32 %v13739_v35, %v3694_v38  ;;  %v6742_v21 = vpop.eup %6741  ;;  %v2028_v16 = vadd.f32 1.0, %v6738_v11  ;;  %6753 = vpow2.f32 %v6066_v44  ;;  %v3270_v37 = vpop.permute.xlu0 %3269  ;;  %v13752_v27 = vld [vmem:[#allocation62_spill] sm:$0xff] }
 0x3ae   :  { %v3189_v47 = vadd.f32 %v3181_v34, %v10900_v51  ;;  %v11101_v9 = vadd.f32 %v10894_v49, %v3292_v45  ;;  %v11103_v43 = vpop.permute.xlu1 %3263  ;;  %v6744_v61 = vpop.eup %6743  ;;  %6755 = vpow2.f32 %v6068_v23  ;;  %v3190_v54 = vadd.f32 %v10994_v14, %v10958_v10 }
 0x3af   :  { %13741 = vst [vmem:[#allocation164_spill] sm:$0xff] %v11103_v43  ;;  %v3272_v29 = vsel %vm638_vm13, %v3266_v57, %v3270_v37  ;;  %v3278_v35 = vsel %vm638_vm13, %v3270_v37, %v3258_v33  ;;  %6757 = vpow2.f32 %v6069_v4  ;;  %v11112_v51 = vadd.f32 %v10894_v49, %v3291_v22  ;;  %v13759_v37 = vld [vmem:[#allocation120_spill] sm:$0xff] }
 0x3b0   :  { %13740 = vst [vmem:[#allocation24_spill] sm:$0xff] %v11101_v9  ;;  %v6746_v50 = vpop.eup %6745  ;;  %v3286_v48 = vsel %vm10198_vm1, %v3278_v35, 0.0  ;;  %v3293_v38 = vadd.f32 %v3272_v29, %v3189_v47  ;;  %6759 = vrcp.f32 %v1374_v25  ;;  %v2027_v14 = vadd.f32 1.0, %v6742_v21 }
 0x3b1   :  { %13742 = vst [vmem:[#allocation205_spill] sm:$0xff] %v11112_v51  ;;  %v11119_v45 = vadd.f32 %v3286_v48, %v3190_v54  ;;  %v6748_v57 = vpop.eup %6747  ;;  %v6097_v44 = vmul.f32 -1.442695, %v11101_v9  ;;  %v11122_v33 = vpop.permute.xlu0 %3956  ;;  %v11127_v23 = vadd.f32 %v10747_v41, %v3715_v39  ;;  %v11130_v34 = vmul.f32 %v6744_v61, %v10799_v28  ;;  %v13753_v39 = vld [vmem:[#allocation229_spill] sm:$0xff]  ;;  %v13764_v48 = vld [vmem:[#allocation154_spill] sm:$0xff]  ;;  %v13775_v9 = vld [vmem:[#allocation100_spill] sm:$0xff] }
 0x3b2   :  { %13743 = vst [vmem:[#allocation28_spill] sm:$0xff] %v11122_v33  ;;  %v11124_v11 = vpop.permute.xlu1 %3255  ;;  %v11133_v55 = vmul.f32 %v6740_v7, %v10743_v56  ;;  %v2029_v25 = vadd.f32 1.0, %v6746_v50  ;;  %v11136_v21 = vadd.f32 %v10760_v26, %v3716_v15  ;;  %v11139_v4 = vadd.f32 %v10764_v2, %v3717_v20  ;;  %v13754_v28 = vld [vmem:[#allocation189_spill] sm:$0xff]  ;;  %v13757_v2 = vld [vmem:[#allocation123_spill] sm:$0xff] }
 0x3b3   :  { %13744 = vst [vmem:[#allocation50_spill] sm:$0xff] %v11124_v11  ;;  %13745 = vst [vmem:[#allocation112_spill] sm:$0xff] %v11127_v23  ;;  %v11142_v22 = vadd.f32 %v10768_v31, %v3718_v30  ;;  %v11146_v41 = vmul.f32 %v13752_v27, %v13751_v63  ;;  %v11152_v56 = vsel %vm638_vm13, %v13754_v28, %v13753_v39  ;;  %6761 = vrcp.f32 %v2028_v16  ;;  %v13758_v31 = vld [vmem:[#allocation116_spill] sm:$0xff]  ;;  %v13760_v16 = vld [vmem:[#allocation231_spill] sm:$0xff] }
 0x3b4   :  { %13746 = vst [vmem:[#allocation60_spill] sm:$0xff] %v11130_v34  ;;  %13747 = vst [vmem:[#allocation104_spill] sm:$0xff] %v11133_v55  ;;  %v6096_v26 = vmul.f32 -1.442695, %v11112_v51  ;;  %v11155_v15 = vpop.eup %6749  ;;  %v11159_v20 = vmul.f32 %v13752_v27, %v13757_v2  ;;  %v11163_v30 = vmul.f32 %v13752_v27, %v13758_v31  ;;  %6763 = vrcp.f32 %v2027_v14  ;;  %v13765_v14 = vld [vmem:[#allocation186_spill] sm:$0xff]  ;;  %v13767_v63 = vld [vmem:[#allocation135_spill] sm:$0xff] }
 0x3b5   :  { %13748 = vst [vmem:[#allocation211_spill] sm:$0xff] %v11136_v21  ;;  %13749 = vst [vmem:[#allocation206_spill] sm:$0xff] %v11139_v4  ;;  %v2030_v7 = vadd.f32 1.0, %v6748_v57  ;;  %v6752_v47 = vpop.eup %6751  ;;  %v11167_v61 = vmul.f32 %v13752_v27, %v13759_v37  ;;  %v11173_v54 = vsel %vm638_vm13, %v13760_v16, %v13754_v28  ;;  %6765 = vpow2.f32 %v6097_v44  ;;  %v13768_v27 = vld [vmem:[#allocation145_spill] sm:$0xff]  ;;  %v382_v44 = vpop.permute.xlu0 %381  ;;  %v13769_v28 = vld [vmem:[#allocation156_spill] sm:$0xff] }
 0x3b6   :  { %13750 = vst [vmem:[#allocation52_spill] sm:$0xff] %v11142_v22  ;;  %13755 = vst [vmem:[#allocation58_spill] sm:$0xff] %v11152_v56  ;;  %v11176_v29 = vadd.f32 %v10894_v49, %v3293_v38  ;;  %v11178_v35 = vpop.permute.xlu1 %3267  ;;  %6767 = vrcp.f32 %v2029_v25  ;;  %v11185_v57 = vmul.f32 %v13765_v14, %v13764_v48  ;;  %v11191_v39 = vsel %vm525_vm11, %v13768_v27, %v13767_v63  ;;  %v13770_v31 = vld [vmem:[#allocation41_spill] sm:$0xff]  ;;  %v13771_v37 = vld [vmem:[#allocation7_spill] sm:$0xff] }
 0x3b7   :  { %13756 = vst [vmem:[#allocation210_spill] sm:$0xff] %v11155_v15  ;;  %13761 = vst [vmem:[#allocation110_spill] sm:$0xff] %v11173_v54  ;;  %v6754_v38 = vpop.eup %6753  ;;  %v11195_v2 = vmul.f32 %v13765_v14, %v13769_v28  ;;  %v11201_v25 = vsel %vm525_vm11, %v13771_v37, %v13770_v31  ;;  %v13772_v16 = vld [vmem:[#allocation161_spill] sm:$0xff]  ;;  %v13773_v48 = vld [vmem:[#allocation14_spill] sm:$0xff]  ;;  %6769 = vpow2.f32 %v6096_v26  ;;  %v11211_v51 = vmul.f32 %v13765_v14, %v13775_v9 }
 0x3b8   :  { %13762 = vst [vmem:[#allocation106_spill] sm:$0xff] %v11176_v29  ;;  %13763 = vst [vmem:[#allocation209_spill] sm:$0xff] %v11178_v35  ;;  %v11207_v50 = vsel %vm638_vm13, %v13773_v48, %v13772_v16  ;;  %v6756_v10 = vpop.eup %6755  ;;  %6771 = vrcp.f32 %v2030_v7  ;;  %v13777_v28 = vld [vmem:[#allocation185_spill] sm:$0xff]  ;;  %v2680_v15 = vadd.f32 1.0, %v6752_v47  ;;  %v11224_v26 = vsel %vm525_vm11, %v13767_v63, %v13771_v37  ;;  %v13783_v35 = vld [vmem:[#allocation150_spill] sm:$0xff] }
 0x3b9   :  { %13766 = vst [vmem:[#allocation213_spill] sm:$0xff] %v11185_v57  ;;  %13774 = vst [vmem:[#allocation215_spill] sm:$0xff] %v11207_v50  ;;  %v11215_v32 = vmul.f32 %v13765_v14, %v13777_v28  ;;  %v6758_v55 = vpop.eup %6757  ;;  %v11230_v9 = vsel %vm525_vm11, %v13770_v31, %v13768_v27  ;;  %v6098_v7 = vmul.f32 -1.442695, %v11176_v29  ;;  %v2679_v28 = vadd.f32 1.0, %v6754_v38  ;;  %v1056_v31 = vpop.permute.xlu0 %1055  ;;  %v13782_v29 = vld [vmem:[#allocation13_spill] sm:$0xff] }
 0x3ba   :  { %13776 = vst [vmem:[#allocation216_spill] sm:$0xff] %v11211_v51  ;;  %v11233_v47 = vpop.eup %6759  ;;  %v11245_v37 = vsel %vm638_vm13, %v10864_v12, %v10806_v60  ;;  %v11247_v27 = vpop.permute.xlu1 %3952  ;;  %v2681_v34 = vadd.f32 1.0, %v6756_v10  ;;  %v390_v33 = vmul.f32 %v382_v44, %v13783_v35  ;;  %v13784_v14 = vld [vmem:[#allocation10_spill] sm:$0xff]  ;;  %6773 = vrcp.f32 %v2680_v15  ;;  %v13831_v54 = vld [vmem:[#allocation20_spill] sm:$0xff] }
 0x3bb   :  { %13778 = vst [vmem:[#allocation219_spill] sm:$0xff] %v11215_v32  ;;  %13779 = vst [vmem:[#allocation218_spill] sm:$0xff] %v11233_v47  ;;  %v389_v47 = vmul.f32 %v382_v44, %v13782_v29  ;;  %v391_v38 = vmul.f32 %v382_v44, %v13784_v14  ;;  %v2682_v4 = vadd.f32 1.0, %v6758_v55  ;;  %v11256_v63 = vsel %vm638_vm13, %v10806_v60, %v13773_v48  ;;  %v13790_v60 = vld [vmem:[#allocation157_spill] sm:$0xff]  ;;  %v13794_v48 = vld [vmem:[#allocation178_spill] sm:$0xff] }
 0x3bc   :  { %13780 = vst [vmem:[#allocation40_spill] sm:$0xff] %v11245_v37  ;;  %13781 = vst [vmem:[#allocation220_spill] sm:$0xff] %v11247_v27  ;;  %v11262_v50 = vsel %vm638_vm13, %v13772_v16, %v10864_v12  ;;  %v11270_v15 = vsel %vm525_vm11, %v10982_v0, %v10945_v5  ;;  %v11274_v55 = vadd.f32 %v10894_v49, %v11119_v45  ;;  %6775 = vpow2.f32 %v6098_v7  ;;  %v13795_v14 = vld [vmem:[#allocation15_spill] sm:$0xff]  ;;  %v13842_v51 = vld [vmem:[#allocation64_spill] sm:$0xff] }
 0x3bd   :  { %13785 = vst [vmem:[#allocation222_spill] sm:$0xff] %v11256_v63  ;;  %13786 = vst [vmem:[#allocation128_spill] sm:$0xff] %v11262_v50  ;;  %v11264_v10 = vpop.eup %6761  ;;  %v392_v29 = vmul.f32 %v382_v44, %v13790_v60  ;;  %6777 = vrcp.f32 %v2679_v28  ;;  %v11286_v16 = vsel %vm525_vm11, %v11019_v17, %v11049_v24  ;;  %v11292_v49 = vsel %vm638_vm13, %v11086_v42, %v11103_v43  ;;  %v13796_v60 = vld [vmem:[#allocation89_spill] sm:$0xff]  ;;  %v13907_v58 = vld [vmem:[#allocation28_spill] sm:$0xff] }
 0x3be   :  { %13787 = vst [vmem:[#allocation70_spill] sm:$0xff] %v11264_v10  ;;  %13788 = vst [vmem:[#allocation73_spill] sm:$0xff] %v11270_v15  ;;  %v11277_v35 = vpop.eup %6763  ;;  %v11294_v45 = vpop.permute.xlu1 %3807  ;;  %6779 = vrcp.f32 %v2681_v34  ;;  %v413_v7 = vadd.f32 %v13794_v48, %v389_v47  ;;  %v414_v28 = vadd.f32 %v13795_v14, %v390_v33  ;;  %v415_v12 = vadd.f32 %v13796_v60, %v391_v38  ;;  %v13800_v48 = vld [vmem:[#allocation31_spill] sm:$0xff]  ;;  %v13802_v60 = vld [vmem:[#allocation177_spill] sm:$0xff] }
 0x3bf   :  { %13789 = vst [vmem:[#allocation114_spill] sm:$0xff] %v11274_v55  ;;  %13791 = vst [vmem:[#allocation126_spill] sm:$0xff] %v11277_v35  ;;  %v6766_v44 = vpop.eup %6765  ;;  %v1712_v10 = vpop.permute.xlu0 %1711  ;;  %6781 = vrcp.f32 %v2682_v4  ;;  %v11308_v43 = vsel %vm525_vm11, %v10945_v5, %v11019_v17  ;;  %v11314_v33 = vsel %vm525_vm11, %v11049_v24, %v10982_v0  ;;  %v6099_v47 = vmul.f32 -1.442695, %v11274_v55  ;;  %v13803_v0 = vld [vmem:[#allocation166_spill] sm:$0xff]  ;;  %v13805_v4 = vld [vmem:[#allocation9_spill] sm:$0xff] }
 0x3c0   :  { %13792 = vst [vmem:[#allocation115_spill] sm:$0xff] %v11286_v16  ;;  %13793 = vst [vmem:[#allocation221_spill] sm:$0xff] %v11292_v49  ;;  %v11299_v35 = vpop.eup %6767  ;;  %v416_v5 = vadd.f32 %v13800_v48, %v392_v29  ;;  %v3340_v14 = vadd.f32 1.0, %v6766_v44  ;;  %v1063_v37 = vmul.f32 %v1056_v31, %v13802_v60  ;;  %v1064_v24 = vmul.f32 %v1056_v31, %v13803_v0  ;;  %v13806_v55 = vld [vmem:[#allocation160_spill] sm:$0xff]  ;;  %v13807_v63 = vld [vmem:[#allocation85_spill] sm:$0xff] }
 0x3c1   :  { %13797 = vst [vmem:[#allocation125_spill] sm:$0xff] %v11299_v35  ;;  %13798 = vst [vmem:[#allocation119_spill] sm:$0xff] %v11308_v43  ;;  %v6770_v34 = vpop.eup %6769  ;;  %v13804_v35 = vld [vmem:[#allocation170_spill] sm:$0xff]  ;;  %v437_v16 = vadd.f32 %v13805_v4, %v413_v7  ;;  %v438_v50 = vadd.f32 %v13806_v55, %v414_v28  ;;  %v439_v22 = vadd.f32 %v13807_v63, %v415_v12  ;;  %v13810_v60 = vld [vmem:[#allocation29_spill] sm:$0xff]  ;;  %6783 = vpow2.f32 %v6099_v47 }
 0x3c2   :  { %13799 = vst [vmem:[#allocation87_spill] sm:$0xff] %v11314_v33  ;;  %v11324_v17 = vpop.eup %6771  ;;  %v1065_v33 = vmul.f32 %v1056_v31, %v13804_v35  ;;  %v11329_v43 = vpop.permute.xlu1 %3819  ;;  %v13808_v38 = vld [vmem:[#allocation162_spill] sm:$0xff]  ;;  %v3339_v48 = vadd.f32 1.0, %v6770_v34  ;;  %v11339_v44 = vsel %vm638_vm13, %v11124_v11, %v11086_v42  ;;  %v1719_v35 = vmul.f32 %v1712_v10, %v13810_v60  ;;  %v13811_v0 = vld [vmem:[#allocation101_spill] sm:$0xff]  ;;  %v13814_v63 = vld [vmem:[#allocation59_spill] sm:$0xff] }
 0x3c3   :  { %13801 = vst [vmem:[#allocation167_spill] sm:$0xff] %v11324_v17  ;;  %v1066_v49 = vmul.f32 %v1056_v31, %v13808_v38  ;;  %v2373_v29 = vpop.permute.xlu0 %2372  ;;  %13809 = vst [vmem:[#allocation142_spill] sm:$0xff] %v11339_v44  ;;  %v1720_v17 = vmul.f32 %v1712_v10, %v13811_v0  ;;  %v13812_v7 = vld [vmem:[#allocation98_spill] sm:$0xff]  ;;  %v13813_v55 = vld [vmem:[#allocation65_spill] sm:$0xff]  ;;  %v1722_v12 = vmul.f32 %v1712_v10, %v13814_v63  ;;  %6785 = vrcp.f32 %v3340_v14 }
 0x3c4   :  { %v440_v4 = vadd.f32 %v13812_v7, %v416_v5  ;;  %v1721_v28 = vmul.f32 %v1712_v10, %v13813_v55  ;;  %v11346_v31 = vpop.eup %6773  ;;  %v13816_v34 = vld [vmem:[#allocation22_spill] sm:$0xff]  ;;  %v13817_v15 = vld [vmem:[#allocation12_spill] sm:$0xff]  ;;  %v13819_v47 = vld [vmem:[#allocation149_spill] sm:$0xff]  ;;  %6787 = vrcp.f32 %v3339_v48 }
 0x3c5   :  { %13815 = vst [vmem:[#allocation124_spill] sm:$0xff] %v11346_v31  ;;  %v1087_v38 = vadd.f32 %v13816_v34, %v1063_v37  ;;  %v1088_v21 = vadd.f32 %v13817_v15, %v1064_v24  ;;  %v13818_v42 = vld [vmem:[#allocation146_spill] sm:$0xff]  ;;  %v13820_v5 = vsel %vm10113_vm12, %v13819_v47, 0.0  ;;  %v13822_v10 = vld [vmem:[#allocation33_spill] sm:$0xff]  ;;  %v13824_v63 = vld [vmem:[#allocation191_spill] sm:$0xff] }
 0x3c6   :  { %v1089_v11 = vadd.f32 %v13818_v42, %v1065_v33  ;;  %v11351_v44 = vpop.permute.xlu1 %3811  ;;  %v6776_v60 = vpop.eup %6775  ;;  %v550_v0 = vadd.f32 %v13820_v5, %v437_v16  ;;  %v13821_v7 = vld [vmem:[#allocation194_spill] sm:$0xff]  ;;  %v13823_v14 = vsel %vm10166_vm15, %v13822_v10, 0.0  ;;  %v1090_v15 = vadd.f32 %v13824_v63, %v1066_v49  ;;  %v13826_v34 = vld [vmem:[#allocation228_spill] sm:$0xff]  ;;  %v13828_v16 = vld [vmem:[#allocation129_spill] sm:$0xff] }
 0x3c7   :  { %v11358_v55 = vadd.f32 %v13821_v7, %v438_v50  ;;  %v552_v37 = vadd.f32 %v13823_v14, %v439_v22  ;;  %v11365_v24 = vpop.permute.xlu0 %3023  ;;  %v11367_v33 = vpop.eup %6777  ;;  %v1743_v42 = vadd.f32 %v13826_v34, %v1719_v35  ;;  %v13827_v31 = vld [vmem:[#allocation226_spill] sm:$0xff]  ;;  %v2379_v5 = vmul.f32 %v2373_v29, %v13828_v16  ;;  %v13830_v7 = vld [vmem:[#allocation48_spill] sm:$0xff]  ;;  %v13835_v48 = vld [vmem:[#allocation193_spill] sm:$0xff] }
 0x3c8   :  { %13825 = vst [vmem:[#allocation42_spill] sm:$0xff] %v11367_v33  ;;  %v1744_v47 = vadd.f32 %v13827_v31, %v1720_v17  ;;  %v11372_v50 = vpop.eup %6779  ;;  %v553_v56 = vadd.f32 %v13830_v7, %v440_v4  ;;  %v1745_v10 = vadd.f32 %v13831_v54, %v1721_v28  ;;  %v13832_v22 = vld [vmem:[#allocation230_spill] sm:$0xff]  ;;  %v13833_v49 = vld [vmem:[#allocation68_spill] sm:$0xff]  ;;  %v3341_v33 = vadd.f32 1.0, %v6776_v60 }
 0x3c9   :  { %13829 = vst [vmem:[#allocation223_spill] sm:$0xff] %v11372_v50  ;;  %v1746_v14 = vadd.f32 %v13832_v22, %v1722_v12  ;;  %v2380_v63 = vmul.f32 %v2373_v29, %v13833_v49  ;;  %v11378_v23 = vpop.eup %6781  ;;  %v1111_v27 = vadd.f32 %v13835_v48, %v1087_v38  ;;  %v13836_v35 = vld [vmem:[#allocation26_spill] sm:$0xff]  ;;  %v13837_v17 = vld [vmem:[#allocation192_spill] sm:$0xff]  ;;  %v13838_v50 = vld [vmem:[#allocation19_spill] sm:$0xff] }
 0x3ca   :  { %13834 = vst [vmem:[#allocation107_spill] sm:$0xff] %v11378_v23  ;;  %v1112_v34 = vadd.f32 %v13836_v35, %v1088_v21  ;;  %v1113_v31 = vadd.f32 %v13837_v17, %v1089_v11  ;;  %v11383_v16 = vpop.permute.xlu1 %3815  ;;  %v1114_v32 = vadd.f32 %v13838_v50, %v1090_v15  ;;  %v13839_v4 = vld [vmem:[#allocation132_spill] sm:$0xff]  ;;  %v13841_v22 = vld [vmem:[#allocation153_spill] sm:$0xff]  ;;  %v1767_v23 = vadd.f32 %v13842_v51, %v1743_v42  ;;  %v13843_v60 = vld [vmem:[#allocation54_spill] sm:$0xff] }
 0x3cb   :  { %v2381_v7 = vmul.f32 %v2373_v29, %v13839_v4  ;;  %v13840_v54 = vld [vmem:[#allocation44_spill] sm:$0xff]  ;;  %v3680_v12 = vpop.permute.xlu0 %3679  ;;  %v665_v49 = vadd.f32 %v13841_v22, %v552_v37  ;;  %v1768_v13 = vadd.f32 %v13843_v60, %v1744_v47  ;;  %v13845_v21 = vld [vmem:[#allocation34_spill] sm:$0xff]  ;;  %v13846_v11 = vld [vmem:[#allocation61_spill] sm:$0xff]  ;;  %v1770_v57 = vadd.f32 %v13847_v8, %v1746_v14 }
 0x3cc   :  { %v2382_v28 = vmul.f32 %v2373_v29, %v13840_v54  ;;  %v13844_v38 = vld [vmem:[#allocation140_spill] sm:$0xff]  ;;  %v663_v35 = vadd.f32 %v13845_v21, %v550_v0  ;;  %v1769_v17 = vadd.f32 %v13846_v11, %v1745_v10  ;;  %v11399_v29 = vsel %vm525_vm11, %v11329_v43, %v11294_v45  ;;  %v13850_v8 = vld [vmem:[#allocation197_spill] sm:$0xff]  ;;  %v11417_v10 = vpop.eup %6783  ;;  %v13852_v14 = vld [vmem:[#allocation27_spill] sm:$0xff] }
 0x3cd   :  { %v2403_v48 = vadd.f32 %v13844_v38, %v2379_v5  ;;  %v13848_v15 = vld [vmem:[#allocation92_spill] sm:$0xff]  ;;  %6789 = vrcp.f32 %v3341_v33  ;;  %v13849_v51 = vsel %vm10113_vm12, %v10796_v1, 0.0  ;;  %v11407_v0 = vadd.f32 %v10845_v62, %v1112_v34  ;;  %v13854_v1 = vld [vmem:[#allocation23_spill] sm:$0xff]  ;;  %v11427_v22 = vpop.eup %6785 }
 0x3ce   :  { %v2404_v37 = vadd.f32 %v13848_v15, %v2380_v63  ;;  %v1215_v42 = vadd.f32 %v13849_v51, %v1111_v27  ;;  %v13851_v47 = vsel %vm10166_vm15, %v13850_v8, 0.0  ;;  %v11415_v50 = vpop.permute.xlu1 %3915  ;;  %v11420_v33 = vadd.f32 %v13852_v14, %v1114_v32  ;;  %v13853_v63 = vld [vmem:[#allocation86_spill] sm:$0xff]  ;;  %v13855_v54 = vld [vmem:[#allocation187_spill] sm:$0xff]  ;;  %v13858_v21 = vld [vmem:[#allocation8_spill] sm:$0xff] }
 0x3cf   :  { %v11413_v5 = vadd.f32 %v13851_v47, %v1113_v31  ;;  %v2405_v4 = vadd.f32 %v13853_v63, %v2381_v7  ;;  %v2406_v27 = vadd.f32 %v13854_v1, %v2382_v28  ;;  %v3688_v62 = vmul.f32 %v3680_v12, %v13855_v54  ;;  %v11425_v34 = vpop.permute.xlu0 %3809  ;;  %v13857_v7 = vld [vmem:[#allocation196_spill] sm:$0xff]  ;;  %v13862_v47 = vld [vmem:[#allocation171_spill] sm:$0xff]  ;;  %v13863_v14 = vld [vmem:[#allocation173_spill] sm:$0xff] }
 0x3d0   :  { %v13856_v31 = vsel %vm10113_vm12, %v11082_v18, 0.0  ;;  %v11436_v38 = vadd.f32 %v11076_v6, %v1768_v13  ;;  %v2427_v28 = vadd.f32 %v13857_v7, %v2403_v48  ;;  %v13859_v11 = vsel %vm10166_vm15, %v13858_v21, 0.0  ;;  %v13860_v51 = vld [vmem:[#allocation232_spill] sm:$0xff]  ;;  %v11454_v6 = vpop.eup %6787  ;;  %v13874_v32 = vld [vmem:[#allocation163_spill] sm:$0xff] }
 0x3d1   :  { %v11433_v60 = vadd.f32 %v13856_v31, %v1767_v23  ;;  %v11446_v15 = vadd.f32 %v13859_v11, %v1769_v17  ;;  %v11449_v8 = vadd.f32 %v13860_v51, %v1770_v57  ;;  %v13861_v18 = vld [vmem:[#allocation32_spill] sm:$0xff]  ;;  %v3031_v13 = vmul.f32 %v11365_v24, %v13862_v47  ;;  %v13864_v17 = vld [vmem:[#allocation139_spill] sm:$0xff]  ;;  %v13868_v11 = vld [vmem:[#allocation30_spill] sm:$0xff] }
 0x3d2   :  { %v2428_v23 = vadd.f32 %v13861_v18, %v2404_v37  ;;  %v3032_v63 = vmul.f32 %v11365_v24, %v13863_v14  ;;  %v3712_v48 = vadd.f32 %v11159_v20, %v3688_v62  ;;  %v3920_v1 = vpop.permute.xlu1 %3919  ;;  %v13865_v54 = vsel %vm10198_vm1, %v13864_v17, 0.0  ;;  %v13866_v57 = vld [vmem:[#allocation108_spill] sm:$0xff]  ;;  %v13867_v37 = vld [vmem:[#allocation25_spill] sm:$0xff]  ;;  %v13872_v17 = vld [vmem:[#allocation95_spill] sm:$0xff] }
 0x3d3   :  { %v666_v31 = vadd.f32 %v13865_v54, %v553_v56  ;;  %v11464_v7 = vadd.f32 %v13866_v57, %v665_v49  ;;  %v2429_v21 = vadd.f32 %v13867_v37, %v2405_v4  ;;  %v2430_v51 = vadd.f32 %v13868_v11, %v2406_v27  ;;  %v13869_v47 = vld [vmem:[#allocation181_spill] sm:$0xff]  ;;  %v11473_v62 = vpop.permute.xlu0 %3821  ;;  %v13871_v49 = vld [vmem:[#allocation96_spill] sm:$0xff] }
 0x3d4   :  { %v3827_v18 = vsel %vm525_vm11, %v11294_v45, %v11351_v44  ;;  %v3687_v20 = vmul.f32 %v3680_v12, %v13869_v47  ;;  %v13870_v56 = vsel %vm10113_vm12, %v11191_v39, 0.0  ;;  %v3033_v4 = vmul.f32 %v11365_v24, %v13871_v49  ;;  %v13873_v37 = vld [vmem:[#allocation169_spill] sm:$0xff] }
 0x3d5   :  { %v11479_v14 = vadd.f32 %v13870_v56, %v2427_v28  ;;  %v3689_v27 = vmul.f32 %v3680_v12, %v13872_v17  ;;  %v11485_v54 = vadd.f32 %v13866_v57, %v666_v31  ;;  %v11488_v45 = vadd.f32 %v11224_v26, %v2428_v23 }
 0x3d6   :  { %v3034_v11 = vmul.f32 %v11365_v24, %v13873_v37  ;;  %v3055_v47 = vadd.f32 %v10888_v53, %v3031_v13  ;;  %v3690_v39 = vmul.f32 %v3680_v12, %v13874_v32  ;;  %v3056_v28 = vadd.f32 %v10904_v59, %v3032_v63  ;;  %v3912_v49 = vpop.permute.xlu1 %3911  ;;  %v13876_v59 = vld [vmem:[#allocation183_spill] sm:$0xff] }
 0x3d7   :  { %v3736_v56 = vadd.f32 %v11195_v2, %v3712_v48  ;;  %v5990_v17 = vmul.f32 -1.442695, %v11464_v7  ;;  %v5991_v31 = vmul.f32 -1.442695, %v11485_v54  ;;  %v13875_v26 = vsel %vm10166_vm15, %v11201_v25, 0.0  ;;  %v11508_v12 = vpop.permute.xlu0 %3813  ;;  %v11515_v13 = vpop.eup %6789 }
 0x3d8   :  { %v11502_v23 = vadd.f32 %v13875_v26, %v2429_v21  ;;  %v11505_v24 = vadd.f32 %v11230_v9, %v2430_v51  ;;  %v3711_v53 = vadd.f32 %v11146_v41, %v3687_v20  ;;  %v13877_v2 = vsel %vm10154_vm14, %v13876_v59, 0.0 }
 0x3d9   :  { %v664_v32 = vadd.f32 %v13877_v2, %v11358_v55  ;;  %v3713_v63 = vadd.f32 %v11163_v30, %v3689_v27  ;;  %v3929_v25 = vsel %vm638_vm13, %v11415_v50, %v3920_v1  ;;  %6791 = vpow2.f32 %v5990_v17 }
 0x3da   :  { %v11522_v9 = vadd.f32 %v13866_v57, %v663_v35  ;;  %v3057_v41 = vadd.f32 %v10920_v40, %v3033_v4  ;;  %v3714_v48 = vadd.f32 %v11167_v61, %v3690_v39  ;;  %6793 = vpow2.f32 %v5991_v31  ;;  %v13878_v61 = vld [vmem:[#allocation213_spill] sm:$0xff]  ;;  %v13884_v31 = vld [vmem:[#allocation111_spill] sm:$0xff] }
 0x3db   :  { %v11527_v21 = vadd.f32 %v13866_v57, %v664_v32  ;;  %v3823_v30 = vsel %vm525_vm11, %v11383_v16, %v11329_v43  ;;  %v3825_v55 = vsel %vm525_vm11, %v11351_v44, %v11383_v16  ;;  %v3840_v35 = vadd.f32 %v3827_v18, %v3736_v56  ;;  %v3924_v57 = vpop.permute.xlu1 %3923  ;;  %v11541_v4 = vpop.permute.xlu0 %3817  ;;  %v13879_v43 = vld [vmem:[#allocation190_spill] sm:$0xff]  ;;  %v13881_v44 = vld [vmem:[#allocation200_spill] sm:$0xff] }
 0x3dc   :  { %v1319_v51 = vadd.f32 %v11015_v46, %v1215_v42  ;;  %v3936_v40 = vsel %vm10154_vm14, %v3929_v25, 0.0  ;;  %v3735_v20 = vadd.f32 %v13878_v61, %v3711_v53  ;;  %v5988_v27 = vmul.f32 -1.442695, %v11522_v9  ;;  %v13882_v46 = vld [vmem:[#allocation168_spill] sm:$0xff] }
 0x3dd   :  { %v13880_v37 = vsel %vm10154_vm14, %v13879_v43, 0.0  ;;  %v11550_v16 = vadd.f32 %v13881_v44, %v3034_v11  ;;  %v11553_v42 = vadd.f32 %v13882_v46, %v3055_v47  ;;  %v13883_v18 = vld [vmem:[#allocation216_spill] sm:$0xff]  ;;  %v5989_v17 = vmul.f32 -1.442695, %v11527_v21  ;;  %v13885_v11 = vld [vmem:[#allocation219_spill] sm:$0xff]  ;;  %v13889_v43 = vld [vmem:[#allocation109_spill] sm:$0xff] }
 0x3de   :  { %v1320_v39 = vadd.f32 %v13880_v37, %v11407_v0  ;;  %v3737_v56 = vadd.f32 %v13883_v18, %v3713_v63  ;;  %v11558_v26 = vadd.f32 %v13884_v31, %v3056_v28  ;;  %v3833_v53 = vsel %vm10166_vm15, %v3825_v55, 0.0  ;;  %v13886_v28 = vld [vmem:[#allocation165_spill] sm:$0xff]  ;;  %v13892_v44 = vld [vmem:[#allocation220_spill] sm:$0xff] }
 0x3df   :  { %v3830_v0 = vsel %vm525_vm11, %v11473_v62, %v11425_v34  ;;  %v3738_v59 = vadd.f32 %v13885_v11, %v3714_v48  ;;  %v3944_v2 = vadd.f32 %v3936_v40, %v3840_v35  ;;  %v3931_v47 = vsel %vm638_vm13, %v3912_v49, %v11415_v50  ;;  %v3918_v48 = vpop.permute.xlu0 %3917 }
 0x3e0   :  { %v3933_v32 = vsel %vm638_vm13, %v3924_v57, %v3912_v49  ;;  %v11573_v63 = vadd.f32 %v13886_v28, %v1319_v51  ;;  %v13887_v25 = vsel %vm10113_vm12, %v11399_v29, 0.0  ;;  %v3927_v61 = vsel %vm638_vm13, %v3920_v1, %v3924_v57  ;;  %v13888_v51 = vld [vmem:[#allocation39_spill] sm:$0xff]  ;;  %v13890_v1 = vld [vmem:[#allocation198_spill] sm:$0xff] }
 0x3e1   :  { %v3839_v55 = vadd.f32 %v13887_v25, %v3735_v20  ;;  %6795 = vpow2.f32 %v5988_v27  ;;  %v11582_v35 = vadd.f32 %v13886_v28, %v1320_v39  ;;  %v3841_v50 = vadd.f32 %v3833_v53, %v3737_v56 }
 0x3e2   :  { %6797 = vpow2.f32 %v5989_v17  ;;  %v6014_v49 = vmul.f32 -1.442695, %v11573_v63  ;;  %v1321_v40 = vadd.f32 %v13888_v51, %v11413_v5  ;;  %v11588_v37 = vadd.f32 %v13889_v43, %v3057_v41  ;;  %v13894_v51 = vld [vmem:[#allocation110_spill] sm:$0xff] }
 0x3e3   :  { %v3943_v29 = vadd.f32 %v3931_v47, %v3839_v55  ;;  %v3938_v20 = vsel %vm10198_vm1, %v3933_v32, 0.0  ;;  %v13891_v57 = vsel %vm10198_vm1, %v13890_v1, 0.0  ;;  %v6792_v39 = vpop.eup %6791  ;;  %v11598_v46 = vadd.f32 %v13892_v44, %v3944_v2  ;;  %v11605_v53 = vpop.permute.xlu0 %3921 }
 0x3e4   :  { %v1322_v27 = vadd.f32 %v13891_v57, %v11420_v33  ;;  %v3842_v18 = vadd.f32 %v3823_v30, %v3738_v59  ;;  %v3945_v56 = vadd.f32 %v3927_v61, %v3841_v50  ;;  %v11601_v5 = vadd.f32 %v13886_v28, %v1321_v40  ;;  %v6794_v41 = vpop.eup %6793  ;;  %v13893_v61 = vld [vmem:[#allocation112_spill] sm:$0xff] }
 0x3e5   :  { %v3835_v17 = vsel %vm10113_vm12, %v3830_v0, 0.0  ;;  %v713_v31 = vadd.f32 1.0, %v6792_v39  ;;  %v6015_v11 = vmul.f32 -1.442695, %v11582_v35  ;;  %v714_v2 = vadd.f32 1.0, %v6794_v41  ;;  %v13897_v39 = vld [vmem:[#allocation211_spill] sm:$0xff] }
 0x3e6   :  { %v11609_v33 = vadd.f32 %v13886_v28, %v1322_v27  ;;  %v3946_v47 = vadd.f32 %v3938_v20, %v3842_v18  ;;  %6799 = vpow2.f32 %v6014_v49  ;;  %v6016_v30 = vmul.f32 -1.442695, %v11601_v5  ;;  %v13895_v20 = vld [vmem:[#allocation58_spill] sm:$0xff] }
 0x3e7   :  { %v11613_v59 = vadd.f32 %v13892_v44, %v3943_v29  ;;  %6801 = vrcp.f32 %v713_v31  ;;  %v3930_v0 = vsel %vm638_vm13, %v3918_v48, %v11605_v53  ;;  %v6119_v25 = vmul.f32 -1.442695, %v11598_v46  ;;  %v3914_v29 = vpop.permute.xlu0 %3913 }
 0x3e8   :  { %v6017_v32 = vmul.f32 -1.442695, %v11609_v33  ;;  %v3828_v28 = vsel %vm525_vm11, %v11425_v34, %v11508_v12  ;;  %v11625_v55 = vadd.f32 %v13892_v44, %v3945_v56  ;;  %6803 = vrcp.f32 %v714_v2 }
 0x3e9   :  { %v3843_v50 = vadd.f32 %v3835_v17, %v13893_v61  ;;  %v3826_v49 = vsel %vm525_vm11, %v11508_v12, %v11541_v4  ;;  %6805 = vpow2.f32 %v6015_v11  ;;  %v1975_v40 = vadd.f32 %v13894_v51, %v11433_v60 }
 0x3ea   :  { %v11635_v43 = vadd.f32 %v13892_v44, %v3946_v47  ;;  %v3940_v34 = vsel %vm10154_vm14, %v3930_v0, 0.0  ;;  %6807 = vpow2.f32 %v6016_v30  ;;  %v13896_v1 = vsel %vm10154_vm14, %v13895_v20, 0.0  ;;  %v13898_v47 = vld [vmem:[#allocation188_spill] sm:$0xff] }
 0x3eb   :  { %v1976_v57 = vadd.f32 %v13896_v1, %v11436_v38  ;;  %v6796_v27 = vpop.eup %6795  ;;  %v6118_v12 = vmul.f32 -1.442695, %v11613_v59  ;;  %v3844_v18 = vadd.f32 %v3828_v28, %v13897_v39  ;;  %v3824_v60 = vsel %vm525_vm11, %v11541_v4, %v11473_v62  ;;  %v13899_v4 = vld [vmem:[#allocation155_spill] sm:$0xff] }
 0x3ec   :  { %6809 = vpow2.f32 %v6017_v32  ;;  %v6798_v44 = vpop.eup %6797  ;;  %v6120_v56 = vmul.f32 -1.442695, %v11625_v55  ;;  %v3837_v41 = vsel %vm10166_vm15, %v3826_v49, 0.0  ;;  %v711_v17 = vadd.f32 1.0, %v6796_v27  ;;  %v13900_v32 = vld [vmem:[#allocation204_spill] sm:$0xff] }
 0x3ed   :  { %6811 = vpow2.f32 %v6119_v25  ;;  %v712_v38 = vadd.f32 1.0, %v6798_v44  ;;  %v3948_v31 = vadd.f32 %v3940_v34, %v3844_v18  ;;  %v3932_v11 = vsel %vm638_vm13, %v3914_v29, %v3918_v48  ;;  %v13901_v48 = vld [vmem:[#allocation73_spill] sm:$0xff]  ;;  %v13903_v49 = vld [vmem:[#allocation52_spill] sm:$0xff]  ;;  %v13904_v34 = vld [vmem:[#allocation206_spill] sm:$0xff] }
 0x3ee   :  { %v11656_v2 = vadd.f32 %v13898_v47, %v1975_v40  ;;  %v6121_v30 = vmul.f32 -1.442695, %v11635_v43  ;;  %6813 = vrcp.f32 %v711_v17  ;;  %v11660_v62 = vadd.f32 %v13898_v47, %v1976_v57  ;;  %v3926_v57 = vpop.permute.xlu0 %3925 }
 0x3ef   :  { %v1977_v0 = vadd.f32 %v13899_v4, %v11446_v15  ;;  %v11666_v25 = vadd.f32 %v13900_v32, %v11550_v16  ;;  %v13902_v28 = vsel %vm10113_vm12, %v13901_v48, 0.0  ;;  %v3846_v51 = vadd.f32 %v3824_v60, %v13903_v49  ;;  %v13905_v15 = vld [vmem:[#allocation158_spill] sm:$0xff] }
 0x3f0   :  { %v3183_v61 = vadd.f32 %v13902_v28, %v11553_v42  ;;  %6815 = vrcp.f32 %v712_v38  ;;  %v6800_v40 = vpop.eup %6799  ;;  %v3845_v20 = vadd.f32 %v3837_v41, %v13904_v34  ;;  %v3947_v1 = vadd.f32 %v3932_v11, %v3843_v50  ;;  %v13908_v38 = vld [vmem:[#allocation222_spill] sm:$0xff] }
 0x3f1   :  { %6817 = vpow2.f32 %v6118_v12  ;;  %v13906_v16 = vsel %vm10198_vm1, %v13905_v15, 0.0  ;;  %v6802_v39 = vpop.eup %6801  ;;  %v11681_v18 = vadd.f32 %v13907_v58, %v3948_v31  ;;  %v1367_v42 = vadd.f32 1.0, %v6800_v40 }
 0x3f2   :  { %v1978_v27 = vadd.f32 %v13906_v16, %v11449_v8  ;;  %6819 = vpow2.f32 %v6120_v56  ;;  %v6040_v60 = vmul.f32 -1.442695, %v11656_v2  ;;  %v6804_v44 = vpop.eup %6803  ;;  %v11685_v12 = vmul.f32 %v6802_v39, %v11464_v7  ;;  %v13912_v16 = vld [vmem:[#allocation128_spill] sm:$0xff] }
 0x3f3   :  { %6821 = vpow2.f32 %v6121_v30  ;;  %v6041_v50 = vmul.f32 -1.442695, %v11660_v62  ;;  %v11689_v41 = vadd.f32 %v13898_v47, %v1977_v0  ;;  %v6806_v17 = vpop.eup %6805  ;;  %v11692_v8 = vmul.f32 %v6804_v44, %v11485_v54  ;;  %v13909_v54 = vld [vmem:[#allocation215_spill] sm:$0xff] }
 0x3f4   :  { %6823 = vrcp.f32 %v1367_v42  ;;  %v3934_v56 = vsel %vm638_vm13, %v3926_v57, %v3914_v29  ;;  %v2635_v31 = vadd.f32 %v13908_v38, %v11479_v14  ;;  %v6808_v11 = vpop.eup %6807  ;;  %v1368_v30 = vadd.f32 1.0, %v6806_v17 }
 0x3f5   :  { %v11699_v7 = vadd.f32 %v13907_v58, %v3947_v1  ;;  %v11702_v4 = vadd.f32 %v13898_v47, %v1978_v27  ;;  %v13910_v0 = vsel %vm10154_vm14, %v13909_v54, 0.0  ;;  %v4143_v29 = vadd.f32 %v11692_v8, %v11685_v12  ;;  %v13911_v1 = vld [vmem:[#allocation122_spill] sm:$0xff]  ;;  %v13916_v54 = vld [vmem:[#allocation119_spill] sm:$0xff] }
 0x3f6   :  { %v2636_v32 = vadd.f32 %v13910_v0, %v11488_v45  ;;  %v6810_v48 = vpop.eup %6809  ;;  %v6123_v14 = vmul.f32 -1.442695, %v11681_v18  ;;  %v1369_v28 = vadd.f32 1.0, %v6808_v11  ;;  %6825 = vpow2.f32 %v6040_v60 }
 0x3f7   :  { %v11712_v49 = vpop.eup %6811  ;;  %6827 = vrcp.f32 %v1368_v30  ;;  %v1370_v40 = vadd.f32 1.0, %v6810_v48  ;;  %v3928_v47 = vsel %vm638_vm13, %v11605_v53, %v3926_v57  ;;  %v3942_v34 = vsel %vm10198_vm1, %v3934_v56, 0.0  ;;  %4144 = vadd.xlane.f32.xlu0 %v4143_v29  ;;  %v13913_v53 = vld [vmem:[#allocation40_spill] sm:$0xff]  ;;  %v13917_v29 = vld [vmem:[#allocation50_spill] sm:$0xff] }
 0x3f8   :  { %6829 = vrcp.f32 %v1369_v28  ;;  %v6042_v45 = vmul.f32 -1.442695, %v11689_v41  ;;  %v11721_v15 = vadd.f32 %v13911_v1, %v2635_v31  ;;  %v2637_v27 = vadd.f32 %v13912_v16, %v11502_v23  ;;  %v6814_v39 = vpop.eup %6813  ;;  %v13915_v23 = vld [vmem:[#allocation142_spill] sm:$0xff] }
 0x3f9   :  { %v6122_v42 = vmul.f32 -1.442695, %v11699_v7  ;;  %6831 = vrcp.f32 %v1370_v40  ;;  %v11727_v60 = vadd.f32 %v13911_v1, %v2636_v32  ;;  %v13914_v57 = vsel %vm10198_vm1, %v13913_v53, 0.0 }
 0x3fa   :  { %v2638_v44 = vadd.f32 %v13914_v57, %v11505_v24  ;;  %v6816_v17 = vpop.eup %6815  ;;  %v11735_v56 = vmul.f32 %v6814_v39, %v11522_v9  ;;  %v3949_v38 = vadd.f32 %v3928_v47, %v3845_v20  ;;  %v3950_v31 = vadd.f32 %v3942_v34, %v3846_v51  ;;  %v13918_v9 = vld [vmem:[#allocation209_spill] sm:$0xff] }
 0x3fb   :  { %v3287_v11 = vadd.f32 %v13915_v23, %v3183_v61  ;;  %v11738_v30 = vpop.eup %6817  ;;  %v3184_v0 = vadd.f32 %v13916_v54, %v11558_v26  ;;  %v11743_v32 = vmul.f32 %v6816_v17, %v11527_v21  ;;  %6833 = vpow2.f32 %v6123_v14  ;;  %v13919_v34 = vld [vmem:[#allocation45_spill] sm:$0xff]  ;;  %v13925_v17 = vld [vmem:[#allocation164_spill] sm:$0xff] }
 0x3fc   :  { %v6043_v48 = vmul.f32 -1.442695, %v11702_v4  ;;  %v11746_v24 = vpop.eup %6819  ;;  %v3277_v51 = vsel %vm638_vm13, %v13918_v9, %v13917_v29  ;;  %6835 = vpow2.f32 %v6041_v50  ;;  %v6070_v61 = vmul.f32 -1.442695, %v11721_v15 }
 0x3fd   :  { %v11754_v20 = vadd.f32 %v13911_v1, %v2637_v27  ;;  %v11756_v26 = vpop.eup %6821  ;;  %v4082_v21 = vadd.f32 %v11743_v32, %v11735_v56  ;;  %6837 = vpow2.f32 %v6042_v45  ;;  %v6071_v14 = vmul.f32 -1.442695, %v11727_v60  ;;  %v13920_v45 = vld [vmem:[#allocation115_spill] sm:$0xff] }
 0x3fe   :  { %v11762_v28 = vadd.f32 %v13911_v1, %v2638_v44  ;;  %v6824_v40 = vpop.eup %6823  ;;  %6839 = vpow2.f32 %v6122_v42  ;;  %v11765_v50 = vadd.f32 %v13907_v58, %v3949_v38  ;;  %v11768_v47 = vadd.f32 %v13907_v58, %v3950_v31  ;;  %v13922_v1 = vld [vmem:[#allocation87_spill] sm:$0xff]  ;;  %v13923_v42 = vld [vmem:[#allocation221_spill] sm:$0xff] }
 0x3ff   :  { %v11771_v16 = vadd.f32 %v13919_v34, %v3287_v11  ;;  %v13921_v27 = vsel %vm10166_vm15, %v13920_v45, 0.0  ;;  %v3186_v53 = vadd.f32 %v13922_v1, %v11666_v25  ;;  %4083 = vadd.xlane.f32.xlu1 %v4082_v21  ;;  %6841 = vpow2.f32 %v6043_v48  ;;  %v13927_v45 = vld [vmem:[#allocation60_spill] sm:$0xff] }
 0x400   :  { %v3185_v39 = vadd.f32 %v13921_v27, %v11588_v37  ;;  %v13924_v57 = vsel %vm10154_vm14, %v13923_v42, 0.0  ;;  %v6826_v44 = vpop.eup %6825  ;;  %v3271_v38 = vsel %vm638_vm13, %v13925_v17, %v13918_v9  ;;  %v11789_v36 = vmul.f32 %v6824_v40, %v11573_v63  ;;  %v13926_v9 = vld [vmem:[#allocation201_spill] sm:$0xff]  ;;  %v13928_v27 = vld [vmem:[#allocation104_spill] sm:$0xff] }
 0x401   :  { %v3288_v58 = vadd.f32 %v13924_v57, %v3184_v0  ;;  %6843 = vpow2.f32 %v6070_v61  ;;  %v6072_v37 = vmul.f32 -1.442695, %v11754_v20  ;;  %v6828_v25 = vpop.eup %6827  ;;  %v3282_v31 = vsel %vm10198_vm1, %v3277_v51, 0.0  ;;  %v13929_v42 = vld [vmem:[#allocation21_spill] sm:$0xff]  ;;  %v13930_v57 = vld [vmem:[#allocation210_spill] sm:$0xff] }
 0x402   :  { %v2023_v19 = vadd.f32 1.0, %v6826_v44  ;;  %6845 = vpow2.f32 %v6071_v14  ;;  %v6073_v23 = vmul.f32 -1.442695, %v11762_v28  ;;  %v6830_v11 = vpop.eup %6829  ;;  %v11796_v54 = vmul.f32 %v6828_v25, %v11582_v35 }
 0x403   :  { %v6124_v0 = vmul.f32 -1.442695, %v11765_v50  ;;  %v6125_v63 = vmul.f32 -1.442695, %v11768_v47  ;;  %v6092_v48 = vmul.f32 -1.442695, %v11771_v16  ;;  %v6832_v29 = vpop.eup %6831  ;;  %4147 = vadd.xlane.f32.xlu1 %v13926_v9  ;;  %v11803_v52 = vadd.f32 %v13919_v34, %v3288_v58 }
 0x404   :  { %6847 = vrcp.f32 %v2023_v19  ;;  %v3289_v51 = vadd.f32 %v3271_v38, %v3185_v39  ;;  %v3290_v61 = vadd.f32 %v3282_v31, %v3186_v53  ;;  %v4088_v21 = vadd.f32 %v11796_v54, %v11789_v36  ;;  %v13931_v39 = vld [vmem:[#allocation202_spill] sm:$0xff] }
 0x405   :  { %v11808_v35 = vmul.f32 %v6830_v11, %v11601_v5  ;;  %v11811_v14 = vmul.f32 %v6832_v29, %v11609_v33  ;;  %6849 = vpow2.f32 %v6072_v37  ;;  %v11813_v40 = vpop.eup %6833  ;;  %v4091_v1 = vadd.f32 %v13928_v27, %v13927_v45  ;;  %v13932_v53 = vld [vmem:[#allocation218_spill] sm:$0xff] }
 0x406   :  { %v11819_v58 = vmul.f32 %v13930_v57, %v13929_v42  ;;  %v11823_v44 = vmul.f32 %v13932_v53, %v13931_v39  ;;  %6851 = vpow2.f32 %v6073_v23  ;;  %v6836_v5 = vpop.eup %6835  ;;  %4089 = vadd.xlane.f32.xlu0 %v4088_v21  ;;  %v6093_v38 = vmul.f32 -1.442695, %v11803_v52  ;;  %v13934_v29 = vld [vmem:[#allocation126_spill] sm:$0xff] }
 0x407   :  { %6853 = vpow2.f32 %v6092_v48  ;;  %v6838_v33 = vpop.eup %6837  ;;  %4092 = vadd.xlane.f32.xlu1 %v4091_v1  ;;  %v2024_v17 = vadd.f32 1.0, %v6836_v5  ;;  %v11827_v37 = vadd.f32 %v13919_v34, %v3289_v51  ;;  %v4149_v31 = vadd.f32 %v11811_v14, %v11808_v35  ;;  %v13936_v42 = vld [vmem:[#allocation70_spill] sm:$0xff] }
 0x408   :  { %6855 = vpow2.f32 %v6124_v0  ;;  %v6840_v25 = vpop.eup %6839  ;;  %v2025_v19 = vadd.f32 1.0, %v6838_v33  ;;  %v11832_v23 = vadd.f32 %v13919_v34, %v3290_v61  ;;  %v4152_v48 = vadd.f32 %v11823_v44, %v11819_v58  ;;  %v13933_v0 = vld [vmem:[#allocation203_spill] sm:$0xff] }
 0x409   :  { %6857 = vpow2.f32 %v6125_v63  ;;  %v6842_v11 = vpop.eup %6841  ;;  %v11838_v9 = vmul.f32 %v13934_v29, %v13933_v0  ;;  %v13935_v63 = vld [vmem:[#allocation99_spill] sm:$0xff]  ;;  %v6094_v61 = vmul.f32 -1.442695, %v11827_v37 }
 0x40a   :  { %6859 = vrcp.f32 %v2024_v17  ;;  %4150 = vadd.xlane.f32.xlu0 %v4149_v31  ;;  %v2026_v21 = vadd.f32 1.0, %v6842_v11  ;;  %v11842_v57 = vmul.f32 %v13936_v42, %v13935_v63  ;;  %v6095_v53 = vmul.f32 -1.442695, %v11832_v23  ;;  %v13937_v17 = vld [vmem:[#allocation16_spill] sm:$0xff]  ;;  %v13938_v31 = vld [vmem:[#allocation125_spill] sm:$0xff] }
 0x40b   :  { %v6844_v51 = vpop.eup %6843  ;;  %6861 = vrcp.f32 %v2025_v19  ;;  %4153 = vadd.xlane.f32.xlu1 %v4152_v48  ;;  %v11850_v19 = vmul.f32 %v13938_v31, %v13937_v17  ;;  %v13939_v11 = vld [vmem:[#allocation17_spill] sm:$0xff]  ;;  %v13940_v48 = vld [vmem:[#allocation167_spill] sm:$0xff]  ;;  %v3991_v63 = vadd.f32 1.0, %v11738_v30 }
 0x40c   :  { %v6846_v1 = vpop.eup %6845  ;;  %v2683_v34 = vadd.f32 1.0, %v6844_v51  ;;  %6863 = vpow2.f32 %v6093_v38  ;;  %v4097_v33 = vadd.f32 %v11842_v57, %v11838_v9  ;;  %v11854_v0 = vmul.f32 %v13940_v48, %v13939_v11 }
 0x40d   :  { %6865 = vrcp.f32 %v2026_v21  ;;  %v2684_v39 = vadd.f32 1.0, %v6846_v1  ;;  %v3342_v51 = vadd.f32 1.0, %v11417_v10  ;;  %v3996_v48 = vadd.f32 1.0, %v11813_v40 }
 0x40e   :  { %v6848_v5 = vpop.eup %6847  ;;  %6867 = vrcp.f32 %v2683_v34  ;;  %v4158_v31 = vadd.f32 %v11854_v0, %v11850_v19 }
 0x40f   :  { %v6850_v38 = vpop.eup %6849  ;;  %6869 = vrcp.f32 %v2684_v39  ;;  %4098 = vadd.xlane.f32.xlu1 %v4097_v33  ;;  %v11861_v39 = vmul.f32 %v6848_v5, %v11656_v2  ;;  %v3995_v33 = vadd.f32 1.0, %v6840_v25 }
 0x410   :  { %v6852_v29 = vpop.eup %6851  ;;  %v2685_v21 = vadd.f32 1.0, %v6850_v38  ;;  %6871 = vpow2.f32 %v6094_v61 }
 0x411   :  { %v6854_v1 = vpop.eup %6853  ;;  %v2686_v42 = vadd.f32 1.0, %v6852_v29  ;;  %6873 = vpow2.f32 %v6095_v53 }
 0x412   :  { %v6856_v17 = vpop.eup %6855  ;;  %6875 = vrcp.f32 %v2685_v21  ;;  %v3335_v11 = vadd.f32 1.0, %v6854_v1 }
 0x413   :  { %v6858_v34 = vpop.eup %6857  ;;  %6877 = vrcp.f32 %v2686_v42  ;;  %4159 = vadd.xlane.f32.xlu1 %v4158_v31  ;;  %v3997_v29 = vadd.f32 1.0, %v6856_v17  ;;  %v13941_v42 = vld [vmem:[#allocation102_spill] sm:$0xff] }
 0x414   :  { %v6860_v10 = vpop.eup %6859  ;;  %6879 = vrcp.f32 %v3342_v51  ;;  %v3998_v21 = vadd.f32 1.0, %v6858_v34  ;;  %v13942_v17 = vld [vmem:[#allocation42_spill] sm:$0xff] }
 0x415   :  { %v6862_v61 = vpop.eup %6861  ;;  %6881 = vrcp.f32 %v3991_v63  ;;  %v11864_v30 = vmul.f32 %v6860_v10, %v11660_v62  ;;  %v11880_v31 = vmul.f32 %v13942_v17, %v13941_v42  ;;  %v13946_v42 = vld [vmem:[#allocation223_spill] sm:$0xff] }
 0x416   :  { %v6864_v53 = vpop.eup %6863  ;;  %6883 = vrcp.f32 %v3335_v11  ;;  %v11870_v5 = vmul.f32 %v6862_v61, %v11689_v41 }
 0x417   :  { %v6866_v38 = vpop.eup %6865  ;;  %v4094_v2 = vadd.f32 %v11864_v30, %v11861_v39  ;;  %v3336_v51 = vadd.f32 1.0, %v6864_v53  ;;  %6885 = vrcp.f32 %v3995_v33  ;;  %v7026_v53 = vmov 0.0|0.0  }
 0x418   :  { %v6868_v25 = vpop.eup %6867  ;;  %v11873_v1 = vmul.f32 %v6866_v38, %v11702_v4  ;;  %6307 = vmatprep.subr.bf16.mxu0 %v7026_v53  ;;  %v13943_v38 = vld [vmem:[#allocation172_spill] sm:$0xff] }
 0x419   :  { %v6870_v62 = vpop.eup %6869  ;;  %4095 = vadd.xlane.f32.xlu0 %v4094_v2  ;;  %v11876_v40 = vmul.f32 %v6868_v25, %v11721_v15  ;;  %6887 = vrcp.f32 %v3336_v51  ;;  %v3992_v15 = vadd.f32 1.0, %v11712_v49  ;;  %v3994_v25 = vadd.f32 1.0, %v11756_v26 }
 0x41a   :  { %v6872_v63 = vpop.eup %6871  ;;  %6889 = vrcp.f32 %v3996_v48  ;;  %v11883_v41 = vmul.f32 %v6870_v62, %v11727_v60  ;;  %v4155_v4 = vadd.f32 %v11873_v1, %v11870_v5  ;;  %v3993_v60 = vadd.f32 1.0, %v11746_v24 }
 0x41b   :  { %v6874_v11 = vpop.eup %6873  ;;  %6891 = vrcp.f32 %v3997_v29  ;;  %v3337_v34 = vadd.f32 1.0, %v6872_v63  ;;  %v13944_v29 = vld [vmem:[#allocation124_spill] sm:$0xff]  ;;  %v13945_v63 = vld [vmem:[#allocation75_spill] sm:$0xff] }
 0x41c   :  { %v6876_v10 = vpop.eup %6875  ;;  %6893 = vrcp.f32 %v3998_v21  ;;  %v4103_v33 = vadd.f32 %v11883_v41, %v11876_v40  ;;  %v3338_v61 = vadd.f32 1.0, %v6874_v11  ;;  %v11894_v2 = vmul.f32 %v13944_v29, %v13943_v38  ;;  %v13947_v11 = vld [vmem:[#allocation207_spill] sm:$0xff] }
 0x41d   :  { %v6878_v48 = vpop.eup %6877  ;;  %4156 = vadd.xlane.f32.xlu0 %v4155_v4  ;;  %v11897_v51 = vmul.f32 %v6876_v10, %v11754_v20  ;;  %6895 = vrcp.f32 %v3337_v34  ;;  %v11907_v17 = vmul.f32 %v13946_v42, %v13945_v63  ;;  %v13948_v20 = vld [vmem:[#allocation107_spill] sm:$0xff] }
 0x41e   :  { %v6880_v49 = vpop.eup %6879  ;;  %4104 = vadd.xlane.f32.xlu1 %v4103_v33  ;;  %v11901_v21 = vmul.f32 %v6878_v48, %v11762_v28  ;;  %6897 = vrcp.f32 %v3338_v61  ;;  %v4100_v24 = vadd.f32 %v11894_v2, %v11880_v31  ;;  %v11911_v4 = vmul.f32 %v13948_v20, %v13947_v11  ;;  %v13949_v28 = vld [vmem:[#allocation205_spill] sm:$0xff]  ;;  %v13950_v61 = vld [vmem:[#allocation24_spill] sm:$0xff] }
 0x41f   :  { %v6882_v62 = vpop.eup %6881  ;;  %6899 = vrcp.f32 %v3992_v15  ;;  %v11917_v10 = vmul.f32 %v11454_v6, %v13949_v28  ;;  %v11921_v48 = vmul.f32 %v11427_v22, %v13950_v61  ;;  %v13952_v22 = vld [vmem:[#allocation114_spill] sm:$0xff] }
 0x420   :  { %v6884_v34 = vpop.eup %6883  ;;  %v4164_v26 = vadd.f32 %v11901_v21, %v11897_v51  ;;  %6901 = vrcp.f32 %v3993_v60  ;;  %v4161_v15 = vadd.f32 %v11911_v4, %v11907_v17  ;;  %v11938_v42 = vmul.f32 %v6880_v49, %v13952_v22 }
 0x421   :  { %4101 = vadd.xlane.f32.xlu0 %v4100_v24  ;;  %v6886_v33 = vpop.eup %6885  ;;  %6903 = vrcp.f32 %v3994_v25  ;;  %v11926_v29 = vmul.f32 %v6884_v34, %v11771_v16  ;;  %v4109_v60 = vadd.f32 %v11921_v48, %v11917_v10  ;;  %v13951_v25 = vld [vmem:[#allocation106_spill] sm:$0xff] }
 0x422   :  { %4165 = vadd.xlane.f32.xlu1 %v4164_v26  ;;  %v11935_v24 = vmul.f32 %v11515_v13, %v13951_v25  ;;  %v11941_v16 = vmul.f32 %v6886_v33, %v11699_v7 }
 0x423   :  { %v6888_v38 = vpop.eup %6887 }
 0x424   :  { %v6890_v63 = vpop.eup %6889  ;;  %v11929_v6 = vmul.f32 %v6888_v38, %v11803_v52  ;;  %13953 = vst [vmem:[#allocation179_spill] sm:$0xff] %v11941_v16  ;;  %v4170_v13 = vadd.f32 %v11938_v42, %v11935_v24 }
 0x425   :  { %v6892_v11 = vpop.eup %6891  ;;  %4162 = vadd.xlane.f32.xlu0 %v4161_v15  ;;  %v11951_v49 = vmul.f32 %v6890_v63, %v11681_v18  ;;  %v11967_v63 = vmul.f32 %v6882_v62, %v11613_v59  ;;  %v13961_v62 = vmov 0.0  }
 0x426   :  { %v6894_v20 = vpop.eup %6893  ;;  %4110 = vadd.xlane.f32.xlu1 %v4109_v60  ;;  %v4106_v52 = vadd.f32 %v11929_v6, %v11926_v29  ;;  %v11959_v38 = vmul.f32 %v6892_v11, %v11765_v50  ;;  %6236 = vmatprep.mubr.msk.f32.mxu0 %vm7027_vm2, %v13961_v62 }
 0x427   :  { %v6896_v34 = vpop.eup %6895  ;;  %13954 = vst [vmem:[#allocation47_spill] sm:$0xff] %v11951_v49  ;;  %v4115_v33 = vadd.f32 %v11951_v49, %v11941_v16  ;;  %13957 = vst [vmem:[#allocation224_spill] sm:$0xff] %v11967_v63 }
 0x428   :  { %v6898_v26 = vpop.eup %6897  ;;  %v11946_v28 = vmul.f32 %v6896_v34, %v11827_v37  ;;  %13955 = vst [vmem:[#allocation105_spill] sm:$0xff] %v11959_v38  ;;  %v11962_v37 = vmul.f32 %v6894_v20, %v11768_v47 }
 0x429   :  { %4107 = vadd.xlane.f32.xlu0 %v4106_v52  ;;  %v11954_v61 = vmul.f32 %v6898_v26, %v11832_v23  ;;  %v6900_v7 = vpop.eup %6899 }
 0x42a   :  { %4171 = vadd.xlane.f32.xlu1 %v4170_v13  ;;  %13956 = vst [vmem:[#allocation71_spill] sm:$0xff] %v11962_v37  ;;  %v6902_v15 = vpop.eup %6901  ;;  %v11970_v60 = vmul.f32 %v6900_v7, %v11598_v46  ;;  %v4176_v50 = vadd.f32 %v11962_v37, %v11959_v38  ;;  %v11987_v46 = vld [vmem:[%s12339_s3] sm:$0xff] }
 0x42b   :  { %v4167_v18 = vadd.f32 %v11954_v61, %v11946_v28  ;;  %v6904_v23 = vpop.eup %6903  ;;  %v11977_v25 = vmul.f32 %v6902_v15, %v11625_v55  ;;  %v13962_v55 = vmov 2  }
 0x42c   :  { %13958 = vst [vmem:[#allocation82_spill] sm:$0xff] %v11970_v60  ;;  %v4112_v47 = vadd.f32 %v11970_v60, %v11967_v63  ;;  %v11980_v22 = vmul.f32 %v6904_v23, %v11635_v43  ;;  %v4087_v43 = vpop.xlane.xlu0 %4086 }
 0x42d   :  { %4168 = vadd.xlane.f32.xlu0 %v4167_v18  ;;  %13959 = vst [vmem:[#allocation74_spill] sm:$0xff] %v11977_v25  ;;  %v4119_v52 = vmul.f32 0.00390625, %v4087_v43 }
 0x42e   :  { %4116 = vadd.xlane.f32.xlu1 %v4115_v33  ;;  %13960 = vst [vmem:[#allocation80_spill] sm:$0xff] %v11980_v22  ;;  %v4173_v59 = vadd.f32 %v11980_v22, %v11977_v25 }
 0x42f   :  { %v4132_v15 = vsel %vm4130_vm3, %v4119_v52, 0.0 }
 0x431   :  { %4113 = vadd.xlane.f32.xlu0 %v4112_v47 }
 0x432   :  { %4177 = vadd.xlane.f32.xlu1 %v4176_v50 }
 0x435   :  { %4174 = vadd.xlane.f32.xlu0 %v4173_v59 }
 0x443   :  { %4326 = vperm.xlu1 %6500, %v4206_v3  }
 0x44b   :  { %4219 = vperm.xlu0 %6499, %v11987_v46  }
 0x44f   :  { %6501 = vset.pattern.permute.xlu0 %v13962_v55 }
 0x484   :  { %v4145_v11 = vpop.xlane.xlu0 %4144 }
 0x485   :  { %v4179_v26 = vmul.f32 0.00390625, %v4145_v11 }
 0x48c   :  { %v4084_v20 = vpop.xlane.xlu1 %4083 }
 0x48d   :  { %v4118_v34 = vmul.f32 0.00390625, %v4084_v20 }
 0x48f   :  { %v4131_v13 = vsel %vm4130_vm3, %v4118_v34, 0.0 }
 0x490   :  { %v4148_v7 = vpop.xlane.xlu1 %4147  ;;  %v4192_v18 = vsel %vm4191_vm4, %v4179_v26, %v4131_v13 }
 0x491   :  { %v4180_v33 = vmul.f32 0.00390625, %v4148_v7 }
 0x493   :  { %v4090_v23 = vpop.xlane.xlu0 %4089  ;;  %v4193_v50 = vsel %vm4191_vm4, %v4180_v33, %v4132_v15 }
 0x494   :  { %v6308_v47 = vpack.c.bf16 %v4193_v50, %v4192_v18  ;;  %v4093_v59 = vpop.xlane.xlu1 %4092  ;;  %v4120_v55 = vmul.f32 0.00390625, %v4090_v23 }
 0x495   :  { %v4121_v43 = vmul.f32 0.00390625, %v4093_v59 }
 0x496   :  { %6309 = vmatpush3.bf16.msra.mxu0 %v6308_v47  ;;  %v4133_v52 = vsel %vm4130_vm3, %v4120_v55, 0.0 }
 0x497   :  { %v4151_v11 = vpop.xlane.xlu0 %4150  ;;  %6310 = vmatprep.subr.bf16.mxu0 %v7026_v53  ;;  %v4134_v26 = vsel %vm4130_vm3, %v4121_v43, 0.0 }
 0x498   :  { %v4181_v20 = vmul.f32 0.00390625, %v4151_v11  ;;  %v4154_v34 = vpop.xlane.xlu1 %4153 }
 0x499   :  { %v4182_v7 = vmul.f32 0.00390625, %v4154_v34 }
 0x49a   :  { %v4194_v13 = vsel %vm4191_vm4, %v4181_v20, %v4133_v52 }
 0x49b   :  { %v4195_v33 = vsel %vm4191_vm4, %v4182_v7, %v4134_v26 }
 0x49c   :  { %v6311_v15 = vpack.c.bf16 %v4195_v33, %v4194_v13  ;;  %v4099_v18 = vpop.xlane.xlu1 %4098 }
 0x49d   :  { %v4123_v47 = vmul.f32 0.00390625, %v4099_v18 }
 0x49e   :  { %6312 = vmatpush3.bf16.msra.mxu0 %v6311_v15 }
 0x49f   :  { %6313 = vmatprep.subr.bf16.mxu0 %v7026_v53  ;;  %v4136_v43 = vsel %vm4130_vm3, %v4123_v47, 0.0 }
 0x4a0   :  { %v4160_v23 = vpop.xlane.xlu1 %4159 }
 0x4a1   :  { %v4184_v59 = vmul.f32 0.00390625, %v4160_v23 }
 0x4a3   :  { %v4197_v20 = vsel %vm4191_vm4, %v4184_v59, %v4136_v43 }
 0x4a6   :  { %v4096_v50 = vpop.xlane.xlu0 %4095 }
 0x4a7   :  { %v4122_v11 = vmul.f32 0.00390625, %v4096_v50 }
 0x4a9   :  { %v4135_v7 = vsel %vm4130_vm3, %v4122_v11, 0.0 }
 0x4aa   :  { %v4157_v55 = vpop.xlane.xlu0 %4156 }
 0x4ab   :  { %v4183_v34 = vmul.f32 0.00390625, %v4157_v55  ;;  %v4105_v52 = vpop.xlane.xlu1 %4104 }
 0x4ac   :  { %v4125_v15 = vmul.f32 0.00390625, %v4105_v52 }
 0x4ad   :  { %v4196_v26 = vsel %vm4191_vm4, %v4183_v34, %v4135_v7 }
 0x4ae   :  { %v4102_v13 = vpop.xlane.xlu0 %4101  ;;  %v6314_v33 = vpack.c.bf16 %v4197_v20, %v4196_v26  ;;  %v4138_v59 = vsel %vm4130_vm3, %v4125_v15, 0.0 }
 0x4af   :  { %v4166_v18 = vpop.xlane.xlu1 %4165  ;;  %v4124_v23 = vmul.f32 0.00390625, %v4102_v13 }
 0x4b0   :  { %6315 = vmatpush3.bf16.msra.mxu0 %v6314_v33  ;;  %v4186_v50 = vmul.f32 0.00390625, %v4166_v18 }
 0x4b1   :  { %6316 = vmatprep.subr.bf16.mxu0 %v7026_v53  ;;  %v4137_v34 = vsel %vm4130_vm3, %v4124_v23, 0.0 }
 0x4b2   :  { %v4163_v47 = vpop.xlane.xlu0 %4162  ;;  %v4199_v11 = vsel %vm4191_vm4, %v4186_v50, %v4138_v59 }
 0x4b3   :  { %v4185_v55 = vmul.f32 0.00390625, %v4163_v47  ;;  %v4111_v43 = vpop.xlane.xlu1 %4110 }
 0x4b4   :  { %v4127_v26 = vmul.f32 0.00390625, %v4111_v43 }
 0x4b5   :  { %v4198_v20 = vsel %vm4191_vm4, %v4185_v55, %v4137_v34 }
 0x4b6   :  { %v4108_v52 = vpop.xlane.xlu0 %4107  ;;  %v6317_v7 = vpack.c.bf16 %v4199_v11, %v4198_v20  ;;  %v4140_v50 = vsel %vm4130_vm3, %v4127_v26, 0.0 }
 0x4b7   :  { %v4172_v13 = vpop.xlane.xlu1 %4171  ;;  %v4126_v33 = vmul.f32 0.00390625, %v4108_v52 }
 0x4b8   :  { %6318 = vmatpush3.bf16.msra.mxu0 %v6317_v7  ;;  %v4188_v18 = vmul.f32 0.00390625, %v4172_v13 }
 0x4b9   :  { %6319 = vmatprep.subr.bf16.mxu0 %v7026_v53  ;;  %v4139_v55 = vsel %vm4130_vm3, %v4126_v33, 0.0 }
 0x4ba   :  { %v4169_v15 = vpop.xlane.xlu0 %4168  ;;  %v4201_v23 = vsel %vm4191_vm4, %v4188_v18, %v4140_v50 }
 0x4bb   :  { %v4187_v47 = vmul.f32 0.00390625, %v4169_v15  ;;  %v4117_v59 = vpop.xlane.xlu1 %4116 }
 0x4bc   :  { %v4129_v20 = vmul.f32 0.00390625, %v4117_v59  ;;  %v4303_v59 = vld [vmem:[%s12341_s5] sm:$0xff] }
 0x4bd   :  { %v4200_v11 = vsel %vm4191_vm4, %v4187_v47, %v4139_v55  ;;  %6241 = vmatprep.mubr.msk.f32.mxu1 %vm4374_vm6, %v4303_v59  ;;  %v4207_v55 = vld [vmem:[%s12339_s3 + $0x18] sm:$0xff] }
 0x4be   :  { %v4114_v43 = vpop.xlane.xlu0 %4113  ;;  %v6320_v34 = vpack.c.bf16 %v4201_v23, %v4200_v11  ;;  %v4142_v18 = vsel %vm4130_vm3, %v4129_v20, 0.0  ;;  %v4212_v11 = vld [vmem:[%s12339_s3 + $0x40] sm:$0xff]  ;;  %4331 = vperm.xlu1 %6500, %v4207_v55   ;;  %v13963_v20 = vmov 0  }
 0x4bf   :  { %v4178_v52 = vpop.xlane.xlu1 %4177  ;;  %v4128_v7 = vmul.f32 0.00390625, %v4114_v43  ;;  %4356 = vperm.xlu0 %6501, %v4212_v11   ;;  %v4215_v43 = vld [vmem:[%s12339_s3 + $0x58] sm:$0xff] }
 0x4c0   :  { %6321 = vmatpush3.bf16.msra.mxu0 %v6320_v34  ;;  %v4190_v13 = vmul.f32 0.00390625, %v4178_v52  ;;  %v12071_v34 = vld [vmem:[%s12339_s3 + $0x8] sm:$0xff]  ;;  %v4208_v52 = vld [vmem:[%s12339_s3 + $0x20] sm:$0xff] }
 0x4c1   :  { %6322 = vmatprep.subr.bf16.mxu0 %v7026_v53  ;;  %v4141_v50 = vsel %vm4130_vm3, %v4128_v7, 0.0  ;;  %v4216_v53 = vld [vmem:[%s12340_s4] sm:$0xff]  ;;  %v4209_v7 = vld [vmem:[%s12339_s3 + $0x28] sm:$0xff] }
 0x4c2   :  { %v4175_v26 = vpop.xlane.xlu0 %4174  ;;  %v4203_v33 = vsel %vm4191_vm4, %v4190_v13, %v4142_v18  ;;  %4316 = vperm.xlu1 %6500, %v11987_v46   ;;  %v4210_v13 = vld [vmem:[%s12339_s3 + $0x30] sm:$0xff]  ;;  %v4213_v18 = vld [vmem:[%s12339_s3 + $0x48] sm:$0xff] }
 0x4c3   :  { %v4189_v15 = vmul.f32 0.00390625, %v4175_v26  ;;  %4371 = vperm.xlu0 %6501, %v4215_v43   ;;  %v4211_v26 = vld [vmem:[%s12339_s3 + $0x38] sm:$0xff] }
 0x4c5   :  { %v4202_v47 = vsel %vm4191_vm4, %v4189_v15, %v4141_v50  ;;  %v4214_v15 = vld [vmem:[%s12339_s3 + $0x50] sm:$0xff] }
 0x4c6   :  { %v6323_v23 = vpack.c.bf16 %v4203_v33, %v4202_v47  ;;  %4321 = vperm.xlu1 %6500, %v12071_v34   ;;  %v13964_v33 = vmov 1  }
 0x4c7   :  { %6503 = vset.pattern.permute.xlu0 %v13963_v20 }
 0x4c8   :  { %6324 = vmatpush3.bf16.msra.mxu0 %v6323_v23 }
 0x4ca   :  { %4336 = vperm.xlu1 %6500, %v4208_v52   ;;  %v4220_v50 = vpop.permute.xlu0 %4219  ;;  %v4304_v52 = vld [vmem:[%s12341_s5 + $0x8] sm:$0xff] }
 0x4cb   :  { %6237 = vmatmul.mubr.msk.f32.vlgmr.msra.gmra.mrb[24].mxu0 %vm4222_vm5, %v4216_v53 }
 0x4cc   :  { %4797 = vmatprep.mubr.f32.mxu0 %v13961_v62 }
 0x4ce   :  { %4341 = vperm.xlu1 %6500, %v4209_v7   ;;  %v4305_v7 = vld [vmem:[%s12341_s5 + $0x10] sm:$0xff] }
 0x4d2   :  { %4346 = vperm.xlu1 %6500, %v4210_v13   ;;  %v4306_v13 = vld [vmem:[%s12341_s5 + $0x18] sm:$0xff] }
 0x4d6   :  { %4351 = vperm.xlu1 %6500, %v4211_v26   ;;  %v4307_v26 = vld [vmem:[%s12341_s5 + $0x20] sm:$0xff] }
 0x4da   :  { %4361 = vperm.xlu1 %6500, %v4213_v18   ;;  %v4308_v18 = vld [vmem:[%s12341_s5 + $0x28] sm:$0xff] }
 0x4de   :  { %4366 = vperm.xlu1 %6500, %v4214_v15   ;;  %v4309_v15 = vld [vmem:[%s12341_s5 + $0x30] sm:$0xff] }
 0x4e2   :  { %6502 = vset.pattern.permute.xlu1 %v13964_v33 }
 0x59e   :  { %v4292_v47 = vpop.f32.mrb[24].mxu0 }
 0x59f   :  { %v4293_v23 = vadd.f32 %v4292_v47, %v4220_v50  ;;  %v6238_v53 = vpop.f32.mrb[25].mxu0  ;;  %v4310_v50 = vld [vmem:[%s12341_s5 + $0x38] sm:$0xff]  ;;  %v4311_v47 = vld [vmem:[%s12341_s5 + $0x40] sm:$0xff] }
 0x5a0   :  { %v4313_v53 = vld [vmem:[%s12341_s5 + $0x50] sm:$0xff] }
 0x5a1   :  { %v6127_v59 = vmul.f32 -1.442695, %v4293_v23 }
 0x5a3   :  { %6905 = vpow2.f32 %v6127_v59  ;;  %v4314_v59 = vld [vmem:[%s12341_s5 + $0x58] sm:$0xff] }
 0x5ad   :  { %v6906_v3 = vpop.eup %6905 }
 0x5ae   :  { %v4299_v55 = vadd.f32 1.0, %v6906_v3  ;;  %v4327_v3 = vpop.permute.xlu1 %4326 }
 0x5b0   :  { %6907 = vrcp.f32 %v4299_v55 }
 0x5b2   :  { %v4332_v55 = vpop.permute.xlu1 %4331 }
 0x5ba   :  { %v6908_v11 = vpop.eup %6907 }
 0x5bb   :  { %v4302_v43 = vmul.f32 %v6908_v11, %v4293_v23  ;;  %v4312_v23 = vld [vmem:[%s12341_s5 + $0x48] sm:$0xff]  ;;  %v4317_v11 = vpop.permute.xlu1 %4316 }
 0x5bd   :  { %6239 = vmatprep.subr.mxu1 %v4302_v43 }
 0x5be   :  { %6240 = vmatpush3.msra.mxu1 %v4302_v43 }
 0x5bf   :  { %6242 = vmatmul.mubr.msk.f32.vlgmr.msra.gmra.mrb[24].mxu1 %vm4374_vm6, %v4304_v52  ;;  %v4322_v43 = vpop.permute.xlu1 %4321 }
 0x5c0   :  { %6244 = vmatprep.mubr.msk.f32.mxu1 %vm4374_vm6, %v4305_v7 }
 0x5c3   :  { %6245 = vmatmul.mubr.msk.f32.gmra.mrb[26].mxu1 %vm4374_vm6, %v4306_v13  ;;  %v4337_v52 = vpop.permute.xlu1 %4336 }
 0x5c4   :  { %6247 = vmatprep.mubr.msk.f32.mxu1 %vm4374_vm6, %v4307_v26 }
 0x5c7   :  { %6248 = vmatmul.mubr.msk.f32.gmra.mrb[28].mxu1 %vm4374_vm6, %v4308_v18  ;;  %v4342_v7 = vpop.permute.xlu1 %4341 }
 0x5c8   :  { %6250 = vmatprep.mubr.msk.f32.mxu1 %vm4374_vm6, %v4309_v15 }
 0x5cb   :  { %6251 = vmatmul.mubr.msk.f32.gmra.mrb[30].mxu1 %vm4374_vm6, %v4310_v50  ;;  %v4347_v50 = vpop.permute.xlu1 %4346 }
 0x5cc   :  { %6253 = vmatprep.mubr.msk.f32.mxu1 %vm4374_vm6, %v4311_v47 }
 0x5cf   :  { %6254 = vmatmul.mubr.msk.f32.gmra.mrb[32].mxu1 %vm4374_vm6, %v4312_v23  ;;  %v4352_v38 = vpop.permute.xlu1 %4351 }
 0x5d0   :  { %6256 = vmatprep.mubr.msk.f32.mxu1 %vm4374_vm6, %v4313_v53 }
 0x5d3   :  { %6257 = vmatmul.mubr.msk.f32.gmra.mrb[34].mxu1 %vm4374_vm6, %v4314_v59 }
 0x5d4   :  { %4874 = vmatprep.mubr.f32.mxu1 %v13961_v62 }
 0x692   :  { %v6243_v13 = vpop.f32.mrb[24].mxu1 }
 0x693   :  { %v4483_v26 = vadd.f32 %v6243_v13, %v4322_v43  ;;  %v4477_v18 = vpop.f32.mrb[25].mxu1 }
 0x694   :  { %v4478_v15 = vadd.f32 %v4477_v18, %v4317_v11 }
 0x695   :  { %v6141_v47 = vmul.f32 -1.442695, %v4483_v26  ;;  %v4357_v26 = vpop.permute.xlu0 %4356 }
 0x696   :  { %v6140_v23 = vmul.f32 -1.442695, %v4478_v15  ;;  %v6246_v53 = vpop.f32.mrb[26].mxu1 }
 0x697   :  { %6909 = vpow2.f32 %v6141_v47  ;;  %v4493_v49 = vadd.f32 %v6246_v53, %v4332_v55  ;;  %v4487_v16 = vpop.f32.mrb[27].mxu1 }
 0x698   :  { %6911 = vpow2.f32 %v6140_v23  ;;  %v4488_v59 = vadd.f32 %v4487_v16, %v4327_v3  ;;  %v4362_v16 = vpop.permute.xlu1 %4361 }
 0x699   :  { %v6143_v60 = vmul.f32 -1.442695, %v4493_v49 }
 0x69a   :  { %v6142_v63 = vmul.f32 -1.442695, %v4488_v59  ;;  %v6249_v37 = vpop.f32.mrb[28].mxu1 }
 0x69b   :  { %6913 = vpow2.f32 %v6143_v60  ;;  %v4503_v22 = vadd.f32 %v6249_v37, %v4342_v7  ;;  %v4497_v25 = vpop.f32.mrb[29].mxu1 }
 0x69c   :  { %6915 = vpow2.f32 %v6142_v63  ;;  %v4498_v43 = vadd.f32 %v4497_v25, %v4337_v52  ;;  %v4372_v52 = vpop.permute.xlu0 %4371 }
 0x69d   :  { %v6145_v13 = vmul.f32 -1.442695, %v4503_v22 }
 0x69e   :  { %v6144_v11 = vmul.f32 -1.442695, %v4498_v43  ;;  %v6252_v18 = vpop.f32.mrb[30].mxu1 }
 0x69f   :  { %6917 = vpow2.f32 %v6145_v13  ;;  %v4513_v15 = vadd.f32 %v6252_v18, %v4352_v38  ;;  %v4507_v47 = vpop.f32.mrb[31].mxu1  ;;  %v4367_v18 = vpop.permute.xlu1 %4366 }
 0x6a0   :  { %6919 = vpow2.f32 %v6144_v11  ;;  %v4508_v55 = vadd.f32 %v4507_v47, %v4347_v50 }
 0x6a1   :  { %v6910_v23 = vpop.eup %6909  ;;  %v6147_v49 = vmul.f32 -1.442695, %v4513_v15 }
 0x6a2   :  { %v6912_v3 = vpop.eup %6911  ;;  %v4573_v53 = vadd.f32 1.0, %v6910_v23  ;;  %v6146_v59 = vmul.f32 -1.442695, %v4508_v55  ;;  %v6255_v60 = vpop.f32.mrb[32].mxu1 }
 0x6a3   :  { %v4572_v37 = vadd.f32 1.0, %v6912_v3  ;;  %6921 = vpow2.f32 %v6147_v49  ;;  %v4523_v63 = vadd.f32 %v6255_v60, %v4362_v16  ;;  %v4517_v25 = vpop.f32.mrb[33].mxu1 }
 0x6a4   :  { %6923 = vrcp.f32 %v4573_v53  ;;  %v4518_v22 = vadd.f32 %v4517_v25, %v4357_v26 }
 0x6a5   :  { %v6914_v7 = vpop.eup %6913  ;;  %6925 = vrcp.f32 %v4572_v37  ;;  %v6149_v38 = vmul.f32 -1.442695, %v4523_v63 }
 0x6a6   :  { %v6916_v43 = vpop.eup %6915  ;;  %v4575_v13 = vadd.f32 1.0, %v6914_v7  ;;  %6927 = vpow2.f32 %v6146_v59  ;;  %v6258_v50 = vpop.f32.mrb[34].mxu1  ;;  %v6148_v11 = vmul.f32 -1.442695, %v4518_v22 }
 0x6a7   :  { %v4574_v15 = vadd.f32 1.0, %v6916_v43  ;;  %6929 = vpow2.f32 %v6149_v38  ;;  %v4527_v47 = vpop.f32.mrb[35].mxu1  ;;  %v4533_v55 = vadd.f32 %v6258_v50, %v4372_v52 }
 0x6a8   :  { %6931 = vrcp.f32 %v4575_v13  ;;  %v4528_v23 = vadd.f32 %v4527_v47, %v4367_v18 }
 0x6a9   :  { %v6918_v16 = vpop.eup %6917  ;;  %6933 = vrcp.f32 %v4574_v15  ;;  %v6151_v49 = vmul.f32 -1.442695, %v4533_v55 }
 0x6aa   :  { %v6920_v26 = vpop.eup %6919  ;;  %v4577_v3 = vadd.f32 1.0, %v6918_v16  ;;  %v6150_v53 = vmul.f32 -1.442695, %v4528_v23  ;;  %6935 = vpow2.f32 %v6148_v11 }
 0x6ab   :  { %v4576_v60 = vadd.f32 1.0, %v6920_v26  ;;  %6937 = vpow2.f32 %v6151_v49 }
 0x6ac   :  { %6939 = vrcp.f32 %v4577_v3 }
 0x6ad   :  { %v6922_v59 = vpop.eup %6921  ;;  %6941 = vrcp.f32 %v4576_v60 }
 0x6ae   :  { %v6924_v37 = vpop.eup %6923  ;;  %v4579_v63 = vadd.f32 1.0, %v6922_v59  ;;  %6943 = vpow2.f32 %v6150_v53 }
 0x6af   :  { %v6926_v25 = vpop.eup %6925  ;;  %4610 = vst.msk [vmem:[#allocation3 + $0x8] sm:$0xff] %vm4608_vm7, %v6924_v37 }
 0x6b0   :  { %v6928_v22 = vpop.eup %6927  ;;  %4609 = vst.msk [vmem:[#allocation3] sm:$0xff] %vm4608_vm7, %v6926_v25  ;;  %6945 = vrcp.f32 %v4579_v63 }
 0x6b1   :  { %v6930_v52 = vpop.eup %6929  ;;  %v4578_v7 = vadd.f32 1.0, %v6928_v22 }
 0x6b2   :  { %v6932_v38 = vpop.eup %6931  ;;  %v4581_v43 = vadd.f32 1.0, %v6930_v52 }
 0x6b3   :  { %v6934_v13 = vpop.eup %6933  ;;  %4612 = vst.msk [vmem:[#allocation3 + $0x18] sm:$0xff] %vm4608_vm7, %v6932_v38  ;;  %6947 = vrcp.f32 %v4578_v7 }
 0x6b4   :  { %v6936_v50 = vpop.eup %6935  ;;  %4611 = vst.msk [vmem:[#allocation3 + $0x10] sm:$0xff] %vm4608_vm7, %v6934_v13  ;;  %6949 = vrcp.f32 %v4581_v43 }
 0x6b5   :  { %v6938_v11 = vpop.eup %6937  ;;  %v4580_v18 = vadd.f32 1.0, %v6936_v50 }
 0x6b6   :  { %v6940_v15 = vpop.eup %6939  ;;  %v4622_v47 = vld [vmem:[#allocation3 + $0x8] sm:$0xff]  ;;  %v4583_v55 = vadd.f32 1.0, %v6938_v11  ;;  %v13965_v11 = vmov 4  }
 0x6b7   :  { %v6942_v23 = vpop.eup %6941  ;;  %4614 = vst.msk [vmem:[#allocation3 + $0x28] sm:$0xff] %vm4608_vm7, %v6940_v15  ;;  %4642 = vperm.xlu1 %6502, %v4622_v47   ;;  %v4621_v16 = vld [vmem:[#allocation3] sm:$0xff]  ;;  %6951 = vrcp.f32 %v4580_v18 }
 0x6b8   :  { %v6944_v49 = vpop.eup %6943  ;;  %4613 = vst.msk [vmem:[#allocation3 + $0x20] sm:$0xff] %vm4608_vm7, %v6942_v23  ;;  %4646 = vperm.xlu0 %6503, %v4621_v16   ;;  %6953 = vrcp.f32 %v4583_v55 }
 0x6b9   :  { %v4582_v26 = vadd.f32 1.0, %v6944_v49 }
 0x6ba   :  { %v6946_v3 = vpop.eup %6945  ;;  %v4681_v53 = vld [vmem:[#allocation3 + $0x18] sm:$0xff] }
 0x6bb   :  { %4616 = vst.msk [vmem:[#allocation3 + $0x38] sm:$0xff] %vm4608_vm7, %v6946_v3  ;;  %6955 = vrcp.f32 %v4582_v26  ;;  %6505 = vset.pattern.permute.xlu1 %v13963_v20  ;;  %v4680_v25 = vld [vmem:[#allocation3 + $0x10] sm:$0xff] }
 0x6bc   :  { %6504 = vset.pattern.permute.xlu0 %v13964_v33  ;;  %4650 = vperm.xlu1 %6505, %v4622_v47  }
 0x6bd   :  { %v6948_v60 = vpop.eup %6947  ;;  %4689 = vperm.xlu0 %6504, %v4681_v53  }
 0x6be   :  { %v6950_v59 = vpop.eup %6949  ;;  %4615 = vst.msk [vmem:[#allocation3 + $0x30] sm:$0xff] %vm4608_vm7, %v6948_v60  ;;  %v5049_v22 = vld [vmem:[#allocation3 + $0x28] sm:$0xff] }
 0x6bf   :  { %4618 = vst.msk [vmem:[#allocation3 + $0x48] sm:$0xff] %vm4608_vm7, %v6950_v59  ;;  %v5048_v38 = vld [vmem:[#allocation3 + $0x20] sm:$0xff] }
 0x6c0   :  { %4697 = vperm.xlu1 %6505, %v4681_v53   ;;  %v13966_v59 = vld [vmem:[#allocation43_spill] sm:$0xff] }
 0x6c1   :  { %v6952_v37 = vpop.eup %6951  ;;  %4637 = vperm.xlu0 %6504, %v4621_v16  }
 0x6c2   :  { %v6954_v63 = vpop.eup %6953  ;;  %4617 = vst.msk [vmem:[#allocation3 + $0x40] sm:$0xff] %vm4608_vm7, %v6952_v37  ;;  %v5265_v50 = vld [vmem:[#allocation3 + $0x38] sm:$0xff] }
 0x6c3   :  { %4620 = vst.msk [vmem:[#allocation3 + $0x58] sm:$0xff] %vm4608_vm7, %v6954_v63 }
 0x6c4   :  { %6506 = vset.pattern.permute.xlu1 %v13964_v33 }
 0x6c5   :  { %v6956_v52 = vpop.eup %6955  ;;  %4684 = vperm.xlu1 %6506, %v4680_v25   ;;  %5057 = vperm.xlu0 %6504, %v5049_v22   ;;  %v5264_v7 = vld [vmem:[#allocation3 + $0x30] sm:$0xff] }
 0x6c6   :  { %4619 = vst.msk [vmem:[#allocation3 + $0x50] sm:$0xff] %vm4608_vm7, %v6956_v52  ;;  %v5481_v43 = vld [vmem:[#allocation3 + $0x48] sm:$0xff] }
 0x6c9   :  { %6507 = vset.pattern.permute.xlu1 %v13963_v20  ;;  %5268 = vperm.xlu0 %6504, %v5264_v7   ;;  %v5480_v18 = vld [vmem:[#allocation3 + $0x40] sm:$0xff] }
 0x6ca   :  { %4693 = vperm.xlu1 %6507, %v4680_v25   ;;  %v5697_v15 = vld [vmem:[#allocation3 + $0x58] sm:$0xff]  ;;  %v13967_v25 = vld [vmem:[#allocation199_spill] sm:$0xff] }
 0x6cd   :  { %6512 = vset.pattern.permute.xlu0 %v13963_v20  ;;  %v5696_v13 = vld [vmem:[#allocation3 + $0x50] sm:$0xff] }
 0x6ce   :  { %5065 = vperm.xlu1 %6507, %v5049_v22   ;;  %5277 = vperm.xlu0 %6512, %v5264_v7  }
 0x6d2   :  { %6508 = vset.pattern.permute.xlu1 %v13964_v33  ;;  %6513 = vset.pattern.permute.xlu0 %v13964_v33 }
 0x6d3   :  { %5052 = vperm.xlu1 %6508, %v5048_v38   ;;  %5489 = vperm.xlu0 %6513, %v5481_v43  }
 0x6d7   :  { %6509 = vset.pattern.permute.xlu1 %v13963_v20  ;;  %5700 = vperm.xlu0 %6513, %v5696_v13  }
 0x6d8   :  { %5061 = vperm.xlu1 %6509, %v5048_v38  }
 0x6db   :  { %6517 = vset.pattern.permute.xlu0 %v13963_v20 }
 0x6dc   :  { %6510 = vset.pattern.permute.xlu1 %v13964_v33  ;;  %5709 = vperm.xlu0 %6517, %v5696_v13  }
 0x6dd   :  { %5273 = vperm.xlu1 %6510, %v5265_v50  }
 0x6e0   :  { %6520 = vset.pattern.permute.xlu0 %v13965_v11 }
 0x6e1   :  { %6511 = vset.pattern.permute.xlu1 %v13963_v20  ;;  %5920 = vperm.xlu0 %6520, %v12071_v34  }
 0x6e2   :  { %5281 = vperm.xlu1 %6511, %v5265_v50  }
 0x6e6   :  { %5497 = vperm.xlu1 %6511, %v5481_v43   ;;  %v13968_v43 = vld [vmem:[#allocation38_spill] sm:$0xff] }
 0x6ea   :  { %6514 = vset.pattern.permute.xlu1 %v13964_v33 }
 0x6eb   :  { %5484 = vperm.xlu1 %6514, %v5480_v18  }
 0x6ef   :  { %6515 = vset.pattern.permute.xlu1 %v13963_v20 }
 0x6f0   :  { %5493 = vperm.xlu1 %6515, %v5480_v18   ;;  %v13969_v18 = vld [vmem:[#allocation37_spill] sm:$0xff] }
 0x6f4   :  { %6516 = vset.pattern.permute.xlu1 %v13964_v33 }
 0x6f5   :  { %5705 = vperm.xlu1 %6516, %v5697_v15  }
 0x6f9   :  { %6518 = vset.pattern.permute.xlu1 %v13963_v20 }
 0x6fa   :  { %5713 = vperm.xlu1 %6518, %v5697_v15  }
 0x6fe   :  { %6519 = vset.pattern.permute.xlu1 %v13965_v11 }
 0x6ff   :  { %5915 = vperm.xlu1 %6519, %v11987_v46  }
 0x736   :  { %v4643_v34 = vpop.permute.xlu1 %4642 }
 0x737   :  { %v4647_v47 = vpop.permute.xlu0 %4646  ;;  %v4676_v37 = vmul.f32 %v4643_v34, %v13966_v59  ;;  %v4675_v13 = vmul.f32 %v4643_v34, %v13968_v43 }
 0x73b   :  { %v4651_v55 = vpop.permute.xlu1 %4650 }
 0x73c   :  { %v4690_v23 = vpop.permute.xlu0 %4689  ;;  %v4674_v22 = vmul.f32 %v4651_v55, %v13967_v25 }
 0x73d   :  { %v4722_v26 = vmul.f32 %v4690_v23, %v11819_v58  ;;  %v4723_v33 = vmul.f32 %v4690_v23, %v11823_v44  ;;  %v4669_v23 = vmul.f32 %v4647_v47, %v11735_v56 }
 0x73f   :  { %v4698_v16 = vpop.permute.xlu1 %4697 }
 0x740   :  { %v4638_v49 = vpop.permute.xlu0 %4637  ;;  %v4720_v38 = vmul.f32 %v4698_v16, %v13927_v45  ;;  %v4721_v44 = vmul.f32 %v4698_v16, %v13928_v27  ;;  %v4673_v45 = vmul.f32 %v4651_v55, %v13969_v18  ;;  %v4677_v16 = vld [vmem:[%s12342_s6] sm:$0xff] }
 0x741   :  { %v4672_v53 = vmul.f32 %v4638_v49, %v11692_v8  ;;  %v4671_v52 = vmul.f32 %v4638_v49, %v11685_v12  ;;  %v4670_v12 = vmul.f32 %v4647_v47, %v11743_v32 }
 0x742   :  { %v6335_v32 = vpack.c.bf16 %v4673_v45, %v4669_v23  ;;  %v13972_v23 = vld [vmem:[#allocation105_spill] sm:$0xff] }
 0x743   :  { %v6337_v7 = vpack.c.bf16 %v4676_v37, %v4672_v53  ;;  %v6339_v15 = vpack.c.bf16 %v4675_v13, %v4671_v52 }
 0x744   :  { %v4685_v3 = vpop.permute.xlu1 %4684  ;;  %v5058_v34 = vpop.permute.xlu0 %5057 }
 0x745   :  { %v4718_v20 = vmul.f32 %v4685_v3, %v11808_v35  ;;  %v4719_v60 = vmul.f32 %v4685_v3, %v11811_v14  ;;  %v6152_v14 = vld [vmem:[%s12342_s6 + $0x10] sm:$0xff]  ;;  %v5090_v56 = vmul.f32 %v5058_v34, %v11850_v19  ;;  %v5091_v47 = vmul.f32 %v5058_v34, %v11854_v0  ;;  %v4678_v19 = vld [vmem:[%s12342_s6 + $0x8] sm:$0xff] }
 0x747   :  { %v6329_v46 = vpack.c.bf16 %v4723_v33, %v4719_v60  ;;  %v6331_v63 = vpack.c.bf16 %v4722_v26, %v4718_v20 }
 0x749   :  { %6330 = vmatprep.subr.bf16.mxu1 %v6329_v46  ;;  %v4694_v58 = vpop.permute.xlu1 %4693  ;;  %v6162_v46 = vld [vmem:[%s12342_s6 + $0x20] sm:$0xff] }
 0x74a   :  { %v4716_v8 = vmul.f32 %v4694_v58, %v11789_v36  ;;  %v4717_v35 = vmul.f32 %v4694_v58, %v11796_v54  ;;  %6332 = vmatpush1.bf16.msra.mxu1 %v6331_v63  ;;  %v6333_v36 = vpack.c.bf16 %v4674_v22, %v4670_v12  ;;  %v6153_v54 = vld [vmem:[%s12342_s6 + $0x18] sm:$0xff] }
 0x74b   :  { %6338 = vmatprep.subr.bf16.mxu1 %v6337_v7 }
 0x74c   :  { %v6325_v50 = vpack.c.bf16 %v4721_v44, %v4717_v35  ;;  %v6327_v11 = vpack.c.bf16 %v4720_v38, %v4716_v8  ;;  %v6168_v38 = vld [vmem:[%s12342_s6 + $0x30] sm:$0xff] }
 0x74d   :  { %v5066_v27 = vpop.permute.xlu1 %5065  ;;  %6156 = vmatmul.mubr.msk.f32.vlgmr.msra.gmra.mrb[36].mxu1 %vm80_vm0, %v6152_v14 }
 0x74e   :  { %6326 = vmatprep.subr.bf16.mxu0 %v6325_v50  ;;  %6340 = vmatpush1.bf16.msra.mxu1 %v6339_v15  ;;  %v5089_v53 = vmul.f32 %v5066_v27, %v11842_v57 }
 0x74f   :  { %6328 = vmatpush1.bf16.msra.mxu0 %v6327_v11  ;;  %4880 = vmatprep.mubr.f32.mxu1 %v13961_v62 }
 0x750   :  { %6334 = vmatprep.subr.bf16.mxu0 %v6333_v36 }
 0x751   :  { %6157 = vmatmul.mubr.msk.f32.gmra.mrb[38].mxu1 %vm80_vm0, %v6153_v54 }
 0x752   :  { %v5053_v55 = vpop.permute.xlu1 %5052  ;;  %6154 = vmatmul.mubr.msk.f32.vlgmr.msra.gmra.mrb[26].mxu0 %vm80_vm0, %v6152_v14  ;;  %5034 = vmatprep.mubr.f32.mxu1 %v13961_v62 }
 0x753   :  { %v5086_v49 = vmul.f32 %v5053_v55, %v11870_v5  ;;  %v5087_v26 = vmul.f32 %v5053_v55, %v11873_v1  ;;  %6336 = vmatpush1.bf16.msra.mxu0 %v6335_v32  ;;  %4803 = vmatprep.mubr.f32.mxu0 %v13961_v62  ;;  %v5269_v5 = vpop.permute.xlu0 %5268  ;;  %v5088_v1 = vmul.f32 %v5066_v27, %v11838_v9  ;;  %v13973_v32 = vld [vmem:[#allocation71_spill] sm:$0xff] }
 0x754   :  { %v5302_v9 = vmul.f32 %v5269_v5, %v11907_v17  ;;  %v6163_v17 = vld [vmem:[%s12342_s6 + $0x28] sm:$0xff] }
 0x755   :  { %v6345_v3 = vpack.c.bf16 %v5091_v47, %v5087_v26  ;;  %v6347_v33 = vpack.c.bf16 %v5090_v56, %v5086_v49  ;;  %6160 = vmatmul.mubr.msk.f32.vlgmr.msra.gmra.mrb[36].mxu1 %vm80_vm0, %v4677_v16  ;;  %v13974_v26 = vld [vmem:[#allocation224_spill] sm:$0xff] }
 0x756   :  { %6155 = vmatmul.mubr.msk.f32.gmra.mrb[28].mxu0 %vm80_vm0, %v6153_v54  ;;  %5040 = vmatprep.mubr.f32.mxu1 %v13961_v62 }
 0x757   :  { %6346 = vmatprep.subr.bf16.mxu1 %v6345_v3  ;;  %v5062_v0 = vpop.permute.xlu1 %5061  ;;  %4957 = vmatprep.mubr.f32.mxu0 %v13961_v62  ;;  %v5278_v25 = vpop.permute.xlu0 %5277 }
 0x758   :  { %v5084_v20 = vmul.f32 %v5062_v0, %v11861_v39  ;;  %v5085_v60 = vmul.f32 %v5062_v0, %v11864_v30  ;;  %6348 = vmatpush1.bf16.msra.mxu1 %v6347_v33  ;;  %v5303_v39 = vmul.f32 %v5269_v5, %v11911_v4  ;;  %v5301_v4 = vmul.f32 %v5278_v25, %v11894_v2  ;;  %v13975_v33 = vld [vmem:[#allocation82_spill] sm:$0xff]  ;;  %v13976_v0 = vld [vmem:[#allocation179_spill] sm:$0xff] }
 0x759   :  { %6161 = vmatmul.mubr.msk.f32.gmra.mrb[38].mxu1 %vm80_vm0, %v4678_v19 }
 0x75a   :  { %v6341_v59 = vpack.c.bf16 %v5089_v53, %v5085_v60  ;;  %v6343_v37 = vpack.c.bf16 %v5088_v1, %v5084_v20  ;;  %6158 = vmatmul.mubr.msk.f32.vlgmr.msra.gmra.mrb[26].mxu0 %vm80_vm0, %v4677_v16  ;;  %5242 = vmatprep.mubr.f32.mxu1 %v13961_v62  ;;  %v13977_v1 = vld [vmem:[#allocation47_spill] sm:$0xff]  ;;  %v6180_v20 = vld [vmem:[%s12342_s6 + $0x50] sm:$0xff] }
 0x75b   :  { %4963 = vmatprep.mubr.f32.mxu0 %v13961_v62 }
 0x75c   :  { %6342 = vmatprep.subr.bf16.mxu0 %v6341_v59  ;;  %v5274_v57 = vpop.permute.xlu1 %5273 }
 0x75d   :  { %v5306_v30 = vmul.f32 %v5274_v57, %v11897_v51  ;;  %v5307_v63 = vmul.f32 %v5274_v57, %v11901_v21  ;;  %6344 = vmatpush1.bf16.msra.mxu0 %v6343_v37  ;;  %6166 = vmatmul.mubr.msk.f32.vlgmr.msra.gmra.mrb[36].mxu1 %vm80_vm0, %v6162_v46  ;;  %v5300_v51 = vmul.f32 %v5278_v25, %v11880_v31  ;;  %v6181_v37 = vld [vmem:[%s12342_s6 + $0x58] sm:$0xff]  ;;  %v5933_v57 = vld [vmem:[%s12336_s0 + $0x10] sm:$0xff] }
 0x75e   :  { %6159 = vmatmul.mubr.msk.f32.gmra.mrb[28].mxu0 %vm80_vm0, %v4678_v19  ;;  %5248 = vmatprep.mubr.f32.mxu1 %v13961_v62 }
 0x75f   :  { %v6353_v22 = vpack.c.bf16 %v5307_v63, %v5303_v39  ;;  %v6355_v52 = vpack.c.bf16 %v5306_v30, %v5302_v9  ;;  %5165 = vmatprep.mubr.f32.mxu0 %v13961_v62  ;;  %v5934_v63 = vld [vmem:[%s12336_s0 + $0x18] sm:$0xff] }
 0x761   :  { %6354 = vmatprep.subr.bf16.mxu1 %v6353_v22  ;;  %v5282_v21 = vpop.permute.xlu1 %5281  ;;  %6167 = vmatmul.mubr.msk.f32.gmra.mrb[38].mxu1 %vm80_vm0, %v6163_v17 }
 0x762   :  { %v5304_v7 = vmul.f32 %v5282_v21, %v11876_v40  ;;  %v5305_v58 = vmul.f32 %v5282_v21, %v11883_v41  ;;  %6356 = vmatpush1.bf16.msra.mxu1 %v6355_v52  ;;  %6164 = vmatmul.mubr.msk.f32.vlgmr.msra.gmra.mrb[26].mxu0 %vm80_vm0, %v6162_v46  ;;  %v6169_v40 = vld [vmem:[%s12342_s6 + $0x38] sm:$0xff]  ;;  %v5490_v41 = vpop.permute.xlu0 %5489 }
 0x763   :  { %5458 = vmatprep.mubr.f32.mxu1 %v13961_v62  ;;  %5171 = vmatprep.mubr.f32.mxu0 %v13961_v62  ;;  %v5522_v35 = vmul.f32 %v5490_v41, %v11935_v24  ;;  %v5523_v14 = vmul.f32 %v5490_v41, %v11938_v42 }
 0x764   :  { %v6349_v31 = vpack.c.bf16 %v5305_v58, %v5301_v4  ;;  %v6351_v44 = vpack.c.bf16 %v5304_v7, %v5300_v51  ;;  %v5931_v7 = vld [vmem:[%s12336_s0] sm:$0xff] }
 0x765   :  { %v5498_v8 = vpop.permute.xlu1 %5497  ;;  %6172 = vmatmul.mubr.msk.f32.vlgmr.msra.gmra.mrb[36].mxu1 %vm80_vm0, %v6168_v38 }
 0x766   :  { %6350 = vmatprep.subr.bf16.mxu0 %v6349_v31  ;;  %6165 = vmatmul.mubr.msk.f32.gmra.mrb[28].mxu0 %vm80_vm0, %v6163_v17  ;;  %v5520_v18 = vmul.f32 %v5498_v8, %v11917_v10  ;;  %v5521_v24 = vmul.f32 %v5498_v8, %v11921_v48  ;;  %v5701_v45 = vpop.permute.xlu0 %5700  ;;  %v6175_v10 = vld [vmem:[%s12342_s6 + $0x48] sm:$0xff]  ;;  %v13970_v48 = vld [vmem:[#allocation74_spill] sm:$0xff] }
 0x767   :  { %6352 = vmatpush1.bf16.msra.mxu0 %v6351_v44  ;;  %5464 = vmatprep.mubr.f32.mxu1 %v13961_v62 }
 0x768   :  { %5381 = vmatprep.mubr.f32.mxu0 %v13961_v62 }
 0x769   :  { %6173 = vmatmul.mubr.msk.f32.gmra.mrb[38].mxu1 %vm80_vm0, %v6169_v40 }
 0x76a   :  { %v5485_v2 = vpop.permute.xlu1 %5484  ;;  %6170 = vmatmul.mubr.msk.f32.vlgmr.msra.gmra.mrb[26].mxu0 %vm80_vm0, %v6168_v38  ;;  %5674 = vmatprep.mubr.f32.mxu1 %v13961_v62  ;;  %v5710_v16 = vpop.permute.xlu0 %5709  ;;  %v5938_v38 = vld [vmem:[%s12336_s0 + $0x38] sm:$0xff] }
 0x76b   :  { %v5518_v43 = vmul.f32 %v5485_v2, %v11946_v28  ;;  %v5519_v13 = vmul.f32 %v5485_v2, %v11954_v61  ;;  %5387 = vmatprep.mubr.f32.mxu0 %v13961_v62  ;;  %v6174_v61 = vld [vmem:[%s12342_s6 + $0x40] sm:$0xff]  ;;  %v5732_v3 = vmul.f32 %v5710_v16, %v13974_v26  ;;  %v5733_v19 = vmul.f32 %v5710_v16, %v13975_v33 }
 0x76d   :  { %v6361_v12 = vpack.c.bf16 %v5523_v14, %v5519_v13  ;;  %v6363_v50 = vpack.c.bf16 %v5522_v35, %v5518_v43 }
 0x76e   :  { %6171 = vmatmul.mubr.msk.f32.gmra.mrb[28].mxu0 %vm80_vm0, %v6169_v40  ;;  %v5921_v17 = vpop.permute.xlu0 %5920  ;;  %v5932_v40 = vld [vmem:[%s12336_s0 + $0x8] sm:$0xff] }
 0x76f   :  { %6362 = vmatprep.subr.bf16.mxu1 %v6361_v12  ;;  %v5494_v11 = vpop.permute.xlu1 %5493  ;;  %5597 = vmatprep.mubr.f32.mxu0 %v13961_v62  ;;  %v5935_v12 = vld [vmem:[%s12336_s0 + $0x20] sm:$0xff] }
 0x770   :  { %v5516_v42 = vmul.f32 %v5494_v11, %v11926_v29  ;;  %v5517_v28 = vmul.f32 %v5494_v11, %v11929_v6  ;;  %6364 = vmatpush1.bf16.msra.mxu1 %v6363_v50  ;;  %v5734_v29 = vmul.f32 %v5701_v45, %v13970_v48  ;;  %v13971_v6 = vld [vmem:[#allocation80_spill] sm:$0xff] }
 0x771   :  { %v5735_v54 = vmul.f32 %v5701_v45, %v13971_v6 }
 0x772   :  { %v6357_v15 = vpack.c.bf16 %v5521_v24, %v5517_v28  ;;  %v6359_v27 = vpack.c.bf16 %v5520_v18, %v5516_v42  ;;  %v5936_v18 = vld [vmem:[%s12336_s0 + $0x28] sm:$0xff] }
 0x773   :  { %6178 = vmatmul.mubr.msk.f32.vlgmr.msra.gmra.mrb[36].mxu1 %vm80_vm0, %v6174_v61 }
 0x774   :  { %6358 = vmatprep.subr.bf16.mxu0 %v6357_v15  ;;  %v5706_v36 = vpop.permute.xlu1 %5705  ;;  %5680 = vmatprep.mubr.f32.mxu1 %v13961_v62 }
 0x775   :  { %v5738_v34 = vmul.f32 %v5706_v36, %v13972_v23  ;;  %v5739_v55 = vmul.f32 %v5706_v36, %v13973_v32  ;;  %6360 = vmatpush1.bf16.msra.mxu0 %v6359_v27 }
 0x777   :  { %v6369_v56 = vpack.c.bf16 %v5739_v55, %v5735_v54  ;;  %v6371_v47 = vpack.c.bf16 %v5738_v34, %v5734_v29  ;;  %6179 = vmatmul.mubr.msk.f32.gmra.mrb[38].mxu1 %vm80_vm0, %v6175_v10 }
 0x778   :  { %6176 = vmatmul.mubr.msk.f32.vlgmr.msra.gmra.mrb[26].mxu0 %vm80_vm0, %v6174_v61  ;;  %5890 = vmatprep.mubr.f32.mxu1 %v13961_v62 }
 0x779   :  { %6370 = vmatprep.subr.bf16.mxu1 %v6369_v56  ;;  %v5714_v49 = vpop.permute.xlu1 %5713  ;;  %5603 = vmatprep.mubr.f32.mxu0 %v13961_v62 }
 0x77a   :  { %v5736_v5 = vmul.f32 %v5714_v49, %v13976_v0  ;;  %v5737_v53 = vmul.f32 %v5714_v49, %v13977_v1  ;;  %6372 = vmatpush1.bf16.msra.mxu1 %v6371_v47 }
 0x77c   :  { %v6365_v60 = vpack.c.bf16 %v5737_v53, %v5733_v19  ;;  %v6367_v59 = vpack.c.bf16 %v5736_v5, %v5732_v3  ;;  %6177 = vmatmul.mubr.msk.f32.gmra.mrb[28].mxu0 %vm80_vm0, %v6175_v10 }
 0x77d   :  { %6184 = vmatmul.mubr.msk.f32.vlgmr.msra.gmra.mrb[36].mxu1 %vm80_vm0, %v6180_v20  ;;  %5813 = vmatprep.mubr.f32.mxu0 %v13961_v62 }
 0x77e   :  { %6366 = vmatprep.subr.bf16.mxu0 %v6365_v60  ;;  %5896 = vmatprep.mubr.f32.mxu1 %v13961_v62  ;;  %v5916_v46 = vpop.permute.xlu1 %5915 }
 0x77f   :  { %6368 = vmatpush1.bf16.msra.mxu0 %v6367_v59 }
 0x781   :  { %6185 = vmatmul.mubr.msk.f32.gmra.mrb[38].mxu1 %vm80_vm0, %v6181_v37 }
 0x782   :  { %6182 = vmatmul.mubr.msk.f32.vlgmr.msra.gmra.mrb[26].mxu0 %vm80_vm0, %v6180_v20 }
 0x783   :  { %5819 = vmatprep.mubr.f32.mxu0 %v13961_v62  ;;  %v5937_v62 = vld [vmem:[%s12336_s0 + $0x30] sm:$0xff] }
 0x786   :  { %6183 = vmatmul.mubr.msk.f32.gmra.mrb[28].mxu0 %vm80_vm0, %v6181_v37 }
 0x850   :  { %v5892_v9 = vpop.f32.mrb[36].mxu1 }
 0x851   :  { %v5925_v39 = vadd.f32 %v5916_v46, %v5892_v9  ;;  %v5894_v30 = vpop.f32.mrb[37].mxu1 }
 0x852   :  { %v5926_v25 = vadd.f32 %v5916_v46, %v5894_v30 }
 0x853   :  { %v5941_v22 = vadd.f32 %v5933_v57, %v5925_v39 }
 0x854   :  { %v5942_v52 = vadd.f32 %v5934_v63, %v5926_v25  ;;  %v5898_v51 = vpop.f32.mrb[38].mxu1 }
 0x855   :  { %5949 = vst [vmem:[#allocation4 + $0x10] sm:$0xff] %v5941_v22  ;;  %v5929_v21 = vadd.f32 %v5921_v17, %v5898_v51  ;;  %v5815_v4 = vpop.f32.mrb[26].mxu0  ;;  %v5900_v58 = vpop.f32.mrb[39].mxu1 }
 0x856   :  { %5950 = vst [vmem:[#allocation4 + $0x18] sm:$0xff] %v5942_v52  ;;  %v5923_v31 = vadd.f32 %v5916_v46, %v5815_v4  ;;  %v5930_v44 = vadd.f32 %v5921_v17, %v5900_v58  ;;  %v5817_v8 = vpop.f32.mrb[27].mxu0 }
 0x857   :  { %v5945_v41 = vadd.f32 %v5937_v62, %v5929_v21  ;;  %v5924_v2 = vadd.f32 %v5916_v46, %v5817_v8 }
 0x858   :  { %v5939_v35 = vadd.f32 %v5931_v7, %v5923_v31  ;;  %v5946_v14 = vadd.f32 %v5938_v38, %v5930_v44 }
 0x859   :  { %5953 = vst [vmem:[#allocation4 + $0x30] sm:$0xff] %v5945_v41  ;;  %v5940_v43 = vadd.f32 %v5932_v40, %v5924_v2  ;;  %v5821_v13 = vpop.f32.mrb[28].mxu0 }
 0x85a   :  { %5947 = vst [vmem:[#allocation4] sm:$0xff] %v5939_v35  ;;  %5954 = vst [vmem:[#allocation4 + $0x38] sm:$0xff] %v5946_v14  ;;  %v5927_v50 = vadd.f32 %v5921_v17, %v5821_v13  ;;  %v5823_v11 = vpop.f32.mrb[29].mxu0 }
 0x85b   :  { %5948 = vst [vmem:[#allocation4 + $0x8] sm:$0xff] %v5940_v43  ;;  %v5928_v24 = vadd.f32 %v5921_v17, %v5823_v11 }
 0x85c   :  { %v5943_v42 = vadd.f32 %v5935_v12, %v5927_v50 }
 0x85d   :  { %v5944_v28 = vadd.f32 %v5936_v18, %v5928_v24 }
 0x85e   :  { %5951 = vst [vmem:[#allocation4 + $0x20] sm:$0xff] %v5943_v42 }
 0x85f   :  { %5952 = vst [vmem:[#allocation4 + $0x28] sm:$0xff] %v5944_v28 }
 0x860   :  { %6999 = shalt.err (!%p6996_p4)
}
 0x861   :  { %s7000_s0 = scalar_lea.hbm %s12343_s7, 1024 }
 0x862   :  { %p7001_p5 = scmp.ne.s32.totalorder %s12343_s7, %s7000_s0  ;;  %p7004_p6 = scmp.lt.u32.totalorder %s7000_s0, %s12343_s7 }
 0x864   :  { %p7006_p7 = pnand %p7004_p6, %p7001_p5 }
 0x866   :  { %7009 = shalt.err (!%p7006_p7)
}
 0x867   :  { %s7029_s27 = smov 512   ;;  %s7030_s28 = smov 32  }
 0x868   :  { %5966 = dma.vmem_to_hbm [thread:$0]  %s5961_s21, 1024, %s12343_s7, [#allocation5], %s7029_s27, %s7029_s27, %s7030_s28  }
 0x869   :  { %7010 = dma.done.wait [#allocation5], 1024  }
 0x86a   :  { %7011 = vsyncadd [#allocation5], 4294966272 }
 0x86b   :  { %5970 = vsyncpa [#allocation5], 1 }

</bundles_post_ra>
